<compile_context>
chip_gen: v7x
topology: tpu7x:2x2x1
jax: 0.10.0
libtpu: 0.0.40
codegen_flags: <defaults>
</compile_context>

<pallas_src>
import math
from functools import partial

import jax
import jax.numpy as jnp
from jax import lax
from jax.experimental import pallas as pl
from jax.experimental.pallas import tpu as pltpu


def _largest_divisor(n, cap):
    g = min(n, cap)
    while n % g:
        g -= 1
    return g


# ---------------------------------------------------------------------------
# Kernel 1: sparsity measure M = max_j(Q.K_sample_j) - sum_j(Q.K_sample_j)/L_K
# Only the sampled scores are computed (no dense QK^T).  One grid step handles
# G heads; the U_part sampled key sets are streamed with a short static loop.
# ---------------------------------------------------------------------------
def _prob_m_kernel(q_ref, ks_ref, m_ref, *, L_K, U_part):
    q = q_ref[...].astype(jnp.float32)                       # (G, L_Q, D)
    G, L_Q, _ = q.shape
    run_max = jnp.full((G, L_Q), jnp.finfo(jnp.float32).min, jnp.float32)
    run_sum = jnp.zeros((G, L_Q), jnp.float32)
    for j in range(U_part):                                  # static, short (factor*ceil(log L))
        kj = ks_ref[:, j, :, :].astype(jnp.float32)          # (G, L_Q, D) sampled keys for slot j
        s = jnp.sum(q * kj, axis=-1)                         # (G, L_Q)
        run_max = jnp.maximum(run_max, s)
        run_sum = run_sum + s
    m_ref[:, 0, :] = run_max - run_sum * (1.0 / float(L_K))  # lane-dense store


# ---------------------------------------------------------------------------
# Kernel 2: scores = Q_reduce @ K^T * scale, ProbMask (causal on selected rows),
# softmax, attn @ V, then blend the updated rows into the precomputed cumsum(V)
# context.  Mask and scatter one-hot are built in-kernel from int32 indices.
# ---------------------------------------------------------------------------
def _update_kernel(qr_ref, k_ref, v_ref, idx_ref, ctx0_ref, ctx_ref, *, scale):
    qr = qr_ref[...]                                         # (G, u_pad, D)  bf16
    k = k_ref[...]                                           # (G, L_K, D)    bf16
    v = v_ref[...]                                           # (G, L_V, D)    bf16
    idx = idx_ref[...][:, 0, :]                              # (G, u_pad)     int32, -1 == padding
    G, L_Q, _ = ctx_ref.shape
    u_pad = idx.shape[-1]

    scores = jnp.einsum('gud,gkd->guk', qr, k,
                        preferred_element_type=jnp.float32) * scale
    k_pos = lax.broadcasted_iota(jnp.int32, scores.shape, 2)
    # ProbMask: allowed where k_pos <= query index (padded rows keep k=0 to stay finite)
    allow = k_pos <= jnp.maximum(idx, 0)[:, :, None]
    scores = jnp.where(allow, scores, -jnp.inf)

    m = jnp.max(scores, axis=-1, keepdims=True)
    e = jnp.exp(scores - m)
    denom = jnp.sum(e, axis=-1, keepdims=True)
    attn = e * pl.reciprocal(denom, approx=True)             # softmax(dim=-1)

    upd = jnp.einsum('guk,gkd->gud', attn.astype(v.dtype), v,
                     preferred_element_type=jnp.float32)     # (G, u_pad, D)

    # scatter updated rows into ctx0 = cumsum(V) via an in-kernel one-hot blend
    rows = lax.broadcasted_iota(jnp.int32, (G, L_Q, u_pad), 1)
    p = (rows == idx[:, None, :]).astype(jnp.float32)        # (G, L_Q, u_pad); -1 pads never match
    sel = jnp.sum(p, axis=-1, keepdims=True)                 # (G, L_Q, 1) 1.0 where row selected
    scattered = jnp.einsum('glu,gud->gld', p, upd,
                           preferred_element_type=jnp.float32)
    ctx_ref[...] = ctx0_ref[...] * (1.0 - sel) + scattered


# ---------------------------------------------------------------------------
# Wrapper: sampling, gathers, top-k and cumsum are cheap glue in plain JAX.
# ---------------------------------------------------------------------------
def prob_attention(queries, keys, values, *, factor=5, scale=None,
                   mask_flag=True, sample_key=None, block_heads=8):
    B, L_Q, H, D = queries.shape
    _, L_K, _, _ = keys.shape
    _, L_V, _, _ = values.shape
    assert mask_flag, "only the default mask_flag=True (causal) path is implemented"
    # TODO(synk): mask_flag=False mean-context branch not implemented.
    assert L_Q == L_V and L_K == L_V

    if sample_key is None:
        sample_key = jax.random.PRNGKey(1)
    out_dtype = queries.dtype

    BH = B * H
    q = jnp.transpose(queries, (0, 2, 1, 3)).reshape(BH, L_Q, D)
    k = jnp.transpose(keys, (0, 2, 1, 3)).reshape(BH, L_K, D)
    v = jnp.transpose(values, (0, 2, 1, 3)).reshape(BH, L_V, D)
    q_bf = q.astype(jnp.bfloat16)
    k_bf = k.astype(jnp.bfloat16)
    v_bf = v.astype(jnp.bfloat16)

    U_part = min(factor * int(math.ceil(math.log(L_K))), L_K)   # sample_k
    u = min(factor * int(math.ceil(math.log(L_Q))), L_Q)        # n_top

    # torch.randint(L_K, (L_Q, sample_k)) equivalent: one draw shared by all (B, H).
    idx_sample = jax.random.randint(sample_key, (L_Q, U_part), 0, L_K)
    # gather sampled keys: k_samp[bh, j, q, :] = K[bh, idx_sample[q, j], :]
    k_samp = jnp.take(k_bf, idx_sample.T, axis=1)               # (BH, U_part, L_Q, D)

    G = _largest_divisor(BH, block_heads)                       # heads per grid step
    cp = pltpu.CompilerParams(dimension_semantics=("parallel",),
                              vmem_limit_bytes=32 * 1024 * 1024)

    # --- kernel 1: sparsity measure M --------------------------------------
    M = pl.pallas_call(
        partial(_prob_m_kernel, L_K=L_K, U_part=U_part),
        out_shape=jax.ShapeDtypeStruct((BH, 1, L_Q), jnp.float32),
        grid=(BH // G,),
        in_specs=[
            pl.BlockSpec((G, L_Q, D), lambda i: (i, 0, 0)),
            pl.BlockSpec((G, U_part, L_Q, D), lambda i: (i, 0, 0, 0)),
        ],
        out_specs=pl.BlockSpec((G, 1, L_Q), lambda i: (i, 0, 0)),
        compiler_params=cp,
    )(q_bf, k_samp)
    M = M[:, 0, :]                                              # (BH, L_Q)

    # top-u query selection (small op, plain JAX like torch .topk)
    _, m_top = lax.top_k(M, u)                                  # (BH, u) int32

    # pad n_top to a multiple of 8 sublanes; padded slots marked -1 (inert)
    u_pad = ((u + 7) // 8) * 8
    m_top_pad = jnp.pad(m_top, ((0, 0), (0, u_pad - u)), constant_values=-1)
    gather_idx = jnp.maximum(m_top_pad, 0)
    q_red = jnp.take_along_axis(q_bf, gather_idx[:, :, None], axis=1)   # (BH, u_pad, D)

    # initial context = cumsum(V, axis=-2) (mask_flag=True branch), computed once by XLA
    ctx0 = jnp.cumsum(v.astype(jnp.float32), axis=1)            # (BH, L_V, D)

    sc = scale if scale is not None else 1.0 / math.sqrt(D)

    # --- kernel 2: masked softmax attention + context row update ------------
    ctx = pl.pallas_call(
        partial(_update_kernel, scale=sc),
        out_shape=jax.ShapeDtypeStruct((BH, L_Q, D), jnp.float32),
        grid=(BH // G,),
        in_specs=[
            pl.BlockSpec((G, u_pad, D), lambda i: (i, 0, 0)),
            pl.BlockSpec((G, L_K, D), lambda i: (i, 0, 0)),
            pl.BlockSpec((G, L_V, D), lambda i: (i, 0, 0)),
            pl.BlockSpec((G, 1, u_pad), lambda i: (i, 0, 0)),
            pl.BlockSpec((G, L_V, D), lambda i: (i, 0, 0)),
        ],
        out_specs=pl.BlockSpec((G, L_Q, D), lambda i: (i, 0, 0)),
        compiler_params=cp,
    )(q_red, k_bf, v_bf, m_top_pad.reshape(BH, 1, u_pad), ctx0)

    context = ctx.reshape(B, H, L_Q, D).astype(out_dtype)
    # output_attention=False -> attn is None
    # TODO(synk): output_attention=True dense (L_V, L_V) attention map not implemented.
    return context, None


if __name__ == "__main__":
    B, L, H, D = 2, 32, 4, 32          # L_Q = L_K = L_V = 32
    key = jax.random.PRNGKey(0)
    kq, kk, kv = jax.random.split(key, 3)
    queries = jax.random.normal(kq, (B, L, H, D), dtype=jnp.float32)
    keys = jax.random.normal(kk, (B, L, H, D), dtype=jnp.float32)
    values = jax.random.normal(kv, (B, L, H, D), dtype=jnp.float32)

    context, attn = prob_attention(queries, keys, values, factor=5, scale=None,
                                   mask_flag=True,
                                   sample_key=jax.random.PRNGKey(1))
    context = jax.block_until_ready(context)

    assert context.shape == (B, H, L, D)
    assert attn is None
    assert bool(jnp.all(jnp.isfinite(context)))
    print("KERNEL_OK")
</pallas_src>

<mosaic_0001>
module attributes {stable_mosaic.version = 11 : i64} {
  func.func @_prob_m_kernel(%arg0: i32, %arg1: memref<8x32x32xbf16, #tpu.memory_space<vmem>>, %arg2: memref<8x20x32x32xbf16, #tpu.memory_space<vmem>>, %arg3: memref<8x1x32xf32, #tpu.memory_space<vmem>>) attributes {dimension_semantics = [#tpu.dimension_semantics<parallel>], iteration_bounds = array<i64: 1>, scalar_prefetch = 0 : i64, scratch_operands = 0 : i64, tpu.core_type = #tpu.core_type<tc>, window_params = [{transform_indices = @transform_0, window_bounds = array<i64: 8, 32, 32>}, {transform_indices = @transform_1, window_bounds = array<i64: 8, 20, 32, 32>}, {transform_indices = @transform_2, window_bounds = array<i64: 8, 1, 32>}]} {
    %c0 = arith.constant 0 : index
    %c0_0 = arith.constant 0 : index
    %c0_1 = arith.constant 0 : index
    %0 = vector.load %arg1[%c0, %c0_0, %c0_1] : memref<8x32x32xbf16, #tpu.memory_space<vmem>>, vector<8x32x32xbf16>
    %1 = arith.extf %0 : vector<8x32x32xbf16> to vector<8x32x32xf32>
    %cst = arith.constant -3.40282347E+38 : f32
    %2 = vector.broadcast %cst : f32 to vector<8x32xf32>
    %cst_2 = arith.constant 0.000000e+00 : f32
    %3 = vector.broadcast %cst_2 : f32 to vector<8x32xf32>
    %c0_3 = arith.constant 0 : index
    %c0_4 = arith.constant 0 : index
    %c0_5 = arith.constant 0 : index
    %c0_6 = arith.constant 0 : index
    %4 = vector.load %arg2[%c0_3, %c0_4, %c0_5, %c0_6] : memref<8x20x32x32xbf16, #tpu.memory_space<vmem>>, vector<8x1x32x32xbf16>
    %5 = vector.shape_cast %4 : vector<8x1x32x32xbf16> to vector<8x32x32xbf16>
    %6 = arith.extf %5 : vector<8x32x32xbf16> to vector<8x32x32xf32>
    %7 = arith.mulf %1, %6 : vector<8x32x32xf32>
    %cst_7 = arith.constant dense<0.000000e+00> : vector<8x32xf32>
    %8 = vector.multi_reduction <add>, %7, %cst_7 [2] : vector<8x32x32xf32> to vector<8x32xf32>
    %9 = arith.maximumf %2, %8 : vector<8x32xf32>
    %10 = arith.addf %3, %8 : vector<8x32xf32>
    %c0_8 = arith.constant 0 : index
    %c1 = arith.constant 1 : index
    %c0_9 = arith.constant 0 : index
    %c0_10 = arith.constant 0 : index
    %11 = vector.load %arg2[%c0_8, %c1, %c0_9, %c0_10] : memref<8x20x32x32xbf16, #tpu.memory_space<vmem>>, vector<8x1x32x32xbf16>
    %12 = vector.shape_cast %11 : vector<8x1x32x32xbf16> to vector<8x32x32xbf16>
    %13 = arith.extf %12 : vector<8x32x32xbf16> to vector<8x32x32xf32>
    %14 = arith.mulf %1, %13 : vector<8x32x32xf32>
    %cst_11 = arith.constant dense<0.000000e+00> : vector<8x32xf32>
    %15 = vector.multi_reduction <add>, %14, %cst_11 [2] : vector<8x32x32xf32> to vector<8x32xf32>
    %16 = arith.maximumf %9, %15 : vector<8x32xf32>
    %17 = arith.addf %10, %15 : vector<8x32xf32>
    %c0_12 = arith.constant 0 : index
    %c2 = arith.constant 2 : index
    %c0_13 = arith.constant 0 : index
    %c0_14 = arith.constant 0 : index
    %18 = vector.load %arg2[%c0_12, %c2, %c0_13, %c0_14] : memref<8x20x32x32xbf16, #tpu.memory_space<vmem>>, vector<8x1x32x32xbf16>
    %19 = vector.shape_cast %18 : vector<8x1x32x32xbf16> to vector<8x32x32xbf16>
    %20 = arith.extf %19 : vector<8x32x32xbf16> to vector<8x32x32xf32>
    %21 = arith.mulf %1, %20 : vector<8x32x32xf32>
    %cst_15 = arith.constant dense<0.000000e+00> : vector<8x32xf32>
    %22 = vector.multi_reduction <add>, %21, %cst_15 [2] : vector<8x32x32xf32> to vector<8x32xf32>
    %23 = arith.maximumf %16, %22 : vector<8x32xf32>
    %24 = arith.addf %17, %22 : vector<8x32xf32>
    %c0_16 = arith.constant 0 : index
    %c3 = arith.constant 3 : index
    %c0_17 = arith.constant 0 : index
    %c0_18 = arith.constant 0 : index
    %25 = vector.load %arg2[%c0_16, %c3, %c0_17, %c0_18] : memref<8x20x32x32xbf16, #tpu.memory_space<vmem>>, vector<8x1x32x32xbf16>
    %26 = vector.shape_cast %25 : vector<8x1x32x32xbf16> to vector<8x32x32xbf16>
    %27 = arith.extf %26 : vector<8x32x32xbf16> to vector<8x32x32xf32>
    %28 = arith.mulf %1, %27 : vector<8x32x32xf32>
    %cst_19 = arith.constant dense<0.000000e+00> : vector<8x32xf32>
    %29 = vector.multi_reduction <add>, %28, %cst_19 [2] : vector<8x32x32xf32> to vector<8x32xf32>
    %30 = arith.maximumf %23, %29 : vector<8x32xf32>
    %31 = arith.addf %24, %29 : vector<8x32xf32>
    %c0_20 = arith.constant 0 : index
    %c4 = arith.constant 4 : index
    %c0_21 = arith.constant 0 : index
    %c0_22 = arith.constant 0 : index
    %32 = vector.load %arg2[%c0_20, %c4, %c0_21, %c0_22] : memref<8x20x32x32xbf16, #tpu.memory_space<vmem>>, vector<8x1x32x32xbf16>
    %33 = vector.shape_cast %32 : vector<8x1x32x32xbf16> to vector<8x32x32xbf16>
    %34 = arith.extf %33 : vector<8x32x32xbf16> to vector<8x32x32xf32>
    %35 = arith.mulf %1, %34 : vector<8x32x32xf32>
    %cst_23 = arith.constant dense<0.000000e+00> : vector<8x32xf32>
    %36 = vector.multi_reduction <add>, %35, %cst_23 [2] : vector<8x32x32xf32> to vector<8x32xf32>
    %37 = arith.maximumf %30, %36 : vector<8x32xf32>
    %38 = arith.addf %31, %36 : vector<8x32xf32>
    %c0_24 = arith.constant 0 : index
    %c5 = arith.constant 5 : index
    %c0_25 = arith.constant 0 : index
    %c0_26 = arith.constant 0 : index
    %39 = vector.load %arg2[%c0_24, %c5, %c0_25, %c0_26] : memref<8x20x32x32xbf16, #tpu.memory_space<vmem>>, vector<8x1x32x32xbf16>
    %40 = vector.shape_cast %39 : vector<8x1x32x32xbf16> to vector<8x32x32xbf16>
    %41 = arith.extf %40 : vector<8x32x32xbf16> to vector<8x32x32xf32>
    %42 = arith.mulf %1, %41 : vector<8x32x32xf32>
    %cst_27 = arith.constant dense<0.000000e+00> : vector<8x32xf32>
    %43 = vector.multi_reduction <add>, %42, %cst_27 [2] : vector<8x32x32xf32> to vector<8x32xf32>
    %44 = arith.maximumf %37, %43 : vector<8x32xf32>
    %45 = arith.addf %38, %43 : vector<8x32xf32>
    %c0_28 = arith.constant 0 : index
    %c6 = arith.constant 6 : index
    %c0_29 = arith.constant 0 : index
    %c0_30 = arith.constant 0 : index
    %46 = vector.load %arg2[%c0_28, %c6, %c0_29, %c0_30] : memref<8x20x32x32xbf16, #tpu.memory_space<vmem>>, vector<8x1x32x32xbf16>
    %47 = vector.shape_cast %46 : vector<8x1x32x32xbf16> to vector<8x32x32xbf16>
    %48 = arith.extf %47 : vector<8x32x32xbf16> to vector<8x32x32xf32>
    %49 = arith.mulf %1, %48 : vector<8x32x32xf32>
    %cst_31 = arith.constant dense<0.000000e+00> : vector<8x32xf32>
    %50 = vector.multi_reduction <add>, %49, %cst_31 [2] : vector<8x32x32xf32> to vector<8x32xf32>
    %51 = arith.maximumf %44, %50 : vector<8x32xf32>
    %52 = arith.addf %45, %50 : vector<8x32xf32>
    %c0_32 = arith.constant 0 : index
    %c7 = arith.constant 7 : index
    %c0_33 = arith.constant 0 : index
    %c0_34 = arith.constant 0 : index
    %53 = vector.load %arg2[%c0_32, %c7, %c0_33, %c0_34] : memref<8x20x32x32xbf16, #tpu.memory_space<vmem>>, vector<8x1x32x32xbf16>
    %54 = vector.shape_cast %53 : vector<8x1x32x32xbf16> to vector<8x32x32xbf16>
    %55 = arith.extf %54 : vector<8x32x32xbf16> to vector<8x32x32xf32>
    %56 = arith.mulf %1, %55 : vector<8x32x32xf32>
    %cst_35 = arith.constant dense<0.000000e+00> : vector<8x32xf32>
    %57 = vector.multi_reduction <add>, %56, %cst_35 [2] : vector<8x32x32xf32> to vector<8x32xf32>
    %58 = arith.maximumf %51, %57 : vector<8x32xf32>
    %59 = arith.addf %52, %57 : vector<8x32xf32>
    %c0_36 = arith.constant 0 : index
    %c8 = arith.constant 8 : index
    %c0_37 = arith.constant 0 : index
    %c0_38 = arith.constant 0 : index
    %60 = vector.load %arg2[%c0_36, %c8, %c0_37, %c0_38] : memref<8x20x32x32xbf16, #tpu.memory_space<vmem>>, vector<8x1x32x32xbf16>
    %61 = vector.shape_cast %60 : vector<8x1x32x32xbf16> to vector<8x32x32xbf16>
    %62 = arith.extf %61 : vector<8x32x32xbf16> to vector<8x32x32xf32>
    %63 = arith.mulf %1, %62 : vector<8x32x32xf32>
    %cst_39 = arith.constant dense<0.000000e+00> : vector<8x32xf32>
    %64 = vector.multi_reduction <add>, %63, %cst_39 [2] : vector<8x32x32xf32> to vector<8x32xf32>
    %65 = arith.maximumf %58, %64 : vector<8x32xf32>
    %66 = arith.addf %59, %64 : vector<8x32xf32>
    %c0_40 = arith.constant 0 : index
    %c9 = arith.constant 9 : index
    %c0_41 = arith.constant 0 : index
    %c0_42 = arith.constant 0 : index
    %67 = vector.load %arg2[%c0_40, %c9, %c0_41, %c0_42] : memref<8x20x32x32xbf16, #tpu.memory_space<vmem>>, vector<8x1x32x32xbf16>
    %68 = vector.shape_cast %67 : vector<8x1x32x32xbf16> to vector<8x32x32xbf16>
    %69 = arith.extf %68 : vector<8x32x32xbf16> to vector<8x32x32xf32>
    %70 = arith.mulf %1, %69 : vector<8x32x32xf32>
    %cst_43 = arith.constant dense<0.000000e+00> : vector<8x32xf32>
    %71 = vector.multi_reduction <add>, %70, %cst_43 [2] : vector<8x32x32xf32> to vector<8x32xf32>
    %72 = arith.maximumf %65, %71 : vector<8x32xf32>
    %73 = arith.addf %66, %71 : vector<8x32xf32>
    %c0_44 = arith.constant 0 : index
    %c10 = arith.constant 10 : index
    %c0_45 = arith.constant 0 : index
    %c0_46 = arith.constant 0 : index
    %74 = vector.load %arg2[%c0_44, %c10, %c0_45, %c0_46] : memref<8x20x32x32xbf16, #tpu.memory_space<vmem>>, vector<8x1x32x32xbf16>
    %75 = vector.shape_cast %74 : vector<8x1x32x32xbf16> to vector<8x32x32xbf16>
    %76 = arith.extf %75 : vector<8x32x32xbf16> to vector<8x32x32xf32>
    %77 = arith.mulf %1, %76 : vector<8x32x32xf32>
    %cst_47 = arith.constant dense<0.000000e+00> : vector<8x32xf32>
    %78 = vector.multi_reduction <add>, %77, %cst_47 [2] : vector<8x32x32xf32> to vector<8x32xf32>
    %79 = arith.maximumf %72, %78 : vector<8x32xf32>
    %80 = arith.addf %73, %78 : vector<8x32xf32>
    %c0_48 = arith.constant 0 : index
    %c11 = arith.constant 11 : index
    %c0_49 = arith.constant 0 : index
    %c0_50 = arith.constant 0 : index
    %81 = vector.load %arg2[%c0_48, %c11, %c0_49, %c0_50] : memref<8x20x32x32xbf16, #tpu.memory_space<vmem>>, vector<8x1x32x32xbf16>
    %82 = vector.shape_cast %81 : vector<8x1x32x32xbf16> to vector<8x32x32xbf16>
    %83 = arith.extf %82 : vector<8x32x32xbf16> to vector<8x32x32xf32>
    %84 = arith.mulf %1, %83 : vector<8x32x32xf32>
    %cst_51 = arith.constant dense<0.000000e+00> : vector<8x32xf32>
    %85 = vector.multi_reduction <add>, %84, %cst_51 [2] : vector<8x32x32xf32> to vector<8x32xf32>
    %86 = arith.maximumf %79, %85 : vector<8x32xf32>
    %87 = arith.addf %80, %85 : vector<8x32xf32>
    %c0_52 = arith.constant 0 : index
    %c12 = arith.constant 12 : index
    %c0_53 = arith.constant 0 : index
    %c0_54 = arith.constant 0 : index
    %88 = vector.load %arg2[%c0_52, %c12, %c0_53, %c0_54] : memref<8x20x32x32xbf16, #tpu.memory_space<vmem>>, vector<8x1x32x32xbf16>
    %89 = vector.shape_cast %88 : vector<8x1x32x32xbf16> to vector<8x32x32xbf16>
    %90 = arith.extf %89 : vector<8x32x32xbf16> to vector<8x32x32xf32>
    %91 = arith.mulf %1, %90 : vector<8x32x32xf32>
    %cst_55 = arith.constant dense<0.000000e+00> : vector<8x32xf32>
    %92 = vector.multi_reduction <add>, %91, %cst_55 [2] : vector<8x32x32xf32> to vector<8x32xf32>
    %93 = arith.maximumf %86, %92 : vector<8x32xf32>
    %94 = arith.addf %87, %92 : vector<8x32xf32>
    %c0_56 = arith.constant 0 : index
    %c13 = arith.constant 13 : index
    %c0_57 = arith.constant 0 : index
    %c0_58 = arith.constant 0 : index
    %95 = vector.load %arg2[%c0_56, %c13, %c0_57, %c0_58] : memref<8x20x32x32xbf16, #tpu.memory_space<vmem>>, vector<8x1x32x32xbf16>
    %96 = vector.shape_cast %95 : vector<8x1x32x32xbf16> to vector<8x32x32xbf16>
    %97 = arith.extf %96 : vector<8x32x32xbf16> to vector<8x32x32xf32>
    %98 = arith.mulf %1, %97 : vector<8x32x32xf32>
    %cst_59 = arith.constant dense<0.000000e+00> : vector<8x32xf32>
    %99 = vector.multi_reduction <add>, %98, %cst_59 [2] : vector<8x32x32xf32> to vector<8x32xf32>
    %100 = arith.maximumf %93, %99 : vector<8x32xf32>
    %101 = arith.addf %94, %99 : vector<8x32xf32>
    %c0_60 = arith.constant 0 : index
    %c14 = arith.constant 14 : index
    %c0_61 = arith.constant 0 : index
    %c0_62 = arith.constant 0 : index
    %102 = vector.load %arg2[%c0_60, %c14, %c0_61, %c0_62] : memref<8x20x32x32xbf16, #tpu.memory_space<vmem>>, vector<8x1x32x32xbf16>
    %103 = vector.shape_cast %102 : vector<8x1x32x32xbf16> to vector<8x32x32xbf16>
    %104 = arith.extf %103 : vector<8x32x32xbf16> to vector<8x32x32xf32>
    %105 = arith.mulf %1, %104 : vector<8x32x32xf32>
    %cst_63 = arith.constant dense<0.000000e+00> : vector<8x32xf32>
    %106 = vector.multi_reduction <add>, %105, %cst_63 [2] : vector<8x32x32xf32> to vector<8x32xf32>
    %107 = arith.maximumf %100, %106 : vector<8x32xf32>
    %108 = arith.addf %101, %106 : vector<8x32xf32>
    %c0_64 = arith.constant 0 : index
    %c15 = arith.constant 15 : index
    %c0_65 = arith.constant 0 : index
    %c0_66 = arith.constant 0 : index
    %109 = vector.load %arg2[%c0_64, %c15, %c0_65, %c0_66] : memref<8x20x32x32xbf16, #tpu.memory_space<vmem>>, vector<8x1x32x32xbf16>
    %110 = vector.shape_cast %109 : vector<8x1x32x32xbf16> to vector<8x32x32xbf16>
    %111 = arith.extf %110 : vector<8x32x32xbf16> to vector<8x32x32xf32>
    %112 = arith.mulf %1, %111 : vector<8x32x32xf32>
    %cst_67 = arith.constant dense<0.000000e+00> : vector<8x32xf32>
    %113 = vector.multi_reduction <add>, %112, %cst_67 [2] : vector<8x32x32xf32> to vector<8x32xf32>
    %114 = arith.maximumf %107, %113 : vector<8x32xf32>
    %115 = arith.addf %108, %113 : vector<8x32xf32>
    %c0_68 = arith.constant 0 : index
    %c16 = arith.constant 16 : index
    %c0_69 = arith.constant 0 : index
    %c0_70 = arith.constant 0 : index
    %116 = vector.load %arg2[%c0_68, %c16, %c0_69, %c0_70] : memref<8x20x32x32xbf16, #tpu.memory_space<vmem>>, vector<8x1x32x32xbf16>
    %117 = vector.shape_cast %116 : vector<8x1x32x32xbf16> to vector<8x32x32xbf16>
    %118 = arith.extf %117 : vector<8x32x32xbf16> to vector<8x32x32xf32>
    %119 = arith.mulf %1, %118 : vector<8x32x32xf32>
    %cst_71 = arith.constant dense<0.000000e+00> : vector<8x32xf32>
    %120 = vector.multi_reduction <add>, %119, %cst_71 [2] : vector<8x32x32xf32> to vector<8x32xf32>
    %121 = arith.maximumf %114, %120 : vector<8x32xf32>
    %122 = arith.addf %115, %120 : vector<8x32xf32>
    %c0_72 = arith.constant 0 : index
    %c17 = arith.constant 17 : index
    %c0_73 = arith.constant 0 : index
    %c0_74 = arith.constant 0 : index
    %123 = vector.load %arg2[%c0_72, %c17, %c0_73, %c0_74] : memref<8x20x32x32xbf16, #tpu.memory_space<vmem>>, vector<8x1x32x32xbf16>
    %124 = vector.shape_cast %123 : vector<8x1x32x32xbf16> to vector<8x32x32xbf16>
    %125 = arith.extf %124 : vector<8x32x32xbf16> to vector<8x32x32xf32>
    %126 = arith.mulf %1, %125 : vector<8x32x32xf32>
    %cst_75 = arith.constant dense<0.000000e+00> : vector<8x32xf32>
    %127 = vector.multi_reduction <add>, %126, %cst_75 [2] : vector<8x32x32xf32> to vector<8x32xf32>
    %128 = arith.maximumf %121, %127 : vector<8x32xf32>
    %129 = arith.addf %122, %127 : vector<8x32xf32>
    %c0_76 = arith.constant 0 : index
    %c18 = arith.constant 18 : index
    %c0_77 = arith.constant 0 : index
    %c0_78 = arith.constant 0 : index
    %130 = vector.load %arg2[%c0_76, %c18, %c0_77, %c0_78] : memref<8x20x32x32xbf16, #tpu.memory_space<vmem>>, vector<8x1x32x32xbf16>
    %131 = vector.shape_cast %130 : vector<8x1x32x32xbf16> to vector<8x32x32xbf16>
    %132 = arith.extf %131 : vector<8x32x32xbf16> to vector<8x32x32xf32>
    %133 = arith.mulf %1, %132 : vector<8x32x32xf32>
    %cst_79 = arith.constant dense<0.000000e+00> : vector<8x32xf32>
    %134 = vector.multi_reduction <add>, %133, %cst_79 [2] : vector<8x32x32xf32> to vector<8x32xf32>
    %135 = arith.maximumf %128, %134 : vector<8x32xf32>
    %136 = arith.addf %129, %134 : vector<8x32xf32>
    %c0_80 = arith.constant 0 : index
    %c19 = arith.constant 19 : index
    %c0_81 = arith.constant 0 : index
    %c0_82 = arith.constant 0 : index
    %137 = vector.load %arg2[%c0_80, %c19, %c0_81, %c0_82] : memref<8x20x32x32xbf16, #tpu.memory_space<vmem>>, vector<8x1x32x32xbf16>
    %138 = vector.shape_cast %137 : vector<8x1x32x32xbf16> to vector<8x32x32xbf16>
    %139 = arith.extf %138 : vector<8x32x32xbf16> to vector<8x32x32xf32>
    %140 = arith.mulf %1, %139 : vector<8x32x32xf32>
    %cst_83 = arith.constant dense<0.000000e+00> : vector<8x32xf32>
    %141 = vector.multi_reduction <add>, %140, %cst_83 [2] : vector<8x32x32xf32> to vector<8x32xf32>
    %142 = arith.maximumf %135, %141 : vector<8x32xf32>
    %143 = arith.addf %136, %141 : vector<8x32xf32>
    %cst_84 = arith.constant 3.125000e-02 : f32
    %144 = vector.broadcast %cst_84 : f32 to vector<8x32xf32>
    %145 = arith.mulf %143, %144 : vector<8x32xf32>
    %146 = arith.subf %142, %145 : vector<8x32xf32>
    %c0_85 = arith.constant 0 : index
    %c0_86 = arith.constant 0 : index
    %c0_87 = arith.constant 0 : index
    %147 = vector.load %arg3[%c0_85, %c0_86, %c0_87] : memref<8x1x32xf32, #tpu.memory_space<vmem>>, vector<8x1x32xf32>
    %148 = vector.shape_cast %147 : vector<8x1x32xf32> to vector<8x32xf32>
    %149 = vector.shape_cast %146 : vector<8x32xf32> to vector<8x1x32xf32>
    tpu.vector_store %arg3[%c0_85, %c0_86, %c0_87], %149 {strides = array<i32>} : memref<8x1x32xf32, #tpu.memory_space<vmem>>, vector<8x1x32xf32>,
    return
  }
  func.func @transform_0(%arg0: i32) -> (i32, i32, i32) {
    %c0_i32 = arith.constant 0 : i32
    %c0_i32_0 = arith.constant 0 : i32
    %c0_i32_1 = arith.constant 0 : i32
    return %arg0, %c0_i32, %c0_i32_0 : i32, i32, i32
  }
  func.func @transform_1(%arg0: i32) -> (i32, i32, i32, i32) {
    %c0_i32 = arith.constant 0 : i32
    %c0_i32_0 = arith.constant 0 : i32
    %c0_i32_1 = arith.constant 0 : i32
    %c0_i32_2 = arith.constant 0 : i32
    return %arg0, %c0_i32, %c0_i32_0, %c0_i32_1 : i32, i32, i32, i32
  }
  func.func @transform_2(%arg0: i32) -> (i32, i32, i32) {
    %c0_i32 = arith.constant 0 : i32
    %c0_i32_0 = arith.constant 0 : i32
    %c0_i32_1 = arith.constant 0 : i32
    return %arg0, %c0_i32, %c0_i32_0 : i32, i32, i32
  }
}

</mosaic_0001>

<bundles_post_ra>
// kernel: tpu_custom_call.1
= control target key start
LH: loop header
LB: loop body
LE: loop exit
PB: predicated region body
PF: predicated region fallthrough
CT: control target
= control target key end

     0   :  { %7 = vsyncpa [#allocation3], 0  ;;  %s13545_s0 = inlined_call_operand.hbm [shape: bf16[8,32,32], index: 0, kind: input, shape index: {}]   ;;  %s13546_s1 = inlined_call_operand.hbm [shape: bf16[8,20,32,32], index: 1, kind: input, shape index: {}]   ;;  %s13547_s2 = inlined_call_operand.hbm [shape: f32[8,1,32], index: 2, kind: output, shape index: {}]  }
   0x1   :  { %8 = vsyncpa [#allocation6], 0 }
   0x2   :  { %9 = vsyncpa [#allocation4], 0  ;;  %s7273_s9 = smov [#allocation2]   ;;  %s7201_s13 = scalar_lea.hbm %s13545_s0, 2048 }
   0x3   :  { %s15_s10 = sshll.u32 %s7273_s9, 4  ;;  %p7202_p0 = scmp.ne.s32.totalorder %s13545_s0, %s7201_s13  ;;  %s16_s10 = int_to_ptr.vmem [resolvable:$true] %s15_s10 }
   0x4   :  { %p7205_p1 = scmp.lt.u32.totalorder %s7201_s13, %s13545_s0 }
   0x6   :  { %p7207_p2 = pnand %p7205_p1, %p7202_p0 }
   0x8   :  { %7210 = shalt.err (!%p7207_p2)
}
   0x9   :  { %s7211_s18 = scalar_lea.vmem %s16_s10, 2048  ;;  %p7216_p4 = scmp.lt.s32.totalorder %s16_s10, %s16_s10 }
   0xa   :  { %p7212_p3 = scmp.ne.s32.totalorder %s16_s10, %s7211_s18  ;;  %p7217_p5 = scmp.lt.s32.totalorder %s7211_s18, %s7211_s18 }
   0xc   :  { %p7218_p6 = por %p7217_p5, %p7216_p4 }
   0xe   :  { %p7219_p7 = pnand %p7218_p6, %p7212_p3 }
  0x10   :  { %7222 = shalt.err (!%p7219_p7)
}
  0x11   :  { %s7274_s19 = smov 64   ;;  %s7275_s20 = smov 4  }
  0x12   :  { %21 = dma.hbm_to_vmem [thread:$0]  %s13545_s0, 2048, %s16_s10, [#allocation3], %s7274_s19, %s7274_s19, %s7275_s20  }
  0x13   :  { %s7276_s23 = smov [#allocation5]   ;;  %s7223_s27 = scalar_lea.hbm %s13546_s1, 40960 }
  0x14   :  { %s27_s24 = sshll.u32 %s7276_s23, 4  ;;  %p7224_p8 = scmp.ne.s32.totalorder %s13546_s1, %s7223_s27  ;;  %s28_s24 = int_to_ptr.vmem [resolvable:$true] %s27_s24 }
  0x15   :  { %p7227_p9 = scmp.lt.u32.totalorder %s7223_s27, %s13546_s1 }
  0x17   :  { %p7229_p10 = pnand %p7227_p9, %p7224_p8 }
  0x19   :  { %7232 = shalt.err (!%p7229_p10)
}
  0x1a   :  { %s7233_s4 = scalar_lea.vmem %s28_s24, 40960  ;;  %p7238_p12 = scmp.lt.s32.totalorder %s28_s24, %s28_s24 }
  0x1b   :  { %p7234_p11 = scmp.ne.s32.totalorder %s28_s24, %s7233_s4  ;;  %p7239_p13 = scmp.lt.s32.totalorder %s7233_s4, %s7233_s4 }
  0x1d   :  { %p7240_p0 = por %p7239_p13, %p7238_p12 }
  0x1f   :  { %p7241_p1 = pnand %p7240_p0, %p7234_p11 }
  0x21   :  { %7244 = shalt.err (!%p7241_p1)
}
  0x22   :  { %33 = dma.hbm_to_vmem [thread:$0]  %s13546_s1, 40960, %s28_s24, [#allocation6], %s7274_s19, %s7274_s19, %s7275_s20  }
  0x23   :  { %7267 = dma.done.wait [#allocation3], 2048  }
  0x24   :  { %7268 = vsyncadd [#allocation3], 4294965248 }
  0x25   :  { %7269 = dma.done.wait [#allocation6], 40960  }
  0x26   :  { %7270 = vsyncadd [#allocation6], 4294926336  ;;  %v6879_v0 = vld [vmem:[#allocation2 + $0x8] sm:$0xff]   ;;  %vm200_vm0 = vcmask 261120   ;;  %v5536_v2 = vld [vmem:[#allocation2] sm:$0xff]   ;;  %vm5351_vm1 = vcmask 130112  }
  0x27   :  { %v6894_v1 = vld [vmem:[#allocation5 + $0x8] sm:$0xff]   ;;  %v7319_v3 = vunpack.c.l.bf16 %v6879_v0  ;;  %v7321_v5 = vunpack.c.l.bf16 %v5536_v2  ;;  %v5600_v6 = vld [vmem:[#allocation5] sm:$0xff]   ;;  %v7323_v7 = vunpack.c.h.bf16 %v6879_v0  ;;  %v6880_v8 = vld [vmem:[#allocation2 + $0x10] sm:$0xff]   ;;  %v7325_v12 = vunpack.c.h.bf16 %v5536_v2  ;;  %s7277_s1 = smov [#allocation7]  }
  0x28   :  { %v5605_v4 = vunpack.c.l.bf16 %v6894_v1  ;;  %v6895_v9 = vld [vmem:[#allocation5 + $0x140] sm:$0xff]   ;;  %v5601_v10 = vunpack.c.l.bf16 %v5600_v6  ;;  %v5606_v11 = vunpack.c.h.bf16 %v6894_v1  ;;  %v5602_v13 = vunpack.c.h.bf16 %v5600_v6  ;;  %v6881_v22 = vld [vmem:[#allocation2 + $0x18] sm:$0xff]   ;;  %v6896_v23 = vld [vmem:[#allocation5 + $0x148] sm:$0xff]   ;;  %s5522_s6 = sshll.u32 %s7277_s1, 4  ;;  %s5523_s6 = int_to_ptr.vmem [resolvable:$true] %s5522_s6 }
  0x29   :  { %14106 = vst [vmem:[#allocation11_spill] sm:$0xff] %v7319_v3  ;;  %14107 = vst [vmem:[#allocation12_spill] sm:$0xff] %v7321_v5  ;;  %v7328_v15 = vunpack.c.h.bf16 %v6880_v8  ;;  %v5610_v16 = vunpack.c.h.bf16 %v6895_v9  ;;  %v7330_v17 = vunpack.c.l.bf16 %v6880_v8  ;;  %v5609_v21 = vunpack.c.l.bf16 %v6895_v9  ;;  %v6882_v34 = vld [vmem:[#allocation2 + $0x20] sm:$0xff]   ;;  %v6883_v44 = vld [vmem:[#allocation2 + $0x28] sm:$0xff]   ;;  %s7245_s7 = scalar_lea.vmem %s5523_s6, 128  ;;  %p7250_p3 = scmp.lt.s32.totalorder %s5523_s6, %s5523_s6 }
  0x2a   :  { %14108 = vst [vmem:[#allocation13_spill] sm:$0xff] %v7323_v7  ;;  %14109 = vst [vmem:[#allocation14_spill] sm:$0xff] %v7325_v12  ;;  %v170_v14 = vmul.f32 %v5605_v4, %v7319_v3  ;;  %v168_v18 = vmul.f32 %v5601_v10, %v7321_v5  ;;  %v171_v19 = vmul.f32 %v5606_v11, %v7323_v7  ;;  %v7339_v28 = vunpack.c.h.bf16 %v6881_v22  ;;  %v6897_v35 = vld [vmem:[#allocation5 + $0x280] sm:$0xff]   ;;  %v6898_v45 = vld [vmem:[#allocation5 + $0x288] sm:$0xff]   ;;  %p7246_p2 = scmp.ne.s32.totalorder %s5523_s6, %s7245_s7  ;;  %p7251_p4 = scmp.lt.s32.totalorder %s7245_s7, %s7245_s7 }
  0x2b   :  { %14110 = vst [vmem:[#allocation15_spill] sm:$0xff] %v7328_v15  ;;  %14111 = vst [vmem:[#allocation16_spill] sm:$0xff] %v7330_v17  ;;  %v169_v20 = vmul.f32 %v5602_v13, %v7325_v12  ;;  %v173_v27 = vmul.f32 %v5610_v16, %v7328_v15  ;;  %v5614_v29 = vunpack.c.h.bf16 %v6896_v23  ;;  %v172_v31 = vmul.f32 %v5609_v21, %v7330_v17  ;;  %v6884_v54 = vld [vmem:[#allocation2 + $0x30] sm:$0xff]   ;;  %v6899_v55 = vld [vmem:[#allocation5 + $0x3c0] sm:$0xff]  }
  0x2c   :  { %v207_v24 = vsel %vm200_vm0, %v170_v14, 0.0  ;;  %v201_v25 = vsel %vm200_vm0, %v168_v18, 0.0  ;;  %v210_v26 = vsel %vm200_vm0, %v171_v19, 0.0  ;;  %14112 = vst [vmem:[#allocation17_spill] sm:$0xff] %v7339_v28  ;;  %v7343_v32 = vunpack.c.l.bf16 %v6881_v22  ;;  %v6885_v0 = vld [vmem:[#allocation2 + $0x38] sm:$0xff]   ;;  %v6900_v1 = vld [vmem:[#allocation5 + $0x3c8] sm:$0xff]   ;;  %p7252_p5 = por %p7251_p4, %p7250_p3 }
  0x2d   :  { %208 = vadd.xlane.f32.xlu1 %v207_v24  ;;  %202 = vadd.xlane.f32.xlu0 %v201_v25  ;;  %v204_v30 = vsel %vm200_vm0, %v169_v20, 0.0  ;;  %v5613_v33 = vunpack.c.l.bf16 %v6896_v23  ;;  %v216_v36 = vsel %vm200_vm0, %v173_v27, 0.0  ;;  %v175_v37 = vmul.f32 %v5614_v29, %v7339_v28  ;;  %v6886_v14 = vld [vmem:[#allocation2 + $0x40] sm:$0xff]   ;;  %v6902_v27 = vld [vmem:[#allocation5 + $0x508] sm:$0xff]  }
  0x2e   :  { %14113 = vst [vmem:[#allocation18_spill] sm:$0xff] %v7343_v32  ;;  %v7347_v38 = vunpack.c.h.bf16 %v6882_v34  ;;  %v5618_v39 = vunpack.c.h.bf16 %v6897_v35  ;;  %v213_v40 = vsel %vm200_vm0, %v172_v31, 0.0  ;;  %v7351_v42 = vunpack.c.l.bf16 %v6882_v34  ;;  %v6901_v16 = vld [vmem:[#allocation5 + $0x500] sm:$0xff]   ;;  %p7253_p6 = pnand %p7252_p5, %p7246_p2 }
  0x2f   :  { %v174_v41 = vmul.f32 %v5613_v33, %v7343_v32  ;;  %v5617_v43 = vunpack.c.l.bf16 %v6897_v35  ;;  %v222_v46 = vsel %vm200_vm0, %v175_v37, 0.0  ;;  %v7355_v48 = vunpack.c.h.bf16 %v6883_v44 }
  0x30   :  { %14114 = vst [vmem:[#allocation19_spill] sm:$0xff] %v7347_v38  ;;  %14115 = vst [vmem:[#allocation20_spill] sm:$0xff] %v7351_v42  ;;  %v177_v47 = vmul.f32 %v5618_v39, %v7347_v38  ;;  %v5622_v49 = vunpack.c.h.bf16 %v6898_v45  ;;  %v7359_v52 = vunpack.c.l.bf16 %v6883_v44  ;;  %v5621_v53 = vunpack.c.l.bf16 %v6898_v45  ;;  %v6888_v39 = vld [vmem:[#allocation2 + $0x50] sm:$0xff]  }
  0x31   :  { %211 = vadd.xlane.f32.xlu1 %v210_v26  ;;  %205 = vadd.xlane.f32.xlu0 %v204_v30  ;;  %14116 = vst [vmem:[#allocation21_spill] sm:$0xff] %v7355_v48  ;;  %v219_v50 = vsel %vm200_vm0, %v174_v41, 0.0  ;;  %v176_v51 = vmul.f32 %v5617_v43, %v7351_v42  ;;  %v7363_v58 = vunpack.c.h.bf16 %v6884_v54  ;;  %v5626_v59 = vunpack.c.h.bf16 %v6899_v55  ;;  %v6887_v26 = vld [vmem:[#allocation2 + $0x48] sm:$0xff]  }
  0x32   :  { %14117 = vst [vmem:[#allocation22_spill] sm:$0xff] %v7359_v52  ;;  %v228_v56 = vsel %vm200_vm0, %v177_v47, 0.0  ;;  %v179_v57 = vmul.f32 %v5622_v49, %v7355_v48  ;;  %v178_v61 = vmul.f32 %v5621_v53, %v7359_v52  ;;  %v7367_v62 = vunpack.c.l.bf16 %v6884_v54  ;;  %v6904_v53 = vld [vmem:[#allocation5 + $0x648] sm:$0xff]  }
  0x33   :  { %14118 = vst [vmem:[#allocation23_spill] sm:$0xff] %v7363_v58  ;;  %v225_v60 = vsel %vm200_vm0, %v176_v51, 0.0  ;;  %v5625_v63 = vunpack.c.l.bf16 %v6899_v55  ;;  %v181_v4 = vmul.f32 %v5626_v59, %v7363_v58  ;;  %v7371_v6 = vunpack.c.h.bf16 %v6885_v0  ;;  %v6889_v51 = vld [vmem:[#allocation2 + $0x58] sm:$0xff]  }
  0x34   :  { %14119 = vst [vmem:[#allocation24_spill] sm:$0xff] %v7367_v62  ;;  %v234_v2 = vsel %vm200_vm0, %v179_v57, 0.0  ;;  %v5630_v8 = vunpack.c.h.bf16 %v6900_v1  ;;  %v231_v9 = vsel %vm200_vm0, %v178_v61, 0.0  ;;  %v7375_v11 = vunpack.c.l.bf16 %v6885_v0  ;;  %v6890_v0 = vld [vmem:[#allocation2 + $0x60] sm:$0xff]  }
  0x35   :  { %217 = vadd.xlane.f32.xlu1 %v216_v36  ;;  %214 = vadd.xlane.f32.xlu0 %v213_v40  ;;  %14120 = vst [vmem:[#allocation25_spill] sm:$0xff] %v7371_v6  ;;  %v180_v10 = vmul.f32 %v5625_v63, %v7367_v62  ;;  %v5629_v13 = vunpack.c.l.bf16 %v6900_v1  ;;  %v240_v18 = vsel %vm200_vm0, %v181_v4, 0.0  ;;  %v7379_v20 = vunpack.c.h.bf16 %v6886_v14  ;;  %v6903_v40 = vld [vmem:[#allocation5 + $0x640] sm:$0xff]  }
  0x36   :  { %14121 = vst [vmem:[#allocation26_spill] sm:$0xff] %v7375_v11  ;;  %v183_v19 = vmul.f32 %v5630_v8, %v7371_v6  ;;  %v5634_v21 = vunpack.c.h.bf16 %v6901_v16  ;;  %v7383_v24 = vunpack.c.l.bf16 %v6886_v14  ;;  %v5633_v25 = vunpack.c.l.bf16 %v6901_v16  ;;  %v6905_v1 = vld [vmem:[#allocation5 + $0x780] sm:$0xff]  }
  0x37   :  { %14122 = vst [vmem:[#allocation27_spill] sm:$0xff] %v7379_v20  ;;  %v237_v22 = vsel %vm200_vm0, %v180_v10, 0.0  ;;  %v182_v23 = vmul.f32 %v5629_v13, %v7375_v11  ;;  %v7387_v31 = vunpack.c.h.bf16 %v6887_v26  ;;  %v5638_v33 = vunpack.c.h.bf16 %v6902_v27 }
  0x38   :  { %14123 = vst [vmem:[#allocation28_spill] sm:$0xff] %v7383_v24  ;;  %v246_v29 = vsel %vm200_vm0, %v183_v19, 0.0  ;;  %v185_v30 = vmul.f32 %v5634_v21, %v7379_v20  ;;  %v184_v35 = vmul.f32 %v5633_v25, %v7383_v24  ;;  %v7391_v36 = vunpack.c.l.bf16 %v6887_v26  ;;  %v6906_v19 = vld [vmem:[#allocation5 + $0x788] sm:$0xff]  }
  0x39   :  { %223 = vadd.xlane.f32.xlu1 %v222_v46  ;;  %220 = vadd.xlane.f32.xlu0 %v219_v50  ;;  %14124 = vst [vmem:[#allocation29_spill] sm:$0xff] %v7387_v31  ;;  %v243_v34 = vsel %vm200_vm0, %v182_v23, 0.0  ;;  %v5637_v37 = vunpack.c.l.bf16 %v6902_v27  ;;  %v187_v43 = vmul.f32 %v5638_v33, %v7387_v31  ;;  %v7395_v44 = vunpack.c.h.bf16 %v6888_v39  ;;  %v6892_v33 = vld [vmem:[#allocation2 + $0x70] sm:$0xff]  }
  0x3a   :  { %14125 = vst [vmem:[#allocation30_spill] sm:$0xff] %v7391_v36  ;;  %v252_v41 = vsel %vm200_vm0, %v185_v30, 0.0  ;;  %v5642_v45 = vunpack.c.h.bf16 %v6903_v40  ;;  %v249_v46 = vsel %vm200_vm0, %v184_v35, 0.0  ;;  %v7399_v49 = vunpack.c.l.bf16 %v6888_v39 }
  0x3b   :  { %14126 = vst [vmem:[#allocation31_spill] sm:$0xff] %v7395_v44  ;;  %v186_v47 = vmul.f32 %v5637_v37, %v7391_v36  ;;  %v5641_v50 = vunpack.c.l.bf16 %v6903_v40  ;;  %v258_v54 = vsel %vm200_vm0, %v187_v43, 0.0  ;;  %v5646_v57 = vunpack.c.h.bf16 %v6904_v53 }
  0x3c   :  { %14127 = vst [vmem:[#allocation32_spill] sm:$0xff] %v7399_v49  ;;  %v189_v55 = vmul.f32 %v5642_v45, %v7395_v44  ;;  %v7407_v61 = vunpack.c.l.bf16 %v6889_v51  ;;  %v5645_v63 = vunpack.c.l.bf16 %v6904_v53  ;;  %v7411_v8 = vunpack.c.h.bf16 %v6890_v0 }
  0x3d   :  { %229 = vadd.xlane.f32.xlu1 %v228_v56  ;;  %226 = vadd.xlane.f32.xlu0 %v225_v60  ;;  %v7403_v56 = vunpack.c.h.bf16 %v6889_v51  ;;  %v255_v59 = vsel %vm200_vm0, %v186_v47, 0.0  ;;  %v188_v60 = vmul.f32 %v5641_v50, %v7399_v49  ;;  %v7415_v14 = vunpack.c.l.bf16 %v6890_v0  ;;  %v6893_v47 = vld [vmem:[#allocation2 + $0x78] sm:$0xff]   ;;  %v6908_v50 = vld [vmem:[#allocation5 + $0x8c8] sm:$0xff]   ;;  %v5664_v0 = vld [vmem:[#allocation5 + $0x10] sm:$0xff]  }
  0x3e   :  { %14129 = vst [vmem:[#allocation34_spill] sm:$0xff] %v7407_v61  ;;  %14130 = vst [vmem:[#allocation35_spill] sm:$0xff] %v7411_v8  ;;  %v190_v13 = vmul.f32 %v5645_v63, %v7407_v61  ;;  %v5649_v16 = vunpack.c.l.bf16 %v6905_v1  ;;  %v5654_v25 = vunpack.c.h.bf16 %v6906_v19  ;;  %v5653_v30 = vunpack.c.l.bf16 %v6906_v19 }
  0x3f   :  { %14128 = vst [vmem:[#allocation33_spill] sm:$0xff] %v7403_v56  ;;  %v191_v4 = vmul.f32 %v5646_v57, %v7403_v56  ;;  %v261_v10 = vsel %vm200_vm0, %v188_v60, 0.0  ;;  %14131 = vst [vmem:[#allocation36_spill] sm:$0xff] %v7415_v14  ;;  %v7427_v39 = vunpack.c.h.bf16 %v6892_v33  ;;  %v7431_v45 = vunpack.c.l.bf16 %v6892_v33 }
  0x40   :  { %v267_v26 = vsel %vm200_vm0, %v190_v13, 0.0  ;;  %v192_v27 = vmul.f32 %v5649_v16, %v7415_v14  ;;  %v7439_v60 = vunpack.c.l.bf16 %v6893_v47  ;;  %v5661_v63 = vunpack.c.l.bf16 %v6908_v50  ;;  %v6909_v16 = vld [vmem:[#allocation5 + $0x18] sm:$0xff]  }
  0x41   :  { %235 = vadd.xlane.f32.xlu1 %v234_v2  ;;  %232 = vadd.xlane.f32.xlu0 %v231_v9  ;;  %v264_v2 = vsel %vm200_vm0, %v189_v55, 0.0  ;;  %v5650_v9 = vunpack.c.h.bf16 %v6905_v1  ;;  %v270_v21 = vsel %vm200_vm0, %v191_v4, 0.0  ;;  %14134 = vst [vmem:[#allocation39_spill] sm:$0xff] %v7427_v39  ;;  %14135 = vst [vmem:[#allocation40_spill] sm:$0xff] %v7431_v45  ;;  %v5662_v55 = vunpack.c.h.bf16 %v6908_v50 }
  0x42   :  { %14137 = vst [vmem:[#allocation42_spill] sm:$0xff] %v7439_v60  ;;  %v5666_v4 = vunpack.c.h.bf16 %v5664_v0  ;;  %v5665_v13 = vunpack.c.l.bf16 %v5664_v0  ;;  %vm5358_vm2 = vcmask 195712   ;;  %vm5365_vm3 = vcmask 261312  }
  0x43   :  { %vm5508_vm4 = vcmask 253952  }
  0x44   :  { %v427_v19 = vmul.f32 %v5666_v4, %v7325_v12  ;;  %v6913_v4 = vld [vmem:[#allocation5 + $0x298] sm:$0xff]  }
  0x45   :  { %241 = vadd.xlane.f32.xlu1 %v240_v18  ;;  %238 = vadd.xlane.f32.xlu0 %v237_v22  ;;  %v6891_v18 = vld [vmem:[#allocation2 + $0x68] sm:$0xff]   ;;  %v193_v22 = vmul.f32 %v5650_v9, %v7411_v8 }
  0x46   :  { %v7419_v23 = vunpack.c.h.bf16 %v6891_v18 }
  0x47   :  { %v276_v35 = vsel %vm200_vm0, %v193_v22, 0.0 }
  0x48   :  { %14132 = vst [vmem:[#allocation37_spill] sm:$0xff] %v7419_v23  ;;  %v195_v37 = vmul.f32 %v5654_v25, %v7419_v23  ;;  %v426_v25 = vmul.f32 %v5665_v13, %v7321_v5  ;;  %v5686_v13 = vunpack.c.h.bf16 %v6913_v4 }
  0x49   :  { %247 = vadd.xlane.f32.xlu1 %v246_v29  ;;  %244 = vadd.xlane.f32.xlu0 %v243_v34  ;;  %v7423_v29 = vunpack.c.l.bf16 %v6891_v18  ;;  %v6907_v34 = vld [vmem:[#allocation5 + $0x8c0] sm:$0xff]  }
  0x4a   :  { %v5658_v40 = vunpack.c.h.bf16 %v6907_v34  ;;  %v282_v51 = vsel %vm200_vm0, %v195_v37, 0.0 }
  0x4b   :  { %14133 = vst [vmem:[#allocation38_spill] sm:$0xff] %v7423_v29  ;;  %v194_v43 = vmul.f32 %v5653_v30, %v7423_v29  ;;  %v461_v30 = vsel %vm200_vm0, %v427_v19, 0.0  ;;  %v5685_v19 = vunpack.c.l.bf16 %v6913_v4 }
  0x4c   :  { %v197_v53 = vmul.f32 %v5658_v40, %v7427_v39 }
  0x4d   :  { %253 = vadd.xlane.f32.xlu1 %v252_v41  ;;  %250 = vadd.xlane.f32.xlu0 %v249_v46  ;;  %v273_v41 = vsel %vm200_vm0, %v192_v27, 0.0  ;;  %v5657_v46 = vunpack.c.l.bf16 %v6907_v34  ;;  %v279_v57 = vsel %vm200_vm0, %v194_v43, 0.0  ;;  %v6910_v27 = vld [vmem:[#allocation5 + $0x150] sm:$0xff]  }
  0x4e   :  { %v288_v1 = vsel %vm200_vm0, %v197_v53, 0.0  ;;  %v5674_v34 = vunpack.c.h.bf16 %v6910_v27  ;;  %v5673_v40 = vunpack.c.l.bf16 %v6910_v27 }
  0x51   :  { %259 = vadd.xlane.f32.xlu1 %v258_v54  ;;  %256 = vadd.xlane.f32.xlu0 %v255_v59  ;;  %v7435_v54 = vunpack.c.h.bf16 %v6893_v47  ;;  %v196_v59 = vmul.f32 %v5657_v46, %v7431_v45  ;;  %v431_v46 = vmul.f32 %v5674_v34, %v7328_v15  ;;  %v6915_v34 = vld [vmem:[#allocation5 + $0x3d8] sm:$0xff]  }
  0x53   :  { %14136 = vst [vmem:[#allocation41_spill] sm:$0xff] %v7435_v54  ;;  %v285_v9 = vsel %vm200_vm0, %v196_v59, 0.0 }
  0x55   :  { %265 = vadd.xlane.f32.xlu1 %v264_v2  ;;  %262 = vadd.xlane.f32.xlu0 %v261_v10  ;;  %v199_v2 = vmul.f32 %v5662_v55, %v7435_v54  ;;  %v198_v10 = vmul.f32 %v5661_v63, %v7439_v60  ;;  %v6912_v55 = vld [vmem:[#allocation5 + $0x290] sm:$0xff]  }
  0x56   :  { %v5682_v63 = vunpack.c.h.bf16 %v6912_v55 }
  0x57   :  { %v294_v18 = vsel %vm200_vm0, %v199_v2, 0.0  ;;  %v291_v22 = vsel %vm200_vm0, %v198_v10, 0.0  ;;  %v5681_v2 = vunpack.c.l.bf16 %v6912_v55 }
  0x58   :  { %v435_v10 = vmul.f32 %v5682_v63, %v7347_v38  ;;  %v6917_v63 = vld [vmem:[#allocation5 + $0x518] sm:$0xff]  }
  0x59   :  { %271 = vadd.xlane.f32.xlu1 %v270_v21  ;;  %268 = vadd.xlane.f32.xlu0 %v267_v26  ;;  %v5670_v21 = vunpack.c.h.bf16 %v6909_v16  ;;  %v5669_v26 = vunpack.c.l.bf16 %v6909_v16 }
  0x5b   :  { %v429_v33 = vmul.f32 %v5670_v21, %v7323_v7  ;;  %v428_v37 = vmul.f32 %v5669_v26, %v7319_v3  ;;  %v6914_v21 = vld [vmem:[#allocation5 + $0x3d0] sm:$0xff]  }
  0x5c   :  { %v5690_v26 = vunpack.c.h.bf16 %v6914_v21 }
  0x5d   :  { %277 = vadd.xlane.f32.xlu1 %v276_v35  ;;  %274 = vadd.xlane.f32.xlu0 %v273_v41  ;;  %v458_v35 = vsel %vm200_vm0, %v426_v25, 0.0  ;;  %v6911_v41 = vld [vmem:[#allocation5 + $0x158] sm:$0xff]   ;;  %v467_v43 = vsel %vm200_vm0, %v429_v33, 0.0  ;;  %v464_v50 = vsel %vm200_vm0, %v428_v37, 0.0  ;;  %v437_v25 = vmul.f32 %v5686_v13, %v7355_v48  ;;  %v6918_v13 = vld [vmem:[#allocation5 + $0x650] sm:$0xff]  }
  0x5e   :  { %v5678_v47 = vunpack.c.h.bf16 %v6911_v41  ;;  %v5677_v53 = vunpack.c.l.bf16 %v6911_v41  ;;  %v5689_v33 = vunpack.c.l.bf16 %v6914_v21  ;;  %v439_v37 = vmul.f32 %v5690_v26, %v7363_v58  ;;  %v6919_v26 = vld [vmem:[#allocation5 + $0x658] sm:$0xff]  }
  0x60   :  { %v433_v59 = vmul.f32 %v5678_v47, %v7339_v28  ;;  %v6916_v47 = vld [vmem:[#allocation5 + $0x510] sm:$0xff]  }
  0x61   :  { %283 = vadd.xlane.f32.xlu1 %v282_v51  ;;  %280 = vadd.xlane.f32.xlu0 %v279_v57  ;;  %v430_v51 = vmul.f32 %v5673_v40, %v7330_v17  ;;  %v473_v57 = vsel %vm200_vm0, %v431_v46, 0.0  ;;  %v5694_v40 = vunpack.c.h.bf16 %v6915_v34  ;;  %v5693_v46 = vunpack.c.l.bf16 %v6915_v34 }
  0x63   :  { %v470_v0 = vsel %vm200_vm0, %v430_v51, 0.0  ;;  %v441_v51 = vmul.f32 %v5694_v40, %v7371_v6  ;;  %v6920_v40 = vld [vmem:[#allocation5 + $0x790] sm:$0xff]  }
  0x65   :  { %289 = vadd.xlane.f32.xlu1 %v288_v1  ;;  %286 = vadd.xlane.f32.xlu0 %v285_v9  ;;  %v432_v1 = vmul.f32 %v5677_v53, %v7343_v32  ;;  %v479_v9 = vsel %vm200_vm0, %v433_v59, 0.0  ;;  %v5698_v53 = vunpack.c.h.bf16 %v6916_v47  ;;  %v5697_v59 = vunpack.c.l.bf16 %v6916_v47 }
  0x67   :  { %v476_v16 = vsel %vm200_vm0, %v432_v1, 0.0  ;;  %v443_v1 = vmul.f32 %v5698_v53, %v7379_v20  ;;  %v6921_v53 = vld [vmem:[#allocation5 + $0x798] sm:$0xff]  }
  0x69   :  { %295 = vadd.xlane.f32.xlu1 %v294_v18  ;;  %292 = vadd.xlane.f32.xlu0 %v291_v22  ;;  %v434_v18 = vmul.f32 %v5681_v2, %v7351_v42  ;;  %v485_v22 = vsel %vm200_vm0, %v435_v10, 0.0  ;;  %v5702_v2 = vunpack.c.h.bf16 %v6917_v63  ;;  %v5701_v10 = vunpack.c.l.bf16 %v6917_v63 }
  0x6b   :  { %v482_v27 = vsel %vm200_vm0, %v434_v18, 0.0  ;;  %v445_v18 = vmul.f32 %v5702_v2, %v7387_v31  ;;  %v6922_v2 = vld [vmem:[#allocation5 + $0x8d0] sm:$0xff]  }
  0x6d   :  { %462 = vadd.xlane.f32.xlu1 %v461_v30  ;;  %459 = vadd.xlane.f32.xlu0 %v458_v35  ;;  %v436_v30 = vmul.f32 %v5685_v19, %v7359_v52  ;;  %v491_v35 = vsel %vm200_vm0, %v437_v25, 0.0  ;;  %v5706_v19 = vunpack.c.h.bf16 %v6918_v13  ;;  %v5705_v25 = vunpack.c.l.bf16 %v6918_v13 }
  0x6f   :  { %v488_v41 = vsel %vm200_vm0, %v436_v30, 0.0  ;;  %v447_v30 = vmul.f32 %v5706_v19, %v7395_v44  ;;  %v6923_v19 = vld [vmem:[#allocation5 + $0x8d8] sm:$0xff]  }
  0x71   :  { %468 = vadd.xlane.f32.xlu1 %v467_v43  ;;  %465 = vadd.xlane.f32.xlu0 %v464_v50  ;;  %v438_v43 = vmul.f32 %v5689_v33, %v7367_v62  ;;  %v497_v50 = vsel %vm200_vm0, %v439_v37, 0.0  ;;  %v5710_v33 = vunpack.c.h.bf16 %v6919_v26  ;;  %v5709_v37 = vunpack.c.l.bf16 %v6919_v26 }
  0x73   :  { %v494_v55 = vsel %vm200_vm0, %v438_v43, 0.0  ;;  %v449_v43 = vmul.f32 %v5710_v33, %v7403_v56  ;;  %v5728_v33 = vld [vmem:[#allocation5 + $0x20] sm:$0xff]  }
  0x75   :  { %474 = vadd.xlane.f32.xlu1 %v473_v57  ;;  %471 = vadd.xlane.f32.xlu0 %v470_v0  ;;  %v440_v57 = vmul.f32 %v5693_v46, %v7375_v11  ;;  %v503_v0 = vsel %vm200_vm0, %v441_v51, 0.0  ;;  %v5714_v46 = vunpack.c.h.bf16 %v6920_v40  ;;  %v5713_v51 = vunpack.c.l.bf16 %v6920_v40 }
  0x77   :  { %v500_v4 = vsel %vm200_vm0, %v440_v57, 0.0  ;;  %v451_v57 = vmul.f32 %v5714_v46, %v7411_v8  ;;  %v6924_v46 = vld [vmem:[#allocation5 + $0x28] sm:$0xff]  }
  0x79   :  { %480 = vadd.xlane.f32.xlu1 %v479_v9  ;;  %477 = vadd.xlane.f32.xlu0 %v476_v16  ;;  %v442_v9 = vmul.f32 %v5697_v59, %v7383_v24  ;;  %v509_v16 = vsel %vm200_vm0, %v443_v1, 0.0  ;;  %v5718_v59 = vunpack.c.h.bf16 %v6921_v53  ;;  %v5717_v1 = vunpack.c.l.bf16 %v6921_v53 }
  0x7b   :  { %v506_v21 = vsel %vm200_vm0, %v442_v9, 0.0  ;;  %v453_v9 = vmul.f32 %v5718_v59, %v7419_v23  ;;  %v6925_v59 = vld [vmem:[#allocation5 + $0x160] sm:$0xff]  }
  0x7d   :  { %486 = vadd.xlane.f32.xlu1 %v485_v22  ;;  %483 = vadd.xlane.f32.xlu0 %v482_v27  ;;  %v444_v22 = vmul.f32 %v5701_v10, %v7391_v36  ;;  %v515_v27 = vsel %vm200_vm0, %v445_v18, 0.0  ;;  %v5722_v10 = vunpack.c.h.bf16 %v6922_v2  ;;  %v5721_v18 = vunpack.c.l.bf16 %v6922_v2 }
  0x7f   :  { %v512_v34 = vsel %vm200_vm0, %v444_v22, 0.0  ;;  %v455_v22 = vmul.f32 %v5722_v10, %v7427_v39  ;;  %v6926_v10 = vld [vmem:[#allocation5 + $0x168] sm:$0xff]  }
  0x81   :  { %492 = vadd.xlane.f32.xlu1 %v491_v35  ;;  %489 = vadd.xlane.f32.xlu0 %v488_v41  ;;  %v446_v35 = vmul.f32 %v5705_v25, %v7399_v49  ;;  %v521_v41 = vsel %vm200_vm0, %v447_v30, 0.0  ;;  %v5726_v25 = vunpack.c.h.bf16 %v6923_v19  ;;  %v5725_v30 = vunpack.c.l.bf16 %v6923_v19 }
  0x83   :  { %v518_v47 = vsel %vm200_vm0, %v446_v35, 0.0  ;;  %v457_v35 = vmul.f32 %v5726_v25, %v7435_v54  ;;  %v6927_v25 = vld [vmem:[#allocation5 + $0x2a0] sm:$0xff]  }
  0x85   :  { %498 = vadd.xlane.f32.xlu1 %v497_v50  ;;  %495 = vadd.xlane.f32.xlu0 %v494_v55  ;;  %v448_v50 = vmul.f32 %v5709_v37, %v7407_v61  ;;  %v527_v55 = vsel %vm200_vm0, %v449_v43, 0.0  ;;  %v5730_v37 = vunpack.c.h.bf16 %v5728_v33  ;;  %v5729_v43 = vunpack.c.l.bf16 %v5728_v33 }
  0x87   :  { %v524_v63 = vsel %vm200_vm0, %v448_v50, 0.0  ;;  %v684_v50 = vmul.f32 %v5730_v37, %v7325_v12  ;;  %v6928_v37 = vld [vmem:[#allocation5 + $0x2a8] sm:$0xff]  }
  0x89   :  { %504 = vadd.xlane.f32.xlu1 %v503_v0  ;;  %501 = vadd.xlane.f32.xlu0 %v500_v4  ;;  %v450_v0 = vmul.f32 %v5713_v51, %v7415_v14  ;;  %v533_v4 = vsel %vm200_vm0, %v451_v57, 0.0  ;;  %v5734_v51 = vunpack.c.h.bf16 %v6924_v46  ;;  %v5733_v57 = vunpack.c.l.bf16 %v6924_v46 }
  0x8b   :  { %v530_v13 = vsel %vm200_vm0, %v450_v0, 0.0  ;;  %v686_v0 = vmul.f32 %v5734_v51, %v7323_v7  ;;  %v6929_v51 = vld [vmem:[#allocation5 + $0x3e0] sm:$0xff]  }
  0x8d   :  { %510 = vadd.xlane.f32.xlu1 %v509_v16  ;;  %507 = vadd.xlane.f32.xlu0 %v506_v21  ;;  %v452_v16 = vmul.f32 %v5717_v1, %v7423_v29  ;;  %v539_v21 = vsel %vm200_vm0, %v453_v9, 0.0  ;;  %v5738_v1 = vunpack.c.h.bf16 %v6925_v59  ;;  %v5737_v9 = vunpack.c.l.bf16 %v6925_v59 }
  0x8e   :  { %v5754_v59 = vunpack.c.h.bf16 %v6929_v51 }
  0x8f   :  { %v536_v26 = vsel %vm200_vm0, %v452_v16, 0.0  ;;  %v688_v16 = vmul.f32 %v5738_v1, %v7328_v15 }
  0x91   :  { %516 = vadd.xlane.f32.xlu1 %v515_v27  ;;  %513 = vadd.xlane.f32.xlu0 %v512_v34  ;;  %v454_v27 = vmul.f32 %v5721_v18, %v7431_v45  ;;  %v545_v34 = vsel %vm200_vm0, %v455_v22, 0.0  ;;  %v5742_v18 = vunpack.c.h.bf16 %v6926_v10  ;;  %v5741_v22 = vunpack.c.l.bf16 %v6926_v10 }
  0x93   :  { %v542_v40 = vsel %vm200_vm0, %v454_v27, 0.0  ;;  %v690_v27 = vmul.f32 %v5742_v18, %v7339_v28 }
  0x95   :  { %522 = vadd.xlane.f32.xlu1 %v521_v41  ;;  %519 = vadd.xlane.f32.xlu0 %v518_v47  ;;  %v456_v41 = vmul.f32 %v5725_v30, %v7439_v60  ;;  %v551_v47 = vsel %vm200_vm0, %v457_v35, 0.0  ;;  %v5746_v30 = vunpack.c.h.bf16 %v6927_v25  ;;  %v5745_v35 = vunpack.c.l.bf16 %v6927_v25  ;;  %v6931_v25 = vld [vmem:[#allocation5 + $0x520] sm:$0xff]  }
  0x97   :  { %v548_v53 = vsel %vm200_vm0, %v456_v41, 0.0  ;;  %v692_v41 = vmul.f32 %v5746_v30, %v7347_v38 }
  0x99   :  { %528 = vadd.xlane.f32.xlu1 %v527_v55  ;;  %525 = vadd.xlane.f32.xlu0 %v524_v63  ;;  %v683_v55 = vmul.f32 %v5729_v43, %v7321_v5  ;;  %v718_v63 = vsel %vm200_vm0, %v684_v50, 0.0  ;;  %v5750_v43 = vunpack.c.h.bf16 %v6928_v37  ;;  %v5749_v50 = vunpack.c.l.bf16 %v6928_v37 }
  0x9b   :  { %v715_v2 = vsel %vm200_vm0, %v683_v55, 0.0  ;;  %v742_v55 = vsel %vm200_vm0, %v692_v41, 0.0  ;;  %v693_v1 = vmul.f32 %v5749_v50, %v7359_v52  ;;  %v6932_v41 = vld [vmem:[#allocation5 + $0x528] sm:$0xff]  }
  0x9c   :  { %v5766_v50 = vunpack.c.h.bf16 %v6932_v41 }
  0x9d   :  { %534 = vadd.xlane.f32.xlu1 %v533_v4  ;;  %531 = vadd.xlane.f32.xlu0 %v530_v13  ;;  %v685_v4 = vmul.f32 %v5733_v57, %v7319_v3  ;;  %v724_v13 = vsel %vm200_vm0, %v686_v0, 0.0  ;;  %v694_v57 = vmul.f32 %v5750_v43, %v7355_v48 }
  0x9f   :  { %v721_v19 = vsel %vm200_vm0, %v685_v4, 0.0  ;;  %v6930_v4 = vld [vmem:[#allocation5 + $0x3e8] sm:$0xff]   ;;  %v748_v10 = vsel %vm200_vm0, %v694_v57, 0.0 }
  0xa1   :  { %540 = vadd.xlane.f32.xlu1 %v539_v21  ;;  %537 = vadd.xlane.f32.xlu0 %v536_v26  ;;  %v687_v21 = vmul.f32 %v5737_v9, %v7330_v17  ;;  %v730_v26 = vsel %vm200_vm0, %v688_v16, 0.0  ;;  %v5758_v16 = vunpack.c.h.bf16 %v6930_v4 }
  0xa3   :  { %v727_v33 = vsel %vm200_vm0, %v687_v21, 0.0  ;;  %v698_v30 = vmul.f32 %v5758_v16, %v7371_v6 }
  0xa5   :  { %546 = vadd.xlane.f32.xlu1 %v545_v34  ;;  %543 = vadd.xlane.f32.xlu0 %v542_v40  ;;  %v689_v34 = vmul.f32 %v5741_v22, %v7343_v32  ;;  %v736_v40 = vsel %vm200_vm0, %v690_v27, 0.0  ;;  %v5757_v22 = vunpack.c.l.bf16 %v6930_v4  ;;  %v702_v4 = vmul.f32 %v5766_v50, %v7387_v31 }
  0xa7   :  { %v733_v46 = vsel %vm200_vm0, %v689_v34, 0.0  ;;  %v697_v37 = vmul.f32 %v5757_v22, %v7375_v11  ;;  %v6934_v22 = vld [vmem:[#allocation5 + $0x668] sm:$0xff]  }
  0xa9   :  { %552 = vadd.xlane.f32.xlu1 %v551_v47  ;;  %549 = vadd.xlane.f32.xlu0 %v548_v53  ;;  %v691_v47 = vmul.f32 %v5745_v35, %v7351_v42 }
  0xab   :  { %v739_v0 = vsel %vm200_vm0, %v691_v47, 0.0 }
  0xad   :  { %719 = vadd.xlane.f32.xlu1 %v718_v63  ;;  %716 = vadd.xlane.f32.xlu0 %v715_v2  ;;  %v5753_v2 = vunpack.c.l.bf16 %v6929_v51 }
  0xaf   :  { %v695_v21 = vmul.f32 %v5753_v2, %v7367_v62 }
  0xb1   :  { %725 = vadd.xlane.f32.xlu1 %v724_v13  ;;  %722 = vadd.xlane.f32.xlu0 %v721_v19  ;;  %v696_v13 = vmul.f32 %v5754_v59, %v7363_v58  ;;  %v745_v19 = vsel %vm200_vm0, %v693_v1, 0.0  ;;  %v751_v35 = vsel %vm200_vm0, %v695_v21, 0.0  ;;  %v5765_v59 = vunpack.c.l.bf16 %v6932_v41 }
  0xb2   :  { %v5773_v41 = vunpack.c.l.bf16 %v6934_v22 }
  0xb3   :  { %v754_v27 = vsel %vm200_vm0, %v696_v13, 0.0 }
  0xb5   :  { %731 = vadd.xlane.f32.xlu1 %v730_v26  ;;  %728 = vadd.xlane.f32.xlu0 %v727_v33  ;;  %v5762_v33 = vunpack.c.h.bf16 %v6931_v25 }
  0xb7   :  { %v700_v47 = vmul.f32 %v5762_v33, %v7379_v20  ;;  %v5774_v33 = vunpack.c.h.bf16 %v6934_v22 }
  0xb9   :  { %737 = vadd.xlane.f32.xlu1 %v736_v40  ;;  %734 = vadd.xlane.f32.xlu0 %v733_v46  ;;  %v5761_v40 = vunpack.c.l.bf16 %v6931_v25  ;;  %v760_v46 = vsel %vm200_vm0, %v698_v30, 0.0  ;;  %v766_v2 = vsel %vm200_vm0, %v700_v47, 0.0 }
  0xba   :  { %v7529_v53 = vpop.xlane.xlu1 %208  ;;  %v7533_v63 = vpop.xlane.xlu0 %202 }
  0xbb   :  { %14138 = vst [vmem:[#allocation43_spill] sm:$0xff] %v7529_v53  ;;  %v699_v57 = vmul.f32 %v5761_v40, %v7383_v24 }
  0xbd   :  { %743 = vadd.xlane.f32.xlu1 %v742_v55  ;;  %740 = vadd.xlane.f32.xlu0 %v739_v0  ;;  %v757_v55 = vsel %vm200_vm0, %v697_v37, 0.0  ;;  %v6933_v0 = vld [vmem:[#allocation5 + $0x660] sm:$0xff]   ;;  %v763_v16 = vsel %vm200_vm0, %v699_v57, 0.0 }
  0xbe   :  { %v7537_v9 = vpop.xlane.xlu1 %211  ;;  %v7541_v18 = vpop.xlane.xlu0 %205  ;;  %v5769_v21 = vunpack.c.l.bf16 %v6933_v0 }
  0xc0   :  { %v703_v40 = vmul.f32 %v5769_v21, %v7399_v49 }
  0xc1   :  { %749 = vadd.xlane.f32.xlu1 %v748_v10  ;;  %746 = vadd.xlane.f32.xlu0 %v745_v19  ;;  %v5770_v10 = vunpack.c.h.bf16 %v6933_v0  ;;  %v701_v19 = vmul.f32 %v5765_v59, %v7391_v36 }
  0xc2   :  { %v7545_v26 = vpop.xlane.xlu1 %217  ;;  %v7549_v34 = vpop.xlane.xlu0 %214  ;;  %v775_v0 = vsel %vm200_vm0, %v703_v40, 0.0  ;;  %v6937_v40 = vld [vmem:[#allocation5 + $0x8e0] sm:$0xff]  }
  0xc3   :  { %v704_v30 = vmul.f32 %v5770_v10, %v7395_v44  ;;  %v769_v37 = vsel %vm200_vm0, %v701_v19, 0.0  ;;  %v6936_v10 = vld [vmem:[#allocation5 + $0x7a8] sm:$0xff]  }
  0xc4   :  { %v5782_v22 = vunpack.c.h.bf16 %v6936_v10 }
  0xc5   :  { %755 = vadd.xlane.f32.xlu1 %v754_v27  ;;  %752 = vadd.xlane.f32.xlu0 %v751_v35  ;;  %v772_v27 = vsel %vm200_vm0, %v702_v4, 0.0  ;;  %v778_v50 = vsel %vm200_vm0, %v704_v30, 0.0 }
  0xc6   :  { %v7553_v43 = vpop.xlane.xlu1 %223  ;;  %v7557_v51 = vpop.xlane.xlu0 %220 }
  0xc9   :  { %761 = vadd.xlane.f32.xlu1 %v760_v46  ;;  %758 = vadd.xlane.f32.xlu0 %v757_v55  ;;  %v6935_v46 = vld [vmem:[#allocation5 + $0x7a0] sm:$0xff]   ;;  %v706_v55 = vmul.f32 %v5774_v33, %v7403_v56 }
  0xca   :  { %v7561_v1 = vpop.xlane.xlu1 %229  ;;  %v7565_v13 = vpop.xlane.xlu0 %226  ;;  %v5778_v57 = vunpack.c.h.bf16 %v6935_v46  ;;  %v5777_v4 = vunpack.c.l.bf16 %v6935_v46 }
  0xcb   :  { %v784_v19 = vsel %vm200_vm0, %v706_v55, 0.0  ;;  %v5786_v55 = vunpack.c.h.bf16 %v6937_v40 }
  0xcc   :  { %v708_v21 = vmul.f32 %v5778_v57, %v7411_v8  ;;  %v707_v33 = vmul.f32 %v5777_v4, %v7415_v14 }
  0xcd   :  { %767 = vadd.xlane.f32.xlu1 %v766_v2  ;;  %764 = vadd.xlane.f32.xlu0 %v763_v16  ;;  %v705_v2 = vmul.f32 %v5773_v41, %v7407_v61 }
  0xce   :  { %v7569_v25 = vpop.xlane.xlu1 %235  ;;  %v7573_v35 = vpop.xlane.xlu0 %232  ;;  %v790_v46 = vsel %vm200_vm0, %v708_v21, 0.0  ;;  %v787_v57 = vsel %vm200_vm0, %v707_v33, 0.0 }
  0xcf   :  { %v781_v30 = vsel %vm200_vm0, %v705_v2, 0.0  ;;  %v5785_v2 = vunpack.c.l.bf16 %v6937_v40 }
  0xd1   :  { %773 = vadd.xlane.f32.xlu1 %v772_v27  ;;  %770 = vadd.xlane.f32.xlu0 %v769_v37  ;;  %v5781_v37 = vunpack.c.l.bf16 %v6936_v10 }
  0xd2   :  { %v7577_v47 = vpop.xlane.xlu1 %241  ;;  %v7581_v59 = vpop.xlane.xlu0 %238 }
  0xd3   :  { %v709_v53 = vmul.f32 %v5781_v37, %v7423_v29 }
  0xd5   :  { %779 = vadd.xlane.f32.xlu1 %v778_v50  ;;  %776 = vadd.xlane.f32.xlu0 %v775_v0  ;;  %v710_v50 = vmul.f32 %v5782_v22, %v7419_v23  ;;  %v793_v22 = vsel %vm200_vm0, %v709_v53, 0.0  ;;  %v711_v23 = vmul.f32 %v5785_v2, %v7431_v45 }
  0xd6   :  { %v7585_v16 = vpop.xlane.xlu1 %247  ;;  %v7589_v27 = vpop.xlane.xlu0 %244 }
  0xd7   :  { %14139 = vst [vmem:[#allocation44_spill] sm:$0xff] %v7589_v27  ;;  %v6938_v27 = vld [vmem:[#allocation5 + $0x8e8] sm:$0xff]   ;;  %v796_v10 = vsel %vm200_vm0, %v710_v50, 0.0 }
  0xd8   :  { %v5790_v21 = vunpack.c.h.bf16 %v6938_v27  ;;  %v5789_v33 = vunpack.c.l.bf16 %v6938_v27 }
  0xd9   :  { %785 = vadd.xlane.f32.xlu1 %v784_v19  ;;  %782 = vadd.xlane.f32.xlu0 %v781_v30  ;;  %v712_v19 = vmul.f32 %v5786_v55, %v7427_v39  ;;  %v799_v55 = vsel %vm200_vm0, %v711_v23, 0.0 }
  0xda   :  { %v7593_v41 = vpop.xlane.xlu1 %253  ;;  %v7597_v0 = vpop.xlane.xlu0 %250  ;;  %v713_v39 = vmul.f32 %v5789_v33, %v7439_v60 }
  0xdb   :  { %14140 = vst [vmem:[#allocation45_spill] sm:$0xff] %v7597_v0  ;;  %v5792_v0 = vld [vmem:[#allocation5 + $0x30] sm:$0xff]   ;;  %v802_v40 = vsel %vm200_vm0, %v712_v19, 0.0 }
  0xdc   :  { %v5794_v50 = vunpack.c.h.bf16 %v5792_v0  ;;  %v5793_v53 = vunpack.c.l.bf16 %v5792_v0 }
  0xdd   :  { %791 = vadd.xlane.f32.xlu1 %v790_v46  ;;  %788 = vadd.xlane.f32.xlu0 %v787_v57  ;;  %v714_v46 = vmul.f32 %v5790_v21, %v7435_v54  ;;  %v805_v21 = vsel %vm200_vm0, %v713_v39, 0.0  ;;  %v6940_v54 = vld [vmem:[#allocation5 + $0x170] sm:$0xff]  }
  0xde   :  { %v7601_v4 = vpop.xlane.xlu1 %259  ;;  %v7605_v30 = vpop.xlane.xlu0 %256  ;;  %v5801_v39 = vunpack.c.l.bf16 %v6940_v54 }
  0xdf   :  { %14141 = vst [vmem:[#allocation46_spill] sm:$0xff] %v7605_v30  ;;  %v6939_v30 = vld [vmem:[#allocation5 + $0x38] sm:$0xff]   ;;  %v808_v2 = vsel %vm200_vm0, %v714_v46, 0.0  ;;  %v5802_v46 = vunpack.c.h.bf16 %v6940_v54 }
  0xe0   :  { %v5798_v19 = vunpack.c.h.bf16 %v6939_v30  ;;  %v5797_v23 = vunpack.c.l.bf16 %v6939_v30 }
  0xe1   :  { %797 = vadd.xlane.f32.xlu1 %v796_v10  ;;  %794 = vadd.xlane.f32.xlu0 %v793_v22  ;;  %v941_v10 = vmul.f32 %v5794_v50, %v7325_v12 }
  0xe2   :  { %v7609_v37 = vpop.xlane.xlu1 %265  ;;  %v7613_v57 = vpop.xlane.xlu0 %262  ;;  %v942_v12 = vmul.f32 %v5797_v23, %v7319_v3 }
  0xe3   :  { %14142 = vst [vmem:[#allocation47_spill] sm:$0xff] %v7613_v57  ;;  %v940_v57 = vmul.f32 %v5793_v53, %v7321_v5  ;;  %v975_v33 = vsel %vm200_vm0, %v941_v10, 0.0 }
  0xe5   :  { %803 = vadd.xlane.f32.xlu1 %v802_v40  ;;  %800 = vadd.xlane.f32.xlu0 %v799_v55  ;;  %v943_v40 = vmul.f32 %v5798_v19, %v7323_v7  ;;  %v972_v50 = vsel %vm200_vm0, %v940_v57, 0.0  ;;  %v978_v19 = vsel %vm200_vm0, %v942_v12, 0.0  ;;  %v944_v7 = vmul.f32 %v5801_v39, %v7330_v17 }
  0xe6   :  { %v7617_v27 = vpop.xlane.xlu1 %271  ;;  %v7621_v22 = vpop.xlane.xlu0 %268 }
  0xe7   :  { %14143 = vst [vmem:[#allocation48_spill] sm:$0xff] %v7621_v22  ;;  %v6941_v22 = vld [vmem:[#allocation5 + $0x178] sm:$0xff]   ;;  %v981_v53 = vsel %vm200_vm0, %v943_v40, 0.0 }
  0xe8   :  { %v5806_v10 = vunpack.c.h.bf16 %v6941_v22  ;;  %v5805_v57 = vunpack.c.l.bf16 %v6941_v22 }
  0xe9   :  { %809 = vadd.xlane.f32.xlu1 %v808_v2  ;;  %806 = vadd.xlane.f32.xlu0 %v805_v21  ;;  %v945_v2 = vmul.f32 %v5802_v46, %v7328_v15  ;;  %v984_v46 = vsel %vm200_vm0, %v944_v7, 0.0  ;;  %v6943_v15 = vld [vmem:[#allocation5 + $0x2b8] sm:$0xff]  }
  0xea   :  { %v7625_v0 = vpop.xlane.xlu1 %277  ;;  %v7629_v55 = vpop.xlane.xlu0 %274 }
  0xeb   :  { %14144 = vst [vmem:[#allocation49_spill] sm:$0xff] %v7629_v55  ;;  %v6942_v55 = vld [vmem:[#allocation5 + $0x2b0] sm:$0xff]   ;;  %v987_v23 = vsel %vm200_vm0, %v945_v2, 0.0  ;;  %v5814_v2 = vunpack.c.h.bf16 %v6943_v15 }
  0xec   :  { %v5810_v40 = vunpack.c.h.bf16 %v6942_v55  ;;  %v5809_v12 = vunpack.c.l.bf16 %v6942_v55  ;;  %v298_v55 = vmax.f32 %v7541_v18, -3.4028235e+38 }
  0xed   :  { %976 = vadd.xlane.f32.xlu1 %v975_v33  ;;  %973 = vadd.xlane.f32.xlu0 %v972_v50  ;;  %v947_v33 = vmul.f32 %v5806_v10, %v7339_v28  ;;  %v6944_v10 = vld [vmem:[#allocation5 + $0x3f0] sm:$0xff]  }
  0xee   :  { %v7633_v30 = vpop.xlane.xlu1 %283  ;;  %v7637_v21 = vpop.xlane.xlu0 %280  ;;  %v948_v7 = vmul.f32 %v5809_v12, %v7351_v42 }
  0xef   :  { %14145 = vst [vmem:[#allocation50_spill] sm:$0xff] %v7637_v21  ;;  %v946_v21 = vmul.f32 %v5805_v57, %v7343_v32  ;;  %v993_v39 = vsel %vm200_vm0, %v947_v33, 0.0  ;;  %v5818_v57 = vunpack.c.h.bf16 %v6944_v10 }
  0xf0   :  { %v996_v42 = vsel %vm200_vm0, %v948_v7, 0.0 }
  0xf1   :  { %982 = vadd.xlane.f32.xlu1 %v981_v53  ;;  %979 = vadd.xlane.f32.xlu0 %v978_v19  ;;  %v949_v53 = vmul.f32 %v5810_v40, %v7347_v38  ;;  %v5813_v19 = vunpack.c.l.bf16 %v6943_v15  ;;  %v951_v40 = vmul.f32 %v5814_v2, %v7355_v48  ;;  %v953_v2 = vmul.f32 %v5818_v57, %v7363_v58 }
  0xf2   :  { %v7641_v54 = vpop.xlane.xlu1 %289  ;;  %v7645_v50 = vpop.xlane.xlu0 %286  ;;  %v302_v57 = vmax.f32 %v7545_v26, -3.4028235e+38 }
  0xf3   :  { %14146 = vst [vmem:[#allocation51_spill] sm:$0xff] %v7645_v50  ;;  %v990_v50 = vsel %vm200_vm0, %v946_v21, 0.0  ;;  %v999_v33 = vsel %vm200_vm0, %v949_v53, 0.0  ;;  %v950_v15 = vmul.f32 %v5813_v19, %v7359_v52  ;;  %v300_v53 = vmax.f32 %v7537_v9, -3.4028235e+38 }
  0xf5   :  { %988 = vadd.xlane.f32.xlu1 %v987_v23  ;;  %985 = vadd.xlane.f32.xlu0 %v984_v46  ;;  %v297_v23 = vmax.f32 %v7533_v63, -3.4028235e+38 }
  0xf6   :  { %v7649_v22 = vpop.xlane.xlu1 %295  ;;  %v7653_v28 = vpop.xlane.xlu0 %292 }
  0xf7   :  { %14147 = vst [vmem:[#allocation52_spill] sm:$0xff] %v7649_v22  ;;  %14148 = vst [vmem:[#allocation53_spill] sm:$0xff] %v7653_v28  ;;  %v6945_v28 = vld [vmem:[#allocation5 + $0x3f8] sm:$0xff]  }
  0xf9   :  { %994 = vadd.xlane.f32.xlu1 %v993_v39  ;;  %991 = vadd.xlane.f32.xlu0 %v990_v50  ;;  %v5817_v39 = vunpack.c.l.bf16 %v6944_v10 }
  0xfa   :  { %v463_v46 = vpop.xlane.xlu1 %462  ;;  %v460_v12 = vpop.xlane.xlu0 %459 }
  0xfb   :  { %v7662_v38 = vmax.f32 %v298_v55, %v463_v46  ;;  %v7665_v21 = vadd.f32 %v463_v46, %v7541_v18  ;;  %v7668_v22 = vmax.f32 %v297_v23, %v460_v12  ;;  %v7671_v50 = vadd.f32 %v460_v12, %v7533_v63 }
  0xfc   :  { %v1005_v18 = vsel %vm200_vm0, %v951_v40, 0.0  ;;  %v1002_v55 = vsel %vm200_vm0, %v950_v15, 0.0  ;;  %v5822_v46 = vunpack.c.h.bf16 %v6945_v28  ;;  %v952_v63 = vmul.f32 %v5817_v39, %v7367_v62 }
  0xfd   :  { %14149 = vst [vmem:[#allocation54_spill] sm:$0xff] %v7668_v22  ;;  %1000 = vadd.xlane.f32.xlu1 %v999_v33  ;;  %997 = vadd.xlane.f32.xlu0 %v996_v42  ;;  %v5821_v12 = vunpack.c.l.bf16 %v6945_v28  ;;  %v6946_v33 = vld [vmem:[#allocation5 + $0x530] sm:$0xff]   ;;  %v1011_v42 = vsel %vm200_vm0, %v953_v2, 0.0  ;;  %v301_v40 = vmax.f32 %v7549_v34, -3.4028235e+38 }
  0xfe   :  { %v469_v19 = vpop.xlane.xlu1 %468  ;;  %v7682_v23 = vpop.xlane.xlu0 %465  ;;  %v1008_v62 = vsel %vm200_vm0, %v952_v63, 0.0 }
  0xff   :  { %v7677_v7 = vmax.f32 %v300_v53, %v469_v19  ;;  %v7680_v10 = vadd.f32 %v469_v19, %v7537_v9  ;;  %v955_v53 = vmul.f32 %v5822_v46, %v7371_v6  ;;  %v5825_v9 = vunpack.c.l.bf16 %v6946_v33  ;;  %v6947_v19 = vld [vmem:[#allocation5 + $0x538] sm:$0xff]  }
 0x100   :  { %v304_v46 = vmax.f32 %v7553_v43, -3.4028235e+38 }
 0x101   :  { %14150 = vst [vmem:[#allocation55_spill] sm:$0xff] %v7677_v7  ;;  %14151 = vst [vmem:[#allocation56_spill] sm:$0xff] %v7680_v10  ;;  %1006 = vadd.xlane.f32.xlu1 %v1005_v18  ;;  %1003 = vadd.xlane.f32.xlu0 %v1002_v55  ;;  %v5826_v7 = vunpack.c.h.bf16 %v6946_v33  ;;  %v954_v18 = vmul.f32 %v5821_v12, %v7375_v11  ;;  %v5830_v33 = vunpack.c.h.bf16 %v6947_v19 }
 0x102   :  { %v475_v15 = vpop.xlane.xlu1 %474  ;;  %v472_v28 = vpop.xlane.xlu0 %471  ;;  %v956_v63 = vmul.f32 %v5825_v9, %v7383_v24  ;;  %v305_v9 = vmax.f32 %v7565_v13, -3.4028235e+38 }
 0x103   :  { %v7689_v10 = vmax.f32 %v302_v57, %v475_v15  ;;  %v7692_v39 = vadd.f32 %v475_v15, %v7545_v26  ;;  %v7696_v2 = vmax.f32 %v301_v40, %v472_v28  ;;  %v7699_v55 = vadd.f32 %v472_v28, %v7549_v34 }
 0x104   :  { %v303_v57 = vmax.f32 %v7557_v51, -3.4028235e+38  ;;  %v1017_v26 = vsel %vm200_vm0, %v955_v53, 0.0  ;;  %v957_v15 = vmul.f32 %v5826_v7, %v7379_v20  ;;  %v1014_v28 = vsel %vm200_vm0, %v954_v18, 0.0 }
 0x105   :  { %14152 = vst [vmem:[#allocation57_spill] sm:$0xff] %v7689_v10  ;;  %14153 = vst [vmem:[#allocation58_spill] sm:$0xff] %v7696_v2  ;;  %1012 = vadd.xlane.f32.xlu1 %v1011_v42  ;;  %1009 = vadd.xlane.f32.xlu0 %v1008_v62  ;;  %v5829_v42 = vunpack.c.l.bf16 %v6947_v19  ;;  %v306_v53 = vmax.f32 %v7561_v1, -3.4028235e+38  ;;  %v959_v7 = vmul.f32 %v5830_v33, %v7387_v31  ;;  %v1020_v18 = vsel %vm200_vm0, %v956_v63, 0.0 }
 0x106   :  { %14154 = vst [vmem:[#allocation59_spill] sm:$0xff] %v7699_v55  ;;  %v481_v10 = vpop.xlane.xlu1 %480  ;;  %v478_v34 = vpop.xlane.xlu0 %477  ;;  %v6948_v55 = vld [vmem:[#allocation5 + $0x670] sm:$0xff]  }
 0x107   :  { %v7706_v12 = vmax.f32 %v304_v46, %v481_v10  ;;  %v7709_v40 = vadd.f32 %v481_v10, %v7553_v43  ;;  %v7712_v2 = vmax.f32 %v303_v57, %v478_v34  ;;  %v7715_v62 = vadd.f32 %v478_v34, %v7557_v51 }
 0x108   :  { %v1023_v10 = vsel %vm200_vm0, %v957_v15, 0.0  ;;  %v5834_v19 = vunpack.c.h.bf16 %v6948_v55  ;;  %v958_v34 = vmul.f32 %v5829_v42, %v7391_v36  ;;  %v308_v15 = vmax.f32 %v7569_v25, -3.4028235e+38  ;;  %v14216_v22 = vld [vmem:[#allocation55_spill] sm:$0xff] }
 0x109   :  { %14155 = vst [vmem:[#allocation60_spill] sm:$0xff] %v7706_v12  ;;  %14156 = vst [vmem:[#allocation61_spill] sm:$0xff] %v7712_v2  ;;  %1018 = vadd.xlane.f32.xlu1 %v1017_v26  ;;  %1015 = vadd.xlane.f32.xlu0 %v1014_v28  ;;  %v5833_v26 = vunpack.c.l.bf16 %v6948_v55  ;;  %v1029_v63 = vsel %vm200_vm0, %v959_v7, 0.0  ;;  %v6950_v55 = vld [vmem:[#allocation5 + $0x7b0] sm:$0xff]  }
 0x10a   :  { %14157 = vst [vmem:[#allocation62_spill] sm:$0xff] %v7715_v62  ;;  %v487_v43 = vpop.xlane.xlu1 %486  ;;  %v484_v51 = vpop.xlane.xlu0 %483  ;;  %v6949_v62 = vld [vmem:[#allocation5 + $0x678] sm:$0xff]  }
 0x10b   :  { %v7722_v46 = vmax.f32 %v306_v53, %v487_v43  ;;  %v7725_v57 = vadd.f32 %v487_v43, %v7561_v1  ;;  %v7728_v33 = vmax.f32 %v305_v9, %v484_v51  ;;  %v7731_v28 = vadd.f32 %v484_v51, %v7565_v13 }
 0x10c   :  { %v307_v53 = vmax.f32 %v7573_v35, -3.4028235e+38  ;;  %v961_v43 = vmul.f32 %v5834_v19, %v7395_v44  ;;  %v5837_v42 = vunpack.c.l.bf16 %v6949_v62  ;;  %v1026_v51 = vsel %vm200_vm0, %v958_v34, 0.0 }
 0x10d   :  { %14158 = vst [vmem:[#allocation63_spill] sm:$0xff] %v7725_v57  ;;  %1024 = vadd.xlane.f32.xlu1 %v1023_v10  ;;  %1021 = vadd.xlane.f32.xlu0 %v1020_v18  ;;  %v5838_v57 = vunpack.c.h.bf16 %v6949_v62  ;;  %v960_v10 = vmul.f32 %v5833_v26, %v7399_v49  ;;  %v310_v19 = vmax.f32 %v7577_v47, -3.4028235e+38  ;;  %v5842_v62 = vunpack.c.h.bf16 %v6950_v55 }
 0x10e   :  { %v493_v1 = vpop.xlane.xlu1 %492  ;;  %v490_v13 = vpop.xlane.xlu0 %489  ;;  %v962_v34 = vmul.f32 %v5837_v42, %v7407_v61  ;;  %v14165_v42 = vld [vmem:[#allocation44_spill] sm:$0xff] }
 0x10f   :  { %v7737_v36 = vmax.f32 %v308_v15, %v493_v1  ;;  %v7740_v9 = vadd.f32 %v493_v1, %v7569_v25  ;;  %v7744_v7 = vmax.f32 %v307_v53, %v490_v13  ;;  %v7747_v18 = vadd.f32 %v490_v13, %v7573_v35 }
 0x110   :  { %v309_v15 = vmax.f32 %v7581_v59, -3.4028235e+38  ;;  %v1035_v25 = vsel %vm200_vm0, %v961_v43, 0.0  ;;  %v963_v1 = vmul.f32 %v5838_v57, %v7403_v56  ;;  %v1032_v13 = vsel %vm200_vm0, %v960_v10, 0.0 }
 0x111   :  { %14159 = vst [vmem:[#allocation64_spill] sm:$0xff] %v7737_v36  ;;  %14160 = vst [vmem:[#allocation65_spill] sm:$0xff] %v7744_v7  ;;  %1030 = vadd.xlane.f32.xlu1 %v1029_v63  ;;  %1027 = vadd.xlane.f32.xlu0 %v1026_v51  ;;  %v5841_v63 = vunpack.c.l.bf16 %v6950_v55  ;;  %v312_v43 = vmax.f32 %v7585_v16, -3.4028235e+38  ;;  %v965_v57 = vmul.f32 %v5842_v62, %v7411_v8  ;;  %v1038_v10 = vsel %vm200_vm0, %v962_v34, 0.0 }
 0x112   :  { %14161 = vst [vmem:[#allocation66_spill] sm:$0xff] %v7747_v18  ;;  %v499_v36 = vpop.xlane.xlu1 %498  ;;  %v496_v35 = vpop.xlane.xlu0 %495  ;;  %v6951_v18 = vld [vmem:[#allocation5 + $0x7b8] sm:$0xff]  }
 0x113   :  { %v7754_v26 = vmax.f32 %v310_v19, %v499_v36  ;;  %v7757_v53 = vadd.f32 %v499_v36, %v7577_v47  ;;  %v7760_v7 = vmax.f32 %v309_v15, %v496_v35  ;;  %v7763_v51 = vadd.f32 %v496_v35, %v7581_v59 }
 0x114   :  { %v311_v19 = vmax.f32 %v14165_v42, -3.4028235e+38  ;;  %v1041_v47 = vsel %vm200_vm0, %v963_v1, 0.0  ;;  %v5846_v55 = vunpack.c.h.bf16 %v6951_v18  ;;  %v964_v35 = vmul.f32 %v5841_v63, %v7415_v14 }
 0x115   :  { %14162 = vst [vmem:[#allocation67_spill] sm:$0xff] %v7754_v26  ;;  %14163 = vst [vmem:[#allocation68_spill] sm:$0xff] %v7760_v7  ;;  %1036 = vadd.xlane.f32.xlu1 %v1035_v25  ;;  %1033 = vadd.xlane.f32.xlu0 %v1032_v13  ;;  %v5845_v25 = vunpack.c.l.bf16 %v6951_v18  ;;  %v314_v1 = vmax.f32 %v7593_v41, -3.4028235e+38  ;;  %v1047_v34 = vsel %vm200_vm0, %v965_v57, 0.0  ;;  %v6953_v18 = vld [vmem:[#allocation5 + $0x8f8] sm:$0xff]  }
 0x116   :  { %14164 = vst [vmem:[#allocation69_spill] sm:$0xff] %v7763_v51  ;;  %v505_v36 = vpop.xlane.xlu1 %504  ;;  %v502_v59 = vpop.xlane.xlu0 %501  ;;  %v6952_v51 = vld [vmem:[#allocation5 + $0x8f0] sm:$0xff]  }
 0x117   :  { %v7770_v61 = vmax.f32 %v312_v43, %v505_v36  ;;  %v7773_v15 = vadd.f32 %v505_v36, %v7585_v16  ;;  %v7776_v62 = vmax.f32 %v311_v19, %v502_v59  ;;  %v7779_v13 = vadd.f32 %v502_v59, %v14165_v42  ;;  %v14168_v43 = vld [vmem:[#allocation45_spill] sm:$0xff] }
 0x118   :  { %v14169_v36 = vld [vmem:[#allocation37_spill] sm:$0xff]  ;;  %v5850_v8 = vunpack.c.h.bf16 %v6952_v51  ;;  %v5849_v63 = vunpack.c.l.bf16 %v6952_v51  ;;  %v1044_v59 = vsel %vm200_vm0, %v964_v35, 0.0  ;;  %v5854_v51 = vunpack.c.h.bf16 %v6953_v18 }
 0x119   :  { %14166 = vst [vmem:[#allocation44_spill] sm:$0xff] %v7770_v61  ;;  %14167 = vst [vmem:[#allocation70_spill] sm:$0xff] %v7773_v15  ;;  %1042 = vadd.xlane.f32.xlu1 %v1041_v47  ;;  %v313_v61 = vmax.f32 %v14168_v43, -3.4028235e+38  ;;  %1039 = vadd.xlane.f32.xlu0 %v1038_v10  ;;  %v967_v15 = vmul.f32 %v5846_v55, %v14169_v36  ;;  %v966_v47 = vmul.f32 %v5845_v25, %v7423_v29  ;;  %v14174_v36 = vld [vmem:[#allocation46_spill] sm:$0xff] }
 0x11a   :  { %v511_v16 = vpop.xlane.xlu1 %510  ;;  %v508_v42 = vpop.xlane.xlu0 %507  ;;  %v316_v55 = vmax.f32 %v7601_v4, -3.4028235e+38  ;;  %v968_v35 = vmul.f32 %v5849_v63, %v7431_v45 }
 0x11b   :  { %v7785_v14 = vmax.f32 %v314_v1, %v511_v16  ;;  %v7788_v19 = vadd.f32 %v511_v16, %v7593_v41  ;;  %v7792_v57 = vmax.f32 %v313_v61, %v508_v42  ;;  %v7795_v10 = vadd.f32 %v508_v42, %v14168_v43  ;;  %v14175_v16 = vld [vmem:[#allocation39_spill] sm:$0xff] }
 0x11c   :  { %v315_v1 = vmax.f32 %v14174_v36, -3.4028235e+38  ;;  %v1053_v41 = vsel %vm200_vm0, %v967_v15, 0.0  ;;  %v1050_v42 = vsel %vm200_vm0, %v966_v47, 0.0  ;;  %v318_v15 = vmax.f32 %v7609_v37, -3.4028235e+38 }
 0x11d   :  { %14170 = vst [vmem:[#allocation45_spill] sm:$0xff] %v7785_v14  ;;  %14171 = vst [vmem:[#allocation71_spill] sm:$0xff] %v7788_v19  ;;  %1048 = vadd.xlane.f32.xlu1 %v1047_v34  ;;  %1045 = vadd.xlane.f32.xlu0 %v1044_v59  ;;  %v969_v19 = vmul.f32 %v5850_v8, %v14175_v16  ;;  %v5853_v34 = vunpack.c.l.bf16 %v6953_v18  ;;  %v14180_v8 = vld [vmem:[#allocation41_spill] sm:$0xff]  ;;  %v1056_v47 = vsel %vm200_vm0, %v968_v35, 0.0 }
 0x11e   :  { %14172 = vst [vmem:[#allocation72_spill] sm:$0xff] %v7792_v57  ;;  %14173 = vst [vmem:[#allocation73_spill] sm:$0xff] %v7795_v10  ;;  %v517_v14 = vpop.xlane.xlu1 %516  ;;  %v514_v43 = vpop.xlane.xlu0 %513  ;;  %v5856_v10 = vld [vmem:[#allocation5 + $0x40] sm:$0xff]   ;;  %v971_v63 = vmul.f32 %v5854_v51, %v14180_v8 }
 0x11f   :  { %v7802_v25 = vmax.f32 %v316_v55, %v517_v14  ;;  %v7805_v61 = vadd.f32 %v517_v14, %v7601_v4  ;;  %v7808_v57 = vmax.f32 %v315_v1, %v514_v43  ;;  %v7811_v59 = vadd.f32 %v514_v43, %v14174_v36  ;;  %v14181_v55 = vld [vmem:[#allocation47_spill] sm:$0xff] }
 0x120   :  { %v317_v45 = vmax.f32 %v14181_v55, -3.4028235e+38  ;;  %v1059_v4 = vsel %vm200_vm0, %v969_v19, 0.0  ;;  %v5858_v18 = vunpack.c.h.bf16 %v5856_v10  ;;  %v970_v43 = vmul.f32 %v5853_v34, %v7439_v60 }
 0x121   :  { %14176 = vst [vmem:[#allocation46_spill] sm:$0xff] %v7802_v25  ;;  %14177 = vst [vmem:[#allocation74_spill] sm:$0xff] %v7805_v61  ;;  %1054 = vadd.xlane.f32.xlu1 %v1053_v41  ;;  %1051 = vadd.xlane.f32.xlu0 %v1050_v42  ;;  %v5857_v41 = vunpack.c.l.bf16 %v5856_v10  ;;  %v320_v19 = vmax.f32 %v7617_v27, -3.4028235e+38  ;;  %v1065_v35 = vsel %vm200_vm0, %v971_v63, 0.0  ;;  %v6955_v10 = vld [vmem:[#allocation5 + $0x180] sm:$0xff]  }
 0x122   :  { %14178 = vst [vmem:[#allocation75_spill] sm:$0xff] %v7808_v57  ;;  %14179 = vst [vmem:[#allocation76_spill] sm:$0xff] %v7811_v59  ;;  %v523_v14 = vpop.xlane.xlu1 %522  ;;  %v520_v36 = vpop.xlane.xlu0 %519  ;;  %v6954_v59 = vld [vmem:[#allocation5 + $0x48] sm:$0xff]  }
 0x123   :  { %v7818_v61 = vmax.f32 %v318_v15, %v523_v14  ;;  %v7821_v1 = vadd.f32 %v523_v14, %v7609_v37  ;;  %v7824_v51 = vmax.f32 %v317_v45, %v520_v36  ;;  %v7827_v42 = vadd.f32 %v520_v36, %v14181_v55  ;;  %v14184_v15 = vld [vmem:[#allocation48_spill] sm:$0xff]  ;;  %v14185_v14 = vld [vmem:[#allocation14_spill] sm:$0xff] }
 0x124   :  { %v5862_v8 = vunpack.c.h.bf16 %v6954_v59  ;;  %v5861_v34 = vunpack.c.l.bf16 %v6954_v59  ;;  %v1062_v36 = vsel %vm200_vm0, %v970_v43, 0.0  ;;  %v5866_v59 = vunpack.c.h.bf16 %v6955_v10 }
 0x125   :  { %14182 = vst [vmem:[#allocation47_spill] sm:$0xff] %v7818_v61  ;;  %14183 = vst [vmem:[#allocation77_spill] sm:$0xff] %v7821_v1  ;;  %1060 = vadd.xlane.f32.xlu1 %v1059_v4  ;;  %v319_v61 = vmax.f32 %v14184_v15, -3.4028235e+38  ;;  %1057 = vadd.xlane.f32.xlu0 %v1056_v47  ;;  %v1198_v1 = vmul.f32 %v5858_v18, %v14185_v14  ;;  %v1197_v4 = vmul.f32 %v5857_v41, %v7321_v5  ;;  %v14190_v14 = vld [vmem:[#allocation49_spill] sm:$0xff] }
 0x126   :  { %v529_v37 = vpop.xlane.xlu1 %528  ;;  %v526_v55 = vpop.xlane.xlu0 %525  ;;  %v322_v18 = vmax.f32 %v7625_v0, -3.4028235e+38  ;;  %v1199_v43 = vmul.f32 %v5861_v34, %v7319_v3 }
 0x127   :  { %v7833_v60 = vmax.f32 %v320_v19, %v529_v37  ;;  %v7836_v45 = vadd.f32 %v529_v37, %v7617_v27  ;;  %v7840_v63 = vmax.f32 %v319_v61, %v526_v55  ;;  %v7843_v47 = vadd.f32 %v526_v55, %v14184_v15  ;;  %v14191_v37 = vld [vmem:[#allocation13_spill] sm:$0xff] }
 0x128   :  { %v321_v19 = vmax.f32 %v14190_v14, -3.4028235e+38  ;;  %v1232_v27 = vsel %vm200_vm0, %v1198_v1, 0.0  ;;  %v1229_v55 = vsel %vm200_vm0, %v1197_v4, 0.0  ;;  %v324_v1 = vmax.f32 %v7633_v30, -3.4028235e+38 }
 0x129   :  { %14186 = vst [vmem:[#allocation48_spill] sm:$0xff] %v7833_v60  ;;  %14187 = vst [vmem:[#allocation78_spill] sm:$0xff] %v7836_v45  ;;  %1066 = vadd.xlane.f32.xlu1 %v1065_v35  ;;  %1063 = vadd.xlane.f32.xlu0 %v1062_v36  ;;  %v1200_v45 = vmul.f32 %v5862_v8, %v14191_v37  ;;  %v5865_v35 = vunpack.c.l.bf16 %v6955_v10  ;;  %v14196_v8 = vld [vmem:[#allocation15_spill] sm:$0xff]  ;;  %v1235_v4 = vsel %vm200_vm0, %v1199_v43, 0.0 }
 0x12a   :  { %14188 = vst [vmem:[#allocation79_spill] sm:$0xff] %v7840_v63  ;;  %14189 = vst [vmem:[#allocation80_spill] sm:$0xff] %v7843_v47  ;;  %v535_v60 = vpop.xlane.xlu1 %534  ;;  %v532_v15 = vpop.xlane.xlu0 %531  ;;  %v6956_v47 = vld [vmem:[#allocation5 + $0x188] sm:$0xff]   ;;  %v1202_v34 = vmul.f32 %v5866_v59, %v14196_v8 }
 0x12b   :  { %v7850_v41 = vmax.f32 %v322_v18, %v535_v60  ;;  %v7853_v61 = vadd.f32 %v535_v60, %v7625_v0  ;;  %v7856_v63 = vmax.f32 %v321_v19, %v532_v15  ;;  %v7859_v36 = vadd.f32 %v532_v15, %v14190_v14  ;;  %v14197_v18 = vld [vmem:[#allocation50_spill] sm:$0xff] }
 0x12c   :  { %v323_v3 = vmax.f32 %v14197_v18, -3.4028235e+38  ;;  %v1238_v0 = vsel %vm200_vm0, %v1200_v45, 0.0  ;;  %v5870_v10 = vunpack.c.h.bf16 %v6956_v47  ;;  %v1201_v15 = vmul.f32 %v5865_v35, %v7330_v17 }
 0x12d   :  { %14192 = vst [vmem:[#allocation49_spill] sm:$0xff] %v7850_v41  ;;  %14193 = vst [vmem:[#allocation81_spill] sm:$0xff] %v7853_v61  ;;  %1233 = vadd.xlane.f32.xlu1 %v1232_v27  ;;  %1230 = vadd.xlane.f32.xlu0 %v1229_v55  ;;  %v5869_v27 = vunpack.c.l.bf16 %v6956_v47  ;;  %v326_v45 = vmax.f32 %v7641_v54, -3.4028235e+38  ;;  %v1244_v43 = vsel %vm200_vm0, %v1202_v34, 0.0  ;;  %v6958_v47 = vld [vmem:[#allocation5 + $0x2c8] sm:$0xff]  }
 0x12e   :  { %14194 = vst [vmem:[#allocation82_spill] sm:$0xff] %v7856_v63  ;;  %14195 = vst [vmem:[#allocation83_spill] sm:$0xff] %v7859_v36  ;;  %v541_v60 = vpop.xlane.xlu1 %540  ;;  %v538_v14 = vpop.xlane.xlu0 %537  ;;  %v6957_v36 = vld [vmem:[#allocation5 + $0x2c0] sm:$0xff]  }
 0x12f   :  { %v7866_v61 = vmax.f32 %v324_v1, %v541_v60  ;;  %v7869_v19 = vadd.f32 %v541_v60, %v7633_v30  ;;  %v7872_v59 = vmax.f32 %v323_v3, %v538_v14  ;;  %v7875_v55 = vadd.f32 %v538_v14, %v14197_v18  ;;  %v14202_v1 = vld [vmem:[#allocation51_spill] sm:$0xff]  ;;  %v14203_v60 = vld [vmem:[#allocation17_spill] sm:$0xff] }
 0x130   :  { %v5874_v8 = vunpack.c.h.bf16 %v6957_v36  ;;  %v5873_v35 = vunpack.c.l.bf16 %v6957_v36  ;;  %v1241_v14 = vsel %vm200_vm0, %v1201_v15, 0.0  ;;  %v5878_v36 = vunpack.c.h.bf16 %v6958_v47  ;;  %v14211_v15 = vld [vmem:[#allocation20_spill] sm:$0xff] }
 0x131   :  { %14198 = vst [vmem:[#allocation50_spill] sm:$0xff] %v7866_v61  ;;  %14199 = vst [vmem:[#allocation84_spill] sm:$0xff] %v7869_v19  ;;  %1239 = vadd.xlane.f32.xlu1 %v1238_v0  ;;  %v325_v61 = vmax.f32 %v14202_v1, -3.4028235e+38  ;;  %1236 = vadd.xlane.f32.xlu0 %v1235_v4  ;;  %v1204_v19 = vmul.f32 %v5870_v10, %v14203_v60  ;;  %v1203_v0 = vmul.f32 %v5869_v27, %v7343_v32  ;;  %v14209_v60 = vld [vmem:[#allocation53_spill] sm:$0xff]  ;;  %v6959_v27 = vld [vmem:[#allocation5 + $0x400] sm:$0xff]  }
 0x132   :  { %14200 = vst [vmem:[#allocation85_spill] sm:$0xff] %v7872_v59  ;;  %14201 = vst [vmem:[#allocation86_spill] sm:$0xff] %v7875_v55  ;;  %v547_v30 = vpop.xlane.xlu1 %546  ;;  %v544_v18 = vpop.xlane.xlu0 %543  ;;  %v14208_v55 = vld [vmem:[#allocation52_spill] sm:$0xff]  ;;  %v1205_v59 = vmul.f32 %v5873_v35, %v14211_v15 }
 0x133   :  { %v7881_v17 = vmax.f32 %v326_v45, %v547_v30  ;;  %v7884_v3 = vadd.f32 %v547_v30, %v7641_v54  ;;  %v7888_v34 = vmax.f32 %v325_v61, %v544_v18  ;;  %v7891_v4 = vadd.f32 %v544_v18, %v14202_v1  ;;  %v14210_v30 = vld [vmem:[#allocation19_spill] sm:$0xff] }
 0x134   :  { %v328_v10 = vmax.f32 %v14208_v55, -3.4028235e+38  ;;  %v327_v45 = vmax.f32 %v14209_v60, -3.4028235e+38  ;;  %v1250_v54 = vsel %vm200_vm0, %v1204_v19, 0.0  ;;  %v5882_v19 = vunpack.c.h.bf16 %v6959_v27 }
 0x135   :  { %14204 = vst [vmem:[#allocation51_spill] sm:$0xff] %v7881_v17  ;;  %14205 = vst [vmem:[#allocation87_spill] sm:$0xff] %v7884_v3  ;;  %1245 = vadd.xlane.f32.xlu1 %v1244_v43  ;;  %1242 = vadd.xlane.f32.xlu0 %v1241_v14  ;;  %v1206_v3 = vmul.f32 %v5874_v8, %v14210_v30  ;;  %v1247_v43 = vsel %vm200_vm0, %v1203_v0, 0.0  ;;  %v1208_v8 = vmul.f32 %v5878_v36, %v7355_v48 }
 0x136   :  { %14206 = vst [vmem:[#allocation88_spill] sm:$0xff] %v7888_v34  ;;  %14207 = vst [vmem:[#allocation89_spill] sm:$0xff] %v7891_v4  ;;  %v553_v17 = vpop.xlane.xlu1 %552  ;;  %v550_v18 = vpop.xlane.xlu0 %549  ;;  %v5877_v4 = vunpack.c.l.bf16 %v6958_v47  ;;  %v5881_v36 = vunpack.c.l.bf16 %v6959_v27 }
 0x137   :  { %v7898_v61 = vmax.f32 %v328_v10, %v553_v17  ;;  %v7901_v1 = vadd.f32 %v553_v17, %v14208_v55  ;;  %v7904_v34 = vmax.f32 %v327_v45, %v550_v18  ;;  %v7907_v14 = vadd.f32 %v550_v18, %v14209_v60  ;;  %v6960_v45 = vld [vmem:[#allocation5 + $0x408] sm:$0xff]  }
 0x138   :  { %v1256_v10 = vsel %vm200_vm0, %v1206_v3, 0.0  ;;  %v1253_v17 = vsel %vm200_vm0, %v1205_v59, 0.0  ;;  %v1207_v0 = vmul.f32 %v5877_v4, %v7359_v52  ;;  %v5886_v52 = vunpack.c.h.bf16 %v6960_v45 }
 0x139   :  { %14212 = vst [vmem:[#allocation52_spill] sm:$0xff] %v7904_v34  ;;  %1251 = vadd.xlane.f32.xlu1 %v1250_v54  ;;  %1248 = vadd.xlane.f32.xlu0 %v1247_v43  ;;  %v14214_v54 = vld [vmem:[#allocation43_spill] sm:$0xff]  ;;  %v1262_v43 = vsel %vm200_vm0, %v1208_v8, 0.0  ;;  %v5885_v3 = vunpack.c.l.bf16 %v6960_v45 }
 0x13a   :  { %v7910_v35 = vpop.xlane.xlu1 %719  ;;  %v7920_v60 = vpop.xlane.xlu0 %716  ;;  %v299_v18 = vmax.f32 %v14214_v54, -3.4028235e+38  ;;  %v588_v4 = vadd.f32 %v7682_v23, %v14214_v54 }
 0x13b   :  { %v7918_v47 = vadd.f32 %v7910_v35, %v7665_v21  ;;  %14213 = vst [vmem:[#allocation53_spill] sm:$0xff] %v7920_v60  ;;  %v7928_v59 = vadd.f32 %v7920_v60, %v7671_v50  ;;  %v1210_v21 = vmul.f32 %v5882_v19, %v7363_v58  ;;  %v1259_v19 = vsel %vm200_vm0, %v1207_v0, 0.0  ;;  %v6961_v60 = vld [vmem:[#allocation5 + $0x540] sm:$0xff]  }
 0x13c   :  { %v7933_v55 = vmax.f32 %v299_v18, %v7682_v23  ;;  %v14220_v18 = vld [vmem:[#allocation24_spill] sm:$0xff]  ;;  %v1211_v50 = vmul.f32 %v5885_v3, %v7375_v11  ;;  %v5890_v0 = vunpack.c.h.bf16 %v6961_v60 }
 0x13d   :  { %14215 = vst [vmem:[#allocation43_spill] sm:$0xff] %v7928_v59  ;;  %1257 = vadd.xlane.f32.xlu1 %v1256_v10  ;;  %1254 = vadd.xlane.f32.xlu0 %v1253_v17  ;;  %v14217_v59 = vld [vmem:[#allocation56_spill] sm:$0xff]  ;;  %v1209_v58 = vmul.f32 %v5881_v36, %v14220_v18  ;;  %v1268_v54 = vsel %vm200_vm0, %v1210_v21, 0.0  ;;  %v14222_v36 = vld [vmem:[#allocation57_spill] sm:$0xff]  ;;  %v14224_v21 = vld [vmem:[#allocation58_spill] sm:$0xff] }
 0x13e   :  { %v7937_v27 = vpop.xlane.xlu1 %725  ;;  %v7945_v8 = vpop.xlane.xlu0 %722  ;;  %v1271_v11 = vsel %vm200_vm0, %v1211_v50, 0.0  ;;  %v14229_v50 = vld [vmem:[#allocation62_spill] sm:$0xff] }
 0x13f   :  { %v7943_v10 = vadd.f32 %v7937_v27, %v14217_v59  ;;  %14219 = vst [vmem:[#allocation56_spill] sm:$0xff] %v7945_v8  ;;  %v7952_v17 = vadd.f32 %v7945_v8, %v588_v4  ;;  %v1212_v59 = vmul.f32 %v5886_v52, %v7371_v6  ;;  %v14225_v52 = vld [vmem:[#allocation59_spill] sm:$0xff] }
 0x141   :  { %14218 = vst [vmem:[#allocation55_spill] sm:$0xff] %v7943_v10  ;;  %14221 = vst [vmem:[#allocation90_spill] sm:$0xff] %v7952_v17  ;;  %1263 = vadd.xlane.f32.xlu1 %v1262_v43  ;;  %1260 = vadd.xlane.f32.xlu0 %v1259_v19  ;;  %v1265_v43 = vsel %vm200_vm0, %v1209_v58, 0.0  ;;  %v5889_v19 = vunpack.c.l.bf16 %v6961_v60  ;;  %v6962_v17 = vld [vmem:[#allocation5 + $0x548] sm:$0xff]  }
 0x142   :  { %v7954_v45 = vpop.xlane.xlu1 %731  ;;  %v7965_v4 = vpop.xlane.xlu0 %728  ;;  %v5894_v58 = vunpack.c.h.bf16 %v6962_v17 }
 0x143   :  { %v7963_v23 = vadd.f32 %v7954_v45, %v7692_v39  ;;  %v7972_v3 = vadd.f32 %v7965_v4, %v14225_v52  ;;  %v1274_v39 = vsel %vm200_vm0, %v1212_v59, 0.0 }
 0x145   :  { %14223 = vst [vmem:[#allocation57_spill] sm:$0xff] %v7963_v23  ;;  %14226 = vst [vmem:[#allocation58_spill] sm:$0xff] %v7972_v3  ;;  %1269 = vadd.xlane.f32.xlu1 %v1268_v54  ;;  %1266 = vadd.xlane.f32.xlu0 %v1265_v43  ;;  %v1214_v23 = vmul.f32 %v5890_v0, %v7379_v20  ;;  %v1213_v54 = vmul.f32 %v5889_v19, %v7383_v24  ;;  %v5893_v43 = vunpack.c.l.bf16 %v6962_v17  ;;  %v6963_v3 = vld [vmem:[#allocation5 + $0x680] sm:$0xff]   ;;  %v14232_v19 = vld [vmem:[#allocation63_spill] sm:$0xff] }
 0x146   :  { %v7974_v10 = vpop.xlane.xlu1 %737  ;;  %v7985_v52 = vpop.xlane.xlu0 %734  ;;  %v5897_v12 = vunpack.c.l.bf16 %v6963_v3 }
 0x147   :  { %14227 = vst [vmem:[#allocation59_spill] sm:$0xff] %v7974_v10  ;;  %v7983_v8 = vadd.f32 %v7974_v10, %v7709_v40  ;;  %v7992_v0 = vadd.f32 %v7985_v52, %v14229_v50  ;;  %v1280_v40 = vsel %vm200_vm0, %v1214_v23, 0.0  ;;  %v5898_v10 = vunpack.c.h.bf16 %v6963_v3 }
 0x149   :  { %14228 = vst [vmem:[#allocation91_spill] sm:$0xff] %v7983_v8  ;;  %14230 = vst [vmem:[#allocation62_spill] sm:$0xff] %v7992_v0  ;;  %1275 = vadd.xlane.f32.xlu1 %v1274_v39  ;;  %1272 = vadd.xlane.f32.xlu0 %v1271_v11  ;;  %v1216_v8 = vmul.f32 %v5894_v58, %v7387_v31  ;;  %v1277_v39 = vsel %vm200_vm0, %v1213_v54, 0.0  ;;  %v14235_v11 = vld [vmem:[#allocation30_spill] sm:$0xff]  ;;  %v6964_v0 = vld [vmem:[#allocation5 + $0x688] sm:$0xff]   ;;  %v1218_v17 = vmul.f32 %v5898_v10, %v7395_v44 }
 0x14a   :  { %v7994_v60 = vpop.xlane.xlu1 %743  ;;  %v8004_v2 = vpop.xlane.xlu0 %740  ;;  %v1215_v50 = vmul.f32 %v5893_v43, %v14235_v11  ;;  %v1217_v54 = vmul.f32 %v5897_v12, %v7399_v49  ;;  %v14237_v43 = vld [vmem:[#allocation64_spill] sm:$0xff]  ;;  %v14241_v10 = vld [vmem:[#allocation66_spill] sm:$0xff] }
 0x14b   :  { %14231 = vst [vmem:[#allocation92_spill] sm:$0xff] %v7994_v60  ;;  %v8002_v59 = vadd.f32 %v7994_v60, %v14232_v19  ;;  %14234 = vst [vmem:[#allocation93_spill] sm:$0xff] %v8004_v2  ;;  %v8012_v3 = vadd.f32 %v8004_v2, %v7731_v28  ;;  %v1286_v19 = vsel %vm200_vm0, %v1216_v8, 0.0  ;;  %v14240_v8 = vld [vmem:[#allocation65_spill] sm:$0xff] }
 0x14c   :  { %v1289_v49 = vsel %vm200_vm0, %v1217_v54, 0.0  ;;  %v14246_v54 = vld [vmem:[#allocation69_spill] sm:$0xff] }
 0x14d   :  { %14233 = vst [vmem:[#allocation63_spill] sm:$0xff] %v8002_v59  ;;  %14236 = vst [vmem:[#allocation94_spill] sm:$0xff] %v8012_v3  ;;  %1281 = vadd.xlane.f32.xlu1 %v1280_v40  ;;  %1278 = vadd.xlane.f32.xlu0 %v1277_v39  ;;  %v5902_v59 = vunpack.c.h.bf16 %v6964_v0  ;;  %v1283_v40 = vsel %vm200_vm0, %v1215_v50, 0.0  ;;  %v5901_v39 = vunpack.c.l.bf16 %v6964_v0  ;;  %v6965_v3 = vld [vmem:[#allocation5 + $0x7c0] sm:$0xff]  }
 0x14e   :  { %v8014_v58 = vpop.xlane.xlu1 %749  ;;  %v8025_v28 = vpop.xlane.xlu0 %746  ;;  %v5906_v50 = vunpack.c.h.bf16 %v6965_v3 }
 0x14f   :  { %v8023_v23 = vadd.f32 %v8014_v58, %v7740_v9  ;;  %14239 = vst [vmem:[#allocation95_spill] sm:$0xff] %v8025_v28  ;;  %v8032_v12 = vadd.f32 %v8025_v28, %v14241_v10  ;;  %v1292_v9 = vsel %vm200_vm0, %v1218_v17, 0.0  ;;  %v6966_v28 = vld [vmem:[#allocation5 + $0x7c8] sm:$0xff]  }
 0x150   :  { %v5910_v26 = vunpack.c.h.bf16 %v6966_v28 }
 0x151   :  { %14238 = vst [vmem:[#allocation64_spill] sm:$0xff] %v8023_v23  ;;  %14242 = vst [vmem:[#allocation65_spill] sm:$0xff] %v8032_v12  ;;  %1287 = vadd.xlane.f32.xlu1 %v1286_v19  ;;  %1284 = vadd.xlane.f32.xlu0 %v1283_v40  ;;  %v1220_v23 = vmul.f32 %v5902_v59, %v7403_v56  ;;  %v14245_v19 = vld [vmem:[#allocation34_spill] sm:$0xff]  ;;  %v5905_v12 = vunpack.c.l.bf16 %v6965_v3  ;;  %v5909_v56 = vunpack.c.l.bf16 %v6966_v28 }
 0x152   :  { %v8034_v60 = vpop.xlane.xlu1 %755  ;;  %v8045_v10 = vpop.xlane.xlu0 %752  ;;  %v1219_v40 = vmul.f32 %v5901_v39, %v14245_v19  ;;  %v14251_v19 = vld [vmem:[#allocation70_spill] sm:$0xff]  ;;  %v14257_v39 = vld [vmem:[#allocation37_spill] sm:$0xff] }
 0x153   :  { %14243 = vst [vmem:[#allocation66_spill] sm:$0xff] %v8034_v60  ;;  %v8043_v2 = vadd.f32 %v8034_v60, %v7757_v53  ;;  %v8052_v59 = vadd.f32 %v8045_v10, %v14246_v54  ;;  %v1298_v53 = vsel %vm200_vm0, %v1220_v23, 0.0 }
 0x155   :  { %14244 = vst [vmem:[#allocation96_spill] sm:$0xff] %v8043_v2  ;;  %14247 = vst [vmem:[#allocation69_spill] sm:$0xff] %v8052_v59  ;;  %1293 = vadd.xlane.f32.xlu1 %v1292_v9  ;;  %1290 = vadd.xlane.f32.xlu0 %v1289_v49  ;;  %v14249_v2 = vld [vmem:[#allocation35_spill] sm:$0xff]  ;;  %v1295_v9 = vsel %vm200_vm0, %v1219_v40, 0.0  ;;  %v14254_v49 = vld [vmem:[#allocation36_spill] sm:$0xff]  ;;  %v1223_v40 = vmul.f32 %v5909_v56, %v7423_v29 }
 0x156   :  { %v8054_v0 = vpop.xlane.xlu1 %761  ;;  %v1222_v60 = vmul.f32 %v5906_v50, %v14249_v2  ;;  %v8064_v7 = vpop.xlane.xlu0 %758  ;;  %v1221_v54 = vmul.f32 %v5905_v12, %v14254_v49  ;;  %v6967_v59 = vld [vmem:[#allocation5 + $0x900] sm:$0xff]   ;;  %v14258_v12 = vld [vmem:[#allocation45_spill] sm:$0xff]  ;;  %v14259_v49 = vld [vmem:[#allocation71_spill] sm:$0xff] }
 0x157   :  { %14248 = vst [vmem:[#allocation97_spill] sm:$0xff] %v8054_v0  ;;  %v8062_v17 = vadd.f32 %v8054_v0, %v14251_v19  ;;  %14253 = vst [vmem:[#allocation98_spill] sm:$0xff] %v8064_v7  ;;  %v8072_v28 = vadd.f32 %v8064_v7, %v7779_v13  ;;  %v5914_v0 = vunpack.c.h.bf16 %v6967_v59  ;;  %v1307_v29 = vsel %vm200_vm0, %v1223_v40, 0.0  ;;  %v14269_v40 = vld [vmem:[#allocation76_spill] sm:$0xff] }
 0x158   :  { %v1304_v19 = vsel %vm200_vm0, %v1222_v60, 0.0  ;;  %v14262_v60 = vld [vmem:[#allocation72_spill] sm:$0xff] }
 0x159   :  { %14252 = vst [vmem:[#allocation70_spill] sm:$0xff] %v8062_v17  ;;  %14255 = vst [vmem:[#allocation99_spill] sm:$0xff] %v8072_v28  ;;  %1299 = vadd.xlane.f32.xlu1 %v1298_v53  ;;  %1296 = vadd.xlane.f32.xlu0 %v1295_v9  ;;  %v1224_v17 = vmul.f32 %v5910_v26, %v14257_v39  ;;  %v1301_v53 = vsel %vm200_vm0, %v1221_v54, 0.0  ;;  %v5913_v9 = vunpack.c.l.bf16 %v6967_v59  ;;  %v6968_v28 = vld [vmem:[#allocation5 + $0x908] sm:$0xff]   ;;  %v14263_v26 = vld [vmem:[#allocation73_spill] sm:$0xff] }
 0x15a   :  { %v8074_v50 = vpop.xlane.xlu1 %767  ;;  %v8085_v13 = vpop.xlane.xlu0 %764  ;;  %v5918_v54 = vunpack.c.h.bf16 %v6968_v28 }
 0x15b   :  { %14256 = vst [vmem:[#allocation100_spill] sm:$0xff] %v8074_v50  ;;  %v8083_v23 = vadd.f32 %v8074_v50, %v14259_v49  ;;  %14261 = vst [vmem:[#allocation71_spill] sm:$0xff] %v8085_v13  ;;  %v8092_v56 = vadd.f32 %v8085_v13, %v14263_v26  ;;  %v1310_v49 = vsel %vm200_vm0, %v1224_v17, 0.0  ;;  %v14266_v50 = vld [vmem:[#allocation74_spill] sm:$0xff]  ;;  %v5920_v13 = vld [vmem:[#allocation5 + $0x50] sm:$0xff]  }
 0x15c   :  { %v5922_v25 = vunpack.c.h.bf16 %v5920_v13 }
 0x15d   :  { %14260 = vst [vmem:[#allocation45_spill] sm:$0xff] %v8083_v23  ;;  %14264 = vst [vmem:[#allocation72_spill] sm:$0xff] %v8092_v56  ;;  %1305 = vadd.xlane.f32.xlu1 %v1304_v19  ;;  %1302 = vadd.xlane.f32.xlu0 %v1301_v53  ;;  %v1226_v23 = vmul.f32 %v5914_v0, %v14175_v16  ;;  %v14268_v19 = vld [vmem:[#allocation40_spill] sm:$0xff]  ;;  %v5917_v56 = vunpack.c.l.bf16 %v6968_v28  ;;  %v5921_v16 = vunpack.c.l.bf16 %v5920_v13 }
 0x15e   :  { %v8094_v3 = vpop.xlane.xlu1 %773  ;;  %v8105_v26 = vpop.xlane.xlu0 %770  ;;  %v1225_v53 = vmul.f32 %v5913_v9, %v14268_v19  ;;  %v14274_v19 = vld [vmem:[#allocation77_spill] sm:$0xff]  ;;  %v14280_v9 = vld [vmem:[#allocation14_spill] sm:$0xff] }
 0x15f   :  { %14265 = vst [vmem:[#allocation73_spill] sm:$0xff] %v8094_v3  ;;  %v8103_v7 = vadd.f32 %v8094_v3, %v14266_v50  ;;  %v8112_v0 = vadd.f32 %v8105_v26, %v14269_v40  ;;  %v1316_v50 = vsel %vm200_vm0, %v1226_v23, 0.0 }
 0x161   :  { %14267 = vst [vmem:[#allocation74_spill] sm:$0xff] %v8103_v7  ;;  %14270 = vst [vmem:[#allocation76_spill] sm:$0xff] %v8112_v0  ;;  %1311 = vadd.xlane.f32.xlu1 %v1310_v49  ;;  %1308 = vadd.xlane.f32.xlu0 %v1307_v29  ;;  %v14272_v7 = vld [vmem:[#allocation41_spill] sm:$0xff]  ;;  %v1313_v49 = vsel %vm200_vm0, %v1225_v53, 0.0  ;;  %v14277_v29 = vld [vmem:[#allocation42_spill] sm:$0xff]  ;;  %v1454_v53 = vmul.f32 %v5921_v16, %v7321_v5 }
 0x162   :  { %v8114_v59 = vpop.xlane.xlu1 %779  ;;  %v1228_v3 = vmul.f32 %v5918_v54, %v14272_v7  ;;  %v8124_v57 = vpop.xlane.xlu0 %776  ;;  %v1227_v40 = vmul.f32 %v5917_v56, %v14277_v29  ;;  %v6969_v0 = vld [vmem:[#allocation5 + $0x58] sm:$0xff]   ;;  %v14281_v56 = vld [vmem:[#allocation48_spill] sm:$0xff]  ;;  %v14282_v29 = vld [vmem:[#allocation78_spill] sm:$0xff] }
 0x163   :  { %14271 = vst [vmem:[#allocation101_spill] sm:$0xff] %v8114_v59  ;;  %v8122_v17 = vadd.f32 %v8114_v59, %v14274_v19  ;;  %14276 = vst [vmem:[#allocation102_spill] sm:$0xff] %v8124_v57  ;;  %v8132_v13 = vadd.f32 %v8124_v57, %v7827_v42  ;;  %v5926_v59 = vunpack.c.h.bf16 %v6969_v0  ;;  %v1486_v5 = vsel %vm200_vm0, %v1454_v53, 0.0  ;;  %v14293_v53 = vld [vmem:[#allocation83_spill] sm:$0xff] }
 0x164   :  { %v1322_v19 = vsel %vm200_vm0, %v1228_v3, 0.0  ;;  %v14285_v3 = vld [vmem:[#allocation79_spill] sm:$0xff] }
 0x165   :  { %14275 = vst [vmem:[#allocation77_spill] sm:$0xff] %v8122_v17  ;;  %14278 = vst [vmem:[#allocation103_spill] sm:$0xff] %v8132_v13  ;;  %1317 = vadd.xlane.f32.xlu1 %v1316_v50  ;;  %1314 = vadd.xlane.f32.xlu0 %v1313_v49  ;;  %v1455_v17 = vmul.f32 %v5922_v25, %v14280_v9  ;;  %v1319_v50 = vsel %vm200_vm0, %v1227_v40, 0.0  ;;  %v5925_v49 = vunpack.c.l.bf16 %v6969_v0  ;;  %v6970_v13 = vld [vmem:[#allocation5 + $0x190] sm:$0xff]  }
 0x166   :  { %v8134_v54 = vpop.xlane.xlu1 %785  ;;  %v8145_v42 = vpop.xlane.xlu0 %782  ;;  %v14286_v25 = vld [vmem:[#allocation80_spill] sm:$0xff]  ;;  %v5930_v40 = vunpack.c.h.bf16 %v6970_v13 }
 0x167   :  { %14279 = vst [vmem:[#allocation104_spill] sm:$0xff] %v8134_v54  ;;  %v8143_v23 = vadd.f32 %v8134_v54, %v14282_v29  ;;  %14284 = vst [vmem:[#allocation78_spill] sm:$0xff] %v8145_v42  ;;  %v8152_v16 = vadd.f32 %v8145_v42, %v14286_v25  ;;  %v1489_v29 = vsel %vm200_vm0, %v1455_v17, 0.0  ;;  %v14289_v54 = vld [vmem:[#allocation81_spill] sm:$0xff] }
 0x168   :  { %v6971_v42 = vld [vmem:[#allocation5 + $0x198] sm:$0xff]  }
 0x169   :  { %14283 = vst [vmem:[#allocation48_spill] sm:$0xff] %v8143_v23  ;;  %14287 = vst [vmem:[#allocation79_spill] sm:$0xff] %v8152_v16  ;;  %1323 = vadd.xlane.f32.xlu1 %v1322_v19  ;;  %1320 = vadd.xlane.f32.xlu0 %v1319_v50  ;;  %v1457_v23 = vmul.f32 %v5926_v59, %v14191_v37  ;;  %v14292_v19 = vld [vmem:[#allocation11_spill] sm:$0xff]  ;;  %v5929_v16 = vunpack.c.l.bf16 %v6970_v13  ;;  %v5934_v41 = vunpack.c.h.bf16 %v6971_v42  ;;  %v5933_v37 = vunpack.c.l.bf16 %v6971_v42 }
 0x16a   :  { %v8154_v28 = vpop.xlane.xlu1 %791  ;;  %v8165_v25 = vpop.xlane.xlu0 %788  ;;  %v1456_v50 = vmul.f32 %v5925_v49, %v14292_v19  ;;  %v14298_v19 = vld [vmem:[#allocation84_spill] sm:$0xff] }
 0x16b   :  { %14288 = vst [vmem:[#allocation80_spill] sm:$0xff] %v8154_v28  ;;  %v8163_v57 = vadd.f32 %v8154_v28, %v14289_v54  ;;  %14291 = vst [vmem:[#allocation105_spill] sm:$0xff] %v8165_v25  ;;  %v8172_v59 = vadd.f32 %v8165_v25, %v14293_v53  ;;  %v1495_v54 = vsel %vm200_vm0, %v1457_v23, 0.0  ;;  %v14302_v23 = vld [vmem:[#allocation85_spill] sm:$0xff] }
 0x16d   :  { %14290 = vst [vmem:[#allocation81_spill] sm:$0xff] %v8163_v57  ;;  %14294 = vst [vmem:[#allocation83_spill] sm:$0xff] %v8172_v59  ;;  %1490 = vadd.xlane.f32.xlu1 %v1489_v29  ;;  %1487 = vadd.xlane.f32.xlu0 %v1486_v5  ;;  %v14296_v57 = vld [vmem:[#allocation15_spill] sm:$0xff]  ;;  %v1492_v29 = vsel %vm200_vm0, %v1456_v50, 0.0  ;;  %v14301_v5 = vld [vmem:[#allocation16_spill] sm:$0xff]  ;;  %v1460_v50 = vmul.f32 %v5933_v37, %v7343_v32 }
 0x16e   :  { %v8174_v0 = vpop.xlane.xlu1 %797  ;;  %v1459_v28 = vmul.f32 %v5930_v40, %v14296_v57  ;;  %v8184_v63 = vpop.xlane.xlu0 %794  ;;  %v1458_v53 = vmul.f32 %v5929_v16, %v14301_v5  ;;  %v6972_v59 = vld [vmem:[#allocation5 + $0x2d0] sm:$0xff]   ;;  %v14303_v40 = vld [vmem:[#allocation86_spill] sm:$0xff]  ;;  %v14306_v16 = vld [vmem:[#allocation51_spill] sm:$0xff] }
 0x16f   :  { %14295 = vst [vmem:[#allocation106_spill] sm:$0xff] %v8174_v0  ;;  %v8182_v17 = vadd.f32 %v8174_v0, %v14298_v19  ;;  %14300 = vst [vmem:[#allocation107_spill] sm:$0xff] %v8184_v63  ;;  %v8192_v42 = vadd.f32 %v8184_v63, %v14303_v40  ;;  %v5938_v13 = vunpack.c.h.bf16 %v6972_v59  ;;  %v14307_v57 = vld [vmem:[#allocation87_spill] sm:$0xff]  ;;  %v1504_v32 = vsel %vm200_vm0, %v1460_v50, 0.0 }
 0x170   :  { %v1501_v19 = vsel %vm200_vm0, %v1459_v28, 0.0  ;;  %v14309_v28 = vld [vmem:[#allocation88_spill] sm:$0xff] }
 0x171   :  { %14299 = vst [vmem:[#allocation84_spill] sm:$0xff] %v8182_v17  ;;  %14304 = vst [vmem:[#allocation85_spill] sm:$0xff] %v8192_v42  ;;  %1496 = vadd.xlane.f32.xlu1 %v1495_v54  ;;  %1493 = vadd.xlane.f32.xlu0 %v1492_v29  ;;  %v14305_v17 = vld [vmem:[#allocation17_spill] sm:$0xff]  ;;  %v1498_v54 = vsel %vm200_vm0, %v1458_v53, 0.0  ;;  %v5937_v29 = vunpack.c.l.bf16 %v6972_v59 }
 0x172   :  { %v8194_v49 = vpop.xlane.xlu1 %803  ;;  %v1461_v0 = vmul.f32 %v5934_v41, %v14305_v17  ;;  %v8205_v40 = vpop.xlane.xlu0 %800  ;;  %v6973_v42 = vld [vmem:[#allocation5 + $0x2d8] sm:$0xff]  }
 0x173   :  { %v8203_v25 = vadd.f32 %v8194_v49, %v14307_v57  ;;  %v14310_v41 = vld [vmem:[#allocation89_spill] sm:$0xff]  ;;  %v5942_v53 = vunpack.c.h.bf16 %v6973_v42 }
 0x174   :  { %v8212_v37 = vadd.f32 %v8205_v40, %v14310_v41  ;;  %v1507_v57 = vsel %vm200_vm0, %v1461_v0, 0.0 }
 0x175   :  { %14308 = vst [vmem:[#allocation86_spill] sm:$0xff] %v8203_v25  ;;  %1502 = vadd.xlane.f32.xlu1 %v1501_v19  ;;  %1499 = vadd.xlane.f32.xlu0 %v1498_v54  ;;  %v1463_v25 = vmul.f32 %v5938_v13, %v14210_v30  ;;  %v1462_v19 = vmul.f32 %v5937_v29, %v14211_v15  ;;  %v5941_v54 = vunpack.c.l.bf16 %v6973_v42 }
 0x176   :  { %14311 = vst [vmem:[#allocation51_spill] sm:$0xff] %v8212_v37  ;;  %v8214_v5 = vpop.xlane.xlu1 %809  ;;  %v8225_v41 = vpop.xlane.xlu0 %806  ;;  %v6974_v37 = vld [vmem:[#allocation5 + $0x410] sm:$0xff]   ;;  %v14316_v42 = vmax.f32 %v7662_v38, %v7910_v35 }
 0x177   :  { %14312 = vst [vmem:[#allocation87_spill] sm:$0xff] %v8214_v5  ;;  %v8223_v63 = vadd.f32 %v8214_v5, %v7901_v1  ;;  %14314 = vst [vmem:[#allocation89_spill] sm:$0xff] %v8225_v41  ;;  %v8232_v13 = vadd.f32 %v8225_v41, %v7907_v14  ;;  %v1513_v59 = vsel %vm200_vm0, %v1463_v25, 0.0  ;;  %v1465_v1 = vmul.f32 %v5942_v53, %v7355_v48  ;;  %v14319_v41 = vld [vmem:[#allocation54_spill] sm:$0xff]  ;;  %v14320_v25 = vld [vmem:[#allocation53_spill] sm:$0xff] }
 0x178   :  { %v5945_v5 = vunpack.c.l.bf16 %v6974_v37  ;;  %v1510_v14 = vsel %vm200_vm0, %v1462_v19, 0.0  ;;  %v14321_v15 = vmax.f32 %v14319_v41, %v14320_v25  ;;  %v6976_v25 = vld [vmem:[#allocation5 + $0x550] sm:$0xff]  }
 0x179   :  { %14313 = vst [vmem:[#allocation88_spill] sm:$0xff] %v8223_v63  ;;  %14315 = vst [vmem:[#allocation108_spill] sm:$0xff] %v8232_v13  ;;  %1508 = vadd.xlane.f32.xlu1 %v1507_v57  ;;  %1505 = vadd.xlane.f32.xlu0 %v1504_v32  ;;  %v5946_v63 = vunpack.c.h.bf16 %v6974_v37  ;;  %v14318_v57 = vld [vmem:[#allocation22_spill] sm:$0xff]  ;;  %v6975_v13 = vld [vmem:[#allocation5 + $0x418] sm:$0xff]   ;;  %v1519_v35 = vsel %vm200_vm0, %v1465_v1, 0.0 }
 0x17a   :  { %v977_v50 = vpop.xlane.xlu1 %976  ;;  %v974_v34 = vpop.xlane.xlu0 %973  ;;  %v1464_v32 = vmul.f32 %v5941_v54, %v14318_v57  ;;  %v14322_v37 = vld [vmem:[#allocation43_spill] sm:$0xff]  ;;  %v1466_v19 = vmul.f32 %v5945_v5, %v14220_v18  ;;  %v14324_v54 = vmax.f32 %v14216_v22, %v7937_v27  ;;  %v14327_v1 = vld [vmem:[#allocation56_spill] sm:$0xff]  ;;  %v14330_v5 = vld [vmem:[#allocation90_spill] sm:$0xff] }
 0x17b   :  { %v8239_v29 = vmax.f32 %v14316_v42, %v977_v50  ;;  %v8242_v0 = vadd.f32 %v977_v50, %v7918_v47  ;;  %v8249_v53 = vmax.f32 %v14321_v15, %v974_v34  ;;  %v8252_v48 = vadd.f32 %v974_v34, %v14322_v37  ;;  %v14323_v47 = vld [vmem:[#allocation23_spill] sm:$0xff] }
 0x17c   :  { %v1467_v50 = vmul.f32 %v5946_v63, %v14323_v47  ;;  %v5950_v42 = vunpack.c.h.bf16 %v6975_v13  ;;  %v14326_v15 = vld [vmem:[#allocation55_spill] sm:$0xff]  ;;  %v14328_v37 = vmax.f32 %v7933_v55, %v14327_v1  ;;  %v14333_v55 = vld [vmem:[#allocation57_spill] sm:$0xff] }
 0x17d   :  { %14317 = vst [vmem:[#allocation109_spill] sm:$0xff] %v8242_v0  ;;  %1514 = vadd.xlane.f32.xlu1 %v1513_v59  ;;  %1511 = vadd.xlane.f32.xlu0 %v1510_v14  ;;  %v1516_v59 = vsel %vm200_vm0, %v1464_v32, 0.0  ;;  %v5949_v14 = vunpack.c.l.bf16 %v6975_v13  ;;  %v5954_v32 = vunpack.c.h.bf16 %v6976_v25  ;;  %v14331_v13 = vmax.f32 %v14222_v36, %v7954_v45 }
 0x17e   :  { %v983_v38 = vpop.xlane.xlu1 %982  ;;  %v980_v34 = vpop.xlane.xlu0 %979  ;;  %v1525_v27 = vsel %vm200_vm0, %v1467_v50, 0.0  ;;  %v14336_v50 = vmax.f32 %v14224_v21, %v7965_v4  ;;  %v14341_v4 = vld [vmem:[#allocation91_spill] sm:$0xff] }
 0x17f   :  { %v8260_v0 = vmax.f32 %v14324_v54, %v983_v38  ;;  %v8263_v41 = vadd.f32 %v983_v38, %v14326_v15  ;;  %v8269_v63 = vmax.f32 %v14328_v37, %v980_v34  ;;  %v8272_v18 = vadd.f32 %v980_v34, %v14330_v5  ;;  %v14335_v37 = vld [vmem:[#allocation26_spill] sm:$0xff]  ;;  %v6977_v5 = vld [vmem:[#allocation5 + $0x558] sm:$0xff]  }
 0x180   :  { %v1522_v38 = vsel %vm200_vm0, %v1466_v19, 0.0  ;;  %v1469_v54 = vmul.f32 %v5950_v42, %v7371_v6  ;;  %v14337_v42 = vld [vmem:[#allocation58_spill] sm:$0xff] }
 0x181   :  { %14325 = vst [vmem:[#allocation54_spill] sm:$0xff] %v8260_v0  ;;  %14329 = vst [vmem:[#allocation53_spill] sm:$0xff] %v8269_v63  ;;  %1520 = vadd.xlane.f32.xlu1 %v1519_v35  ;;  %1517 = vadd.xlane.f32.xlu0 %v1516_v59  ;;  %v1468_v35 = vmul.f32 %v5949_v14, %v14335_v37  ;;  %v5953_v59 = vunpack.c.l.bf16 %v6976_v25  ;;  %v14338_v14 = vld [vmem:[#allocation60_spill] sm:$0xff]  ;;  %v14339_v25 = vld [vmem:[#allocation59_spill] sm:$0xff] }
 0x182   :  { %v989_v22 = vpop.xlane.xlu1 %988  ;;  %v986_v34 = vpop.xlane.xlu0 %985  ;;  %v1531_v36 = vsel %vm200_vm0, %v1469_v54, 0.0  ;;  %v14340_v37 = vmax.f32 %v14338_v14, %v14339_v25 }
 0x183   :  { %v8280_v15 = vmax.f32 %v14331_v13, %v989_v22  ;;  %v8283_v1 = vadd.f32 %v989_v22, %v14333_v55  ;;  %v8289_v19 = vmax.f32 %v14336_v50, %v986_v34  ;;  %v8292_v6 = vadd.f32 %v986_v34, %v14337_v42  ;;  %v14343_v42 = vld [vmem:[#allocation61_spill] sm:$0xff] }
 0x184   :  { %v1471_v22 = vmul.f32 %v5954_v32, %v7379_v20  ;;  %v5958_v13 = vunpack.c.h.bf16 %v6977_v5  ;;  %v5957_v55 = vunpack.c.l.bf16 %v6977_v5  ;;  %v1528_v34 = vsel %vm200_vm0, %v1468_v35, 0.0  ;;  %v14345_v5 = vld [vmem:[#allocation62_spill] sm:$0xff] }
 0x185   :  { %14332 = vst [vmem:[#allocation43_spill] sm:$0xff] %v8280_v15  ;;  %14334 = vst [vmem:[#allocation55_spill] sm:$0xff] %v8283_v1  ;;  %1526 = vadd.xlane.f32.xlu1 %v1525_v27  ;;  %1523 = vadd.xlane.f32.xlu0 %v1522_v38  ;;  %v1470_v27 = vmul.f32 %v5953_v59, %v7383_v24  ;;  %v6978_v38 = vld [vmem:[#allocation5 + $0x690] sm:$0xff]   ;;  %v14344_v54 = vmax.f32 %v14343_v42, %v7985_v52  ;;  %v14349_v52 = vld [vmem:[#allocation63_spill] sm:$0xff] }
 0x186   :  { %v995_v45 = vpop.xlane.xlu1 %994  ;;  %v992_v50 = vpop.xlane.xlu0 %991  ;;  %v1473_v14 = vmul.f32 %v5958_v13, %v7387_v31  ;;  %v1472_v35 = vmul.f32 %v5957_v55, %v14235_v11  ;;  %v5962_v25 = vunpack.c.h.bf16 %v6978_v38  ;;  %v14346_v59 = vld [vmem:[#allocation92_spill] sm:$0xff]  ;;  %v14353_v55 = vld [vmem:[#allocation94_spill] sm:$0xff] }
 0x187   :  { %v8299_v1 = vmax.f32 %v14340_v37, %v995_v45  ;;  %v8302_v21 = vadd.f32 %v995_v45, %v14341_v4  ;;  %v8309_v32 = vmax.f32 %v14344_v54, %v992_v50  ;;  %v8312_v20 = vadd.f32 %v992_v50, %v14345_v5  ;;  %v6979_v54 = vld [vmem:[#allocation5 + $0x698] sm:$0xff]  }
 0x188   :  { %v1537_v45 = vsel %vm200_vm0, %v1471_v22, 0.0  ;;  %v14347_v4 = vmax.f32 %v7722_v46, %v14346_v59  ;;  %v14350_v22 = vld [vmem:[#allocation93_spill] sm:$0xff]  ;;  %v1543_v59 = vsel %vm200_vm0, %v1473_v14, 0.0  ;;  %v14360_v14 = vld [vmem:[#allocation95_spill] sm:$0xff] }
 0x189   :  { %14342 = vst [vmem:[#allocation56_spill] sm:$0xff] %v8302_v21  ;;  %1532 = vadd.xlane.f32.xlu1 %v1531_v36  ;;  %1529 = vadd.xlane.f32.xlu0 %v1528_v34  ;;  %v1534_v36 = vsel %vm200_vm0, %v1470_v27, 0.0  ;;  %v5961_v34 = vunpack.c.l.bf16 %v6978_v38  ;;  %v14351_v5 = vmax.f32 %v7728_v33, %v14350_v22  ;;  %v5966_v27 = vunpack.c.h.bf16 %v6979_v54  ;;  %v14357_v33 = vld [vmem:[#allocation64_spill] sm:$0xff] }
 0x18a   :  { %v1001_v37 = vpop.xlane.xlu1 %1000  ;;  %v998_v50 = vpop.xlane.xlu0 %997  ;;  %v14355_v38 = vmax.f32 %v14237_v43, %v8014_v58 }
 0x18b   :  { %v8320_v21 = vmax.f32 %v14347_v4, %v1001_v37  ;;  %v8323_v42 = vadd.f32 %v1001_v37, %v14349_v52  ;;  %v8329_v13 = vmax.f32 %v14351_v5, %v998_v50  ;;  %v8332_v11 = vadd.f32 %v998_v50, %v14353_v55  ;;  %v14359_v5 = vld [vmem:[#allocation32_spill] sm:$0xff] }
 0x18c   :  { %v1540_v37 = vsel %vm200_vm0, %v1472_v35, 0.0  ;;  %v1475_v4 = vmul.f32 %v5962_v25, %v7395_v44  ;;  %v6980_v55 = vld [vmem:[#allocation5 + $0x7d0] sm:$0xff]   ;;  %v14362_v25 = vld [vmem:[#allocation65_spill] sm:$0xff] }
 0x18d   :  { %14348 = vst [vmem:[#allocation90_spill] sm:$0xff] %v8320_v21  ;;  %14352 = vst [vmem:[#allocation57_spill] sm:$0xff] %v8329_v13  ;;  %1538 = vadd.xlane.f32.xlu1 %v1537_v45  ;;  %1535 = vadd.xlane.f32.xlu0 %v1534_v36  ;;  %v1474_v45 = vmul.f32 %v5961_v34, %v14359_v5  ;;  %v5965_v36 = vunpack.c.l.bf16 %v6979_v54  ;;  %v14365_v34 = vld [vmem:[#allocation67_spill] sm:$0xff]  ;;  %v14366_v54 = vld [vmem:[#allocation66_spill] sm:$0xff] }
 0x18e   :  { %14354 = vst [vmem:[#allocation58_spill] sm:$0xff] %v8332_v11  ;;  %v1007_v46 = vpop.xlane.xlu1 %1006  ;;  %v1004_v50 = vpop.xlane.xlu0 %1003  ;;  %v14361_v11 = vmax.f32 %v14240_v8, %v14360_v14  ;;  %v1549_v43 = vsel %vm200_vm0, %v1475_v4, 0.0  ;;  %v14367_v5 = vmax.f32 %v14365_v34, %v14366_v54  ;;  %v14369_v8 = vld [vmem:[#allocation96_spill] sm:$0xff] }
 0x18f   :  { %v8340_v52 = vmax.f32 %v14355_v38, %v1007_v46  ;;  %v8343_v22 = vadd.f32 %v1007_v46, %v14357_v33  ;;  %v8352_v44 = vadd.f32 %v1004_v50, %v14362_v25  ;;  %v14364_v46 = vld [vmem:[#allocation33_spill] sm:$0xff]  ;;  %v5970_v33 = vunpack.c.h.bf16 %v6980_v55  ;;  %v14375_v54 = vld [vmem:[#allocation36_spill] sm:$0xff] }
 0x190   :  { %v8349_v35 = vmax.f32 %v14361_v11, %v1004_v50  ;;  %v1477_v38 = vmul.f32 %v5966_v27, %v14364_v46  ;;  %v1546_v50 = vsel %vm200_vm0, %v1474_v45, 0.0  ;;  %v6981_v25 = vld [vmem:[#allocation5 + $0x7d8] sm:$0xff]   ;;  %v14485_v15 = vld [vmem:[#allocation56_spill] sm:$0xff] }
 0x191   :  { %14356 = vst [vmem:[#allocation60_spill] sm:$0xff] %v8340_v52  ;;  %14358 = vst [vmem:[#allocation59_spill] sm:$0xff] %v8343_v22  ;;  %1544 = vadd.xlane.f32.xlu1 %v1543_v59  ;;  %1541 = vadd.xlane.f32.xlu0 %v1540_v37  ;;  %v5969_v22 = vunpack.c.l.bf16 %v6980_v55  ;;  %v14371_v59 = vld [vmem:[#allocation34_spill] sm:$0xff]  ;;  %v14374_v55 = vld [vmem:[#allocation69_spill] sm:$0xff]  ;;  %v1479_v34 = vmul.f32 %v5970_v33, %v14249_v2 }
 0x192   :  { %14363 = vst [vmem:[#allocation91_spill] sm:$0xff] %v8352_v44  ;;  %v1013_v58 = vpop.xlane.xlu1 %1012  ;;  %v1010_v14 = vpop.xlane.xlu0 %1009  ;;  %v1476_v37 = vmul.f32 %v5965_v36, %v14371_v59  ;;  %v14372_v44 = vld [vmem:[#allocation68_spill] sm:$0xff] }
 0x193   :  { %v8359_v52 = vmax.f32 %v14367_v5, %v1013_v58  ;;  %v8362_v11 = vadd.f32 %v1013_v58, %v14369_v8  ;;  %v14373_v4 = vmax.f32 %v14372_v44, %v8045_v10  ;;  %v8372_v46 = vadd.f32 %v1010_v14, %v14374_v55  ;;  %v14376_v36 = vld [vmem:[#allocation44_spill] sm:$0xff]  ;;  %v14380_v44 = vld [vmem:[#allocation70_spill] sm:$0xff] }
 0x194   :  { %v1555_v58 = vsel %vm200_vm0, %v1477_v38, 0.0  ;;  %v1478_v45 = vmul.f32 %v5969_v22, %v14375_v54  ;;  %v5974_v8 = vunpack.c.h.bf16 %v6981_v25  ;;  %v14382_v38 = vld [vmem:[#allocation98_spill] sm:$0xff]  ;;  %v14385_v22 = vld [vmem:[#allocation99_spill] sm:$0xff] }
 0x195   :  { %14368 = vst [vmem:[#allocation61_spill] sm:$0xff] %v8359_v52  ;;  %14370 = vst [vmem:[#allocation62_spill] sm:$0xff] %v8362_v11  ;;  %v8369_v27 = vmax.f32 %v14373_v4, %v1010_v14  ;;  %1550 = vadd.xlane.f32.xlu1 %v1549_v43  ;;  %1547 = vadd.xlane.f32.xlu0 %v1546_v50  ;;  %v14377_v11 = vld [vmem:[#allocation97_spill] sm:$0xff]  ;;  %v1552_v43 = vsel %vm200_vm0, %v1476_v37, 0.0  ;;  %v5973_v50 = vunpack.c.l.bf16 %v6981_v25  ;;  %v6982_v4 = vld [vmem:[#allocation5 + $0x910] sm:$0xff]  }
 0x196   :  { %v1019_v5 = vpop.xlane.xlu1 %1018  ;;  %v14378_v52 = vmax.f32 %v14376_v36, %v14377_v11  ;;  %v1016_v14 = vpop.xlane.xlu0 %1015  ;;  %v14383_v55 = vmax.f32 %v7776_v62, %v14382_v38  ;;  %v1561_v11 = vsel %vm200_vm0, %v1479_v34, 0.0  ;;  %v1481_v36 = vmul.f32 %v5974_v8, %v14257_v39  ;;  %v14387_v25 = vld [vmem:[#allocation100_spill] sm:$0xff]  ;;  %v14390_v62 = vld [vmem:[#allocation45_spill] sm:$0xff]  ;;  %v14393_v34 = vld [vmem:[#allocation71_spill] sm:$0xff] }
 0x197   :  { %v8383_v10 = vadd.f32 %v1019_v5, %v14380_v44  ;;  %v8392_v54 = vadd.f32 %v1016_v14, %v14385_v22  ;;  %v5978_v37 = vunpack.c.h.bf16 %v6982_v4  ;;  %v14388_v44 = vmax.f32 %v14258_v12, %v14387_v25  ;;  %v6983_v22 = vld [vmem:[#allocation5 + $0x918] sm:$0xff]   ;;  %v14395_v8 = vld [vmem:[#allocation72_spill] sm:$0xff] }
 0x198   :  { %v8380_v59 = vmax.f32 %v14378_v52, %v1019_v5  ;;  %v8389_v33 = vmax.f32 %v14383_v55, %v1016_v14  ;;  %v1558_v5 = vsel %vm200_vm0, %v1478_v45, 0.0  ;;  %v14392_v55 = vld [vmem:[#allocation38_spill] sm:$0xff]  ;;  %v1567_v25 = vsel %vm200_vm0, %v1481_v36, 0.0 }
 0x199   :  { %14381 = vst [vmem:[#allocation63_spill] sm:$0xff] %v8383_v10  ;;  %14386 = vst [vmem:[#allocation94_spill] sm:$0xff] %v8392_v54  ;;  %1556 = vadd.xlane.f32.xlu1 %v1555_v58  ;;  %1553 = vadd.xlane.f32.xlu0 %v1552_v43  ;;  %v1480_v58 = vmul.f32 %v5973_v50, %v14392_v55  ;;  %v5977_v43 = vunpack.c.l.bf16 %v6982_v4  ;;  %v14394_v54 = vmax.f32 %v14262_v60, %v14393_v34  ;;  %v14398_v50 = vld [vmem:[#allocation46_spill] sm:$0xff]  ;;  %v14399_v4 = vld [vmem:[#allocation73_spill] sm:$0xff] }
 0x19a   :  { %14379 = vst [vmem:[#allocation92_spill] sm:$0xff] %v8380_v59  ;;  %14384 = vst [vmem:[#allocation93_spill] sm:$0xff] %v8389_v33  ;;  %v1025_v52 = vpop.xlane.xlu1 %1024  ;;  %v1022_v14 = vpop.xlane.xlu0 %1021  ;;  %v14400_v55 = vmax.f32 %v14398_v50, %v14399_v4  ;;  %v14402_v60 = vld [vmem:[#allocation74_spill] sm:$0xff] }
 0x19b   :  { %v8400_v10 = vmax.f32 %v14388_v44, %v1025_v52  ;;  %v8403_v38 = vadd.f32 %v1025_v52, %v14390_v62  ;;  %v8409_v45 = vmax.f32 %v14394_v54, %v1022_v14  ;;  %v8412_v39 = vadd.f32 %v1022_v14, %v14395_v8  ;;  %v14397_v52 = vld [vmem:[#allocation39_spill] sm:$0xff]  ;;  %v5984_v8 = vld [vmem:[#allocation5 + $0x60] sm:$0xff]  }
 0x19c   :  { %v1483_v44 = vmul.f32 %v5978_v37, %v14397_v52  ;;  %v5982_v62 = vunpack.c.h.bf16 %v6983_v22  ;;  %v1564_v14 = vsel %vm200_vm0, %v1480_v58, 0.0  ;;  %v14409_v4 = vld [vmem:[#allocation42_spill] sm:$0xff] }
 0x19d   :  { %14389 = vst [vmem:[#allocation64_spill] sm:$0xff] %v8400_v10  ;;  %14391 = vst [vmem:[#allocation95_spill] sm:$0xff] %v8403_v38  ;;  %1562 = vadd.xlane.f32.xlu1 %v1561_v11  ;;  %1559 = vadd.xlane.f32.xlu0 %v1558_v5  ;;  %v5981_v38 = vunpack.c.l.bf16 %v6983_v22  ;;  %v14404_v11 = vld [vmem:[#allocation40_spill] sm:$0xff] }
 0x19e   :  { %14396 = vst [vmem:[#allocation65_spill] sm:$0xff] %v8412_v39  ;;  %v1031_v12 = vpop.xlane.xlu1 %1030  ;;  %v1028_v34 = vpop.xlane.xlu0 %1027  ;;  %v1482_v5 = vmul.f32 %v5977_v43, %v14404_v11  ;;  %v14405_v39 = vld [vmem:[#allocation75_spill] sm:$0xff]  ;;  %v14408_v22 = vld [vmem:[#allocation76_spill] sm:$0xff]  ;;  %v1485_v50 = vmul.f32 %v5982_v62, %v14272_v7 }
 0x19f   :  { %v8419_v10 = vmax.f32 %v14400_v55, %v1031_v12  ;;  %v8422_v54 = vadd.f32 %v1031_v12, %v14402_v60  ;;  %v14406_v36 = vmax.f32 %v14405_v39, %v8105_v26  ;;  %v8432_v52 = vadd.f32 %v1028_v34, %v14408_v22  ;;  %v14410_v43 = vld [vmem:[#allocation47_spill] sm:$0xff]  ;;  %v14414_v39 = vld [vmem:[#allocation77_spill] sm:$0xff] }
 0x1a0   :  { %v1573_v12 = vsel %vm200_vm0, %v1483_v44, 0.0  ;;  %v1484_v58 = vmul.f32 %v5981_v38, %v14409_v4  ;;  %v5986_v60 = vunpack.c.h.bf16 %v5984_v8  ;;  %v14416_v44 = vld [vmem:[#allocation102_spill] sm:$0xff]  ;;  %v14419_v38 = vld [vmem:[#allocation103_spill] sm:$0xff] }
 0x1a1   :  { %14401 = vst [vmem:[#allocation67_spill] sm:$0xff] %v8419_v10  ;;  %14403 = vst [vmem:[#allocation66_spill] sm:$0xff] %v8422_v54  ;;  %v8429_v37 = vmax.f32 %v14406_v36, %v1028_v34  ;;  %1568 = vadd.xlane.f32.xlu1 %v1567_v25  ;;  %1565 = vadd.xlane.f32.xlu0 %v1564_v14  ;;  %v14411_v54 = vld [vmem:[#allocation101_spill] sm:$0xff]  ;;  %v1570_v25 = vsel %vm200_vm0, %v1482_v5, 0.0  ;;  %v5985_v14 = vunpack.c.l.bf16 %v5984_v8  ;;  %v6984_v36 = vld [vmem:[#allocation5 + $0x68] sm:$0xff]  }
 0x1a2   :  { %v1037_v55 = vpop.xlane.xlu1 %1036  ;;  %v14412_v10 = vmax.f32 %v14410_v43, %v14411_v54  ;;  %v1034_v34 = vpop.xlane.xlu0 %1033  ;;  %v14417_v22 = vmax.f32 %v7824_v51, %v14416_v44  ;;  %v1579_v54 = vsel %vm200_vm0, %v1485_v50, 0.0  ;;  %v1712_v43 = vmul.f32 %v5986_v60, %v14280_v9  ;;  %v14421_v8 = vld [vmem:[#allocation104_spill] sm:$0xff]  ;;  %v14427_v50 = vld [vmem:[#allocation78_spill] sm:$0xff]  ;;  %v14430_v60 = vld [vmem:[#allocation79_spill] sm:$0xff] }
 0x1a3   :  { %14407 = vst [vmem:[#allocation96_spill] sm:$0xff] %v8429_v37  ;;  %v8443_v26 = vadd.f32 %v1037_v55, %v14414_v39  ;;  %v8452_v4 = vadd.f32 %v1034_v34, %v14419_v38  ;;  %v5990_v5 = vunpack.c.h.bf16 %v6984_v36  ;;  %v14422_v39 = vmax.f32 %v14281_v56, %v14421_v8  ;;  %v14424_v51 = vld [vmem:[#allocation48_spill] sm:$0xff]  ;;  %v6985_v38 = vld [vmem:[#allocation5 + $0x1a0] sm:$0xff]  }
 0x1a4   :  { %v8440_v11 = vmax.f32 %v14412_v10, %v1037_v55  ;;  %v8449_v62 = vmax.f32 %v14417_v22, %v1034_v34  ;;  %v1576_v55 = vsel %vm200_vm0, %v1484_v58, 0.0  ;;  %v14426_v22 = vld [vmem:[#allocation12_spill] sm:$0xff]  ;;  %v1746_v8 = vsel %vm200_vm0, %v1712_v43, 0.0  ;;  %v14441_v43 = vld [vmem:[#allocation105_spill] sm:$0xff] }
 0x1a5   :  { %14415 = vst [vmem:[#allocation69_spill] sm:$0xff] %v8443_v26  ;;  %14420 = vst [vmem:[#allocation97_spill] sm:$0xff] %v8452_v4  ;;  %1574 = vadd.xlane.f32.xlu1 %v1573_v12  ;;  %1571 = vadd.xlane.f32.xlu0 %v1570_v25  ;;  %v1711_v12 = vmul.f32 %v5985_v14, %v14426_v22  ;;  %v5989_v25 = vunpack.c.l.bf16 %v6984_v36  ;;  %v14428_v4 = vmax.f32 %v14285_v3, %v14427_v50  ;;  %v14433_v14 = vld [vmem:[#allocation49_spill] sm:$0xff]  ;;  %v14434_v36 = vld [vmem:[#allocation80_spill] sm:$0xff] }
 0x1a6   :  { %14413 = vst [vmem:[#allocation68_spill] sm:$0xff] %v8440_v11  ;;  %14418 = vst [vmem:[#allocation44_spill] sm:$0xff] %v8449_v62  ;;  %v1043_v10 = vpop.xlane.xlu1 %1042  ;;  %v1040_v34 = vpop.xlane.xlu0 %1039  ;;  %v14435_v22 = vmax.f32 %v14433_v14, %v14434_v36  ;;  %v14437_v3 = vld [vmem:[#allocation81_spill] sm:$0xff]  ;;  %v14444_v14 = vld [vmem:[#allocation15_spill] sm:$0xff] }
 0x1a7   :  { %v8460_v26 = vmax.f32 %v14422_v39, %v1043_v10  ;;  %v8463_v44 = vadd.f32 %v1043_v10, %v14424_v51  ;;  %v8469_v58 = vmax.f32 %v14428_v4, %v1040_v34  ;;  %v8472_v9 = vadd.f32 %v1040_v34, %v14430_v60  ;;  %v14432_v10 = vld [vmem:[#allocation13_spill] sm:$0xff]  ;;  %v6986_v60 = vld [vmem:[#allocation5 + $0x1a8] sm:$0xff]  }
 0x1a8   :  { %v1714_v39 = vmul.f32 %v5990_v5, %v14432_v10  ;;  %v5994_v51 = vunpack.c.h.bf16 %v6985_v38  ;;  %v1743_v34 = vsel %vm200_vm0, %v1711_v12, 0.0 }
 0x1a9   :  { %14423 = vst [vmem:[#allocation70_spill] sm:$0xff] %v8460_v26  ;;  %14425 = vst [vmem:[#allocation98_spill] sm:$0xff] %v8463_v44  ;;  %1580 = vadd.xlane.f32.xlu1 %v1579_v54  ;;  %1577 = vadd.xlane.f32.xlu0 %v1576_v55  ;;  %v5993_v44 = vunpack.c.l.bf16 %v6985_v38  ;;  %v14439_v54 = vld [vmem:[#allocation11_spill] sm:$0xff] }
 0x1aa   :  { %14429 = vst [vmem:[#allocation99_spill] sm:$0xff] %v8469_v58  ;;  %14431 = vst [vmem:[#allocation100_spill] sm:$0xff] %v8472_v9  ;;  %v1049_v56 = vpop.xlane.xlu1 %1048  ;;  %v1046_v50 = vpop.xlane.xlu0 %1045  ;;  %v1713_v55 = vmul.f32 %v5989_v25, %v14439_v54  ;;  %v14440_v9 = vld [vmem:[#allocation82_spill] sm:$0xff]  ;;  %v14443_v38 = vld [vmem:[#allocation83_spill] sm:$0xff]  ;;  %v1716_v36 = vmul.f32 %v5994_v51, %v14444_v14 }
 0x1ab   :  { %v8479_v26 = vmax.f32 %v14435_v22, %v1049_v56  ;;  %v8482_v4 = vadd.f32 %v1049_v56, %v14437_v3  ;;  %v14442_v58 = vmax.f32 %v14440_v9, %v14441_v43  ;;  %v8492_v10 = vadd.f32 %v1046_v50, %v14443_v38  ;;  %v14445_v3 = vld [vmem:[#allocation16_spill] sm:$0xff]  ;;  %v14446_v25 = vld [vmem:[#allocation50_spill] sm:$0xff] }
 0x1ac   :  { %v1752_v56 = vsel %vm200_vm0, %v1714_v39, 0.0  ;;  %v1715_v12 = vmul.f32 %v5993_v44, %v14445_v3  ;;  %v14450_v9 = vld [vmem:[#allocation84_spill] sm:$0xff]  ;;  %v6987_v43 = vld [vmem:[#allocation5 + $0x2e0] sm:$0xff]   ;;  %v14451_v39 = vld [vmem:[#allocation107_spill] sm:$0xff] }
 0x1ad   :  { %14436 = vst [vmem:[#allocation45_spill] sm:$0xff] %v8479_v26  ;;  %14438 = vst [vmem:[#allocation71_spill] sm:$0xff] %v8482_v4  ;;  %v8489_v5 = vmax.f32 %v14442_v58, %v1046_v50  ;;  %1747 = vadd.xlane.f32.xlu1 %v1746_v8  ;;  %1744 = vadd.xlane.f32.xlu0 %v1743_v34  ;;  %v5998_v4 = vunpack.c.h.bf16 %v6986_v60  ;;  %v14447_v26 = vld [vmem:[#allocation106_spill] sm:$0xff]  ;;  %v1749_v8 = vsel %vm200_vm0, %v1713_v55, 0.0  ;;  %v5997_v34 = vunpack.c.l.bf16 %v6986_v60  ;;  %v14453_v44 = vld [vmem:[#allocation85_spill] sm:$0xff] }
 0x1ae   :  { %v1055_v22 = vpop.xlane.xlu1 %1054  ;;  %v14448_v54 = vmax.f32 %v14446_v25, %v14447_v26  ;;  %v1052_v50 = vpop.xlane.xlu0 %1051  ;;  %v14452_v38 = vmax.f32 %v14302_v23, %v14451_v39  ;;  %v6002_v55 = vunpack.c.h.bf16 %v6987_v43  ;;  %v14454_v60 = vmax.f32 %v14306_v16, %v8194_v49  ;;  %v14456_v23 = vld [vmem:[#allocation86_spill] sm:$0xff] }
 0x1af   :  { %v8503_v58 = vadd.f32 %v1055_v22, %v14450_v9  ;;  %v8512_v3 = vadd.f32 %v1052_v50, %v14453_v44  ;;  %v1718_v25 = vmul.f32 %v5998_v4, %v14305_v17  ;;  %v6988_v44 = vld [vmem:[#allocation5 + $0x2e8] sm:$0xff]  }
 0x1b0   :  { %v8500_v62 = vmax.f32 %v14448_v54, %v1055_v22  ;;  %v8509_v51 = vmax.f32 %v14452_v38, %v1052_v50  ;;  %v1758_v54 = vsel %vm200_vm0, %v1716_v36, 0.0  ;;  %v1755_v22 = vsel %vm200_vm0, %v1715_v12, 0.0  ;;  %v14457_v38 = vld [vmem:[#allocation18_spill] sm:$0xff]  ;;  %v14460_v4 = vld [vmem:[#allocation51_spill] sm:$0xff] }
 0x1b1   :  { %1753 = vadd.xlane.f32.xlu1 %v1752_v56  ;;  %1750 = vadd.xlane.f32.xlu0 %v1749_v8  ;;  %v1717_v56 = vmul.f32 %v5997_v34, %v14457_v38  ;;  %v6001_v8 = vunpack.c.l.bf16 %v6987_v43  ;;  %v14458_v36 = vmax.f32 %v14309_v28, %v8205_v40  ;;  %v1764_v16 = vsel %vm200_vm0, %v1718_v25, 0.0  ;;  %v14462_v34 = vld [vmem:[#allocation87_spill] sm:$0xff]  ;;  %v14464_v40 = vld [vmem:[#allocation88_spill] sm:$0xff]  ;;  %v14467_v25 = vld [vmem:[#allocation89_spill] sm:$0xff] }
 0x1b2   :  { %14449 = vst [vmem:[#allocation72_spill] sm:$0xff] %v8500_v62  ;;  %v1061_v26 = vpop.xlane.xlu1 %1060  ;;  %v1058_v50 = vpop.xlane.xlu0 %1057  ;;  %v14463_v43 = vmax.f32 %v7898_v61, %v14462_v34  ;;  %v14470_v34 = vld [vmem:[#allocation21_spill] sm:$0xff] }
 0x1b3   :  { %v8520_v9 = vmax.f32 %v14454_v60, %v1061_v26  ;;  %v8523_v39 = vadd.f32 %v1061_v26, %v14456_v23  ;;  %v8529_v12 = vmax.f32 %v14458_v36, %v1058_v50  ;;  %v8532_v17 = vadd.f32 %v1058_v50, %v14460_v4  ;;  %v6989_v4 = vld [vmem:[#allocation5 + $0x420] sm:$0xff]  }
 0x1b4   :  { %v1720_v26 = vmul.f32 %v6002_v55, %v14210_v30  ;;  %v6006_v60 = vunpack.c.h.bf16 %v6988_v44  ;;  %v6005_v23 = vunpack.c.l.bf16 %v6988_v44  ;;  %v1761_v50 = vsel %vm200_vm0, %v1717_v56, 0.0  ;;  %v14469_v44 = vld [vmem:[#allocation108_spill] sm:$0xff] }
 0x1b5   :  { %14455 = vst [vmem:[#allocation46_spill] sm:$0xff] %v8520_v9  ;;  %14459 = vst [vmem:[#allocation73_spill] sm:$0xff] %v8529_v12  ;;  %1759 = vadd.xlane.f32.xlu1 %v1758_v54  ;;  %1756 = vadd.xlane.f32.xlu0 %v1755_v22  ;;  %v14465_v54 = vld [vmem:[#allocation20_spill] sm:$0xff] }
 0x1b6   :  { %14461 = vst [vmem:[#allocation74_spill] sm:$0xff] %v8532_v17  ;;  %v1067_v49 = vpop.xlane.xlu1 %1066  ;;  %v1064_v36 = vpop.xlane.xlu0 %1063  ;;  %v1719_v22 = vmul.f32 %v6001_v8, %v14465_v54  ;;  %v14466_v17 = vld [vmem:[#allocation52_spill] sm:$0xff]  ;;  %v1721_v56 = vmul.f32 %v6005_v23, %v14318_v57  ;;  %v6010_v8 = vunpack.c.h.bf16 %v6989_v4 }
 0x1b7   :  { %v8539_v38 = vmax.f32 %v14463_v43, %v1067_v49  ;;  %v8542_v28 = vadd.f32 %v1067_v49, %v14464_v40  ;;  %v14468_v12 = vmax.f32 %v14466_v17, %v14467_v25  ;;  %v8552_v30 = vadd.f32 %v1064_v36, %v14469_v44  ;;  %v14471_v17 = vld [vmem:[#allocation109_spill] sm:$0xff]  ;;  %v6990_v25 = vld [vmem:[#allocation5 + $0x428] sm:$0xff]  }
 0x1b8   :  { %v1770_v49 = vsel %vm200_vm0, %v1720_v26, 0.0  ;;  %v1722_v43 = vmul.f32 %v6006_v60, %v14470_v34  ;;  %v1724_v40 = vmul.f32 %v6010_v8, %v14323_v47 }
 0x1b9   :  { %v8549_v55 = vmax.f32 %v14468_v12, %v1064_v36  ;;  %1765 = vadd.xlane.f32.xlu1 %v1764_v16  ;;  %1762 = vadd.xlane.f32.xlu0 %v1761_v50  ;;  %v1767_v16 = vsel %vm200_vm0, %v1719_v22, 0.0  ;;  %v6009_v50 = vunpack.c.l.bf16 %v6989_v4  ;;  %v6014_v22 = vunpack.c.h.bf16 %v6990_v25  ;;  %v14479_v4 = vld [vmem:[#allocation25_spill] sm:$0xff] }
 0x1ba   :  { %v8554_v61 = vpop.xlane.xlu1 %1233  ;;  %v8565_v36 = vpop.xlane.xlu0 %1230  ;;  %v1776_v44 = vsel %vm200_vm0, %v1722_v43, 0.0 }
 0x1bb   :  { %v8563_v12 = vadd.f32 %v8554_v61, %v14471_v17  ;;  %14472 = vst [vmem:[#allocation75_spill] sm:$0xff] %v8565_v36  ;;  %v8572_v60 = vadd.f32 %v8565_v36, %v8252_v48  ;;  %v1773_v17 = vsel %vm200_vm0, %v1721_v56, 0.0  ;;  %v6991_v36 = vld [vmem:[#allocation5 + $0x560] sm:$0xff]  }
 0x1bc   :  { %v6017_v0 = vunpack.c.l.bf16 %v6991_v36 }
 0x1bd   :  { %14473 = vst [vmem:[#allocation76_spill] sm:$0xff] %v8572_v60  ;;  %1771 = vadd.xlane.f32.xlu1 %v1770_v49  ;;  %1768 = vadd.xlane.f32.xlu0 %v1767_v16  ;;  %v14476_v49 = vld [vmem:[#allocation24_spill] sm:$0xff]  ;;  %v6013_v60 = vunpack.c.l.bf16 %v6990_v25  ;;  %v14480_v25 = vld [vmem:[#allocation55_spill] sm:$0xff] }
 0x1be   :  { %v8574_v23 = vpop.xlane.xlu1 %1239  ;;  %v8585_v48 = vpop.xlane.xlu0 %1236  ;;  %v1723_v16 = vmul.f32 %v6009_v50, %v14476_v49  ;;  %v14484_v50 = vld [vmem:[#allocation27_spill] sm:$0xff] }
 0x1bf   :  { %14474 = vst [vmem:[#allocation47_spill] sm:$0xff] %v8574_v23  ;;  %v8583_v26 = vadd.f32 %v8574_v23, %v8263_v41  ;;  %v8592_v56 = vadd.f32 %v8585_v48, %v8272_v18  ;;  %v1782_v41 = vsel %vm200_vm0, %v1724_v40, 0.0  ;;  %v6018_v23 = vunpack.c.h.bf16 %v6991_v36 }
 0x1c0   :  { %v1779_v18 = vsel %vm200_vm0, %v1723_v16, 0.0  ;;  %v1727_v16 = vmul.f32 %v6017_v0, %v7383_v24 }
 0x1c1   :  { %14475 = vst [vmem:[#allocation101_spill] sm:$0xff] %v8583_v26  ;;  %14477 = vst [vmem:[#allocation77_spill] sm:$0xff] %v8592_v56  ;;  %1777 = vadd.xlane.f32.xlu1 %v1776_v44  ;;  %1774 = vadd.xlane.f32.xlu0 %v1773_v17  ;;  %v1726_v26 = vmul.f32 %v6014_v22, %v14479_v4  ;;  %v14482_v44 = vld [vmem:[#allocation26_spill] sm:$0xff]  ;;  %v6992_v56 = vld [vmem:[#allocation5 + $0x568] sm:$0xff]  }
 0x1c2   :  { %v8594_v8 = vpop.xlane.xlu1 %1245  ;;  %v8604_v63 = vpop.xlane.xlu0 %1242  ;;  %v1725_v17 = vmul.f32 %v6013_v60, %v14482_v44  ;;  %v1791_v60 = vsel %vm200_vm0, %v1727_v16, 0.0  ;;  %v14492_v16 = vld [vmem:[#allocation58_spill] sm:$0xff] }
 0x1c3   :  { %14478 = vst [vmem:[#allocation102_spill] sm:$0xff] %v8594_v8  ;;  %v8602_v43 = vadd.f32 %v8594_v8, %v14480_v25  ;;  %v8612_v36 = vadd.f32 %v8604_v63, %v8292_v6  ;;  %v1788_v25 = vsel %vm200_vm0, %v1726_v26, 0.0  ;;  %v6022_v8 = vunpack.c.h.bf16 %v6992_v56 }
 0x1c5   :  { %14481 = vst [vmem:[#allocation103_spill] sm:$0xff] %v8602_v43  ;;  %14483 = vst [vmem:[#allocation104_spill] sm:$0xff] %v8612_v36  ;;  %1783 = vadd.xlane.f32.xlu1 %v1782_v41  ;;  %1780 = vadd.xlane.f32.xlu0 %v1779_v18  ;;  %v1728_v43 = vmul.f32 %v6018_v23, %v14484_v50  ;;  %v1785_v41 = vsel %vm200_vm0, %v1725_v17, 0.0  ;;  %v6021_v18 = vunpack.c.l.bf16 %v6992_v56  ;;  %v6993_v36 = vld [vmem:[#allocation5 + $0x6a0] sm:$0xff]  }
 0x1c6   :  { %v8614_v22 = vpop.xlane.xlu1 %1251  ;;  %v8625_v6 = vpop.xlane.xlu0 %1248  ;;  %v1730_v24 = vmul.f32 %v6022_v8, %v7387_v31  ;;  %v6026_v17 = vunpack.c.h.bf16 %v6993_v36 }
 0x1c7   :  { %v8623_v40 = vadd.f32 %v8614_v22, %v14485_v15  ;;  %14486 = vst [vmem:[#allocation48_spill] sm:$0xff] %v8625_v6  ;;  %v8632_v0 = vadd.f32 %v8625_v6, %v8312_v20  ;;  %v1794_v15 = vsel %vm200_vm0, %v1728_v43, 0.0  ;;  %v6994_v6 = vld [vmem:[#allocation5 + $0x6a8] sm:$0xff]  }
 0x1c8   :  { %v6030_v21 = vunpack.c.h.bf16 %v6994_v6  ;;  %v6029_v31 = vunpack.c.l.bf16 %v6994_v6 }
 0x1c9   :  { %14487 = vst [vmem:[#allocation78_spill] sm:$0xff] %v8632_v0  ;;  %1789 = vadd.xlane.f32.xlu1 %v1788_v25  ;;  %1786 = vadd.xlane.f32.xlu0 %v1785_v41  ;;  %v14491_v25 = vld [vmem:[#allocation30_spill] sm:$0xff]  ;;  %v6025_v0 = vunpack.c.l.bf16 %v6993_v36 }
 0x1ca   :  { %v8634_v23 = vpop.xlane.xlu1 %1257  ;;  %v8645_v20 = vpop.xlane.xlu0 %1254  ;;  %v1729_v41 = vmul.f32 %v6021_v18, %v14491_v25  ;;  %v14497_v25 = vld [vmem:[#allocation59_spill] sm:$0xff]  ;;  %v14503_v36 = vld [vmem:[#allocation34_spill] sm:$0xff] }
 0x1cb   :  { %14488 = vst [vmem:[#allocation79_spill] sm:$0xff] %v8634_v23  ;;  %v8643_v26 = vadd.f32 %v8634_v23, %v8323_v42  ;;  %14490 = vst [vmem:[#allocation80_spill] sm:$0xff] %v8645_v20  ;;  %v8652_v8 = vadd.f32 %v8645_v20, %v14492_v16  ;;  %v1800_v42 = vsel %vm200_vm0, %v1730_v24, 0.0  ;;  %v14505_v20 = vld [vmem:[#allocation62_spill] sm:$0xff] }
 0x1cd   :  { %14489 = vst [vmem:[#allocation49_spill] sm:$0xff] %v8643_v26  ;;  %14493 = vst [vmem:[#allocation81_spill] sm:$0xff] %v8652_v8  ;;  %1795 = vadd.xlane.f32.xlu1 %v1794_v15  ;;  %1792 = vadd.xlane.f32.xlu0 %v1791_v60  ;;  %v14495_v26 = vld [vmem:[#allocation31_spill] sm:$0xff]  ;;  %v1797_v15 = vsel %vm200_vm0, %v1729_v41, 0.0  ;;  %v14499_v60 = vld [vmem:[#allocation32_spill] sm:$0xff]  ;;  %v1733_v41 = vmul.f32 %v6029_v31, %v14503_v36 }
 0x1ce   :  { %v8654_v56 = vpop.xlane.xlu1 %1263  ;;  %v1732_v23 = vmul.f32 %v6026_v17, %v14495_v26  ;;  %v8664_v13 = vpop.xlane.xlu0 %1260  ;;  %v1731_v16 = vmul.f32 %v6025_v0, %v14499_v60  ;;  %v6995_v8 = vld [vmem:[#allocation5 + $0x7e0] sm:$0xff]   ;;  %v14500_v17 = vld [vmem:[#allocation91_spill] sm:$0xff]  ;;  %v14504_v0 = vld [vmem:[#allocation61_spill] sm:$0xff] }
 0x1cf   :  { %14494 = vst [vmem:[#allocation82_spill] sm:$0xff] %v8654_v56  ;;  %v8662_v43 = vadd.f32 %v8654_v56, %v14497_v25  ;;  %v8672_v6 = vadd.f32 %v8664_v13, %v14500_v17  ;;  %v6034_v26 = vunpack.c.h.bf16 %v6995_v8  ;;  %v1809_v60 = vsel %vm200_vm0, %v1733_v41, 0.0  ;;  %v14514_v41 = vld [vmem:[#allocation94_spill] sm:$0xff] }
 0x1d0   :  { %v1806_v25 = vsel %vm200_vm0, %v1732_v23, 0.0 }
 0x1d1   :  { %14498 = vst [vmem:[#allocation105_spill] sm:$0xff] %v8662_v43  ;;  %14501 = vst [vmem:[#allocation83_spill] sm:$0xff] %v8672_v6  ;;  %1801 = vadd.xlane.f32.xlu1 %v1800_v42  ;;  %1798 = vadd.xlane.f32.xlu0 %v1797_v15  ;;  %v14502_v43 = vld [vmem:[#allocation33_spill] sm:$0xff]  ;;  %v1803_v42 = vsel %vm200_vm0, %v1731_v16, 0.0  ;;  %v6033_v15 = vunpack.c.l.bf16 %v6995_v8  ;;  %v6996_v6 = vld [vmem:[#allocation5 + $0x7e8] sm:$0xff]   ;;  %v1736_v36 = vmul.f32 %v6034_v26, %v14249_v2 }
 0x1d2   :  { %v8674_v18 = vpop.xlane.xlu1 %1269  ;;  %v1734_v56 = vmul.f32 %v6030_v21, %v14502_v43  ;;  %v8685_v17 = vpop.xlane.xlu0 %1266  ;;  %v6038_v16 = vunpack.c.h.bf16 %v6996_v6 }
 0x1d3   :  { %v8683_v24 = vadd.f32 %v8674_v18, %v14505_v20  ;;  %14507 = vst [vmem:[#allocation106_spill] sm:$0xff] %v8685_v17  ;;  %v8692_v31 = vadd.f32 %v8685_v17, %v8372_v46  ;;  %v6997_v17 = vld [vmem:[#allocation5 + $0x920] sm:$0xff]  }
 0x1d4   :  { %v1812_v20 = vsel %vm200_vm0, %v1734_v56, 0.0  ;;  %v6042_v59 = vunpack.c.h.bf16 %v6997_v17  ;;  %v6041_v2 = vunpack.c.l.bf16 %v6997_v17 }
 0x1d5   :  { %14506 = vst [vmem:[#allocation50_spill] sm:$0xff] %v8683_v24  ;;  %14508 = vst [vmem:[#allocation84_spill] sm:$0xff] %v8692_v31  ;;  %1807 = vadd.xlane.f32.xlu1 %v1806_v25  ;;  %1804 = vadd.xlane.f32.xlu0 %v1803_v42  ;;  %v14510_v24 = vld [vmem:[#allocation63_spill] sm:$0xff]  ;;  %v14513_v25 = vld [vmem:[#allocation36_spill] sm:$0xff]  ;;  %v6037_v31 = vunpack.c.l.bf16 %v6996_v6 }
 0x1d6   :  { %v8694_v21 = vpop.xlane.xlu1 %1275  ;;  %v8705_v46 = vpop.xlane.xlu0 %1272  ;;  %v1735_v42 = vmul.f32 %v6033_v15, %v14513_v25  ;;  %v14519_v25 = vld [vmem:[#allocation95_spill] sm:$0xff]  ;;  %v14526_v6 = vld [vmem:[#allocation40_spill] sm:$0xff] }
 0x1d7   :  { %14509 = vst [vmem:[#allocation107_spill] sm:$0xff] %v8694_v21  ;;  %v8703_v23 = vadd.f32 %v8694_v21, %v14510_v24  ;;  %14512 = vst [vmem:[#allocation86_spill] sm:$0xff] %v8705_v46  ;;  %v8712_v26 = vadd.f32 %v8705_v46, %v14514_v41  ;;  %v1818_v24 = vsel %vm200_vm0, %v1736_v36, 0.0  ;;  %v14528_v46 = vld [vmem:[#allocation66_spill] sm:$0xff] }
 0x1d9   :  { %14511 = vst [vmem:[#allocation85_spill] sm:$0xff] %v8703_v23  ;;  %14515 = vst [vmem:[#allocation51_spill] sm:$0xff] %v8712_v26  ;;  %1813 = vadd.xlane.f32.xlu1 %v1812_v20  ;;  %1810 = vadd.xlane.f32.xlu0 %v1809_v60  ;;  %v14517_v23 = vld [vmem:[#allocation37_spill] sm:$0xff]  ;;  %v1815_v20 = vsel %vm200_vm0, %v1735_v42, 0.0  ;;  %v14521_v60 = vld [vmem:[#allocation38_spill] sm:$0xff]  ;;  %v1739_v42 = vmul.f32 %v6041_v2, %v14526_v6 }
 0x1da   :  { %v8714_v8 = vpop.xlane.xlu1 %1281  ;;  %v1738_v21 = vmul.f32 %v6038_v16, %v14517_v23  ;;  %v8724_v33 = vpop.xlane.xlu0 %1278  ;;  %v1737_v41 = vmul.f32 %v6037_v31, %v14521_v60  ;;  %v6998_v26 = vld [vmem:[#allocation5 + $0x928] sm:$0xff]   ;;  %v14522_v16 = vld [vmem:[#allocation65_spill] sm:$0xff] }
 0x1db   :  { %14516 = vst [vmem:[#allocation87_spill] sm:$0xff] %v8714_v8  ;;  %v8722_v56 = vadd.f32 %v8714_v8, %v14519_v25  ;;  %v8732_v17 = vadd.f32 %v8724_v33, %v14522_v16  ;;  %v6046_v23 = vunpack.c.h.bf16 %v6998_v26  ;;  %v14527_v31 = vld [vmem:[#allocation67_spill] sm:$0xff]  ;;  %v1827_v60 = vsel %vm200_vm0, %v1739_v42, 0.0  ;;  %v14538_v42 = vld [vmem:[#allocation97_spill] sm:$0xff] }
 0x1dc   :  { %v1824_v25 = vsel %vm200_vm0, %v1738_v21, 0.0 }
 0x1dd   :  { %14520 = vst [vmem:[#allocation88_spill] sm:$0xff] %v8722_v56  ;;  %14523 = vst [vmem:[#allocation52_spill] sm:$0xff] %v8732_v17  ;;  %1819 = vadd.xlane.f32.xlu1 %v1818_v24  ;;  %1816 = vadd.xlane.f32.xlu0 %v1815_v20  ;;  %v14525_v56 = vld [vmem:[#allocation39_spill] sm:$0xff]  ;;  %v1821_v24 = vsel %vm200_vm0, %v1737_v41, 0.0  ;;  %v6045_v20 = vunpack.c.l.bf16 %v6998_v26  ;;  %v6048_v17 = vld [vmem:[#allocation5 + $0x70] sm:$0xff]   ;;  %v1742_v6 = vmul.f32 %v6046_v23, %v14272_v7 }
 0x1de   :  { %v8734_v15 = vpop.xlane.xlu1 %1287  ;;  %v1740_v8 = vmul.f32 %v6042_v59, %v14525_v56  ;;  %v8745_v16 = vpop.xlane.xlu0 %1284  ;;  %v6050_v41 = vunpack.c.h.bf16 %v6048_v17 }
 0x1df   :  { %14524 = vst [vmem:[#allocation89_spill] sm:$0xff] %v8734_v15  ;;  %v8743_v36 = vadd.f32 %v8734_v15, %v14528_v46  ;;  %14530 = vst [vmem:[#allocation109_spill] sm:$0xff] %v8745_v16  ;;  %v8752_v2 = vadd.f32 %v8745_v16, %v8432_v52  ;;  %v6999_v16 = vld [vmem:[#allocation5 + $0x78] sm:$0xff]   ;;  %v14552_v15 = vld [vmem:[#allocation71_spill] sm:$0xff] }
 0x1e0   :  { %v1830_v46 = vsel %vm200_vm0, %v1740_v8, 0.0  ;;  %v6054_v11 = vunpack.c.h.bf16 %v6999_v16  ;;  %v6053_v7 = vunpack.c.l.bf16 %v6999_v16 }
 0x1e1   :  { %14529 = vst [vmem:[#allocation108_spill] sm:$0xff] %v8743_v36  ;;  %14531 = vst [vmem:[#allocation55_spill] sm:$0xff] %v8752_v2  ;;  %1825 = vadd.xlane.f32.xlu1 %v1824_v25  ;;  %1822 = vadd.xlane.f32.xlu0 %v1821_v24  ;;  %v14533_v36 = vld [vmem:[#allocation69_spill] sm:$0xff]  ;;  %v14536_v25 = vld [vmem:[#allocation42_spill] sm:$0xff]  ;;  %v6049_v2 = vunpack.c.l.bf16 %v6048_v17 }
 0x1e2   :  { %v8754_v59 = vpop.xlane.xlu1 %1293  ;;  %v8765_v52 = vpop.xlane.xlu0 %1290  ;;  %v1741_v24 = vmul.f32 %v6045_v20, %v14536_v25  ;;  %v14543_v25 = vld [vmem:[#allocation98_spill] sm:$0xff]  ;;  %v14550_v17 = vld [vmem:[#allocation11_spill] sm:$0xff] }
 0x1e3   :  { %14532 = vst [vmem:[#allocation56_spill] sm:$0xff] %v8754_v59  ;;  %v8763_v21 = vadd.f32 %v8754_v59, %v14533_v36  ;;  %14535 = vst [vmem:[#allocation59_spill] sm:$0xff] %v8765_v52  ;;  %v8772_v23 = vadd.f32 %v8765_v52, %v14538_v42  ;;  %v1836_v36 = vsel %vm200_vm0, %v1742_v6, 0.0  ;;  %v14546_v6 = vld [vmem:[#allocation99_spill] sm:$0xff] }
 0x1e5   :  { %14534 = vst [vmem:[#allocation58_spill] sm:$0xff] %v8763_v21  ;;  %14539 = vst [vmem:[#allocation91_spill] sm:$0xff] %v8772_v23  ;;  %1831 = vadd.xlane.f32.xlu1 %v1830_v46  ;;  %1828 = vadd.xlane.f32.xlu0 %v1827_v60  ;;  %v14541_v21 = vld [vmem:[#allocation14_spill] sm:$0xff]  ;;  %v1833_v46 = vsel %vm200_vm0, %v1741_v24, 0.0  ;;  %v14545_v60 = vld [vmem:[#allocation12_spill] sm:$0xff]  ;;  %v1970_v24 = vmul.f32 %v6053_v7, %v14550_v17 }
 0x1e6   :  { %v8774_v26 = vpop.xlane.xlu1 %1299  ;;  %v1969_v59 = vmul.f32 %v6050_v41, %v14541_v21  ;;  %v8784_v8 = vpop.xlane.xlu0 %1296  ;;  %v1968_v42 = vmul.f32 %v6049_v2, %v14545_v60  ;;  %v7000_v23 = vld [vmem:[#allocation5 + $0x1b0] sm:$0xff]   ;;  %v14551_v2 = vld [vmem:[#allocation45_spill] sm:$0xff] }
 0x1e7   :  { %14540 = vst [vmem:[#allocation61_spill] sm:$0xff] %v8774_v26  ;;  %v8782_v37 = vadd.f32 %v8774_v26, %v14543_v25  ;;  %v14547_v41 = vld [vmem:[#allocation100_spill] sm:$0xff]  ;;  %v6058_v21 = vunpack.c.h.bf16 %v7000_v23  ;;  %v2006_v60 = vsel %vm200_vm0, %v1970_v24, 0.0 }
 0x1e8   :  { %v8792_v16 = vadd.f32 %v8784_v8, %v14547_v41  ;;  %v2003_v25 = vsel %vm200_vm0, %v1969_v59, 0.0 }
 0x1e9   :  { %14544 = vst [vmem:[#allocation62_spill] sm:$0xff] %v8782_v37  ;;  %1837 = vadd.xlane.f32.xlu1 %v1836_v36  ;;  %1834 = vadd.xlane.f32.xlu0 %v1833_v46  ;;  %v14549_v37 = vld [vmem:[#allocation13_spill] sm:$0xff]  ;;  %v2000_v36 = vsel %vm200_vm0, %v1968_v42, 0.0  ;;  %v6057_v46 = vunpack.c.l.bf16 %v7000_v23  ;;  %v1973_v17 = vmul.f32 %v6058_v21, %v14444_v14 }
 0x1ea   :  { %14548 = vst [vmem:[#allocation63_spill] sm:$0xff] %v8792_v16  ;;  %v8794_v20 = vpop.xlane.xlu1 %1305  ;;  %v1971_v26 = vmul.f32 %v6054_v11, %v14549_v37  ;;  %v8805_v41 = vpop.xlane.xlu0 %1302  ;;  %v7001_v16 = vld [vmem:[#allocation5 + $0x1b8] sm:$0xff]  }
 0x1eb   :  { %v8803_v52 = vadd.f32 %v8794_v20, %v14552_v15  ;;  %14553 = vst [vmem:[#allocation94_spill] sm:$0xff] %v8805_v41  ;;  %v8812_v7 = vadd.f32 %v8805_v41, %v8492_v10  ;;  %v6062_v42 = vunpack.c.h.bf16 %v7001_v16  ;;  %v7002_v41 = vld [vmem:[#allocation5 + $0x2f0] sm:$0xff]   ;;  %v14561_v23 = vld [vmem:[#allocation17_spill] sm:$0xff] }
 0x1ec   :  { %v2009_v15 = vsel %vm200_vm0, %v1971_v26, 0.0  ;;  %v6065_v62 = vunpack.c.l.bf16 %v7002_v41 }
 0x1ed   :  { %14554 = vst [vmem:[#allocation95_spill] sm:$0xff] %v8812_v7  ;;  %2004 = vadd.xlane.f32.xlu1 %v2003_v25  ;;  %2001 = vadd.xlane.f32.xlu0 %v2000_v36  ;;  %v14558_v25 = vld [vmem:[#allocation16_spill] sm:$0xff]  ;;  %v6061_v7 = vunpack.c.l.bf16 %v7001_v16 }
 0x1ee   :  { %v8814_v11 = vpop.xlane.xlu1 %1311  ;;  %v8825_v10 = vpop.xlane.xlu0 %1308  ;;  %v1972_v36 = vmul.f32 %v6057_v46, %v14558_v25 }
 0x1ef   :  { %14555 = vst [vmem:[#allocation65_spill] sm:$0xff] %v8814_v11  ;;  %v8823_v59 = vadd.f32 %v8814_v11, %v8503_v58  ;;  %14557 = vst [vmem:[#allocation66_spill] sm:$0xff] %v8825_v10  ;;  %v8832_v21 = vadd.f32 %v8825_v10, %v8512_v3  ;;  %v2015_v58 = vsel %vm200_vm0, %v1973_v17, 0.0  ;;  %v6066_v11 = vunpack.c.h.bf16 %v7002_v41  ;;  %v14564_v17 = vld [vmem:[#allocation73_spill] sm:$0xff] }
 0x1f0   :  { %v2012_v3 = vsel %vm200_vm0, %v1972_v36, 0.0  ;;  %v1976_v36 = vmul.f32 %v6065_v62, %v14465_v54 }
 0x1f1   :  { %14556 = vst [vmem:[#allocation67_spill] sm:$0xff] %v8823_v59  ;;  %14559 = vst [vmem:[#allocation69_spill] sm:$0xff] %v8832_v21  ;;  %2010 = vadd.xlane.f32.xlu1 %v2009_v15  ;;  %2007 = vadd.xlane.f32.xlu0 %v2006_v60  ;;  %v1975_v59 = vmul.f32 %v6062_v42, %v14561_v23  ;;  %v14563_v60 = vld [vmem:[#allocation18_spill] sm:$0xff]  ;;  %v7003_v21 = vld [vmem:[#allocation5 + $0x2f8] sm:$0xff]  }
 0x1f2   :  { %v8834_v24 = vpop.xlane.xlu1 %1317  ;;  %v8844_v26 = vpop.xlane.xlu0 %1314  ;;  %v1974_v15 = vmul.f32 %v6061_v7, %v14563_v60  ;;  %v14565_v42 = vld [vmem:[#allocation74_spill] sm:$0xff]  ;;  %v6070_v9 = vunpack.c.h.bf16 %v7003_v21 }
 0x1f3   :  { %14560 = vst [vmem:[#allocation97_spill] sm:$0xff] %v8834_v24  ;;  %v8842_v46 = vadd.f32 %v8834_v24, %v8523_v39  ;;  %v8852_v41 = vadd.f32 %v8844_v26, %v14565_v42  ;;  %v2021_v39 = vsel %vm200_vm0, %v1975_v59, 0.0 }
 0x1f4   :  { %v1979_v54 = vmul.f32 %v6070_v9, %v14470_v34  ;;  %v14576_v9 = vld [vmem:[#allocation76_spill] sm:$0xff] }
 0x1f5   :  { %14562 = vst [vmem:[#allocation98_spill] sm:$0xff] %v8842_v46  ;;  %14566 = vst [vmem:[#allocation99_spill] sm:$0xff] %v8852_v41  ;;  %2016 = vadd.xlane.f32.xlu1 %v2015_v58  ;;  %2013 = vadd.xlane.f32.xlu0 %v2012_v3  ;;  %v14567_v46 = vld [vmem:[#allocation19_spill] sm:$0xff]  ;;  %v2018_v58 = vsel %vm200_vm0, %v1974_v15, 0.0  ;;  %v6069_v3 = vunpack.c.l.bf16 %v7003_v21  ;;  %v7004_v41 = vld [vmem:[#allocation5 + $0x430] sm:$0xff]   ;;  %v14571_v21 = vmax.f32 %v8239_v29, %v8554_v61 }
 0x1f6   :  { %v8854_v16 = vpop.xlane.xlu1 %1323  ;;  %v1977_v24 = vmul.f32 %v6066_v11, %v14567_v46  ;;  %v8865_v42 = vpop.xlane.xlu0 %1320  ;;  %v2033_v61 = vsel %vm200_vm0, %v1979_v54, 0.0 }
 0x1f7   :  { %v8863_v10 = vadd.f32 %v8854_v16, %v8542_v28  ;;  %14569 = vst [vmem:[#allocation45_spill] sm:$0xff] %v8865_v42  ;;  %v8872_v62 = vadd.f32 %v8865_v42, %v8552_v30  ;;  %v2024_v28 = vsel %vm200_vm0, %v1976_v36, 0.0 }
 0x1f8   :  { %v2027_v7 = vsel %vm200_vm0, %v1977_v24, 0.0  ;;  %v14574_v24 = vld [vmem:[#allocation75_spill] sm:$0xff] }
 0x1f9   :  { %14568 = vst [vmem:[#allocation100_spill] sm:$0xff] %v8863_v10  ;;  %14570 = vst [vmem:[#allocation71_spill] sm:$0xff] %v8872_v62  ;;  %2022 = vadd.xlane.f32.xlu1 %v2021_v39  ;;  %2019 = vadd.xlane.f32.xlu0 %v2018_v58  ;;  %v6074_v10 = vunpack.c.h.bf16 %v7004_v41  ;;  %v1978_v39 = vmul.f32 %v6069_v3, %v14318_v57  ;;  %v6073_v58 = vunpack.c.l.bf16 %v7004_v41  ;;  %v7005_v62 = vld [vmem:[#allocation5 + $0x438] sm:$0xff]   ;;  %v14577_v3 = vld [vmem:[#allocation54_spill] sm:$0xff] }
 0x1fa   :  { %v1491_v11 = vpop.xlane.xlu1 %1490  ;;  %v1488_v30 = vpop.xlane.xlu0 %1487  ;;  %v14575_v42 = vmax.f32 %v8249_v53, %v14574_v24  ;;  %v14578_v41 = vld [vmem:[#allocation47_spill] sm:$0xff]  ;;  %v14581_v53 = vld [vmem:[#allocation101_spill] sm:$0xff] }
 0x1fb   :  { %v8880_v15 = vmax.f32 %v14571_v21, %v1491_v11  ;;  %v8883_v59 = vadd.f32 %v1491_v11, %v8563_v12  ;;  %v8892_v34 = vadd.f32 %v1488_v30, %v14576_v9  ;;  %v1981_v12 = vmul.f32 %v6074_v10, %v14323_v47  ;;  %v14583_v9 = vld [vmem:[#allocation53_spill] sm:$0xff] }
 0x1fc   :  { %v8889_v36 = vmax.f32 %v14575_v42, %v1488_v30  ;;  %v6078_v11 = vunpack.c.h.bf16 %v7005_v62  ;;  %v6077_v21 = vunpack.c.l.bf16 %v7005_v62  ;;  %v14579_v57 = vmax.f32 %v14577_v3, %v14578_v41  ;;  %v14585_v62 = vld [vmem:[#allocation77_spill] sm:$0xff] }
 0x1fd   :  { %14572 = vst [vmem:[#allocation73_spill] sm:$0xff] %v8880_v15  ;;  %14573 = vst [vmem:[#allocation74_spill] sm:$0xff] %v8883_v59  ;;  %2028 = vadd.xlane.f32.xlu1 %v2027_v7  ;;  %2025 = vadd.xlane.f32.xlu0 %v2024_v28  ;;  %v2030_v30 = vsel %vm200_vm0, %v1978_v39, 0.0  ;;  %v1980_v7 = vmul.f32 %v6073_v58, %v14476_v49  ;;  %v7006_v28 = vld [vmem:[#allocation5 + $0x570] sm:$0xff]   ;;  %v14584_v54 = vmax.f32 %v14583_v9, %v8585_v48  ;;  %v14586_v58 = vld [vmem:[#allocation43_spill] sm:$0xff] }
 0x1fe   :  { %v1497_v29 = vpop.xlane.xlu1 %1496  ;;  %v1494_v24 = vpop.xlane.xlu0 %1493  ;;  %v1983_v3 = vmul.f32 %v6078_v11, %v14479_v4  ;;  %v1982_v39 = vmul.f32 %v6077_v21, %v14482_v44  ;;  %v6082_v41 = vunpack.c.h.bf16 %v7006_v28  ;;  %v14590_v48 = vld [vmem:[#allocation103_spill] sm:$0xff]  ;;  %v14593_v21 = vld [vmem:[#allocation104_spill] sm:$0xff] }
 0x1ff   :  { %v8899_v59 = vmax.f32 %v14579_v57, %v1497_v29  ;;  %v8902_v42 = vadd.f32 %v1497_v29, %v14581_v53  ;;  %v8909_v10 = vmax.f32 %v14584_v54, %v1494_v24  ;;  %v8912_v47 = vadd.f32 %v1494_v24, %v14585_v62  ;;  %v14587_v53 = vld [vmem:[#allocation102_spill] sm:$0xff]  ;;  %v7007_v54 = vld [vmem:[#allocation5 + $0x578] sm:$0xff]  }
 0x200   :  { %v2039_v29 = vsel %vm200_vm0, %v1981_v12, 0.0  ;;  %v14591_v12 = vmax.f32 %v8289_v19, %v8604_v63 }
 0x201   :  { %14580 = vst [vmem:[#allocation75_spill] sm:$0xff] %v8899_v59  ;;  %14582 = vst [vmem:[#allocation76_spill] sm:$0xff] %v8902_v42  ;;  %2034 = vadd.xlane.f32.xlu1 %v2033_v61  ;;  %2031 = vadd.xlane.f32.xlu0 %v2030_v30  ;;  %v14588_v42 = vmax.f32 %v14586_v58, %v14587_v53  ;;  %v2036_v61 = vsel %vm200_vm0, %v1980_v7, 0.0  ;;  %v6081_v30 = vunpack.c.l.bf16 %v7006_v28  ;;  %v2045_v58 = vsel %vm200_vm0, %v1983_v3, 0.0  ;;  %v14599_v3 = vld [vmem:[#allocation48_spill] sm:$0xff] }
 0x202   :  { %v1503_v57 = vpop.xlane.xlu1 %1502  ;;  %v1500_v24 = vpop.xlane.xlu0 %1499  ;;  %v1985_v53 = vmul.f32 %v6082_v41, %v14484_v50  ;;  %v6086_v7 = vunpack.c.h.bf16 %v7007_v54  ;;  %v14595_v28 = vmax.f32 %v8299_v1, %v8614_v22  ;;  %v14602_v41 = vld [vmem:[#allocation78_spill] sm:$0xff] }
 0x203   :  { %v8920_v59 = vmax.f32 %v14588_v42, %v1503_v57  ;;  %v8923_v9 = vadd.f32 %v1503_v57, %v14590_v48  ;;  %v8929_v11 = vmax.f32 %v14591_v12, %v1500_v24  ;;  %v8932_v62 = vadd.f32 %v1500_v24, %v14593_v21  ;;  %v14598_v24 = vld [vmem:[#allocation28_spill] sm:$0xff] }
 0x204   :  { %v2042_v57 = vsel %vm200_vm0, %v1982_v39, 0.0  ;;  %v7008_v12 = vld [vmem:[#allocation5 + $0x6b0] sm:$0xff]   ;;  %v14600_v21 = vmax.f32 %v8309_v32, %v14599_v3  ;;  %v2051_v22 = vsel %vm200_vm0, %v1985_v53, 0.0  ;;  %v14609_v32 = vld [vmem:[#allocation49_spill] sm:$0xff] }
 0x205   :  { %14589 = vst [vmem:[#allocation54_spill] sm:$0xff] %v8920_v59  ;;  %14592 = vst [vmem:[#allocation47_spill] sm:$0xff] %v8929_v11  ;;  %2040 = vadd.xlane.f32.xlu1 %v2039_v29  ;;  %2037 = vadd.xlane.f32.xlu0 %v2036_v61  ;;  %v1984_v29 = vmul.f32 %v6081_v30, %v14598_v24  ;;  %v6085_v61 = vunpack.c.l.bf16 %v7007_v54  ;;  %v14605_v30 = vld [vmem:[#allocation90_spill] sm:$0xff]  ;;  %v14606_v54 = vld [vmem:[#allocation79_spill] sm:$0xff] }
 0x206   :  { %14594 = vst [vmem:[#allocation101_spill] sm:$0xff] %v8932_v62  ;;  %v1509_v42 = vpop.xlane.xlu1 %1508  ;;  %v1506_v19 = vpop.xlane.xlu0 %1505  ;;  %v14607_v24 = vmax.f32 %v14605_v30, %v14606_v54  ;;  %v14613_v53 = vld [vmem:[#allocation80_spill] sm:$0xff]  ;;  %v14617_v30 = vld [vmem:[#allocation31_spill] sm:$0xff] }
 0x207   :  { %v8940_v48 = vmax.f32 %v14595_v28, %v1509_v42  ;;  %v8943_v63 = vadd.f32 %v1509_v42, %v8623_v40  ;;  %v8949_v39 = vmax.f32 %v14600_v21, %v1506_v19  ;;  %v8952_v50 = vadd.f32 %v1506_v19, %v14602_v41  ;;  %v14604_v40 = vld [vmem:[#allocation29_spill] sm:$0xff] }
 0x208   :  { %v1987_v42 = vmul.f32 %v6086_v7, %v14604_v40  ;;  %v6090_v28 = vunpack.c.h.bf16 %v7008_v12  ;;  %v2048_v19 = vsel %vm200_vm0, %v1984_v29, 0.0  ;;  %v7009_v41 = vld [vmem:[#allocation5 + $0x6b8] sm:$0xff]   ;;  %v14737_v15 = vld [vmem:[#allocation76_spill] sm:$0xff] }
 0x209   :  { %14596 = vst [vmem:[#allocation53_spill] sm:$0xff] %v8940_v48  ;;  %14597 = vst [vmem:[#allocation77_spill] sm:$0xff] %v8943_v63  ;;  %2046 = vadd.xlane.f32.xlu1 %v2045_v58  ;;  %2043 = vadd.xlane.f32.xlu0 %v2042_v57  ;;  %v6089_v63 = vunpack.c.l.bf16 %v7008_v12  ;;  %v14611_v58 = vld [vmem:[#allocation30_spill] sm:$0xff]  ;;  %v14616_v12 = vld [vmem:[#allocation81_spill] sm:$0xff] }
 0x20a   :  { %14601 = vst [vmem:[#allocation43_spill] sm:$0xff] %v8949_v39  ;;  %14603 = vst [vmem:[#allocation102_spill] sm:$0xff] %v8952_v50  ;;  %v1515_v1 = vpop.xlane.xlu1 %1514  ;;  %v1512_v21 = vpop.xlane.xlu0 %1511  ;;  %v1986_v57 = vmul.f32 %v6085_v61, %v14611_v58  ;;  %v14612_v50 = vld [vmem:[#allocation57_spill] sm:$0xff]  ;;  %v1989_v54 = vmul.f32 %v6090_v28, %v14617_v30  ;;  %v14619_v61 = vld [vmem:[#allocation60_spill] sm:$0xff] }
 0x20b   :  { %v8959_v48 = vmax.f32 %v14607_v24, %v1515_v1  ;;  %v8962_v3 = vadd.f32 %v1515_v1, %v14609_v32  ;;  %v14614_v39 = vmax.f32 %v14612_v50, %v14613_v53  ;;  %v8972_v40 = vadd.f32 %v1512_v21, %v14616_v12  ;;  %v14618_v32 = vld [vmem:[#allocation32_spill] sm:$0xff]  ;;  %v14623_v50 = vld [vmem:[#allocation105_spill] sm:$0xff] }
 0x20c   :  { %v2057_v1 = vsel %vm200_vm0, %v1987_v42, 0.0  ;;  %v1988_v29 = vmul.f32 %v6089_v63, %v14618_v32  ;;  %v7010_v53 = vld [vmem:[#allocation5 + $0x7f0] sm:$0xff]   ;;  %v14624_v42 = vmax.f32 %v8349_v35, %v8664_v13  ;;  %v14626_v63 = vld [vmem:[#allocation83_spill] sm:$0xff]  ;;  %v14630_v13 = vld [vmem:[#allocation50_spill] sm:$0xff] }
 0x20d   :  { %14608 = vst [vmem:[#allocation103_spill] sm:$0xff] %v8959_v48  ;;  %14610 = vst [vmem:[#allocation104_spill] sm:$0xff] %v8962_v3  ;;  %v8969_v7 = vmax.f32 %v14614_v39, %v1512_v21  ;;  %2052 = vadd.xlane.f32.xlu1 %v2051_v22  ;;  %2049 = vadd.xlane.f32.xlu0 %v2048_v19  ;;  %v6094_v3 = vunpack.c.h.bf16 %v7009_v41  ;;  %v14620_v48 = vld [vmem:[#allocation82_spill] sm:$0xff]  ;;  %v2054_v22 = vsel %vm200_vm0, %v1986_v57, 0.0  ;;  %v6093_v19 = vunpack.c.l.bf16 %v7009_v41 }
 0x20e   :  { %v1521_v24 = vpop.xlane.xlu1 %1520  ;;  %v14621_v58 = vmax.f32 %v14619_v61, %v14620_v48  ;;  %v1518_v21 = vpop.xlane.xlu0 %1517  ;;  %v6098_v57 = vunpack.c.h.bf16 %v7010_v53  ;;  %v14628_v41 = vmax.f32 %v14504_v0, %v8674_v18 }
 0x20f   :  { %14615 = vst [vmem:[#allocation48_spill] sm:$0xff] %v8969_v7  ;;  %v8983_v39 = vadd.f32 %v1521_v24, %v14623_v50  ;;  %v8989_v28 = vmax.f32 %v14624_v42, %v1518_v21  ;;  %v8992_v12 = vadd.f32 %v1518_v21, %v14626_v63  ;;  %v1991_v61 = vmul.f32 %v6094_v3, %v14502_v43  ;;  %v14632_v42 = vld [vmem:[#allocation34_spill] sm:$0xff]  ;;  %v7011_v63 = vld [vmem:[#allocation5 + $0x7f8] sm:$0xff]   ;;  %v14636_v3 = vld [vmem:[#allocation84_spill] sm:$0xff] }
 0x210   :  { %v8980_v62 = vmax.f32 %v14621_v58, %v1521_v24  ;;  %v2063_v58 = vsel %vm200_vm0, %v1989_v54, 0.0  ;;  %v2060_v24 = vsel %vm200_vm0, %v1988_v29, 0.0  ;;  %v14633_v54 = vld [vmem:[#allocation106_spill] sm:$0xff] }
 0x211   :  { %14625 = vst [vmem:[#allocation90_spill] sm:$0xff] %v8989_v28  ;;  %14627 = vst [vmem:[#allocation79_spill] sm:$0xff] %v8992_v12  ;;  %2058 = vadd.xlane.f32.xlu1 %v2057_v1  ;;  %2055 = vadd.xlane.f32.xlu0 %v2054_v22  ;;  %v1990_v1 = vmul.f32 %v6093_v19, %v14632_v42  ;;  %v6097_v22 = vunpack.c.l.bf16 %v7010_v53  ;;  %v14634_v12 = vmax.f32 %v8369_v27, %v14633_v54  ;;  %v14639_v19 = vld [vmem:[#allocation92_spill] sm:$0xff]  ;;  %v14640_v53 = vld [vmem:[#allocation107_spill] sm:$0xff] }
 0x212   :  { %14622 = vst [vmem:[#allocation78_spill] sm:$0xff] %v8980_v62  ;;  %v1527_v48 = vpop.xlane.xlu1 %1526  ;;  %v1524_v21 = vpop.xlane.xlu0 %1523  ;;  %v2069_v0 = vsel %vm200_vm0, %v1991_v61, 0.0  ;;  %v14641_v42 = vmax.f32 %v14639_v19, %v14640_v53  ;;  %v14643_v27 = vld [vmem:[#allocation85_spill] sm:$0xff]  ;;  %v14647_v61 = vld [vmem:[#allocation86_spill] sm:$0xff] }
 0x213   :  { %v9000_v50 = vmax.f32 %v14628_v41, %v1527_v48  ;;  %v9003_v35 = vadd.f32 %v1527_v48, %v14630_v13  ;;  %v9009_v29 = vmax.f32 %v14634_v12, %v1524_v21  ;;  %v9012_v43 = vadd.f32 %v1524_v21, %v14636_v3  ;;  %v14638_v48 = vld [vmem:[#allocation35_spill] sm:$0xff]  ;;  %v7012_v3 = vld [vmem:[#allocation5 + $0x930] sm:$0xff]   ;;  %v14651_v19 = vld [vmem:[#allocation37_spill] sm:$0xff] }
 0x214   :  { %v1993_v41 = vmul.f32 %v6098_v57, %v14638_v48  ;;  %v6102_v13 = vunpack.c.h.bf16 %v7011_v63  ;;  %v2066_v21 = vsel %vm200_vm0, %v1990_v1, 0.0 }
 0x215   :  { %14629 = vst [vmem:[#allocation49_spill] sm:$0xff] %v9000_v50  ;;  %14631 = vst [vmem:[#allocation57_spill] sm:$0xff] %v9003_v35  ;;  %2064 = vadd.xlane.f32.xlu1 %v2063_v58  ;;  %2061 = vadd.xlane.f32.xlu0 %v2060_v24  ;;  %v6101_v35 = vunpack.c.l.bf16 %v7011_v63  ;;  %v14645_v58 = vld [vmem:[#allocation36_spill] sm:$0xff]  ;;  %v14650_v63 = vld [vmem:[#allocation51_spill] sm:$0xff] }
 0x216   :  { %14635 = vst [vmem:[#allocation80_spill] sm:$0xff] %v9009_v29  ;;  %14637 = vst [vmem:[#allocation81_spill] sm:$0xff] %v9012_v43  ;;  %v1533_v18 = vpop.xlane.xlu1 %1532  ;;  %v1530_v54 = vpop.xlane.xlu0 %1529  ;;  %v1992_v24 = vmul.f32 %v6097_v22, %v14645_v58  ;;  %v14646_v43 = vld [vmem:[#allocation93_spill] sm:$0xff]  ;;  %v1995_v53 = vmul.f32 %v6102_v13, %v14651_v19  ;;  %v14653_v22 = vld [vmem:[#allocation64_spill] sm:$0xff] }
 0x217   :  { %v9019_v50 = vmax.f32 %v14641_v42, %v1533_v18  ;;  %v9022_v12 = vadd.f32 %v1533_v18, %v14643_v27  ;;  %v14648_v29 = vmax.f32 %v14646_v43, %v14647_v61  ;;  %v9032_v48 = vadd.f32 %v1530_v54, %v14650_v63  ;;  %v14652_v27 = vld [vmem:[#allocation38_spill] sm:$0xff]  ;;  %v14657_v43 = vld [vmem:[#allocation88_spill] sm:$0xff]  ;;  %v7013_v61 = vld [vmem:[#allocation5 + $0x938] sm:$0xff]  }
 0x218   :  { %v2075_v18 = vsel %vm200_vm0, %v1993_v41, 0.0  ;;  %v1994_v1 = vmul.f32 %v6101_v35, %v14652_v27  ;;  %v14659_v41 = vmax.f32 %v8409_v45, %v8724_v33  ;;  %v14661_v35 = vld [vmem:[#allocation52_spill] sm:$0xff] }
 0x219   :  { %14642 = vst [vmem:[#allocation60_spill] sm:$0xff] %v9019_v50  ;;  %14644 = vst [vmem:[#allocation82_spill] sm:$0xff] %v9022_v12  ;;  %v9029_v57 = vmax.f32 %v14648_v29, %v1530_v54  ;;  %2070 = vadd.xlane.f32.xlu1 %v2069_v0  ;;  %2067 = vadd.xlane.f32.xlu0 %v2066_v21  ;;  %v6106_v12 = vunpack.c.h.bf16 %v7012_v3  ;;  %v14654_v50 = vld [vmem:[#allocation87_spill] sm:$0xff]  ;;  %v2072_v0 = vsel %vm200_vm0, %v1992_v24, 0.0  ;;  %v6105_v21 = vunpack.c.l.bf16 %v7012_v3  ;;  %v14663_v3 = vld [vmem:[#allocation89_spill] sm:$0xff] }
 0x21a   :  { %v1539_v42 = vpop.xlane.xlu1 %1538  ;;  %v14655_v58 = vmax.f32 %v14653_v22, %v14654_v50  ;;  %v1536_v54 = vpop.xlane.xlu0 %1535  ;;  %v6110_v24 = vunpack.c.h.bf16 %v7013_v61  ;;  %v14666_v33 = vld [vmem:[#allocation108_spill] sm:$0xff] }
 0x21b   :  { %14649 = vst [vmem:[#allocation105_spill] sm:$0xff] %v9029_v57  ;;  %v9043_v29 = vadd.f32 %v1539_v42, %v14657_v43  ;;  %v9049_v13 = vmax.f32 %v14659_v41, %v1536_v54  ;;  %v9052_v63 = vadd.f32 %v1536_v54, %v14661_v35  ;;  %v1997_v22 = vmul.f32 %v6106_v12, %v14525_v56  ;;  %v14668_v41 = vld [vmem:[#allocation40_spill] sm:$0xff]  ;;  %v6112_v35 = vld [vmem:[#allocation5 + $0x80] sm:$0xff]   ;;  %v14673_v12 = vld [vmem:[#allocation55_spill] sm:$0xff] }
 0x21c   :  { %v9040_v28 = vmax.f32 %v14655_v58, %v1539_v42  ;;  %v2081_v58 = vsel %vm200_vm0, %v1995_v53, 0.0  ;;  %v2078_v42 = vsel %vm200_vm0, %v1994_v1, 0.0  ;;  %v14664_v43 = vmax.f32 %v14527_v31, %v14663_v3  ;;  %v14670_v53 = vld [vmem:[#allocation109_spill] sm:$0xff] }
 0x21d   :  { %14658 = vst [vmem:[#allocation50_spill] sm:$0xff] %v9043_v29  ;;  %14660 = vst [vmem:[#allocation106_spill] sm:$0xff] %v9049_v13  ;;  %2076 = vadd.xlane.f32.xlu1 %v2075_v18  ;;  %2073 = vadd.xlane.f32.xlu0 %v2072_v0  ;;  %v1996_v18 = vmul.f32 %v6105_v21, %v14668_v41  ;;  %v6109_v0 = vunpack.c.l.bf16 %v7013_v61  ;;  %v2087_v3 = vsel %vm200_vm0, %v1997_v22, 0.0  ;;  %v14676_v21 = vld [vmem:[#allocation68_spill] sm:$0xff]  ;;  %v14684_v22 = vld [vmem:[#allocation59_spill] sm:$0xff] }
 0x21e   :  { %14656 = vst [vmem:[#allocation83_spill] sm:$0xff] %v9040_v28  ;;  %14662 = vst [vmem:[#allocation84_spill] sm:$0xff] %v9052_v63  ;;  %v1545_v50 = vpop.xlane.xlu1 %1544  ;;  %v1542_v54 = vpop.xlane.xlu0 %1541  ;;  %v14669_v63 = vld [vmem:[#allocation96_spill] sm:$0xff] }
 0x21f   :  { %v9060_v27 = vmax.f32 %v14664_v43, %v1545_v50  ;;  %v9063_v45 = vadd.f32 %v1545_v50, %v14666_v33  ;;  %v14671_v13 = vmax.f32 %v14669_v63, %v14670_v53  ;;  %v9072_v56 = vadd.f32 %v1542_v54, %v14673_v12  ;;  %v14675_v50 = vld [vmem:[#allocation41_spill] sm:$0xff]  ;;  %v14677_v61 = vld [vmem:[#allocation56_spill] sm:$0xff]  ;;  %v14680_v63 = vld [vmem:[#allocation58_spill] sm:$0xff] }
 0x220   :  { %v1999_v43 = vmul.f32 %v6110_v24, %v14675_v50  ;;  %v6114_v33 = vunpack.c.h.bf16 %v6112_v35  ;;  %v14678_v41 = vmax.f32 %v14676_v21, %v14677_v61  ;;  %v7014_v12 = vld [vmem:[#allocation5 + $0x88] sm:$0xff]   ;;  %v14687_v21 = vld [vmem:[#allocation14_spill] sm:$0xff] }
 0x221   :  { %14665 = vst [vmem:[#allocation92_spill] sm:$0xff] %v9060_v27  ;;  %14667 = vst [vmem:[#allocation107_spill] sm:$0xff] %v9063_v45  ;;  %v9069_v1 = vmax.f32 %v14671_v13, %v1542_v54  ;;  %2082 = vadd.xlane.f32.xlu1 %v2081_v58  ;;  %2079 = vadd.xlane.f32.xlu0 %v2078_v42  ;;  %v6113_v45 = vunpack.c.l.bf16 %v6112_v35  ;;  %v2084_v54 = vsel %vm200_vm0, %v1996_v18, 0.0  ;;  %v14682_v58 = vld [vmem:[#allocation42_spill] sm:$0xff]  ;;  %v14686_v35 = vld [vmem:[#allocation91_spill] sm:$0xff] }
 0x222   :  { %14674 = vst [vmem:[#allocation93_spill] sm:$0xff] %v9072_v56  ;;  %v1551_v31 = vpop.xlane.xlu1 %1550  ;;  %v1548_v53 = vpop.xlane.xlu0 %1547  ;;  %v1998_v42 = vmul.f32 %v6109_v0, %v14682_v58  ;;  %v14683_v56 = vld [vmem:[#allocation44_spill] sm:$0xff]  ;;  %v2226_v61 = vmul.f32 %v6114_v33, %v14687_v21  ;;  %v14689_v0 = vld [vmem:[#allocation70_spill] sm:$0xff] }
 0x223   :  { %14672 = vst [vmem:[#allocation85_spill] sm:$0xff] %v9069_v1  ;;  %v9079_v27 = vmax.f32 %v14678_v41, %v1551_v31  ;;  %v9082_v13 = vadd.f32 %v1551_v31, %v14680_v63  ;;  %v14685_v1 = vmax.f32 %v14683_v56, %v14684_v22  ;;  %v9092_v50 = vadd.f32 %v1548_v53, %v14686_v35  ;;  %v14688_v63 = vld [vmem:[#allocation12_spill] sm:$0xff]  ;;  %v14693_v56 = vld [vmem:[#allocation62_spill] sm:$0xff] }
 0x224   :  { %v2093_v31 = vsel %vm200_vm0, %v1999_v43, 0.0  ;;  %v2225_v18 = vmul.f32 %v6113_v45, %v14688_v63  ;;  %v7015_v22 = vld [vmem:[#allocation5 + $0x1c0] sm:$0xff]   ;;  %v14694_v43 = vmax.f32 %v14546_v6, %v8784_v8  ;;  %v14696_v45 = vld [vmem:[#allocation63_spill] sm:$0xff] }
 0x225   :  { %14679 = vst [vmem:[#allocation86_spill] sm:$0xff] %v9079_v27  ;;  %14681 = vst [vmem:[#allocation51_spill] sm:$0xff] %v9082_v13  ;;  %v9089_v24 = vmax.f32 %v14685_v1, %v1548_v53  ;;  %2088 = vadd.xlane.f32.xlu1 %v2087_v3  ;;  %2085 = vadd.xlane.f32.xlu0 %v2084_v54  ;;  %v6118_v13 = vunpack.c.h.bf16 %v7014_v12  ;;  %v14690_v27 = vld [vmem:[#allocation61_spill] sm:$0xff]  ;;  %v2090_v3 = vsel %vm200_vm0, %v1998_v42, 0.0  ;;  %v6117_v54 = vunpack.c.l.bf16 %v7014_v12  ;;  %v14779_v7 = vld [vmem:[#allocation82_spill] sm:$0xff] }
 0x226   :  { %v1557_v41 = vpop.xlane.xlu1 %1556  ;;  %v14691_v58 = vmax.f32 %v14689_v0, %v14690_v27  ;;  %v1554_v53 = vpop.xlane.xlu0 %1553  ;;  %v6122_v42 = vunpack.c.h.bf16 %v7015_v22  ;;  %v14697_v12 = vmax.f32 %v14551_v2, %v8794_v20 }
 0x227   :  { %v9103_v1 = vadd.f32 %v1557_v41, %v14693_v56  ;;  %v9109_v33 = vmax.f32 %v14694_v43, %v1554_v53  ;;  %v9112_v35 = vadd.f32 %v1554_v53, %v14696_v45  ;;  %v2228_v0 = vmul.f32 %v6118_v13, %v14549_v37  ;;  %v14700_v53 = vld [vmem:[#allocation11_spill] sm:$0xff] }
 0x228   :  { %v9100_v29 = vmax.f32 %v14691_v58, %v1557_v41  ;;  %v2260_v58 = vsel %vm200_vm0, %v2226_v61, 0.0  ;;  %v2257_v41 = vsel %vm200_vm0, %v2225_v18, 0.0  ;;  %v7016_v43 = vld [vmem:[#allocation5 + $0x1c8] sm:$0xff]   ;;  %v14701_v61 = vld [vmem:[#allocation94_spill] sm:$0xff] }
 0x229   :  { %14695 = vst [vmem:[#allocation87_spill] sm:$0xff] %v9109_v33  ;;  %2094 = vadd.xlane.f32.xlu1 %v2093_v31  ;;  %2091 = vadd.xlane.f32.xlu0 %v2090_v3  ;;  %v2227_v31 = vmul.f32 %v6117_v54, %v14700_v53  ;;  %v6121_v3 = vunpack.c.l.bf16 %v7015_v22  ;;  %v14702_v45 = vmax.f32 %v8489_v5, %v14701_v61  ;;  %v14703_v13 = vld [vmem:[#allocation95_spill] sm:$0xff]  ;;  %v2266_v2 = vsel %vm200_vm0, %v2228_v0, 0.0  ;;  %v14704_v54 = vld [vmem:[#allocation72_spill] sm:$0xff]  ;;  %v14705_v22 = vld [vmem:[#allocation65_spill] sm:$0xff] }
 0x22a   :  { %14692 = vst [vmem:[#allocation64_spill] sm:$0xff] %v9100_v29  ;;  %v1563_v27 = vpop.xlane.xlu1 %1562  ;;  %v1560_v6 = vpop.xlane.xlu0 %1559  ;;  %v14706_v53 = vmax.f32 %v14704_v54, %v14705_v22  ;;  %v14708_v5 = vld [vmem:[#allocation67_spill] sm:$0xff]  ;;  %v14710_v0 = vld [vmem:[#allocation66_spill] sm:$0xff] }
 0x22b   :  { %v9120_v56 = vmax.f32 %v14697_v12, %v1563_v27  ;;  %v9123_v8 = vadd.f32 %v1563_v27, %v8803_v52  ;;  %v9129_v18 = vmax.f32 %v14702_v45, %v1560_v6  ;;  %v9132_v37 = vadd.f32 %v1560_v6, %v14703_v13 }
 0x22c   :  { %v2230_v52 = vmul.f32 %v6122_v42, %v14444_v14  ;;  %v6126_v27 = vunpack.c.h.bf16 %v7016_v43  ;;  %v6125_v12 = vunpack.c.l.bf16 %v7016_v43  ;;  %v2263_v6 = vsel %vm200_vm0, %v2227_v31, 0.0  ;;  %v14712_v43 = vld [vmem:[#allocation69_spill] sm:$0xff] }
 0x22d   :  { %14698 = vst [vmem:[#allocation88_spill] sm:$0xff] %v9120_v56  ;;  %14699 = vst [vmem:[#allocation52_spill] sm:$0xff] %v9123_v8  ;;  %2261 = vadd.xlane.f32.xlu1 %v2260_v58  ;;  %2258 = vadd.xlane.f32.xlu0 %v2257_v41  ;;  %v2229_v58 = vmul.f32 %v6121_v3, %v14558_v25  ;;  %v7017_v41 = vld [vmem:[#allocation5 + $0x300] sm:$0xff]   ;;  %v14711_v13 = vmax.f32 %v8509_v51, %v14710_v0 }
 0x22e   :  { %v1569_v20 = vpop.xlane.xlu1 %1568  ;;  %v1566_v45 = vpop.xlane.xlu0 %1565  ;;  %v2232_v54 = vmul.f32 %v6126_v27, %v14561_v23  ;;  %v2231_v31 = vmul.f32 %v6125_v12, %v14563_v60  ;;  %v6130_v22 = vunpack.c.h.bf16 %v7017_v41  ;;  %v14713_v3 = vld [vmem:[#allocation46_spill] sm:$0xff]  ;;  %v14719_v12 = vld [vmem:[#allocation99_spill] sm:$0xff] }
 0x22f   :  { %v9139_v8 = vmax.f32 %v14706_v53, %v1569_v20  ;;  %v9142_v61 = vadd.f32 %v1569_v20, %v14708_v5  ;;  %v9149_v42 = vmax.f32 %v14711_v13, %v1566_v45  ;;  %v9152_v14 = vadd.f32 %v1566_v45, %v14712_v43  ;;  %v14714_v5 = vld [vmem:[#allocation97_spill] sm:$0xff]  ;;  %v14717_v51 = vld [vmem:[#allocation98_spill] sm:$0xff]  ;;  %v7018_v13 = vld [vmem:[#allocation5 + $0x308] sm:$0xff]  }
 0x230   :  { %v2272_v20 = vsel %vm200_vm0, %v2230_v52, 0.0  ;;  %v14718_v52 = vmax.f32 %v14564_v17, %v8844_v26  ;;  %v14723_v26 = vld [vmem:[#allocation100_spill] sm:$0xff] }
 0x231   :  { %14707 = vst [vmem:[#allocation89_spill] sm:$0xff] %v9139_v8  ;;  %14709 = vst [vmem:[#allocation108_spill] sm:$0xff] %v9142_v61  ;;  %2267 = vadd.xlane.f32.xlu1 %v2266_v2  ;;  %2264 = vadd.xlane.f32.xlu0 %v2263_v6  ;;  %v14715_v61 = vmax.f32 %v14713_v3, %v14714_v5  ;;  %v2269_v2 = vsel %vm200_vm0, %v2229_v58, 0.0  ;;  %v6129_v6 = vunpack.c.l.bf16 %v7017_v41  ;;  %v2278_v3 = vsel %vm200_vm0, %v2232_v54, 0.0  ;;  %v14725_v54 = vld [vmem:[#allocation45_spill] sm:$0xff] }
 0x232   :  { %v1575_v53 = vpop.xlane.xlu1 %1574  ;;  %v1572_v45 = vpop.xlane.xlu0 %1571  ;;  %v2234_v5 = vmul.f32 %v6130_v22, %v14567_v46  ;;  %v6134_v58 = vunpack.c.h.bf16 %v7018_v13  ;;  %v14721_v41 = vmax.f32 %v8539_v38, %v8854_v16  ;;  %v14728_v22 = vld [vmem:[#allocation71_spill] sm:$0xff] }
 0x233   :  { %v9160_v8 = vmax.f32 %v14715_v61, %v1575_v53  ;;  %v9163_v0 = vadd.f32 %v1575_v53, %v14717_v51  ;;  %v9169_v27 = vmax.f32 %v14718_v52, %v1572_v45  ;;  %v9172_v43 = vadd.f32 %v1572_v45, %v14719_v12  ;;  %v14724_v52 = vld [vmem:[#allocation20_spill] sm:$0xff]  ;;  %v7019_v12 = vld [vmem:[#allocation5 + $0x440] sm:$0xff]  }
 0x234   :  { %v2275_v53 = vsel %vm200_vm0, %v2231_v31, 0.0  ;;  %v2284_v16 = vsel %vm200_vm0, %v2234_v5, 0.0 }
 0x235   :  { %14716 = vst [vmem:[#allocation96_spill] sm:$0xff] %v9160_v8  ;;  %14720 = vst [vmem:[#allocation109_spill] sm:$0xff] %v9172_v43  ;;  %2273 = vadd.xlane.f32.xlu1 %v2272_v20  ;;  %2270 = vadd.xlane.f32.xlu0 %v2269_v2  ;;  %v2233_v20 = vmul.f32 %v6129_v6, %v14724_v52  ;;  %v6133_v2 = vunpack.c.l.bf16 %v7018_v13  ;;  %v14726_v43 = vmax.f32 %v8549_v55, %v14725_v54  ;;  %v14731_v52 = vld [vmem:[#allocation74_spill] sm:$0xff]  ;;  %v7020_v54 = vld [vmem:[#allocation5 + $0x448] sm:$0xff]  }
 0x236   :  { %v1581_v61 = vpop.xlane.xlu1 %1580  ;;  %v1578_v45 = vpop.xlane.xlu0 %1577  ;;  %v6137_v6 = vunpack.c.l.bf16 %v7019_v12 }
 0x237   :  { %v9180_v51 = vmax.f32 %v14721_v41, %v1581_v61  ;;  %v9183_v17 = vadd.f32 %v1581_v61, %v14723_v26  ;;  %v9189_v31 = vmax.f32 %v14726_v43, %v1578_v45  ;;  %v9192_v46 = vadd.f32 %v1578_v45, %v14728_v22  ;;  %v14730_v61 = vld [vmem:[#allocation21_spill] sm:$0xff]  ;;  %v14735_v22 = vld [vmem:[#allocation23_spill] sm:$0xff] }
 0x238   :  { %v2236_v41 = vmul.f32 %v6134_v58, %v14730_v61  ;;  %v6138_v26 = vunpack.c.h.bf16 %v7019_v12 }
 0x239   :  { %14722 = vst [vmem:[#allocation55_spill] sm:$0xff] %v9180_v51  ;;  %14727 = vst [vmem:[#allocation68_spill] sm:$0xff] %v9189_v31  ;;  %2279 = vadd.xlane.f32.xlu1 %v2278_v3  ;;  %2276 = vadd.xlane.f32.xlu0 %v2275_v53  ;;  %v2281_v3 = vsel %vm200_vm0, %v2233_v20, 0.0  ;;  %v14733_v53 = vld [vmem:[#allocation22_spill] sm:$0xff]  ;;  %v2237_v20 = vmul.f32 %v6137_v6, %v14476_v49 }
 0x23a   :  { %v9194_v38 = vpop.xlane.xlu1 %1747  ;;  %v9204_v43 = vpop.xlane.xlu0 %1744  ;;  %v2235_v45 = vmul.f32 %v6133_v2, %v14733_v53  ;;  %v2238_v13 = vmul.f32 %v6138_v26, %v14735_v22  ;;  %v14736_v2 = vld [vmem:[#allocation75_spill] sm:$0xff] }
 0x23b   :  { %14729 = vst [vmem:[#allocation56_spill] sm:$0xff] %v9194_v38  ;;  %v9202_v55 = vadd.f32 %v9194_v38, %v14731_v52  ;;  %v9212_v58 = vadd.f32 %v9204_v43, %v8892_v34  ;;  %v2290_v52 = vsel %vm200_vm0, %v2236_v41, 0.0  ;;  %v2293_v38 = vsel %vm200_vm0, %v2237_v20, 0.0  ;;  %v14743_v20 = vld [vmem:[#allocation101_spill] sm:$0xff] }
 0x23d   :  { %14732 = vst [vmem:[#allocation58_spill] sm:$0xff] %v9202_v55  ;;  %14734 = vst [vmem:[#allocation44_spill] sm:$0xff] %v9212_v58  ;;  %2285 = vadd.xlane.f32.xlu1 %v2284_v16  ;;  %2282 = vadd.xlane.f32.xlu0 %v2281_v3  ;;  %v6142_v55 = vunpack.c.h.bf16 %v7020_v54  ;;  %v2287_v16 = vsel %vm200_vm0, %v2235_v45, 0.0  ;;  %v6141_v3 = vunpack.c.l.bf16 %v7020_v54  ;;  %v7021_v58 = vld [vmem:[#allocation5 + $0x580] sm:$0xff]  }
 0x23e   :  { %v9214_v12 = vpop.xlane.xlu1 %1753  ;;  %v9225_v34 = vpop.xlane.xlu0 %1750  ;;  %v6146_v45 = vunpack.c.h.bf16 %v7021_v58 }
 0x23f   :  { %v9223_v5 = vadd.f32 %v9214_v12, %v14737_v15  ;;  %14738 = vst [vmem:[#allocation59_spill] sm:$0xff] %v9225_v34  ;;  %v9232_v26 = vadd.f32 %v9225_v34, %v8912_v47  ;;  %v2296_v15 = vsel %vm200_vm0, %v2238_v13, 0.0  ;;  %v2240_v49 = vmul.f32 %v6142_v55, %v14479_v4  ;;  %v14757_v34 = vld [vmem:[#allocation104_spill] sm:$0xff] }
 0x241   :  { %14739 = vst [vmem:[#allocation91_spill] sm:$0xff] %v9232_v26  ;;  %2291 = vadd.xlane.f32.xlu1 %v2290_v52  ;;  %2288 = vadd.xlane.f32.xlu0 %v2287_v16  ;;  %v2239_v52 = vmul.f32 %v6141_v3, %v14482_v44  ;;  %v6145_v16 = vunpack.c.l.bf16 %v7021_v58  ;;  %v7022_v26 = vld [vmem:[#allocation5 + $0x588] sm:$0xff]   ;;  %v14748_v44 = vld [vmem:[#allocation77_spill] sm:$0xff]  ;;  %v14755_v58 = vld [vmem:[#allocation30_spill] sm:$0xff] }
 0x242   :  { %v9234_v6 = vpop.xlane.xlu1 %1759  ;;  %v9245_v47 = vpop.xlane.xlu0 %1756  ;;  %v6150_v59 = vunpack.c.h.bf16 %v7022_v26  ;;  %v6149_v4 = vunpack.c.l.bf16 %v7022_v26 }
 0x243   :  { %14740 = vst [vmem:[#allocation70_spill] sm:$0xff] %v9234_v6  ;;  %v9243_v41 = vadd.f32 %v9234_v6, %v8923_v9  ;;  %14742 = vst [vmem:[#allocation62_spill] sm:$0xff] %v9245_v47  ;;  %v9252_v55 = vadd.f32 %v9245_v47, %v14743_v20  ;;  %v2302_v9 = vsel %vm200_vm0, %v2240_v49, 0.0  ;;  %v14751_v49 = vld [vmem:[#allocation43_spill] sm:$0xff] }
 0x245   :  { %14741 = vst [vmem:[#allocation61_spill] sm:$0xff] %v9243_v41  ;;  %14744 = vst [vmem:[#allocation63_spill] sm:$0xff] %v9252_v55  ;;  %2297 = vadd.xlane.f32.xlu1 %v2296_v15  ;;  %2294 = vadd.xlane.f32.xlu0 %v2293_v38  ;;  %v14746_v41 = vld [vmem:[#allocation27_spill] sm:$0xff]  ;;  %v2299_v15 = vsel %vm200_vm0, %v2239_v52, 0.0  ;;  %v14750_v38 = vld [vmem:[#allocation28_spill] sm:$0xff]  ;;  %v2243_v52 = vmul.f32 %v6149_v4, %v14755_v58 }
 0x246   :  { %v9254_v54 = vpop.xlane.xlu1 %1765  ;;  %v2242_v6 = vmul.f32 %v6146_v45, %v14746_v41  ;;  %v9264_v11 = vpop.xlane.xlu0 %1762  ;;  %v2241_v20 = vmul.f32 %v6145_v16, %v14750_v38  ;;  %v7023_v55 = vld [vmem:[#allocation5 + $0x6c0] sm:$0xff]   ;;  %v14756_v16 = vld [vmem:[#allocation103_spill] sm:$0xff] }
 0x247   :  { %14745 = vst [vmem:[#allocation94_spill] sm:$0xff] %v9254_v54  ;;  %v9262_v13 = vadd.f32 %v9254_v54, %v14748_v44  ;;  %v14752_v45 = vld [vmem:[#allocation102_spill] sm:$0xff]  ;;  %v6154_v41 = vunpack.c.h.bf16 %v7023_v55  ;;  %v2311_v38 = vsel %vm200_vm0, %v2243_v52, 0.0  ;;  %v14764_v52 = vld [vmem:[#allocation79_spill] sm:$0xff] }
 0x248   :  { %v9272_v26 = vadd.f32 %v9264_v11, %v14752_v45  ;;  %v2308_v44 = vsel %vm200_vm0, %v2242_v6, 0.0 }
 0x249   :  { %14749 = vst [vmem:[#allocation95_spill] sm:$0xff] %v9262_v13  ;;  %2303 = vadd.xlane.f32.xlu1 %v2302_v9  ;;  %2300 = vadd.xlane.f32.xlu0 %v2299_v15  ;;  %v14754_v13 = vld [vmem:[#allocation29_spill] sm:$0xff]  ;;  %v2305_v9 = vsel %vm200_vm0, %v2241_v20, 0.0  ;;  %v6153_v15 = vunpack.c.l.bf16 %v7023_v55  ;;  %v2246_v58 = vmul.f32 %v6154_v41, %v14617_v30 }
 0x24a   :  { %14753 = vst [vmem:[#allocation72_spill] sm:$0xff] %v9272_v26  ;;  %v9274_v3 = vpop.xlane.xlu1 %1771  ;;  %v2244_v54 = vmul.f32 %v6150_v59, %v14754_v13  ;;  %v9285_v45 = vpop.xlane.xlu0 %1768  ;;  %v7024_v26 = vld [vmem:[#allocation5 + $0x6c8] sm:$0xff]  }
 0x24b   :  { %v9283_v47 = vadd.f32 %v9274_v3, %v14757_v34  ;;  %14758 = vst [vmem:[#allocation65_spill] sm:$0xff] %v9285_v45  ;;  %v9292_v4 = vadd.f32 %v9285_v45, %v8972_v40  ;;  %v6158_v20 = vunpack.c.h.bf16 %v7024_v26 }
 0x24c   :  { %v2314_v34 = vsel %vm200_vm0, %v2244_v54, 0.0 }
 0x24d   :  { %14759 = vst [vmem:[#allocation67_spill] sm:$0xff] %v9292_v4  ;;  %2309 = vadd.xlane.f32.xlu1 %v2308_v44  ;;  %2306 = vadd.xlane.f32.xlu0 %v2305_v9  ;;  %v2245_v44 = vmul.f32 %v6153_v15, %v14618_v32  ;;  %v6157_v9 = vunpack.c.l.bf16 %v7024_v26  ;;  %v7025_v4 = vld [vmem:[#allocation5 + $0x800] sm:$0xff]   ;;  %v14769_v32 = vld [vmem:[#allocation57_spill] sm:$0xff]  ;;  %v14777_v26 = vld [vmem:[#allocation36_spill] sm:$0xff] }
 0x24e   :  { %v9294_v59 = vpop.xlane.xlu1 %1777  ;;  %v9305_v40 = vpop.xlane.xlu0 %1774  ;;  %v6162_v62 = vunpack.c.h.bf16 %v7025_v4  ;;  %v6161_v30 = vunpack.c.l.bf16 %v7025_v4 }
 0x24f   :  { %14760 = vst [vmem:[#allocation66_spill] sm:$0xff] %v9294_v59  ;;  %v9303_v6 = vadd.f32 %v9294_v59, %v8983_v39  ;;  %14762 = vst [vmem:[#allocation46_spill] sm:$0xff] %v9305_v40  ;;  %v9312_v41 = vadd.f32 %v9305_v40, %v14764_v52  ;;  %v2320_v39 = vsel %vm200_vm0, %v2246_v58, 0.0  ;;  %v14772_v58 = vld [vmem:[#allocation80_spill] sm:$0xff] }
 0x251   :  { %14761 = vst [vmem:[#allocation69_spill] sm:$0xff] %v9303_v6  ;;  %14765 = vst [vmem:[#allocation97_spill] sm:$0xff] %v9312_v41  ;;  %2315 = vadd.xlane.f32.xlu1 %v2314_v34  ;;  %2312 = vadd.xlane.f32.xlu0 %v2311_v38  ;;  %v14767_v6 = vld [vmem:[#allocation33_spill] sm:$0xff]  ;;  %v2317_v34 = vsel %vm200_vm0, %v2245_v44, 0.0  ;;  %v14771_v38 = vld [vmem:[#allocation34_spill] sm:$0xff]  ;;  %v2249_v44 = vmul.f32 %v6161_v30, %v14777_v26 }
 0x252   :  { %v9314_v55 = vpop.xlane.xlu1 %1783  ;;  %v2248_v59 = vmul.f32 %v6158_v20, %v14767_v6  ;;  %v9324_v54 = vpop.xlane.xlu0 %1780  ;;  %v2247_v52 = vmul.f32 %v6157_v9, %v14771_v38  ;;  %v7026_v41 = vld [vmem:[#allocation5 + $0x808] sm:$0xff]   ;;  %v14773_v20 = vld [vmem:[#allocation81_spill] sm:$0xff]  ;;  %v14778_v9 = vld [vmem:[#allocation60_spill] sm:$0xff] }
 0x253   :  { %14766 = vst [vmem:[#allocation98_spill] sm:$0xff] %v9314_v55  ;;  %v9322_v45 = vadd.f32 %v9314_v55, %v14769_v32  ;;  %v9332_v4 = vadd.f32 %v9324_v54, %v14773_v20  ;;  %v6166_v6 = vunpack.c.h.bf16 %v7026_v41  ;;  %v2329_v38 = vsel %vm200_vm0, %v2249_v44, 0.0  ;;  %v14789_v44 = vld [vmem:[#allocation84_spill] sm:$0xff] }
 0x254   :  { %v2326_v32 = vsel %vm200_vm0, %v2248_v59, 0.0 }
 0x255   :  { %14770 = vst [vmem:[#allocation99_spill] sm:$0xff] %v9322_v45  ;;  %14774 = vst [vmem:[#allocation100_spill] sm:$0xff] %v9332_v4  ;;  %2321 = vadd.xlane.f32.xlu1 %v2320_v39  ;;  %2318 = vadd.xlane.f32.xlu0 %v2317_v34  ;;  %v14776_v45 = vld [vmem:[#allocation35_spill] sm:$0xff]  ;;  %v2323_v39 = vsel %vm200_vm0, %v2247_v52, 0.0  ;;  %v6165_v34 = vunpack.c.l.bf16 %v7026_v41  ;;  %v7027_v4 = vld [vmem:[#allocation5 + $0x940] sm:$0xff]   ;;  %v2252_v26 = vmul.f32 %v6166_v6, %v14651_v19 }
 0x256   :  { %v9334_v15 = vpop.xlane.xlu1 %1789  ;;  %v2250_v55 = vmul.f32 %v6162_v62, %v14776_v45  ;;  %v9345_v20 = vpop.xlane.xlu0 %1786  ;;  %v6170_v52 = vunpack.c.h.bf16 %v7027_v4 }
 0x257   :  { %14775 = vst [vmem:[#allocation45_spill] sm:$0xff] %v9334_v15  ;;  %v9343_v40 = vadd.f32 %v9334_v15, %v14779_v7  ;;  %14781 = vst [vmem:[#allocation74_spill] sm:$0xff] %v9345_v20  ;;  %v9352_v62 = vadd.f32 %v9345_v20, %v9032_v48  ;;  %v7028_v20 = vld [vmem:[#allocation5 + $0x948] sm:$0xff]  }
 0x258   :  { %v2332_v7 = vsel %vm200_vm0, %v2250_v55, 0.0  ;;  %v6174_v28 = vunpack.c.h.bf16 %v7028_v20  ;;  %v6173_v19 = vunpack.c.l.bf16 %v7028_v20  ;;  %v14803_v15 = vld [vmem:[#allocation51_spill] sm:$0xff] }
 0x259   :  { %14780 = vst [vmem:[#allocation71_spill] sm:$0xff] %v9343_v40  ;;  %14782 = vst [vmem:[#allocation75_spill] sm:$0xff] %v9352_v62  ;;  %2327 = vadd.xlane.f32.xlu1 %v2326_v32  ;;  %2324 = vadd.xlane.f32.xlu0 %v2323_v39  ;;  %v14784_v40 = vld [vmem:[#allocation50_spill] sm:$0xff]  ;;  %v6169_v62 = vunpack.c.l.bf16 %v7027_v4 }
 0x25a   :  { %v9354_v30 = vpop.xlane.xlu1 %1795  ;;  %v9365_v48 = vpop.xlane.xlu0 %1792  ;;  %v14787_v32 = vld [vmem:[#allocation38_spill] sm:$0xff] }
 0x25b   :  { %14783 = vst [vmem:[#allocation76_spill] sm:$0xff] %v9354_v30  ;;  %v9363_v59 = vadd.f32 %v9354_v30, %v14784_v40  ;;  %14786 = vst [vmem:[#allocation77_spill] sm:$0xff] %v9365_v48  ;;  %v2251_v39 = vmul.f32 %v6165_v34, %v14787_v32  ;;  %v9372_v6 = vadd.f32 %v9365_v48, %v14789_v44  ;;  %v2338_v40 = vsel %vm200_vm0, %v2252_v26, 0.0  ;;  %v14794_v32 = vld [vmem:[#allocation107_spill] sm:$0xff]  ;;  %v14797_v26 = vld [vmem:[#allocation85_spill] sm:$0xff] }
 0x25c   :  { %v14801_v4 = vld [vmem:[#allocation42_spill] sm:$0xff] }
 0x25d   :  { %14785 = vst [vmem:[#allocation101_spill] sm:$0xff] %v9363_v59  ;;  %14790 = vst [vmem:[#allocation43_spill] sm:$0xff] %v9372_v6  ;;  %2333 = vadd.xlane.f32.xlu1 %v2332_v7  ;;  %2330 = vadd.xlane.f32.xlu0 %v2329_v38  ;;  %v14792_v59 = vld [vmem:[#allocation39_spill] sm:$0xff]  ;;  %v2335_v7 = vsel %vm200_vm0, %v2251_v39, 0.0  ;;  %v14796_v38 = vld [vmem:[#allocation40_spill] sm:$0xff]  ;;  %v2255_v39 = vmul.f32 %v6173_v19, %v14801_v4 }
 0x25e   :  { %v9374_v41 = vpop.xlane.xlu1 %1801  ;;  %v2254_v30 = vmul.f32 %v6170_v52, %v14792_v59  ;;  %v9384_v55 = vpop.xlane.xlu0 %1798  ;;  %v2253_v44 = vmul.f32 %v6169_v62, %v14796_v38  ;;  %v6176_v6 = vld [vmem:[#allocation5 + $0x90] sm:$0xff]   ;;  %v14798_v52 = vld [vmem:[#allocation93_spill] sm:$0xff]  ;;  %v14802_v62 = vld [vmem:[#allocation86_spill] sm:$0xff] }
 0x25f   :  { %14791 = vst [vmem:[#allocation102_spill] sm:$0xff] %v9374_v41  ;;  %v9382_v57 = vadd.f32 %v9374_v41, %v14794_v32  ;;  %v9392_v20 = vadd.f32 %v9384_v55, %v14798_v52  ;;  %v6178_v59 = vunpack.c.h.bf16 %v6176_v6  ;;  %v2347_v38 = vsel %vm200_vm0, %v2255_v39, 0.0 }
 0x260   :  { %v2344_v32 = vsel %vm200_vm0, %v2254_v30, 0.0 }
 0x261   :  { %14795 = vst [vmem:[#allocation103_spill] sm:$0xff] %v9382_v57  ;;  %14799 = vst [vmem:[#allocation104_spill] sm:$0xff] %v9392_v20  ;;  %2339 = vadd.xlane.f32.xlu1 %v2338_v40  ;;  %2336 = vadd.xlane.f32.xlu0 %v2335_v7  ;;  %v14800_v57 = vld [vmem:[#allocation41_spill] sm:$0xff]  ;;  %v2341_v40 = vsel %vm200_vm0, %v2253_v44, 0.0  ;;  %v6177_v7 = vunpack.c.l.bf16 %v6176_v6  ;;  %v2483_v4 = vmul.f32 %v6178_v59, %v14687_v21 }
 0x262   :  { %v9394_v34 = vpop.xlane.xlu1 %1807  ;;  %v2256_v41 = vmul.f32 %v6174_v28, %v14800_v57  ;;  %v9405_v52 = vpop.xlane.xlu0 %1804  ;;  %v7029_v20 = vld [vmem:[#allocation5 + $0x98] sm:$0xff]  }
 0x263   :  { %v9403_v48 = vadd.f32 %v9394_v34, %v14803_v15  ;;  %v9412_v28 = vadd.f32 %v9405_v52, %v9092_v50  ;;  %v6182_v44 = vunpack.c.h.bf16 %v7029_v20  ;;  %v14809_v6 = vld [vmem:[#allocation13_spill] sm:$0xff] }
 0x264   :  { %v2350_v15 = vsel %vm200_vm0, %v2256_v41, 0.0 }
 0x265   :  { %14804 = vst [vmem:[#allocation79_spill] sm:$0xff] %v9412_v28  ;;  %2345 = vadd.xlane.f32.xlu1 %v2344_v32  ;;  %2342 = vadd.xlane.f32.xlu0 %v2341_v40  ;;  %v2482_v32 = vmul.f32 %v6177_v7, %v14688_v63  ;;  %v6181_v40 = vunpack.c.l.bf16 %v7029_v20  ;;  %v7030_v28 = vld [vmem:[#allocation5 + $0x1d0] sm:$0xff]   ;;  %v14814_v20 = vld [vmem:[#allocation15_spill] sm:$0xff] }
 0x266   :  { %v9414_v19 = vpop.xlane.xlu1 %1813  ;;  %v9425_v50 = vpop.xlane.xlu0 %1810  ;;  %v6185_v29 = vunpack.c.l.bf16 %v7030_v28  ;;  %v14810_v7 = vld [vmem:[#allocation52_spill] sm:$0xff] }
 0x267   :  { %14805 = vst [vmem:[#allocation57_spill] sm:$0xff] %v9414_v19  ;;  %v9423_v30 = vadd.f32 %v9414_v19, %v9103_v1  ;;  %v9432_v59 = vadd.f32 %v9425_v50, %v9112_v35  ;;  %v2517_v1 = vsel %vm200_vm0, %v2483_v4, 0.0  ;;  %v6186_v19 = vunpack.c.h.bf16 %v7030_v28 }
 0x268   :  { %v2514_v35 = vsel %vm200_vm0, %v2482_v32, 0.0  ;;  %v2486_v32 = vmul.f32 %v6185_v29, %v14558_v25 }
 0x269   :  { %14806 = vst [vmem:[#allocation80_spill] sm:$0xff] %v9423_v30  ;;  %14807 = vst [vmem:[#allocation81_spill] sm:$0xff] %v9432_v59  ;;  %2351 = vadd.xlane.f32.xlu1 %v2350_v15  ;;  %2348 = vadd.xlane.f32.xlu0 %v2347_v38  ;;  %v2485_v30 = vmul.f32 %v6182_v44, %v14809_v6  ;;  %v14812_v38 = vld [vmem:[#allocation11_spill] sm:$0xff]  ;;  %v7031_v59 = vld [vmem:[#allocation5 + $0x1d8] sm:$0xff]  }
 0x26a   :  { %v9434_v39 = vpop.xlane.xlu1 %1819  ;;  %v9444_v33 = vpop.xlane.xlu0 %1816  ;;  %v2484_v15 = vmul.f32 %v6181_v40, %v14812_v38  ;;  %v14815_v40 = vld [vmem:[#allocation89_spill] sm:$0xff]  ;;  %v14816_v38 = vld [vmem:[#allocation108_spill] sm:$0xff]  ;;  %v2526_v56 = vsel %vm200_vm0, %v2486_v32, 0.0 }
 0x26b   :  { %14808 = vst [vmem:[#allocation60_spill] sm:$0xff] %v9434_v39  ;;  %v9442_v41 = vadd.f32 %v9434_v39, %v14810_v7  ;;  %v9452_v28 = vadd.f32 %v9444_v33, %v9132_v37  ;;  %v2523_v7 = vsel %vm200_vm0, %v2485_v30, 0.0  ;;  %v6190_v39 = vunpack.c.h.bf16 %v7031_v59  ;;  %v14820_v32 = vld [vmem:[#allocation109_spill] sm:$0xff] }
 0x26d   :  { %14811 = vst [vmem:[#allocation82_spill] sm:$0xff] %v9442_v41  ;;  %14813 = vst [vmem:[#allocation50_spill] sm:$0xff] %v9452_v28  ;;  %2518 = vadd.xlane.f32.xlu1 %v2517_v1  ;;  %2515 = vadd.xlane.f32.xlu0 %v2514_v35  ;;  %v2487_v41 = vmul.f32 %v6186_v19, %v14814_v20  ;;  %v2520_v1 = vsel %vm200_vm0, %v2484_v15, 0.0  ;;  %v6189_v35 = vunpack.c.l.bf16 %v7031_v59  ;;  %v7032_v28 = vld [vmem:[#allocation5 + $0x310] sm:$0xff]  }
 0x26e   :  { %v9454_v44 = vpop.xlane.xlu1 %1825  ;;  %v9465_v37 = vpop.xlane.xlu0 %1822  ;;  %v2489_v25 = vmul.f32 %v6190_v39, %v14561_v23  ;;  %v6194_v15 = vunpack.c.h.bf16 %v7032_v28 }
 0x26f   :  { %v9463_v4 = vadd.f32 %v9454_v44, %v14816_v38  ;;  %v9472_v29 = vadd.f32 %v9465_v37, %v9152_v14  ;;  %v2529_v38 = vsel %vm200_vm0, %v2487_v41, 0.0 }
 0x271   :  { %14817 = vst [vmem:[#allocation84_spill] sm:$0xff] %v9472_v29  ;;  %2524 = vadd.xlane.f32.xlu1 %v2523_v7  ;;  %2521 = vadd.xlane.f32.xlu0 %v2520_v1  ;;  %v2488_v7 = vmul.f32 %v6189_v35, %v14563_v60  ;;  %v6193_v1 = vunpack.c.l.bf16 %v7032_v28  ;;  %v7033_v29 = vld [vmem:[#allocation5 + $0x318] sm:$0xff]  }
 0x272   :  { %v9474_v19 = vpop.xlane.xlu1 %1831  ;;  %v9485_v14 = vpop.xlane.xlu0 %1828  ;;  %v6198_v8 = vunpack.c.h.bf16 %v7033_v29  ;;  %v6197_v23 = vunpack.c.l.bf16 %v7033_v29 }
 0x273   :  { %14818 = vst [vmem:[#allocation107_spill] sm:$0xff] %v9474_v19  ;;  %v9483_v30 = vadd.f32 %v9474_v19, %v9163_v0  ;;  %v9492_v39 = vadd.f32 %v9485_v14, %v14820_v32  ;;  %v2535_v0 = vsel %vm200_vm0, %v2489_v25, 0.0  ;;  %v14831_v25 = vld [vmem:[#allocation58_spill] sm:$0xff] }
 0x274   :  { %v2493_v28 = vmul.f32 %v6198_v8, %v14730_v61 }
 0x275   :  { %14819 = vst [vmem:[#allocation85_spill] sm:$0xff] %v9483_v30  ;;  %14821 = vst [vmem:[#allocation93_spill] sm:$0xff] %v9492_v39  ;;  %2530 = vadd.xlane.f32.xlu1 %v2529_v38  ;;  %2527 = vadd.xlane.f32.xlu0 %v2526_v56  ;;  %v14823_v30 = vld [vmem:[#allocation19_spill] sm:$0xff]  ;;  %v2532_v38 = vsel %vm200_vm0, %v2488_v7, 0.0  ;;  %v14825_v56 = vld [vmem:[#allocation20_spill] sm:$0xff] }
 0x276   :  { %v9494_v59 = vpop.xlane.xlu1 %1837  ;;  %v2491_v19 = vmul.f32 %v6194_v15, %v14823_v30  ;;  %v9504_v41 = vpop.xlane.xlu0 %1834  ;;  %v2490_v32 = vmul.f32 %v6193_v1, %v14825_v56  ;;  %v7034_v39 = vld [vmem:[#allocation5 + $0x450] sm:$0xff]  }
 0x277   :  { %14822 = vst [vmem:[#allocation86_spill] sm:$0xff] %v9494_v59  ;;  %v9502_v35 = vadd.f32 %v9494_v59, %v9183_v17  ;;  %v9512_v29 = vadd.f32 %v9504_v41, %v9192_v46  ;;  %v6202_v7 = vunpack.c.h.bf16 %v7034_v39  ;;  %v14827_v59 = vld [vmem:[#allocation73_spill] sm:$0xff]  ;;  %v14828_v1 = vld [vmem:[#allocation56_spill] sm:$0xff] }
 0x278   :  { %v2541_v17 = vsel %vm200_vm0, %v2491_v19, 0.0  ;;  %v14829_v51 = vmax.f32 %v14827_v59, %v14828_v1  ;;  %v14832_v19 = vmax.f32 %v8889_v36, %v9204_v43  ;;  %v2547_v59 = vsel %vm200_vm0, %v2493_v28, 0.0  ;;  %v14840_v28 = vld [vmem:[#allocation59_spill] sm:$0xff] }
 0x279   :  { %14824 = vst [vmem:[#allocation51_spill] sm:$0xff] %v9502_v35  ;;  %14826 = vst [vmem:[#allocation52_spill] sm:$0xff] %v9512_v29  ;;  %2536 = vadd.xlane.f32.xlu1 %v2535_v0  ;;  %2533 = vadd.xlane.f32.xlu0 %v2532_v38  ;;  %v2492_v35 = vmul.f32 %v6197_v23, %v14733_v53  ;;  %v2538_v0 = vsel %vm200_vm0, %v2490_v32, 0.0  ;;  %v6201_v38 = vunpack.c.l.bf16 %v7034_v39  ;;  %v7035_v29 = vld [vmem:[#allocation5 + $0x458] sm:$0xff]   ;;  %v14834_v23 = vld [vmem:[#allocation44_spill] sm:$0xff] }
 0x27a   :  { %v2005_v15 = vpop.xlane.xlu1 %2004  ;;  %v2002_v46 = vpop.xlane.xlu0 %2001  ;;  %v6206_v32 = vunpack.c.h.bf16 %v7035_v29  ;;  %v14836_v39 = vmax.f32 %v14736_v2, %v9214_v12 }
 0x27b   :  { %v9520_v56 = vmax.f32 %v14829_v51, %v2005_v15  ;;  %v9523_v31 = vadd.f32 %v2005_v15, %v14831_v25  ;;  %v9529_v8 = vmax.f32 %v14832_v19, %v2002_v46  ;;  %v9532_v53 = vadd.f32 %v2002_v46, %v14834_v23  ;;  %v14839_v46 = vld [vmem:[#allocation24_spill] sm:$0xff] }
 0x27c   :  { %v2544_v25 = vsel %vm200_vm0, %v2492_v35, 0.0  ;;  %v2495_v15 = vmul.f32 %v6202_v7, %v14735_v22  ;;  %v7036_v19 = vld [vmem:[#allocation5 + $0x590] sm:$0xff]   ;;  %v14841_v23 = vmax.f32 %v8909_v10, %v14840_v28  ;;  %v14843_v7 = vld [vmem:[#allocation91_spill] sm:$0xff]  ;;  %v14850_v10 = vld [vmem:[#allocation61_spill] sm:$0xff] }
 0x27d   :  { %14830 = vst [vmem:[#allocation89_spill] sm:$0xff] %v9520_v56  ;;  %14833 = vst [vmem:[#allocation108_spill] sm:$0xff] %v9529_v8  ;;  %2542 = vadd.xlane.f32.xlu1 %v2541_v17  ;;  %2539 = vadd.xlane.f32.xlu0 %v2538_v0  ;;  %v2494_v17 = vmul.f32 %v6201_v38, %v14839_v46  ;;  %v6205_v0 = vunpack.c.l.bf16 %v7035_v29  ;;  %v14846_v38 = vld [vmem:[#allocation54_spill] sm:$0xff] }
 0x27e   :  { %14835 = vst [vmem:[#allocation109_spill] sm:$0xff] %v9532_v53  ;;  %v2011_v51 = vpop.xlane.xlu1 %2010  ;;  %v2008_v43 = vpop.xlane.xlu0 %2007  ;;  %v2553_v2 = vsel %vm200_vm0, %v2495_v15, 0.0  ;;  %v14847_v29 = vld [vmem:[#allocation70_spill] sm:$0xff] }
 0x27f   :  { %v9540_v1 = vmax.f32 %v14836_v39, %v2011_v51  ;;  %v9543_v36 = vadd.f32 %v2011_v51, %v9223_v5  ;;  %v9549_v35 = vmax.f32 %v14841_v23, %v2008_v43  ;;  %v9552_v22 = vadd.f32 %v2008_v43, %v14843_v7  ;;  %v14845_v5 = vld [vmem:[#allocation25_spill] sm:$0xff]  ;;  %v14854_v15 = vld [vmem:[#allocation62_spill] sm:$0xff] }
 0x280   :  { %v2497_v51 = vmul.f32 %v6206_v32, %v14845_v5  ;;  %v6210_v39 = vunpack.c.h.bf16 %v7036_v19  ;;  %v14848_v46 = vmax.f32 %v14846_v38, %v14847_v29  ;;  %v2550_v43 = vsel %vm200_vm0, %v2494_v17, 0.0  ;;  %v7037_v7 = vld [vmem:[#allocation5 + $0x598] sm:$0xff]   ;;  %v14858_v38 = vld [vmem:[#allocation27_spill] sm:$0xff] }
 0x281   :  { %14837 = vst [vmem:[#allocation73_spill] sm:$0xff] %v9540_v1  ;;  %14838 = vst [vmem:[#allocation56_spill] sm:$0xff] %v9543_v36  ;;  %2548 = vadd.xlane.f32.xlu1 %v2547_v59  ;;  %2545 = vadd.xlane.f32.xlu0 %v2544_v25  ;;  %v6209_v36 = vunpack.c.l.bf16 %v7036_v19  ;;  %v14852_v59 = vld [vmem:[#allocation26_spill] sm:$0xff]  ;;  %v14857_v19 = vld [vmem:[#allocation63_spill] sm:$0xff] }
 0x282   :  { %14842 = vst [vmem:[#allocation58_spill] sm:$0xff] %v9549_v35  ;;  %14844 = vst [vmem:[#allocation44_spill] sm:$0xff] %v9552_v22  ;;  %v2017_v12 = vpop.xlane.xlu1 %2016  ;;  %v2014_v23 = vpop.xlane.xlu0 %2013  ;;  %v2496_v25 = vmul.f32 %v6205_v0, %v14852_v59  ;;  %v14853_v22 = vld [vmem:[#allocation47_spill] sm:$0xff]  ;;  %v2499_v29 = vmul.f32 %v6210_v39, %v14858_v38  ;;  %v14860_v0 = vld [vmem:[#allocation53_spill] sm:$0xff] }
 0x283   :  { %v9559_v1 = vmax.f32 %v14848_v46, %v2017_v12  ;;  %v9562_v28 = vadd.f32 %v2017_v12, %v14850_v10  ;;  %v14855_v35 = vmax.f32 %v14853_v22, %v14854_v15  ;;  %v9572_v5 = vadd.f32 %v2014_v23, %v14857_v19  ;;  %v14859_v10 = vld [vmem:[#allocation28_spill] sm:$0xff]  ;;  %v14864_v22 = vld [vmem:[#allocation95_spill] sm:$0xff] }
 0x284   :  { %v2559_v12 = vsel %vm200_vm0, %v2497_v51, 0.0  ;;  %v2498_v17 = vmul.f32 %v6209_v36, %v14859_v10  ;;  %v7038_v15 = vld [vmem:[#allocation5 + $0x6d0] sm:$0xff]   ;;  %v14865_v51 = vmax.f32 %v14751_v49, %v9264_v11 }
 0x285   :  { %14849 = vst [vmem:[#allocation59_spill] sm:$0xff] %v9559_v1  ;;  %14851 = vst [vmem:[#allocation91_spill] sm:$0xff] %v9562_v28  ;;  %v9569_v32 = vmax.f32 %v14855_v35, %v2014_v23  ;;  %2554 = vadd.xlane.f32.xlu1 %v2553_v2  ;;  %2551 = vadd.xlane.f32.xlu0 %v2550_v43  ;;  %v6214_v28 = vunpack.c.h.bf16 %v7037_v7  ;;  %v14861_v1 = vld [vmem:[#allocation94_spill] sm:$0xff]  ;;  %v2556_v2 = vsel %vm200_vm0, %v2496_v25, 0.0  ;;  %v6213_v43 = vunpack.c.l.bf16 %v7037_v7  ;;  %v14867_v36 = vld [vmem:[#allocation72_spill] sm:$0xff] }
 0x286   :  { %v2023_v46 = vpop.xlane.xlu1 %2022  ;;  %v14862_v59 = vmax.f32 %v14860_v0, %v14861_v1  ;;  %v2020_v23 = vpop.xlane.xlu0 %2019  ;;  %v6218_v25 = vunpack.c.h.bf16 %v7038_v15  ;;  %v14869_v7 = vmax.f32 %v14756_v16, %v9274_v3 }
 0x287   :  { %14856 = vst [vmem:[#allocation54_spill] sm:$0xff] %v9569_v32  ;;  %v9583_v35 = vadd.f32 %v2023_v46, %v14864_v22  ;;  %v9589_v39 = vmax.f32 %v14865_v51, %v2020_v23  ;;  %v9592_v19 = vadd.f32 %v2020_v23, %v14867_v36  ;;  %v2501_v0 = vmul.f32 %v6214_v28, %v14754_v13  ;;  %v14872_v23 = vld [vmem:[#allocation30_spill] sm:$0xff]  ;;  %v7039_v51 = vld [vmem:[#allocation5 + $0x6d8] sm:$0xff]   ;;  %v14873_v36 = vld [vmem:[#allocation48_spill] sm:$0xff] }
 0x288   :  { %v9580_v53 = vmax.f32 %v14862_v59, %v2023_v46  ;;  %v2565_v59 = vsel %vm200_vm0, %v2499_v29, 0.0  ;;  %v2562_v46 = vsel %vm200_vm0, %v2498_v17, 0.0  ;;  %v14874_v29 = vld [vmem:[#allocation65_spill] sm:$0xff]  ;;  %v14877_v28 = vld [vmem:[#allocation67_spill] sm:$0xff] }
 0x289   :  { %14866 = vst [vmem:[#allocation61_spill] sm:$0xff] %v9589_v39  ;;  %14868 = vst [vmem:[#allocation47_spill] sm:$0xff] %v9592_v19  ;;  %2560 = vadd.xlane.f32.xlu1 %v2559_v12  ;;  %2557 = vadd.xlane.f32.xlu0 %v2556_v2  ;;  %v2500_v12 = vmul.f32 %v6213_v43, %v14872_v23  ;;  %v6217_v2 = vunpack.c.l.bf16 %v7038_v15  ;;  %v14875_v19 = vmax.f32 %v14873_v36, %v14874_v29  ;;  %v14880_v43 = vld [vmem:[#allocation78_spill] sm:$0xff]  ;;  %v14884_v36 = vld [vmem:[#allocation69_spill] sm:$0xff] }
 0x28a   :  { %14863 = vst [vmem:[#allocation70_spill] sm:$0xff] %v9580_v53  ;;  %v2029_v1 = vpop.xlane.xlu1 %2028  ;;  %v2026_v49 = vpop.xlane.xlu0 %2025  ;;  %v2571_v16 = vsel %vm200_vm0, %v2501_v0, 0.0  ;;  %v14881_v15 = vld [vmem:[#allocation66_spill] sm:$0xff] }
 0x28b   :  { %v9600_v22 = vmax.f32 %v14869_v7, %v2029_v1  ;;  %v9603_v11 = vadd.f32 %v2029_v1, %v9283_v47  ;;  %v9609_v17 = vmax.f32 %v14875_v19, %v2026_v49  ;;  %v9612_v13 = vadd.f32 %v2026_v49, %v14877_v28  ;;  %v14879_v47 = vld [vmem:[#allocation31_spill] sm:$0xff]  ;;  %v7040_v28 = vld [vmem:[#allocation5 + $0x810] sm:$0xff]   ;;  %v14888_v0 = vld [vmem:[#allocation46_spill] sm:$0xff] }
 0x28c   :  { %v2503_v1 = vmul.f32 %v6218_v25, %v14879_v47  ;;  %v6222_v7 = vunpack.c.h.bf16 %v7039_v51  ;;  %v14882_v23 = vmax.f32 %v14880_v43, %v14881_v15  ;;  %v2568_v49 = vsel %vm200_vm0, %v2500_v12, 0.0  ;;  %v14892_v43 = vld [vmem:[#allocation33_spill] sm:$0xff]  ;;  %v15004_v56 = vld [vmem:[#allocation91_spill] sm:$0xff] }
 0x28d   :  { %14870 = vst [vmem:[#allocation62_spill] sm:$0xff] %v9600_v22  ;;  %14871 = vst [vmem:[#allocation63_spill] sm:$0xff] %v9603_v11  ;;  %2566 = vadd.xlane.f32.xlu1 %v2565_v59  ;;  %2563 = vadd.xlane.f32.xlu0 %v2562_v46  ;;  %v6221_v11 = vunpack.c.l.bf16 %v7039_v51  ;;  %v14886_v59 = vld [vmem:[#allocation32_spill] sm:$0xff]  ;;  %v14891_v51 = vld [vmem:[#allocation97_spill] sm:$0xff] }
 0x28e   :  { %14876 = vst [vmem:[#allocation53_spill] sm:$0xff] %v9609_v17  ;;  %14878 = vst [vmem:[#allocation94_spill] sm:$0xff] %v9612_v13  ;;  %v2035_v3 = vpop.xlane.xlu1 %2034  ;;  %v2032_v29 = vpop.xlane.xlu0 %2031  ;;  %v2502_v46 = vmul.f32 %v6217_v2, %v14886_v59  ;;  %v14887_v13 = vld [vmem:[#allocation90_spill] sm:$0xff]  ;;  %v2505_v15 = vmul.f32 %v6222_v7, %v14892_v43  ;;  %v14894_v2 = vld [vmem:[#allocation49_spill] sm:$0xff] }
 0x28f   :  { %v9619_v22 = vmax.f32 %v14882_v23, %v2035_v3  ;;  %v9622_v19 = vadd.f32 %v2035_v3, %v14884_v36  ;;  %v14889_v17 = vmax.f32 %v14887_v13, %v14888_v0  ;;  %v9632_v47 = vadd.f32 %v2032_v29, %v14891_v51  ;;  %v14893_v36 = vld [vmem:[#allocation34_spill] sm:$0xff]  ;;  %v14898_v13 = vld [vmem:[#allocation99_spill] sm:$0xff]  ;;  %v7041_v0 = vld [vmem:[#allocation5 + $0x818] sm:$0xff]  }
 0x290   :  { %v2577_v3 = vsel %vm200_vm0, %v2503_v1, 0.0  ;;  %v2504_v12 = vmul.f32 %v6221_v11, %v14893_v36  ;;  %v14900_v1 = vmax.f32 %v14772_v58, %v9324_v54  ;;  %v14902_v11 = vld [vmem:[#allocation100_spill] sm:$0xff]  ;;  %v14907_v54 = vld [vmem:[#allocation71_spill] sm:$0xff] }
 0x291   :  { %14883 = vst [vmem:[#allocation95_spill] sm:$0xff] %v9619_v22  ;;  %14885 = vst [vmem:[#allocation72_spill] sm:$0xff] %v9622_v19  ;;  %v9629_v25 = vmax.f32 %v14889_v17, %v2032_v29  ;;  %2572 = vadd.xlane.f32.xlu1 %v2571_v16  ;;  %2569 = vadd.xlane.f32.xlu0 %v2568_v49  ;;  %v6226_v19 = vunpack.c.h.bf16 %v7040_v28  ;;  %v14895_v22 = vld [vmem:[#allocation98_spill] sm:$0xff]  ;;  %v2574_v16 = vsel %vm200_vm0, %v2502_v46, 0.0  ;;  %v6225_v49 = vunpack.c.l.bf16 %v7040_v28  ;;  %v14904_v28 = vld [vmem:[#allocation45_spill] sm:$0xff] }
 0x292   :  { %v2041_v23 = vpop.xlane.xlu1 %2040  ;;  %v14896_v59 = vmax.f32 %v14894_v2, %v14895_v22  ;;  %v2038_v29 = vpop.xlane.xlu0 %2037  ;;  %v6230_v46 = vunpack.c.h.bf16 %v7041_v0 }
 0x293   :  { %14890 = vst [vmem:[#allocation48_spill] sm:$0xff] %v9629_v25  ;;  %v9643_v17 = vadd.f32 %v2041_v23, %v14898_v13  ;;  %v9649_v7 = vmax.f32 %v14900_v1, %v2038_v29  ;;  %v9652_v51 = vadd.f32 %v2038_v29, %v14902_v11  ;;  %v2507_v2 = vmul.f32 %v6226_v19, %v14776_v45  ;;  %v14909_v1 = vld [vmem:[#allocation36_spill] sm:$0xff]  ;;  %v14914_v19 = vld [vmem:[#allocation75_spill] sm:$0xff] }
 0x294   :  { %v9640_v39 = vmax.f32 %v14896_v59, %v2041_v23  ;;  %v2583_v59 = vsel %vm200_vm0, %v2505_v15, 0.0  ;;  %v2580_v23 = vsel %vm200_vm0, %v2504_v12, 0.0  ;;  %v14905_v13 = vmax.f32 %v14778_v9, %v14904_v28  ;;  %v7042_v11 = vld [vmem:[#allocation5 + $0x950] sm:$0xff]   ;;  %v14911_v15 = vld [vmem:[#allocation74_spill] sm:$0xff] }
 0x295   :  { %14899 = vst [vmem:[#allocation67_spill] sm:$0xff] %v9643_v17  ;;  %14901 = vst [vmem:[#allocation78_spill] sm:$0xff] %v9649_v7  ;;  %2578 = vadd.xlane.f32.xlu1 %v2577_v3  ;;  %2575 = vadd.xlane.f32.xlu0 %v2574_v16  ;;  %v2506_v3 = vmul.f32 %v6225_v49, %v14909_v1  ;;  %v6229_v16 = vunpack.c.l.bf16 %v7041_v0  ;;  %v2589_v28 = vsel %vm200_vm0, %v2507_v2, 0.0  ;;  %v14917_v49 = vld [vmem:[#allocation83_spill] sm:$0xff]  ;;  %v14918_v0 = vld [vmem:[#allocation76_spill] sm:$0xff] }
 0x296   :  { %14897 = vst [vmem:[#allocation65_spill] sm:$0xff] %v9640_v39  ;;  %14903 = vst [vmem:[#allocation66_spill] sm:$0xff] %v9652_v51  ;;  %v2047_v22 = vpop.xlane.xlu1 %2046  ;;  %v2044_v29 = vpop.xlane.xlu0 %2043  ;;  %v14910_v51 = vld [vmem:[#allocation105_spill] sm:$0xff]  ;;  %v14919_v1 = vmax.f32 %v14917_v49, %v14918_v0  ;;  %v14928_v49 = vld [vmem:[#allocation39_spill] sm:$0xff] }
 0x297   :  { %v9660_v36 = vmax.f32 %v14905_v13, %v2047_v22  ;;  %v9663_v58 = vadd.f32 %v2047_v22, %v14907_v54  ;;  %v14912_v7 = vmax.f32 %v14910_v51, %v14911_v15  ;;  %v9672_v45 = vadd.f32 %v2044_v29, %v14914_v19  ;;  %v14916_v22 = vld [vmem:[#allocation37_spill] sm:$0xff] }
 0x298   :  { %v2509_v13 = vmul.f32 %v6230_v46, %v14916_v22  ;;  %v6234_v54 = vunpack.c.h.bf16 %v7042_v11  ;;  %v14921_v51 = vld [vmem:[#allocation101_spill] sm:$0xff]  ;;  %v15026_v32 = vld [vmem:[#allocation72_spill] sm:$0xff] }
 0x299   :  { %14906 = vst [vmem:[#allocation69_spill] sm:$0xff] %v9660_v36  ;;  %14908 = vst [vmem:[#allocation90_spill] sm:$0xff] %v9663_v58  ;;  %v9669_v12 = vmax.f32 %v14912_v7, %v2044_v29  ;;  %2584 = vadd.xlane.f32.xlu1 %v2583_v59  ;;  %2581 = vadd.xlane.f32.xlu0 %v2580_v23  ;;  %v6233_v58 = vunpack.c.l.bf16 %v7042_v11  ;;  %v2586_v29 = vsel %vm200_vm0, %v2506_v3, 0.0  ;;  %v14923_v59 = vld [vmem:[#allocation38_spill] sm:$0xff]  ;;  %v7043_v19 = vld [vmem:[#allocation5 + $0x958] sm:$0xff]  }
 0x29a   :  { %14915 = vst [vmem:[#allocation97_spill] sm:$0xff] %v9672_v45  ;;  %v2053_v9 = vpop.xlane.xlu1 %2052  ;;  %v2050_v15 = vpop.xlane.xlu0 %2049  ;;  %v2508_v23 = vmul.f32 %v6229_v16, %v14923_v59  ;;  %v14924_v45 = vld [vmem:[#allocation106_spill] sm:$0xff]  ;;  %v14925_v2 = vld [vmem:[#allocation77_spill] sm:$0xff]  ;;  %v14927_v11 = vld [vmem:[#allocation43_spill] sm:$0xff]  ;;  %v2511_v0 = vmul.f32 %v6234_v54, %v14928_v49 }
 0x29b   :  { %14913 = vst [vmem:[#allocation46_spill] sm:$0xff] %v9669_v12  ;;  %v9679_v36 = vmax.f32 %v14919_v1, %v2053_v9  ;;  %v9682_v7 = vadd.f32 %v2053_v9, %v14921_v51  ;;  %v14926_v12 = vmax.f32 %v14924_v45, %v14925_v2  ;;  %v9692_v22 = vadd.f32 %v2050_v15, %v14927_v11  ;;  %v14929_v51 = vld [vmem:[#allocation40_spill] sm:$0xff]  ;;  %v14933_v45 = vld [vmem:[#allocation103_spill] sm:$0xff]  ;;  %v6240_v2 = vld [vmem:[#allocation5 + $0xa0] sm:$0xff]  }
 0x29c   :  { %v2595_v9 = vsel %vm200_vm0, %v2509_v13, 0.0  ;;  %v2510_v3 = vmul.f32 %v6233_v58, %v14929_v51  ;;  %v14930_v16 = vld [vmem:[#allocation92_spill] sm:$0xff]  ;;  %v14934_v13 = vmax.f32 %v14797_v26, %v9384_v55 }
 0x29d   :  { %14920 = vst [vmem:[#allocation49_spill] sm:$0xff] %v9679_v36  ;;  %14922 = vst [vmem:[#allocation98_spill] sm:$0xff] %v9682_v7  ;;  %v9689_v46 = vmax.f32 %v14926_v12, %v2050_v15  ;;  %2590 = vadd.xlane.f32.xlu1 %v2589_v28  ;;  %2587 = vadd.xlane.f32.xlu0 %v2586_v29  ;;  %v6238_v7 = vunpack.c.h.bf16 %v7043_v19  ;;  %v14931_v36 = vld [vmem:[#allocation102_spill] sm:$0xff]  ;;  %v2592_v28 = vsel %vm200_vm0, %v2508_v23, 0.0  ;;  %v6237_v29 = vunpack.c.l.bf16 %v7043_v19  ;;  %v14936_v58 = vld [vmem:[#allocation104_spill] sm:$0xff] }
 0x29e   :  { %v2059_v1 = vpop.xlane.xlu1 %2058  ;;  %v14932_v59 = vmax.f32 %v14930_v16, %v14931_v36  ;;  %v2056_v15 = vpop.xlane.xlu0 %2055  ;;  %v6242_v23 = vunpack.c.h.bf16 %v6240_v2  ;;  %v14937_v19 = vmax.f32 %v14802_v62, %v9394_v34 }
 0x29f   :  { %v9703_v12 = vadd.f32 %v2059_v1, %v14933_v45  ;;  %v9709_v54 = vmax.f32 %v14934_v13, %v2056_v15  ;;  %v9712_v11 = vadd.f32 %v2056_v15, %v14936_v58  ;;  %v2513_v16 = vmul.f32 %v6238_v7, %v14800_v57  ;;  %v14940_v15 = vld [vmem:[#allocation42_spill] sm:$0xff]  ;;  %v7044_v13 = vld [vmem:[#allocation5 + $0xa8] sm:$0xff]  }
 0x2a0   :  { %v9700_v17 = vmax.f32 %v14932_v59, %v2059_v1  ;;  %v2601_v59 = vsel %vm200_vm0, %v2511_v0, 0.0  ;;  %v2598_v1 = vsel %vm200_vm0, %v2510_v3, 0.0  ;;  %v14941_v0 = vmax.f32 %v9089_v24, %v9405_v52  ;;  %v14942_v7 = vld [vmem:[#allocation79_spill] sm:$0xff]  ;;  %v14947_v24 = vld [vmem:[#allocation80_spill] sm:$0xff] }
 0x2a1   :  { %14935 = vst [vmem:[#allocation99_spill] sm:$0xff] %v9709_v54  ;;  %2596 = vadd.xlane.f32.xlu1 %v2595_v9  ;;  %2593 = vadd.xlane.f32.xlu0 %v2592_v28  ;;  %v2512_v9 = vmul.f32 %v6237_v29, %v14940_v15  ;;  %v6241_v28 = vunpack.c.l.bf16 %v6240_v2  ;;  %v2607_v62 = vsel %vm200_vm0, %v2513_v16, 0.0  ;;  %v14943_v29 = vld [vmem:[#allocation64_spill] sm:$0xff]  ;;  %v14944_v2 = vld [vmem:[#allocation57_spill] sm:$0xff] }
 0x2a2   :  { %v2065_v36 = vpop.xlane.xlu1 %2064  ;;  %v2062_v26 = vpop.xlane.xlu0 %2061  ;;  %v14945_v15 = vmax.f32 %v14943_v29, %v14944_v2  ;;  %v14952_v2 = vld [vmem:[#allocation11_spill] sm:$0xff] }
 0x2a3   :  { %v9720_v45 = vmax.f32 %v14937_v19, %v2065_v36  ;;  %v9723_v55 = vadd.f32 %v2065_v36, %v9403_v48  ;;  %v9729_v3 = vmax.f32 %v14941_v0, %v2062_v26  ;;  %v9732_v58 = vadd.f32 %v2062_v26, %v14942_v7  ;;  %v14949_v7 = vld [vmem:[#allocation87_spill] sm:$0xff] }
 0x2a4   :  { %v2740_v48 = vmul.f32 %v6242_v23, %v14687_v21  ;;  %v6246_v36 = vunpack.c.h.bf16 %v7044_v13  ;;  %v6245_v19 = vunpack.c.l.bf16 %v7044_v13  ;;  %v2604_v26 = vsel %vm200_vm0, %v2512_v9, 0.0  ;;  %v14951_v13 = vld [vmem:[#allocation81_spill] sm:$0xff] }
 0x2a5   :  { %14938 = vst [vmem:[#allocation100_spill] sm:$0xff] %v9720_v45  ;;  %14939 = vst [vmem:[#allocation45_spill] sm:$0xff] %v9723_v55  ;;  %2602 = vadd.xlane.f32.xlu1 %v2601_v59  ;;  %2599 = vadd.xlane.f32.xlu0 %v2598_v1  ;;  %v2739_v59 = vmul.f32 %v6241_v28, %v14688_v63  ;;  %v7045_v1 = vld [vmem:[#allocation5 + $0x1e0] sm:$0xff]   ;;  %v14950_v16 = vmax.f32 %v14949_v7, %v9425_v50  ;;  %v14953_v28 = vld [vmem:[#allocation88_spill] sm:$0xff] }
 0x2a6   :  { %v2071_v34 = vpop.xlane.xlu1 %2070  ;;  %v2068_v0 = vpop.xlane.xlu0 %2067  ;;  %v2742_v29 = vmul.f32 %v6246_v36, %v14809_v6  ;;  %v2741_v9 = vmul.f32 %v6245_v19, %v14952_v2  ;;  %v14956_v50 = vld [vmem:[#allocation82_spill] sm:$0xff] }
 0x2a7   :  { %v9739_v55 = vmax.f32 %v14945_v15, %v2071_v34  ;;  %v9742_v52 = vadd.f32 %v2071_v34, %v14947_v24  ;;  %v9749_v23 = vmax.f32 %v14950_v16, %v2068_v0  ;;  %v9752_v21 = vadd.f32 %v2068_v0, %v14951_v13  ;;  %v7046_v16 = vld [vmem:[#allocation5 + $0x1e8] sm:$0xff]   ;;  %v14959_v19 = vld [vmem:[#allocation50_spill] sm:$0xff] }
 0x2a8   :  { %v2774_v34 = vsel %vm200_vm0, %v2740_v48, 0.0  ;;  %v6250_v24 = vunpack.c.h.bf16 %v7045_v1  ;;  %v14957_v48 = vmax.f32 %v9129_v18, %v9444_v33 }
 0x2a9   :  { %14946 = vst [vmem:[#allocation71_spill] sm:$0xff] %v9739_v55  ;;  %14948 = vst [vmem:[#allocation105_spill] sm:$0xff] %v9742_v52  ;;  %2608 = vadd.xlane.f32.xlu1 %v2607_v62  ;;  %2605 = vadd.xlane.f32.xlu0 %v2604_v26  ;;  %v14954_v52 = vld [vmem:[#allocation60_spill] sm:$0xff]  ;;  %v2771_v62 = vsel %vm200_vm0, %v2739_v59, 0.0  ;;  %v6249_v26 = vunpack.c.l.bf16 %v7045_v1  ;;  %v6254_v59 = vunpack.c.h.bf16 %v7046_v16  ;;  %v14960_v1 = vmax.f32 %v14815_v40, %v9454_v44 }
 0x2aa   :  { %v2077_v15 = vpop.xlane.xlu1 %2076  ;;  %v14955_v55 = vmax.f32 %v14953_v28, %v14954_v52  ;;  %v2074_v0 = vpop.xlane.xlu0 %2073  ;;  %v2780_v52 = vsel %vm200_vm0, %v2742_v29, 0.0  ;;  %v2744_v28 = vmul.f32 %v6250_v24, %v14814_v20  ;;  %v14964_v29 = vmax.f32 %v9149_v42, %v9465_v37  ;;  %v14965_v24 = vld [vmem:[#allocation84_spill] sm:$0xff]  ;;  %v14971_v42 = vld [vmem:[#allocation85_spill] sm:$0xff] }
 0x2ab   :  { %v9763_v7 = vadd.f32 %v2077_v15, %v14956_v50  ;;  %v9769_v36 = vmax.f32 %v14957_v48, %v2074_v0  ;;  %v9772_v13 = vadd.f32 %v2074_v0, %v14959_v19  ;;  %v14963_v0 = vld [vmem:[#allocation16_spill] sm:$0xff]  ;;  %v7047_v48 = vld [vmem:[#allocation5 + $0x320] sm:$0xff]  }
 0x2ac   :  { %v9760_v63 = vmax.f32 %v14955_v55, %v2077_v15  ;;  %v2777_v15 = vsel %vm200_vm0, %v2741_v9, 0.0  ;;  %v2786_v40 = vsel %vm200_vm0, %v2744_v28, 0.0  ;;  %v14973_v28 = vmax.f32 %v9169_v27, %v9485_v14  ;;  %v14981_v27 = vld [vmem:[#allocation51_spill] sm:$0xff] }
 0x2ad   :  { %14958 = vst [vmem:[#allocation74_spill] sm:$0xff] %v9769_v36  ;;  %2775 = vadd.xlane.f32.xlu1 %v2774_v34  ;;  %2772 = vadd.xlane.f32.xlu0 %v2771_v62  ;;  %v2743_v34 = vmul.f32 %v6249_v26, %v14963_v0  ;;  %v6253_v62 = vunpack.c.l.bf16 %v7046_v16  ;;  %v14967_v26 = vld [vmem:[#allocation96_spill] sm:$0xff]  ;;  %v14968_v16 = vld [vmem:[#allocation107_spill] sm:$0xff] }
 0x2ae   :  { %v2083_v55 = vpop.xlane.xlu1 %2082  ;;  %v2080_v18 = vpop.xlane.xlu0 %2079  ;;  %v14969_v0 = vmax.f32 %v14967_v26, %v14968_v16  ;;  %v14976_v16 = vld [vmem:[#allocation20_spill] sm:$0xff] }
 0x2af   :  { %v9780_v50 = vmax.f32 %v14960_v1, %v2083_v55  ;;  %v9783_v33 = vadd.f32 %v2083_v55, %v9463_v4  ;;  %v9789_v9 = vmax.f32 %v14964_v29, %v2080_v18  ;;  %v9792_v19 = vadd.f32 %v2080_v18, %v14965_v24  ;;  %v14966_v4 = vld [vmem:[#allocation17_spill] sm:$0xff] }
 0x2b0   :  { %v2746_v55 = vmul.f32 %v6254_v59, %v14966_v4  ;;  %v6258_v1 = vunpack.c.h.bf16 %v7047_v48  ;;  %v2783_v18 = vsel %vm200_vm0, %v2743_v34, 0.0 }
 0x2b1   :  { %14961 = vst [vmem:[#allocation75_spill] sm:$0xff] %v9780_v50  ;;  %14962 = vst [vmem:[#allocation83_spill] sm:$0xff] %v9783_v33  ;;  %2781 = vadd.xlane.f32.xlu1 %v2780_v52  ;;  %2778 = vadd.xlane.f32.xlu0 %v2777_v15  ;;  %v6257_v33 = vunpack.c.l.bf16 %v7047_v48  ;;  %v2745_v52 = vmul.f32 %v6253_v62, %v14563_v60  ;;  %v7048_v15 = vld [vmem:[#allocation5 + $0x328] sm:$0xff]   ;;  %v14975_v48 = vld [vmem:[#allocation93_spill] sm:$0xff] }
 0x2b2   :  { %v2089_v44 = vpop.xlane.xlu1 %2088  ;;  %v2086_v29 = vpop.xlane.xlu0 %2085  ;;  %v2748_v26 = vmul.f32 %v6258_v1, %v14823_v30  ;;  %v14977_v62 = vld [vmem:[#allocation55_spill] sm:$0xff] }
 0x2b3   :  { %v9799_v50 = vmax.f32 %v14969_v0, %v2089_v44  ;;  %v9802_v37 = vadd.f32 %v2089_v44, %v14971_v42  ;;  %v9809_v59 = vmax.f32 %v14973_v28, %v2086_v29  ;;  %v9812_v24 = vadd.f32 %v2086_v29, %v14975_v48  ;;  %v7049_v28 = vld [vmem:[#allocation5 + $0x460] sm:$0xff]   ;;  %v14982_v48 = vld [vmem:[#allocation68_spill] sm:$0xff] }
 0x2b4   :  { %v2792_v44 = vsel %vm200_vm0, %v2746_v55, 0.0  ;;  %v2747_v34 = vmul.f32 %v6257_v33, %v14976_v16  ;;  %v6262_v42 = vunpack.c.h.bf16 %v7048_v15  ;;  %v14983_v55 = vmax.f32 %v14982_v48, %v9504_v41  ;;  %v14985_v33 = vld [vmem:[#allocation52_spill] sm:$0xff]  ;;  %v7050_v48 = vld [vmem:[#allocation5 + $0x468] sm:$0xff]  }
 0x2b5   :  { %14970 = vst [vmem:[#allocation76_spill] sm:$0xff] %v9799_v50  ;;  %14972 = vst [vmem:[#allocation101_spill] sm:$0xff] %v9802_v37  ;;  %2787 = vadd.xlane.f32.xlu1 %v2786_v40  ;;  %2784 = vadd.xlane.f32.xlu0 %v2783_v18  ;;  %v14978_v37 = vld [vmem:[#allocation86_spill] sm:$0xff]  ;;  %v2789_v40 = vsel %vm200_vm0, %v2745_v52, 0.0  ;;  %v6261_v18 = vunpack.c.l.bf16 %v7048_v15  ;;  %v6266_v15 = vunpack.c.h.bf16 %v7049_v28 }
 0x2b6   :  { %14974 = vst [vmem:[#allocation106_spill] sm:$0xff] %v9809_v59  ;;  %v2095_v0 = vpop.xlane.xlu1 %2094  ;;  %v14979_v50 = vmax.f32 %v14977_v62, %v14978_v37  ;;  %v2092_v29 = vpop.xlane.xlu0 %2091  ;;  %v2798_v37 = vsel %vm200_vm0, %v2748_v26, 0.0  ;;  %v2750_v52 = vmul.f32 %v6262_v42, %v14730_v61 }
 0x2b7   :  { %v9823_v14 = vadd.f32 %v2095_v0, %v14981_v27  ;;  %v9829_v1 = vmax.f32 %v14983_v55, %v2092_v29  ;;  %v9832_v16 = vadd.f32 %v2092_v29, %v14985_v33  ;;  %v14993_v33 = vld [vmem:[#allocation23_spill] sm:$0xff] }
 0x2b8   :  { %v9820_v60 = vmax.f32 %v14979_v50, %v2095_v0  ;;  %v2795_v0 = vsel %vm200_vm0, %v2747_v34, 0.0  ;;  %v14990_v34 = vld [vmem:[#allocation109_spill] sm:$0xff]  ;;  %v2752_v62 = vmul.f32 %v6266_v15, %v14993_v33  ;;  %v14999_v15 = vld [vmem:[#allocation44_spill] sm:$0xff] }
 0x2b9   :  { %14984 = vst [vmem:[#allocation43_spill] sm:$0xff] %v9829_v1  ;;  %2793 = vadd.xlane.f32.xlu1 %v2792_v44  ;;  %2790 = vadd.xlane.f32.xlu0 %v2789_v40  ;;  %v14989_v44 = vld [vmem:[#allocation22_spill] sm:$0xff]  ;;  %v6265_v40 = vunpack.c.l.bf16 %v7049_v28 }
 0x2ba   :  { %14980 = vst [vmem:[#allocation77_spill] sm:$0xff] %v9820_v60  ;;  %v9834_v50 = vpop.xlane.xlu1 %2261  ;;  %v9845_v27 = vpop.xlane.xlu0 %2258  ;;  %v2749_v29 = vmul.f32 %v6261_v18, %v14989_v44  ;;  %v14995_v44 = vld [vmem:[#allocation56_spill] sm:$0xff]  ;;  %v15002_v18 = vld [vmem:[#allocation26_spill] sm:$0xff]  ;;  %v15085_v60 = vld [vmem:[#allocation89_spill] sm:$0xff] }
 0x2bb   :  { %14986 = vst [vmem:[#allocation92_spill] sm:$0xff] %v9834_v50  ;;  %v9843_v41 = vadd.f32 %v9834_v50, %v9523_v31  ;;  %14988 = vst [vmem:[#allocation103_spill] sm:$0xff] %v9845_v27  ;;  %v9852_v42 = vadd.f32 %v9845_v27, %v14990_v34  ;;  %v2804_v31 = vsel %vm200_vm0, %v2750_v52, 0.0  ;;  %v6269_v50 = vunpack.c.l.bf16 %v7050_v48  ;;  %v14998_v52 = vld [vmem:[#allocation58_spill] sm:$0xff] }
 0x2bd   :  { %14987 = vst [vmem:[#allocation102_spill] sm:$0xff] %v9843_v41  ;;  %14991 = vst [vmem:[#allocation104_spill] sm:$0xff] %v9852_v42  ;;  %2799 = vadd.xlane.f32.xlu1 %v2798_v37  ;;  %2796 = vadd.xlane.f32.xlu0 %v2795_v0  ;;  %v6270_v41 = vunpack.c.h.bf16 %v7050_v48  ;;  %v2801_v37 = vsel %vm200_vm0, %v2749_v29, 0.0  ;;  %v14997_v0 = vld [vmem:[#allocation24_spill] sm:$0xff]  ;;  %v7051_v42 = vld [vmem:[#allocation5 + $0x5a0] sm:$0xff]   ;;  %v2753_v29 = vmul.f32 %v6269_v50, %v15002_v18 }
 0x2be   :  { %v9854_v55 = vpop.xlane.xlu1 %2267  ;;  %v9864_v8 = vpop.xlane.xlu0 %2264  ;;  %v2751_v34 = vmul.f32 %v6265_v40, %v14997_v0  ;;  %v6274_v33 = vunpack.c.h.bf16 %v7051_v42  ;;  %v15003_v40 = vld [vmem:[#allocation59_spill] sm:$0xff] }
 0x2bf   :  { %14992 = vst [vmem:[#allocation79_spill] sm:$0xff] %v9854_v55  ;;  %v9862_v26 = vadd.f32 %v9854_v55, %v14995_v44  ;;  %v9872_v48 = vadd.f32 %v9864_v8, %v14999_v15  ;;  %v2810_v44 = vsel %vm200_vm0, %v2752_v62, 0.0  ;;  %v2813_v0 = vsel %vm200_vm0, %v2753_v29, 0.0  ;;  %v15011_v29 = vld [vmem:[#allocation47_spill] sm:$0xff] }
 0x2c0   :  { %v2756_v18 = vmul.f32 %v6274_v33, %v14858_v38 }
 0x2c1   :  { %14996 = vst [vmem:[#allocation64_spill] sm:$0xff] %v9862_v26  ;;  %15000 = vst [vmem:[#allocation57_spill] sm:$0xff] %v9872_v48  ;;  %2805 = vadd.xlane.f32.xlu1 %v2804_v31  ;;  %2802 = vadd.xlane.f32.xlu0 %v2801_v37  ;;  %v15001_v26 = vld [vmem:[#allocation25_spill] sm:$0xff]  ;;  %v2807_v31 = vsel %vm200_vm0, %v2751_v34, 0.0  ;;  %v6273_v37 = vunpack.c.l.bf16 %v7051_v42  ;;  %v7052_v48 = vld [vmem:[#allocation5 + $0x5a8] sm:$0xff]  }
 0x2c2   :  { %v9874_v28 = vpop.xlane.xlu1 %2273  ;;  %v2754_v55 = vmul.f32 %v6270_v41, %v15001_v26  ;;  %v9885_v15 = vpop.xlane.xlu0 %2270  ;;  %v6278_v34 = vunpack.c.h.bf16 %v7052_v48 }
 0x2c3   :  { %v9883_v27 = vadd.f32 %v9874_v28, %v15004_v56  ;;  %15005 = vst [vmem:[#allocation80_spill] sm:$0xff] %v9885_v15  ;;  %v9892_v50 = vadd.f32 %v9885_v15, %v9572_v5 }
 0x2c4   :  { %v2816_v56 = vsel %vm200_vm0, %v2754_v55, 0.0 }
 0x2c5   :  { %15006 = vst [vmem:[#allocation87_spill] sm:$0xff] %v9892_v50  ;;  %2811 = vadd.xlane.f32.xlu1 %v2810_v44  ;;  %2808 = vadd.xlane.f32.xlu0 %v2807_v31  ;;  %v2755_v44 = vmul.f32 %v6273_v37, %v14859_v10  ;;  %v6277_v31 = vunpack.c.l.bf16 %v7052_v48  ;;  %v7053_v50 = vld [vmem:[#allocation5 + $0x6e0] sm:$0xff]   ;;  %v15016_v10 = vld [vmem:[#allocation63_spill] sm:$0xff]  ;;  %v15024_v48 = vld [vmem:[#allocation32_spill] sm:$0xff] }
 0x2c6   :  { %v9894_v41 = vpop.xlane.xlu1 %2279  ;;  %v9905_v5 = vpop.xlane.xlu0 %2276  ;;  %v6282_v53 = vunpack.c.h.bf16 %v7053_v50  ;;  %v6281_v38 = vunpack.c.l.bf16 %v7053_v50 }
 0x2c7   :  { %15007 = vst [vmem:[#allocation81_spill] sm:$0xff] %v9894_v41  ;;  %v9903_v62 = vadd.f32 %v9894_v41, %v9583_v35  ;;  %15009 = vst [vmem:[#allocation60_spill] sm:$0xff] %v9905_v5  ;;  %v9912_v33 = vadd.f32 %v9905_v5, %v15011_v29  ;;  %v2822_v35 = vsel %vm200_vm0, %v2756_v18, 0.0  ;;  %v15019_v18 = vld [vmem:[#allocation53_spill] sm:$0xff] }
 0x2c9   :  { %15008 = vst [vmem:[#allocation88_spill] sm:$0xff] %v9903_v62  ;;  %15012 = vst [vmem:[#allocation82_spill] sm:$0xff] %v9912_v33  ;;  %2817 = vadd.xlane.f32.xlu1 %v2816_v56  ;;  %2814 = vadd.xlane.f32.xlu0 %v2813_v0  ;;  %v15014_v62 = vld [vmem:[#allocation29_spill] sm:$0xff]  ;;  %v2819_v56 = vsel %vm200_vm0, %v2755_v44, 0.0  ;;  %v15018_v0 = vld [vmem:[#allocation30_spill] sm:$0xff]  ;;  %v2759_v44 = vmul.f32 %v6281_v38, %v15024_v48 }
 0x2ca   :  { %v9914_v42 = vpop.xlane.xlu1 %2285  ;;  %v2758_v41 = vmul.f32 %v6278_v34, %v15014_v62  ;;  %v9924_v55 = vpop.xlane.xlu0 %2282  ;;  %v2757_v29 = vmul.f32 %v6277_v31, %v15018_v0  ;;  %v7054_v33 = vld [vmem:[#allocation5 + $0x6e8] sm:$0xff]   ;;  %v15020_v34 = vld [vmem:[#allocation94_spill] sm:$0xff] }
 0x2cb   :  { %15013 = vst [vmem:[#allocation50_spill] sm:$0xff] %v9914_v42  ;;  %v9922_v15 = vadd.f32 %v9914_v42, %v15016_v10  ;;  %v9932_v50 = vadd.f32 %v9924_v55, %v15020_v34  ;;  %v6286_v62 = vunpack.c.h.bf16 %v7054_v33  ;;  %v15025_v31 = vld [vmem:[#allocation95_spill] sm:$0xff]  ;;  %v2831_v0 = vsel %vm200_vm0, %v2759_v44, 0.0  ;;  %v15036_v44 = vld [vmem:[#allocation66_spill] sm:$0xff] }
 0x2cc   :  { %v2828_v10 = vsel %vm200_vm0, %v2758_v41, 0.0 }
 0x2cd   :  { %15017 = vst [vmem:[#allocation84_spill] sm:$0xff] %v9922_v15  ;;  %15021 = vst [vmem:[#allocation96_spill] sm:$0xff] %v9932_v50  ;;  %2823 = vadd.xlane.f32.xlu1 %v2822_v35  ;;  %2820 = vadd.xlane.f32.xlu0 %v2819_v56  ;;  %v15023_v15 = vld [vmem:[#allocation31_spill] sm:$0xff]  ;;  %v2825_v35 = vsel %vm200_vm0, %v2757_v29, 0.0  ;;  %v6285_v56 = vunpack.c.l.bf16 %v7054_v33  ;;  %v7055_v50 = vld [vmem:[#allocation5 + $0x820] sm:$0xff]   ;;  %v2762_v48 = vmul.f32 %v6286_v62, %v14892_v43 }
 0x2ce   :  { %v9934_v37 = vpop.xlane.xlu1 %2291  ;;  %v2760_v42 = vmul.f32 %v6282_v53, %v15023_v15  ;;  %v9945_v34 = vpop.xlane.xlu0 %2288  ;;  %v6290_v29 = vunpack.c.h.bf16 %v7055_v50 }
 0x2cf   :  { %15022 = vst [vmem:[#allocation107_spill] sm:$0xff] %v9934_v37  ;;  %v9943_v5 = vadd.f32 %v9934_v37, %v15026_v32  ;;  %15028 = vst [vmem:[#allocation93_spill] sm:$0xff] %v9945_v34  ;;  %v9952_v53 = vadd.f32 %v9945_v34, %v9632_v47  ;;  %v7056_v34 = vld [vmem:[#allocation5 + $0x828] sm:$0xff]   ;;  %v15050_v37 = vld [vmem:[#allocation98_spill] sm:$0xff] }
 0x2d0   :  { %v2834_v32 = vsel %vm200_vm0, %v2760_v42, 0.0  ;;  %v6294_v39 = vunpack.c.h.bf16 %v7056_v34  ;;  %v6293_v43 = vunpack.c.l.bf16 %v7056_v34 }
 0x2d1   :  { %15027 = vst [vmem:[#allocation85_spill] sm:$0xff] %v9943_v5  ;;  %15029 = vst [vmem:[#allocation55_spill] sm:$0xff] %v9952_v53  ;;  %2829 = vadd.xlane.f32.xlu1 %v2828_v10  ;;  %2826 = vadd.xlane.f32.xlu0 %v2825_v35  ;;  %v15031_v5 = vld [vmem:[#allocation67_spill] sm:$0xff]  ;;  %v15034_v10 = vld [vmem:[#allocation34_spill] sm:$0xff]  ;;  %v6289_v53 = vunpack.c.l.bf16 %v7055_v50 }
 0x2d2   :  { %v9954_v38 = vpop.xlane.xlu1 %2297  ;;  %v9965_v47 = vpop.xlane.xlu0 %2294  ;;  %v2761_v35 = vmul.f32 %v6285_v56, %v15034_v10  ;;  %v15041_v10 = vld [vmem:[#allocation90_spill] sm:$0xff] }
 0x2d3   :  { %15030 = vst [vmem:[#allocation86_spill] sm:$0xff] %v9954_v38  ;;  %v9963_v41 = vadd.f32 %v9954_v38, %v15031_v5  ;;  %15033 = vst [vmem:[#allocation68_spill] sm:$0xff] %v9965_v47  ;;  %v9972_v62 = vadd.f32 %v9965_v47, %v15036_v44  ;;  %v2840_v5 = vsel %vm200_vm0, %v2762_v48, 0.0  ;;  %v15044_v48 = vld [vmem:[#allocation46_spill] sm:$0xff] }
 0x2d4   :  { %v15048_v50 = vld [vmem:[#allocation38_spill] sm:$0xff] }
 0x2d5   :  { %15032 = vst [vmem:[#allocation51_spill] sm:$0xff] %v9963_v41  ;;  %15037 = vst [vmem:[#allocation52_spill] sm:$0xff] %v9972_v62  ;;  %2835 = vadd.xlane.f32.xlu1 %v2834_v32  ;;  %2832 = vadd.xlane.f32.xlu0 %v2831_v0  ;;  %v15039_v41 = vld [vmem:[#allocation35_spill] sm:$0xff]  ;;  %v2837_v32 = vsel %vm200_vm0, %v2761_v35, 0.0  ;;  %v15043_v0 = vld [vmem:[#allocation36_spill] sm:$0xff]  ;;  %v2765_v35 = vmul.f32 %v6293_v43, %v15048_v50 }
 0x2d6   :  { %v9974_v33 = vpop.xlane.xlu1 %2303  ;;  %v2764_v38 = vmul.f32 %v6290_v29, %v15039_v41  ;;  %v9984_v42 = vpop.xlane.xlu0 %2300  ;;  %v2763_v44 = vmul.f32 %v6289_v53, %v15043_v0  ;;  %v7057_v62 = vld [vmem:[#allocation5 + $0x960] sm:$0xff]   ;;  %v15045_v29 = vld [vmem:[#allocation97_spill] sm:$0xff] }
 0x2d7   :  { %15038 = vst [vmem:[#allocation109_spill] sm:$0xff] %v9974_v33  ;;  %v9982_v25 = vadd.f32 %v9974_v33, %v15041_v10  ;;  %v9992_v34 = vadd.f32 %v9984_v42, %v15045_v29  ;;  %v6298_v41 = vunpack.c.h.bf16 %v7057_v62  ;;  %v15049_v53 = vld [vmem:[#allocation49_spill] sm:$0xff]  ;;  %v2849_v0 = vsel %vm200_vm0, %v2765_v35, 0.0 }
 0x2d8   :  { %v2846_v10 = vsel %vm200_vm0, %v2764_v38, 0.0 }
 0x2d9   :  { %15042 = vst [vmem:[#allocation56_spill] sm:$0xff] %v9982_v25  ;;  %15046 = vst [vmem:[#allocation58_spill] sm:$0xff] %v9992_v34  ;;  %2841 = vadd.xlane.f32.xlu1 %v2840_v5  ;;  %2838 = vadd.xlane.f32.xlu0 %v2837_v32  ;;  %v15047_v25 = vld [vmem:[#allocation37_spill] sm:$0xff]  ;;  %v2843_v5 = vsel %vm200_vm0, %v2763_v44, 0.0  ;;  %v6297_v32 = vunpack.c.l.bf16 %v7057_v62  ;;  %v7058_v34 = vld [vmem:[#allocation5 + $0x968] sm:$0xff]   ;;  %v2768_v50 = vmul.f32 %v6298_v41, %v14928_v49 }
 0x2da   :  { %v9994_v56 = vpop.xlane.xlu1 %2309  ;;  %v2766_v33 = vmul.f32 %v6294_v39, %v15047_v25  ;;  %v10005_v29 = vpop.xlane.xlu0 %2306  ;;  %v6302_v44 = vunpack.c.h.bf16 %v7058_v34 }
 0x2db   :  { %v10003_v47 = vadd.f32 %v9994_v56, %v15050_v37  ;;  %v10012_v39 = vadd.f32 %v10005_v29, %v9692_v22 }
 0x2dc   :  { %v2852_v37 = vsel %vm200_vm0, %v2766_v33, 0.0  ;;  %v2770_v62 = vmul.f32 %v6302_v44, %v14800_v57  ;;  %v15063_v57 = vld [vmem:[#allocation105_spill] sm:$0xff] }
 0x2dd   :  { %15051 = vst [vmem:[#allocation44_spill] sm:$0xff] %v10012_v39  ;;  %2847 = vadd.xlane.f32.xlu1 %v2846_v10  ;;  %2844 = vadd.xlane.f32.xlu0 %v2843_v5  ;;  %v2767_v10 = vmul.f32 %v6297_v32, %v14929_v51  ;;  %v6301_v5 = vunpack.c.l.bf16 %v7058_v34  ;;  %v6304_v39 = vld [vmem:[#allocation5 + $0xb0] sm:$0xff]   ;;  %v15056_v32 = vld [vmem:[#allocation45_spill] sm:$0xff]  ;;  %v15060_v34 = vld [vmem:[#allocation14_spill] sm:$0xff] }
 0x2de   :  { %v10014_v43 = vpop.xlane.xlu1 %2315  ;;  %v10025_v22 = vpop.xlane.xlu0 %2312 }
 0x2df   :  { %15052 = vst [vmem:[#allocation59_spill] sm:$0xff] %v10014_v43  ;;  %v10023_v38 = vadd.f32 %v10014_v43, %v9703_v12  ;;  %v10032_v41 = vadd.f32 %v10025_v22, %v9712_v11  ;;  %v2858_v12 = vsel %vm200_vm0, %v2768_v50, 0.0  ;;  %v6305_v43 = vunpack.c.l.bf16 %v6304_v39 }
 0x2e0   :  { %v2855_v11 = vsel %vm200_vm0, %v2767_v10, 0.0 }
 0x2e1   :  { %15053 = vst [vmem:[#allocation91_spill] sm:$0xff] %v10023_v38  ;;  %15054 = vst [vmem:[#allocation47_spill] sm:$0xff] %v10032_v41  ;;  %2853 = vadd.xlane.f32.xlu1 %v2852_v37  ;;  %2850 = vadd.xlane.f32.xlu0 %v2849_v0  ;;  %v6306_v38 = vunpack.c.h.bf16 %v6304_v39  ;;  %v15058_v0 = vld [vmem:[#allocation42_spill] sm:$0xff]  ;;  %v7059_v41 = vld [vmem:[#allocation5 + $0xb8] sm:$0xff]  }
 0x2e2   :  { %v10034_v35 = vpop.xlane.xlu1 %2321  ;;  %v10044_v54 = vpop.xlane.xlu0 %2318  ;;  %v2769_v37 = vmul.f32 %v6301_v5, %v15058_v0  ;;  %v6310_v45 = vunpack.c.h.bf16 %v7059_v41  ;;  %v15062_v5 = vld [vmem:[#allocation71_spill] sm:$0xff] }
 0x2e3   :  { %15055 = vst [vmem:[#allocation63_spill] sm:$0xff] %v10034_v35  ;;  %v10042_v33 = vadd.f32 %v10034_v35, %v15056_v32  ;;  %v10052_v39 = vadd.f32 %v10044_v54, %v9732_v58  ;;  %v2864_v32 = vsel %vm200_vm0, %v2770_v62, 0.0  ;;  %v15061_v35 = vld [vmem:[#allocation12_spill] sm:$0xff] }
 0x2e4   :  { %v2996_v10 = vmul.f32 %v6305_v43, %v15061_v35  ;;  %v2999_v35 = vmul.f32 %v6310_v45, %v14809_v6 }
 0x2e5   :  { %15057 = vst [vmem:[#allocation53_spill] sm:$0xff] %v10042_v33  ;;  %15059 = vst [vmem:[#allocation94_spill] sm:$0xff] %v10052_v39  ;;  %2859 = vadd.xlane.f32.xlu1 %v2858_v12  ;;  %2856 = vadd.xlane.f32.xlu0 %v2855_v11  ;;  %v2997_v33 = vmul.f32 %v6306_v38, %v15060_v34  ;;  %v2861_v12 = vsel %vm200_vm0, %v2769_v37, 0.0  ;;  %v6309_v11 = vunpack.c.l.bf16 %v7059_v41  ;;  %v7060_v39 = vld [vmem:[#allocation5 + $0x1f0] sm:$0xff]  }
 0x2e6   :  { %v10054_v44 = vpop.xlane.xlu1 %2327  ;;  %v10065_v58 = vpop.xlane.xlu0 %2324  ;;  %v3028_v0 = vsel %vm200_vm0, %v2996_v10, 0.0  ;;  %v6314_v37 = vunpack.c.h.bf16 %v7060_v39 }
 0x2e7   :  { %v10063_v50 = vadd.f32 %v10054_v44, %v15063_v57  ;;  %v10072_v38 = vadd.f32 %v10065_v58, %v9752_v21  ;;  %v3031_v57 = vsel %vm200_vm0, %v2997_v33, 0.0 }
 0x2e8   :  { %v3001_v41 = vmul.f32 %v6314_v37, %v14814_v20 }
 0x2e9   :  { %15064 = vst [vmem:[#allocation95_spill] sm:$0xff] %v10072_v38  ;;  %2865 = vadd.xlane.f32.xlu1 %v2864_v32  ;;  %2862 = vadd.xlane.f32.xlu0 %v2861_v12  ;;  %v2998_v32 = vmul.f32 %v6309_v11, %v14952_v2  ;;  %v6313_v12 = vunpack.c.l.bf16 %v7060_v39  ;;  %v7061_v38 = vld [vmem:[#allocation5 + $0x1f8] sm:$0xff]   ;;  %v15070_v2 = vld [vmem:[#allocation83_spill] sm:$0xff] }
 0x2ea   :  { %v10074_v43 = vpop.xlane.xlu1 %2333  ;;  %v10085_v21 = vpop.xlane.xlu0 %2330 }
 0x2eb   :  { %15065 = vst [vmem:[#allocation72_spill] sm:$0xff] %v10074_v43  ;;  %v10083_v62 = vadd.f32 %v10074_v43, %v9763_v7  ;;  %v10092_v45 = vadd.f32 %v10085_v21, %v9772_v13  ;;  %v3037_v7 = vsel %vm200_vm0, %v2999_v35, 0.0  ;;  %v6317_v43 = vunpack.c.l.bf16 %v7061_v38 }
 0x2ec   :  { %v3034_v13 = vsel %vm200_vm0, %v2998_v32, 0.0 }
 0x2ed   :  { %15066 = vst [vmem:[#allocation67_spill] sm:$0xff] %v10083_v62  ;;  %15067 = vst [vmem:[#allocation66_spill] sm:$0xff] %v10092_v45  ;;  %3032 = vadd.xlane.f32.xlu1 %v3031_v57  ;;  %3029 = vadd.xlane.f32.xlu0 %v3028_v0  ;;  %v6318_v62 = vunpack.c.h.bf16 %v7061_v38  ;;  %v15072_v0 = vld [vmem:[#allocation16_spill] sm:$0xff] }
 0x2ee   :  { %v10094_v10 = vpop.xlane.xlu1 %2339  ;;  %v10104_v36 = vpop.xlane.xlu0 %2336  ;;  %v3000_v57 = vmul.f32 %v6313_v12, %v15072_v0  ;;  %v7062_v45 = vld [vmem:[#allocation5 + $0x330] sm:$0xff]   ;;  %v15076_v0 = vld [vmem:[#allocation101_spill] sm:$0xff] }
 0x2ef   :  { %15068 = vst [vmem:[#allocation90_spill] sm:$0xff] %v10094_v10  ;;  %v10102_v33 = vadd.f32 %v10094_v10, %v15070_v2  ;;  %v10112_v38 = vadd.f32 %v10104_v36, %v9792_v19  ;;  %v3043_v2 = vsel %vm200_vm0, %v3001_v41, 0.0  ;;  %v3003_v11 = vmul.f32 %v6318_v62, %v14966_v4  ;;  %v15075_v12 = vld [vmem:[#allocation76_spill] sm:$0xff] }
 0x2f0   :  { %v6322_v10 = vunpack.c.h.bf16 %v7062_v45 }
 0x2f1   :  { %15071 = vst [vmem:[#allocation46_spill] sm:$0xff] %v10102_v33  ;;  %15073 = vst [vmem:[#allocation97_spill] sm:$0xff] %v10112_v38  ;;  %3038 = vadd.xlane.f32.xlu1 %v3037_v7  ;;  %3035 = vadd.xlane.f32.xlu0 %v3034_v13  ;;  %v15074_v33 = vld [vmem:[#allocation18_spill] sm:$0xff]  ;;  %v3040_v7 = vsel %vm200_vm0, %v3000_v57, 0.0  ;;  %v6321_v13 = vunpack.c.l.bf16 %v7062_v45  ;;  %v7063_v38 = vld [vmem:[#allocation5 + $0x338] sm:$0xff]  }
 0x2f2   :  { %v10114_v37 = vpop.xlane.xlu1 %2345  ;;  %v3002_v32 = vmul.f32 %v6317_v43, %v15074_v33  ;;  %v10125_v19 = vpop.xlane.xlu0 %2342  ;;  %v3005_v33 = vmul.f32 %v6322_v10, %v14823_v30  ;;  %v6326_v57 = vunpack.c.h.bf16 %v7063_v38  ;;  %v15089_v30 = vld [vmem:[#allocation102_spill] sm:$0xff] }
 0x2f3   :  { %v10123_v35 = vadd.f32 %v10114_v37, %v15076_v0  ;;  %15078 = vst [vmem:[#allocation98_spill] sm:$0xff] %v10125_v19  ;;  %v10132_v62 = vadd.f32 %v10125_v19, %v9812_v24  ;;  %v3049_v0 = vsel %vm200_vm0, %v3003_v11, 0.0  ;;  %v7064_v19 = vld [vmem:[#allocation5 + $0x470] sm:$0xff]  }
 0x2f4   :  { %v3046_v39 = vsel %vm200_vm0, %v3002_v32, 0.0  ;;  %v3055_v45 = vsel %vm200_vm0, %v3005_v33, 0.0  ;;  %v15093_v33 = vld [vmem:[#allocation103_spill] sm:$0xff] }
 0x2f5   :  { %15077 = vst [vmem:[#allocation49_spill] sm:$0xff] %v10123_v35  ;;  %15079 = vst [vmem:[#allocation45_spill] sm:$0xff] %v10132_v62  ;;  %3044 = vadd.xlane.f32.xlu1 %v3043_v2  ;;  %3041 = vadd.xlane.f32.xlu0 %v3040_v7  ;;  %v15083_v2 = vld [vmem:[#allocation20_spill] sm:$0xff]  ;;  %v6325_v62 = vunpack.c.l.bf16 %v7063_v38 }
 0x2f6   :  { %v10134_v43 = vpop.xlane.xlu1 %2351  ;;  %v10145_v24 = vpop.xlane.xlu0 %2348  ;;  %v3004_v7 = vmul.f32 %v6321_v13, %v15083_v2  ;;  %v15086_v13 = vld [vmem:[#allocation92_spill] sm:$0xff] }
 0x2f7   :  { %15080 = vst [vmem:[#allocation71_spill] sm:$0xff] %v10134_v43  ;;  %v10143_v41 = vadd.f32 %v10134_v43, %v9823_v14  ;;  %15082 = vst [vmem:[#allocation83_spill] sm:$0xff] %v10145_v24  ;;  %v10152_v10 = vadd.f32 %v10145_v24, %v9832_v16  ;;  %v3007_v14 = vmul.f32 %v6326_v57, %v14730_v61  ;;  %v6329_v43 = vunpack.c.l.bf16 %v7064_v19  ;;  %v15092_v24 = vld [vmem:[#allocation108_spill] sm:$0xff] }
 0x2f8   :  { %v15087_v38 = vmax.f32 %v15085_v60, %v15086_v13  ;;  %v3052_v16 = vsel %vm200_vm0, %v3004_v7, 0.0  ;;  %v15094_v59 = vmax.f32 %v15092_v24, %v15093_v33  ;;  %v7066_v33 = vld [vmem:[#allocation5 + $0x5b0] sm:$0xff]  }
 0x2f9   :  { %15081 = vst [vmem:[#allocation105_spill] sm:$0xff] %v10143_v41  ;;  %15084 = vst [vmem:[#allocation76_spill] sm:$0xff] %v10152_v10  ;;  %3050 = vadd.xlane.f32.xlu1 %v3049_v0  ;;  %3047 = vadd.xlane.f32.xlu0 %v3046_v39  ;;  %v6330_v41 = vunpack.c.h.bf16 %v7064_v19  ;;  %v15091_v0 = vld [vmem:[#allocation22_spill] sm:$0xff]  ;;  %v7065_v10 = vld [vmem:[#allocation5 + $0x478] sm:$0xff]  }
 0x2fa   :  { %v2519_v32 = vpop.xlane.xlu1 %2518  ;;  %v2516_v1 = vpop.xlane.xlu0 %2515  ;;  %v3006_v39 = vmul.f32 %v6325_v62, %v15091_v0  ;;  %v15096_v19 = vld [vmem:[#allocation104_spill] sm:$0xff]  ;;  %v15099_v62 = vld [vmem:[#allocation73_spill] sm:$0xff] }
 0x2fb   :  { %v10159_v2 = vmax.f32 %v15087_v38, %v2519_v32  ;;  %v10162_v11 = vadd.f32 %v2519_v32, %v15089_v30  ;;  %v10169_v57 = vmax.f32 %v15094_v59, %v2516_v1  ;;  %v10172_v61 = vadd.f32 %v2516_v1, %v15096_v19  ;;  %v15097_v32 = vld [vmem:[#allocation23_spill] sm:$0xff]  ;;  %v15098_v38 = vld [vmem:[#allocation24_spill] sm:$0xff] }
 0x2fc   :  { %v3061_v30 = vsel %vm200_vm0, %v3007_v14, 0.0  ;;  %v3009_v13 = vmul.f32 %v6330_v41, %v15097_v32  ;;  %v3008_v7 = vmul.f32 %v6329_v43, %v15098_v38  ;;  %v15103_v59 = vld [vmem:[#allocation64_spill] sm:$0xff]  ;;  %v15104_v14 = vmax.f32 %v14998_v52, %v9864_v8  ;;  %v15106_v43 = vld [vmem:[#allocation57_spill] sm:$0xff] }
 0x2fd   :  { %15088 = vst [vmem:[#allocation101_spill] sm:$0xff] %v10159_v2  ;;  %15090 = vst [vmem:[#allocation89_spill] sm:$0xff] %v10162_v11  ;;  %3056 = vadd.xlane.f32.xlu1 %v3055_v45  ;;  %3053 = vadd.xlane.f32.xlu0 %v3052_v16  ;;  %v6334_v11 = vunpack.c.h.bf16 %v7065_v10  ;;  %v15100_v2 = vld [vmem:[#allocation79_spill] sm:$0xff]  ;;  %v3058_v45 = vsel %vm200_vm0, %v3006_v39, 0.0  ;;  %v6333_v16 = vunpack.c.l.bf16 %v7065_v10  ;;  %v6338_v39 = vunpack.c.h.bf16 %v7066_v33 }
 0x2fe   :  { %15095 = vst [vmem:[#allocation92_spill] sm:$0xff] %v10169_v57  ;;  %v2525_v60 = vpop.xlane.xlu1 %2524  ;;  %v15101_v0 = vmax.f32 %v15099_v62, %v15100_v2  ;;  %v2522_v1 = vpop.xlane.xlu0 %2521  ;;  %v15108_v10 = vmax.f32 %v15003_v40, %v9874_v28 }
 0x2ff   :  { %v10183_v24 = vadd.f32 %v2525_v60, %v15103_v59  ;;  %v10189_v41 = vmax.f32 %v15104_v14, %v2522_v1  ;;  %v10192_v19 = vadd.f32 %v2522_v1, %v15106_v43  ;;  %v3011_v62 = vmul.f32 %v6334_v11, %v15001_v26  ;;  %v15111_v1 = vld [vmem:[#allocation26_spill] sm:$0xff]  ;;  %v7067_v14 = vld [vmem:[#allocation5 + $0x5b8] sm:$0xff]   ;;  %v15116_v11 = vld [vmem:[#allocation87_spill] sm:$0xff] }
 0x300   :  { %v10180_v35 = vmax.f32 %v15101_v0, %v2525_v60  ;;  %v3067_v0 = vsel %vm200_vm0, %v3009_v13, 0.0  ;;  %v3064_v60 = vsel %vm200_vm0, %v3008_v7, 0.0  ;;  %v15112_v43 = vld [vmem:[#allocation54_spill] sm:$0xff]  ;;  %v15113_v13 = vld [vmem:[#allocation80_spill] sm:$0xff] }
 0x301   :  { %15105 = vst [vmem:[#allocation108_spill] sm:$0xff] %v10189_v41  ;;  %15107 = vst [vmem:[#allocation103_spill] sm:$0xff] %v10192_v19  ;;  %3062 = vadd.xlane.f32.xlu1 %v3061_v30  ;;  %3059 = vadd.xlane.f32.xlu0 %v3058_v45  ;;  %v3010_v30 = vmul.f32 %v6333_v16, %v15111_v1  ;;  %v6337_v45 = vunpack.c.l.bf16 %v7066_v33  ;;  %v15114_v19 = vmax.f32 %v15112_v43, %v15113_v13  ;;  %v15119_v16 = vld [vmem:[#allocation70_spill] sm:$0xff]  ;;  %v15120_v33 = vld [vmem:[#allocation81_spill] sm:$0xff] }
 0x302   :  { %15102 = vst [vmem:[#allocation102_spill] sm:$0xff] %v10180_v35  ;;  %v2531_v2 = vpop.xlane.xlu1 %2530  ;;  %v2528_v52 = vpop.xlane.xlu0 %2527  ;;  %v3073_v40 = vsel %vm200_vm0, %v3011_v62, 0.0  ;;  %v15121_v1 = vmax.f32 %v15119_v16, %v15120_v33  ;;  %v15123_v43 = vld [vmem:[#allocation88_spill] sm:$0xff]  ;;  %v15131_v16 = vld [vmem:[#allocation29_spill] sm:$0xff] }
 0x303   :  { %v10200_v59 = vmax.f32 %v15108_v10, %v2531_v2  ;;  %v10203_v8 = vadd.f32 %v2531_v2, %v9883_v27  ;;  %v10209_v7 = vmax.f32 %v15114_v19, %v2528_v52  ;;  %v10212_v26 = vadd.f32 %v2528_v52, %v15116_v11  ;;  %v15118_v27 = vld [vmem:[#allocation27_spill] sm:$0xff]  ;;  %v7068_v11 = vld [vmem:[#allocation5 + $0x6f0] sm:$0xff]  }
 0x304   :  { %v3013_v2 = vmul.f32 %v6338_v39, %v15118_v27  ;;  %v6342_v10 = vunpack.c.h.bf16 %v7067_v14  ;;  %v3070_v52 = vsel %vm200_vm0, %v3010_v30, 0.0  ;;  %v15127_v62 = vld [vmem:[#allocation60_spill] sm:$0xff] }
 0x305   :  { %15109 = vst [vmem:[#allocation104_spill] sm:$0xff] %v10200_v59  ;;  %15110 = vst [vmem:[#allocation73_spill] sm:$0xff] %v10203_v8  ;;  %3068 = vadd.xlane.f32.xlu1 %v3067_v0  ;;  %3065 = vadd.xlane.f32.xlu0 %v3064_v60  ;;  %v6341_v8 = vunpack.c.l.bf16 %v7067_v14  ;;  %v15125_v0 = vld [vmem:[#allocation28_spill] sm:$0xff]  ;;  %v15130_v14 = vld [vmem:[#allocation82_spill] sm:$0xff] }
 0x306   :  { %15115 = vst [vmem:[#allocation79_spill] sm:$0xff] %v10209_v7  ;;  %15117 = vst [vmem:[#allocation64_spill] sm:$0xff] %v10212_v26  ;;  %v2537_v28 = vpop.xlane.xlu1 %2536  ;;  %v2534_v13 = vpop.xlane.xlu0 %2533  ;;  %v3012_v60 = vmul.f32 %v6337_v45, %v15125_v0  ;;  %v15126_v26 = vld [vmem:[#allocation61_spill] sm:$0xff]  ;;  %v3015_v33 = vmul.f32 %v6342_v10, %v15131_v16  ;;  %v15133_v45 = vld [vmem:[#allocation62_spill] sm:$0xff] }
 0x307   :  { %v10219_v59 = vmax.f32 %v15121_v1, %v2537_v28  ;;  %v10222_v19 = vadd.f32 %v2537_v28, %v15123_v43  ;;  %v15128_v7 = vmax.f32 %v15126_v26, %v15127_v62  ;;  %v10232_v27 = vadd.f32 %v2534_v13, %v15130_v14  ;;  %v15132_v43 = vld [vmem:[#allocation30_spill] sm:$0xff]  ;;  %v15137_v26 = vld [vmem:[#allocation84_spill] sm:$0xff]  ;;  %v7069_v62 = vld [vmem:[#allocation5 + $0x6f8] sm:$0xff]  }
 0x308   :  { %v3079_v28 = vsel %vm200_vm0, %v3013_v2, 0.0  ;;  %v3014_v30 = vmul.f32 %v6341_v8, %v15132_v43  ;;  %v15139_v2 = vmax.f32 %v15019_v18, %v9924_v55  ;;  %v15141_v8 = vld [vmem:[#allocation96_spill] sm:$0xff]  ;;  %v15146_v55 = vld [vmem:[#allocation85_spill] sm:$0xff] }
 0x309   :  { %15122 = vst [vmem:[#allocation57_spill] sm:$0xff] %v10219_v59  ;;  %15124 = vst [vmem:[#allocation54_spill] sm:$0xff] %v10222_v19  ;;  %v10229_v39 = vmax.f32 %v15128_v7, %v2534_v13  ;;  %3074 = vadd.xlane.f32.xlu1 %v3073_v40  ;;  %3071 = vadd.xlane.f32.xlu0 %v3070_v52  ;;  %v6346_v19 = vunpack.c.h.bf16 %v7068_v11  ;;  %v15134_v59 = vld [vmem:[#allocation50_spill] sm:$0xff]  ;;  %v3076_v40 = vsel %vm200_vm0, %v3012_v60, 0.0  ;;  %v6345_v52 = vunpack.c.l.bf16 %v7068_v11  ;;  %v15143_v11 = vld [vmem:[#allocation107_spill] sm:$0xff] }
 0x30a   :  { %v2543_v1 = vpop.xlane.xlu1 %2542  ;;  %v15135_v0 = vmax.f32 %v15133_v45, %v15134_v59  ;;  %v2540_v13 = vpop.xlane.xlu0 %2539  ;;  %v6350_v60 = vunpack.c.h.bf16 %v7069_v62 }
 0x30b   :  { %15129 = vst [vmem:[#allocation80_spill] sm:$0xff] %v10229_v39  ;;  %v10243_v7 = vadd.f32 %v2543_v1, %v15137_v26  ;;  %v10249_v10 = vmax.f32 %v15139_v2, %v2540_v13  ;;  %v10252_v14 = vadd.f32 %v2540_v13, %v15141_v8  ;;  %v3017_v45 = vmul.f32 %v6346_v19, %v15023_v15  ;;  %v15148_v2 = vld [vmem:[#allocation32_spill] sm:$0xff]  ;;  %v15153_v19 = vld [vmem:[#allocation55_spill] sm:$0xff] }
 0x30c   :  { %v10240_v41 = vmax.f32 %v15135_v0, %v2543_v1  ;;  %v3085_v0 = vsel %vm200_vm0, %v3015_v33, 0.0  ;;  %v3082_v1 = vsel %vm200_vm0, %v3014_v30, 0.0  ;;  %v15144_v26 = vmax.f32 %v15025_v31, %v15143_v11  ;;  %v7070_v8 = vld [vmem:[#allocation5 + $0x830] sm:$0xff]   ;;  %v15150_v33 = vld [vmem:[#allocation93_spill] sm:$0xff] }
 0x30d   :  { %15138 = vst [vmem:[#allocation70_spill] sm:$0xff] %v10243_v7  ;;  %15140 = vst [vmem:[#allocation81_spill] sm:$0xff] %v10249_v10  ;;  %3080 = vadd.xlane.f32.xlu1 %v3079_v28  ;;  %3077 = vadd.xlane.f32.xlu0 %v3076_v40  ;;  %v3016_v28 = vmul.f32 %v6345_v52, %v15148_v2  ;;  %v6349_v40 = vunpack.c.l.bf16 %v7069_v62  ;;  %v3091_v11 = vsel %vm200_vm0, %v3017_v45, 0.0  ;;  %v15156_v52 = vld [vmem:[#allocation65_spill] sm:$0xff]  ;;  %v15157_v62 = vld [vmem:[#allocation86_spill] sm:$0xff] }
 0x30e   :  { %15136 = vst [vmem:[#allocation87_spill] sm:$0xff] %v10240_v41  ;;  %15142 = vst [vmem:[#allocation88_spill] sm:$0xff] %v10252_v14  ;;  %v2549_v59 = vpop.xlane.xlu1 %2548  ;;  %v2546_v13 = vpop.xlane.xlu0 %2545  ;;  %v15149_v14 = vld [vmem:[#allocation48_spill] sm:$0xff]  ;;  %v15158_v2 = vmax.f32 %v15156_v52, %v15157_v62  ;;  %v15167_v52 = vld [vmem:[#allocation35_spill] sm:$0xff] }
 0x30f   :  { %v10260_v43 = vmax.f32 %v15144_v26, %v2549_v59  ;;  %v10263_v18 = vadd.f32 %v2549_v59, %v15146_v55  ;;  %v15151_v10 = vmax.f32 %v15149_v14, %v15150_v33  ;;  %v10272_v15 = vadd.f32 %v2546_v13, %v15153_v19  ;;  %v15155_v59 = vld [vmem:[#allocation33_spill] sm:$0xff]  ;;  %v15160_v14 = vld [vmem:[#allocation51_spill] sm:$0xff]  ;;  %v15164_v45 = vld [vmem:[#allocation68_spill] sm:$0xff] }
 0x310   :  { %v3019_v26 = vmul.f32 %v6350_v60, %v15155_v59  ;;  %v6354_v55 = vunpack.c.h.bf16 %v7070_v8  ;;  %v7071_v19 = vld [vmem:[#allocation5 + $0x838] sm:$0xff]   ;;  %v15271_v57 = vld [vmem:[#allocation54_spill] sm:$0xff] }
 0x311   :  { %15145 = vst [vmem:[#allocation61_spill] sm:$0xff] %v10260_v43  ;;  %15147 = vst [vmem:[#allocation60_spill] sm:$0xff] %v10263_v18  ;;  %v10269_v30 = vmax.f32 %v15151_v10, %v2546_v13  ;;  %3086 = vadd.xlane.f32.xlu1 %v3085_v0  ;;  %3083 = vadd.xlane.f32.xlu0 %v3082_v1  ;;  %v6353_v18 = vunpack.c.l.bf16 %v7070_v8  ;;  %v3088_v13 = vsel %vm200_vm0, %v3016_v28, 0.0  ;;  %v15162_v0 = vld [vmem:[#allocation34_spill] sm:$0xff]  ;;  %v15166_v8 = vld [vmem:[#allocation52_spill] sm:$0xff] }
 0x312   :  { %15154 = vst [vmem:[#allocation62_spill] sm:$0xff] %v10272_v15  ;;  %v2555_v31 = vpop.xlane.xlu1 %2554  ;;  %v2552_v33 = vpop.xlane.xlu0 %2551  ;;  %v3018_v1 = vmul.f32 %v6349_v40, %v15162_v0  ;;  %v15163_v15 = vld [vmem:[#allocation78_spill] sm:$0xff]  ;;  %v3021_v62 = vmul.f32 %v6354_v55, %v15167_v52  ;;  %v15169_v40 = vld [vmem:[#allocation69_spill] sm:$0xff] }
 0x313   :  { %15152 = vst [vmem:[#allocation82_spill] sm:$0xff] %v10269_v30  ;;  %v10279_v43 = vmax.f32 %v15158_v2, %v2555_v31  ;;  %v10282_v10 = vadd.f32 %v2555_v31, %v15160_v14  ;;  %v15165_v30 = vmax.f32 %v15163_v15, %v15164_v45  ;;  %v10292_v59 = vadd.f32 %v2552_v33, %v15166_v8  ;;  %v15168_v14 = vld [vmem:[#allocation36_spill] sm:$0xff] }
 0x314   :  { %v3097_v31 = vsel %vm200_vm0, %v3019_v26, 0.0  ;;  %v3020_v28 = vmul.f32 %v6353_v18, %v15168_v14  ;;  %v15172_v15 = vld [vmem:[#allocation56_spill] sm:$0xff]  ;;  %v15173_v26 = vmax.f32 %v15044_v48, %v9984_v42  ;;  %v15174_v18 = vld [vmem:[#allocation58_spill] sm:$0xff] }
 0x315   :  { %15159 = vst [vmem:[#allocation50_spill] sm:$0xff] %v10279_v43  ;;  %15161 = vst [vmem:[#allocation84_spill] sm:$0xff] %v10282_v10  ;;  %v10289_v60 = vmax.f32 %v15165_v30, %v2552_v33  ;;  %3092 = vadd.xlane.f32.xlu1 %v3091_v11  ;;  %3089 = vadd.xlane.f32.xlu0 %v3088_v13  ;;  %v6358_v10 = vunpack.c.h.bf16 %v7071_v19  ;;  %v15170_v43 = vld [vmem:[#allocation109_spill] sm:$0xff]  ;;  %v3094_v11 = vsel %vm200_vm0, %v3018_v1, 0.0  ;;  %v6357_v13 = vunpack.c.l.bf16 %v7071_v19  ;;  %v7072_v45 = vld [vmem:[#allocation5 + $0x970] sm:$0xff]  }
 0x316   :  { %v2561_v2 = vpop.xlane.xlu1 %2560  ;;  %v15171_v0 = vmax.f32 %v15169_v40, %v15170_v43  ;;  %v2558_v33 = vpop.xlane.xlu0 %2557  ;;  %v6362_v1 = vunpack.c.h.bf16 %v7072_v45  ;;  %v15175_v19 = vmax.f32 %v15049_v53, %v9994_v56 }
 0x317   :  { %v10303_v30 = vadd.f32 %v2561_v2, %v15172_v15  ;;  %v10309_v55 = vmax.f32 %v15173_v26, %v2558_v33  ;;  %v10312_v8 = vadd.f32 %v2558_v33, %v15174_v18  ;;  %v3023_v40 = vmul.f32 %v6358_v10, %v15047_v25  ;;  %v15177_v33 = vld [vmem:[#allocation38_spill] sm:$0xff]  ;;  %v7073_v26 = vld [vmem:[#allocation5 + $0x978] sm:$0xff]   ;;  %v15179_v10 = vld [vmem:[#allocation44_spill] sm:$0xff] }
 0x318   :  { %v10300_v7 = vmax.f32 %v15171_v0, %v2561_v2  ;;  %v3103_v0 = vsel %vm200_vm0, %v3021_v62, 0.0  ;;  %v3100_v2 = vsel %vm200_vm0, %v3020_v28, 0.0  ;;  %v15178_v62 = vmax.f32 %v9689_v46, %v10005_v29  ;;  %v15184_v46 = vld [vmem:[#allocation91_spill] sm:$0xff] }
 0x319   :  { %3098 = vadd.xlane.f32.xlu1 %v3097_v31  ;;  %3095 = vadd.xlane.f32.xlu0 %v3094_v11  ;;  %v3022_v31 = vmul.f32 %v6357_v13, %v15177_v33  ;;  %v6361_v11 = vunpack.c.l.bf16 %v7072_v45  ;;  %v3109_v53 = vsel %vm200_vm0, %v3023_v40, 0.0  ;;  %v15181_v13 = vld [vmem:[#allocation59_spill] sm:$0xff] }
 0x31a   :  { %v2567_v43 = vpop.xlane.xlu1 %2566  ;;  %v2564_v48 = vpop.xlane.xlu0 %2563  ;;  %v15182_v45 = vmax.f32 %v9700_v17, %v15181_v13  ;;  %v15189_v13 = vld [vmem:[#allocation41_spill] sm:$0xff] }
 0x31b   :  { %v10320_v15 = vmax.f32 %v15175_v19, %v2567_v43  ;;  %v10323_v42 = vadd.f32 %v2567_v43, %v10003_v47  ;;  %v10329_v28 = vmax.f32 %v15178_v62, %v2564_v48  ;;  %v10332_v18 = vadd.f32 %v2564_v48, %v15179_v10  ;;  %v15186_v10 = vld [vmem:[#allocation99_spill] sm:$0xff] }
 0x31c   :  { %v3025_v47 = vmul.f32 %v6362_v1, %v14928_v49  ;;  %v6366_v43 = vunpack.c.h.bf16 %v7073_v26  ;;  %v6365_v19 = vunpack.c.l.bf16 %v7073_v26  ;;  %v3106_v48 = vsel %vm200_vm0, %v3022_v31, 0.0  ;;  %v15188_v26 = vld [vmem:[#allocation47_spill] sm:$0xff] }
 0x31d   :  { %15176 = vst [vmem:[#allocation96_spill] sm:$0xff] %v10320_v15  ;;  %15180 = vst [vmem:[#allocation107_spill] sm:$0xff] %v10332_v18  ;;  %3104 = vadd.xlane.f32.xlu1 %v3103_v0  ;;  %3101 = vadd.xlane.f32.xlu0 %v3100_v2  ;;  %v3024_v0 = vmul.f32 %v6361_v11, %v14929_v51  ;;  %v6368_v2 = vld [vmem:[#allocation5 + $0xc0] sm:$0xff]   ;;  %v15187_v40 = vmax.f32 %v15186_v10, %v10025_v22  ;;  %v15191_v11 = vld [vmem:[#allocation100_spill] sm:$0xff] }
 0x31e   :  { %v2573_v56 = vpop.xlane.xlu1 %2572  ;;  %v2570_v62 = vpop.xlane.xlu0 %2569  ;;  %v15194_v22 = vld [vmem:[#allocation53_spill] sm:$0xff]  ;;  %v15307_v15 = vld [vmem:[#allocation40_spill] sm:$0xff] }
 0x31f   :  { %v10339_v33 = vmax.f32 %v15182_v45, %v2573_v56  ;;  %v10342_v29 = vadd.f32 %v2573_v56, %v15184_v46  ;;  %v10349_v1 = vmax.f32 %v15187_v40, %v2570_v62  ;;  %v10352_v49 = vadd.f32 %v2570_v62, %v15188_v26  ;;  %v15190_v46 = vld [vmem:[#allocation42_spill] sm:$0xff]  ;;  %v7074_v40 = vld [vmem:[#allocation5 + $0xc8] sm:$0xff]  }
 0x320   :  { %v3115_v56 = vsel %vm200_vm0, %v3025_v47, 0.0  ;;  %v3027_v45 = vmul.f32 %v6366_v43, %v15189_v13  ;;  %v3026_v31 = vmul.f32 %v6365_v19, %v15190_v46  ;;  %v15195_v47 = vmax.f32 %v9729_v3, %v10044_v54  ;;  %v15196_v19 = vld [vmem:[#allocation94_spill] sm:$0xff] }
 0x321   :  { %15183 = vst [vmem:[#allocation85_spill] sm:$0xff] %v10339_v33  ;;  %15185 = vst [vmem:[#allocation48_spill] sm:$0xff] %v10342_v29  ;;  %3110 = vadd.xlane.f32.xlu1 %v3109_v53  ;;  %3107 = vadd.xlane.f32.xlu0 %v3106_v48  ;;  %v6370_v29 = vunpack.c.h.bf16 %v6368_v2  ;;  %v15192_v33 = vld [vmem:[#allocation63_spill] sm:$0xff]  ;;  %v3112_v53 = vsel %vm200_vm0, %v3024_v0, 0.0  ;;  %v6369_v48 = vunpack.c.l.bf16 %v6368_v2  ;;  %v6374_v0 = vunpack.c.h.bf16 %v7074_v40 }
 0x322   :  { %v2579_v17 = vpop.xlane.xlu1 %2578  ;;  %v15193_v51 = vmax.f32 %v15191_v11, %v15192_v33  ;;  %v2576_v62 = vpop.xlane.xlu0 %2575  ;;  %v3121_v33 = vsel %vm200_vm0, %v3027_v45, 0.0  ;;  %v15197_v2 = vmax.f32 %v15062_v5, %v10054_v44  ;;  %v15200_v45 = vmax.f32 %v9749_v23, %v10065_v58  ;;  %v15206_v23 = vld [vmem:[#allocation67_spill] sm:$0xff] }
 0x323   :  { %v10363_v10 = vadd.f32 %v2579_v17, %v15194_v22  ;;  %v10369_v43 = vmax.f32 %v15195_v47, %v2576_v62  ;;  %v10372_v26 = vadd.f32 %v2576_v62, %v15196_v19  ;;  %v3254_v11 = vmul.f32 %v6370_v29, %v15060_v34  ;;  %v15199_v62 = vld [vmem:[#allocation12_spill] sm:$0xff]  ;;  %v7075_v47 = vld [vmem:[#allocation5 + $0x200] sm:$0xff]   ;;  %v15201_v29 = vld [vmem:[#allocation95_spill] sm:$0xff] }
 0x324   :  { %v10360_v18 = vmax.f32 %v15193_v51, %v2579_v17  ;;  %v3118_v17 = vsel %vm200_vm0, %v3026_v31, 0.0 }
 0x325   :  { %3116 = vadd.xlane.f32.xlu1 %v3115_v56  ;;  %3113 = vadd.xlane.f32.xlu0 %v3112_v53  ;;  %v3253_v56 = vmul.f32 %v6369_v48, %v15199_v62  ;;  %v6373_v53 = vunpack.c.l.bf16 %v7074_v40  ;;  %v3288_v5 = vsel %vm200_vm0, %v3254_v11, 0.0  ;;  %v15203_v48 = vld [vmem:[#allocation72_spill] sm:$0xff] }
 0x326   :  { %v2585_v51 = vpop.xlane.xlu1 %2584  ;;  %v2582_v3 = vpop.xlane.xlu0 %2581  ;;  %v15204_v40 = vmax.f32 %v9760_v63, %v15203_v48 }
 0x327   :  { %v10380_v22 = vmax.f32 %v15197_v2, %v2585_v51  ;;  %v10383_v54 = vadd.f32 %v2585_v51, %v10063_v50  ;;  %v10389_v31 = vmax.f32 %v15200_v45, %v2582_v3  ;;  %v10392_v19 = vadd.f32 %v2582_v3, %v15201_v29  ;;  %v7076_v29 = vld [vmem:[#allocation5 + $0x208] sm:$0xff]  }
 0x328   :  { %v3256_v50 = vmul.f32 %v6374_v0, %v14809_v6  ;;  %v6378_v51 = vunpack.c.h.bf16 %v7075_v47  ;;  %v6377_v2 = vunpack.c.l.bf16 %v7075_v47  ;;  %v3285_v3 = vsel %vm200_vm0, %v3253_v56, 0.0  ;;  %v15211_v47 = vld [vmem:[#allocation66_spill] sm:$0xff] }
 0x329   :  { %15198 = vst [vmem:[#allocation93_spill] sm:$0xff] %v10380_v22  ;;  %15202 = vst [vmem:[#allocation55_spill] sm:$0xff] %v10392_v19  ;;  %3122 = vadd.xlane.f32.xlu1 %v3121_v33  ;;  %3119 = vadd.xlane.f32.xlu0 %v3118_v17  ;;  %v15208_v33 = vld [vmem:[#allocation11_spill] sm:$0xff]  ;;  %v15209_v19 = vld [vmem:[#allocation74_spill] sm:$0xff] }
 0x32a   :  { %v2591_v44 = vpop.xlane.xlu1 %2590  ;;  %v2588_v45 = vpop.xlane.xlu0 %2587  ;;  %v3255_v17 = vmul.f32 %v6373_v53, %v15208_v33  ;;  %v15210_v11 = vmax.f32 %v15209_v19, %v10085_v21  ;;  %v3258_v48 = vmul.f32 %v6378_v51, %v14814_v20  ;;  %v15213_v53 = vld [vmem:[#allocation75_spill] sm:$0xff]  ;;  %v15217_v21 = vld [vmem:[#allocation46_spill] sm:$0xff] }
 0x32b   :  { %v10399_v62 = vmax.f32 %v15204_v40, %v2591_v44  ;;  %v10402_v58 = vadd.f32 %v2591_v44, %v15206_v23  ;;  %v10412_v6 = vadd.f32 %v2588_v45, %v15211_v47  ;;  %v3294_v44 = vsel %vm200_vm0, %v3256_v50, 0.0  ;;  %v15212_v40 = vld [vmem:[#allocation16_spill] sm:$0xff]  ;;  %v15321_v22 = vld [vmem:[#allocation11_spill] sm:$0xff] }
 0x32c   :  { %v10409_v0 = vmax.f32 %v15210_v11, %v2588_v45  ;;  %v3257_v56 = vmul.f32 %v6377_v2, %v15212_v40  ;;  %v6382_v23 = vunpack.c.h.bf16 %v7076_v29  ;;  %v7077_v11 = vld [vmem:[#allocation5 + $0x340] sm:$0xff]   ;;  %v15218_v50 = vmax.f32 %v9789_v9, %v10104_v36  ;;  %v15220_v2 = vld [vmem:[#allocation97_spill] sm:$0xff] }
 0x32d   :  { %15205 = vst [vmem:[#allocation65_spill] sm:$0xff] %v10399_v62  ;;  %15207 = vst [vmem:[#allocation86_spill] sm:$0xff] %v10402_v58  ;;  %3289 = vadd.xlane.f32.xlu1 %v3288_v5  ;;  %3286 = vadd.xlane.f32.xlu0 %v3285_v3  ;;  %v15214_v58 = vld [vmem:[#allocation90_spill] sm:$0xff]  ;;  %v3291_v5 = vsel %vm200_vm0, %v3255_v17, 0.0  ;;  %v6381_v3 = vunpack.c.l.bf16 %v7076_v29  ;;  %v6386_v17 = vunpack.c.h.bf16 %v7077_v11  ;;  %v15222_v29 = vmax.f32 %v15075_v12, %v10114_v37  ;;  %v15224_v36 = vld [vmem:[#allocation49_spill] sm:$0xff] }
 0x32e   :  { %v2597_v63 = vpop.xlane.xlu1 %2596  ;;  %v15215_v62 = vmax.f32 %v15213_v53, %v15214_v58  ;;  %v2594_v45 = vpop.xlane.xlu0 %2593  ;;  %v3300_v58 = vsel %vm200_vm0, %v3258_v48, 0.0  ;;  %v3260_v53 = vmul.f32 %v6382_v23, %v14966_v4  ;;  %v15228_v48 = vld [vmem:[#allocation98_spill] sm:$0xff]  ;;  %v15231_v23 = vld [vmem:[#allocation45_spill] sm:$0xff] }
 0x32f   :  { %v10423_v19 = vadd.f32 %v2597_v63, %v15217_v21  ;;  %v10429_v51 = vmax.f32 %v15218_v50, %v2594_v45  ;;  %v10432_v47 = vadd.f32 %v2594_v45, %v15220_v2  ;;  %v15226_v50 = vld [vmem:[#allocation18_spill] sm:$0xff]  ;;  %v7078_v2 = vld [vmem:[#allocation5 + $0x348] sm:$0xff]  }
 0x330   :  { %v10420_v33 = vmax.f32 %v15215_v62, %v2597_v63  ;;  %v3297_v63 = vsel %vm200_vm0, %v3257_v56, 0.0  ;;  %v3306_v12 = vsel %vm200_vm0, %v3260_v53, 0.0  ;;  %v15242_v53 = vld [vmem:[#allocation83_spill] sm:$0xff] }
 0x331   :  { %15219 = vst [vmem:[#allocation78_spill] sm:$0xff] %v10429_v51  ;;  %15221 = vst [vmem:[#allocation68_spill] sm:$0xff] %v10432_v47  ;;  %3295 = vadd.xlane.f32.xlu1 %v3294_v44  ;;  %3292 = vadd.xlane.f32.xlu0 %v3291_v5  ;;  %v3259_v44 = vmul.f32 %v6381_v3, %v15226_v50  ;;  %v6385_v5 = vunpack.c.l.bf16 %v7077_v11  ;;  %v15227_v47 = vld [vmem:[#allocation106_spill] sm:$0xff]  ;;  %v15234_v3 = vld [vmem:[#allocation77_spill] sm:$0xff] }
 0x332   :  { %15216 = vst [vmem:[#allocation51_spill] sm:$0xff] %v10420_v33  ;;  %v2603_v62 = vpop.xlane.xlu1 %2602  ;;  %v2600_v45 = vpop.xlane.xlu0 %2599  ;;  %v15229_v51 = vmax.f32 %v15227_v47, %v15228_v48  ;;  %v15235_v11 = vld [vmem:[#allocation71_spill] sm:$0xff]  ;;  %v15238_v47 = vld [vmem:[#allocation105_spill] sm:$0xff] }
 0x333   :  { %v10440_v21 = vmax.f32 %v15222_v29, %v2603_v62  ;;  %v10443_v9 = vadd.f32 %v2603_v62, %v15224_v36  ;;  %v10452_v4 = vadd.f32 %v2600_v45, %v15231_v23  ;;  %v15233_v62 = vld [vmem:[#allocation19_spill] sm:$0xff]  ;;  %v6390_v36 = vunpack.c.h.bf16 %v7078_v2  ;;  %v7079_v23 = vld [vmem:[#allocation5 + $0x480] sm:$0xff]  }
 0x334   :  { %v10449_v56 = vmax.f32 %v15229_v51, %v2600_v45  ;;  %v3262_v29 = vmul.f32 %v6386_v17, %v15233_v62  ;;  %v15236_v50 = vmax.f32 %v15234_v3, %v15235_v11  ;;  %v3303_v45 = vsel %vm200_vm0, %v3259_v44, 0.0  ;;  %v15246_v3 = vld [vmem:[#allocation21_spill] sm:$0xff]  ;;  %v15247_v44 = vld [vmem:[#allocation22_spill] sm:$0xff] }
 0x335   :  { %15223 = vst [vmem:[#allocation52_spill] sm:$0xff] %v10440_v21  ;;  %15225 = vst [vmem:[#allocation69_spill] sm:$0xff] %v10443_v9  ;;  %3301 = vadd.xlane.f32.xlu1 %v3300_v58  ;;  %3298 = vadd.xlane.f32.xlu0 %v3297_v63  ;;  %v6389_v9 = vunpack.c.l.bf16 %v7078_v2  ;;  %v15240_v58 = vld [vmem:[#allocation20_spill] sm:$0xff]  ;;  %v3264_v11 = vmul.f32 %v6390_v36, %v15246_v3 }
 0x336   :  { %15230 = vst [vmem:[#allocation109_spill] sm:$0xff] %v10449_v56  ;;  %15232 = vst [vmem:[#allocation56_spill] sm:$0xff] %v10452_v4  ;;  %v2609_v37 = vpop.xlane.xlu1 %2608  ;;  %v2606_v48 = vpop.xlane.xlu0 %2605  ;;  %v3261_v63 = vmul.f32 %v6385_v5, %v15240_v58  ;;  %v15241_v4 = vld [vmem:[#allocation43_spill] sm:$0xff]  ;;  %v15245_v2 = vld [vmem:[#allocation76_spill] sm:$0xff]  ;;  %v6394_v5 = vunpack.c.h.bf16 %v7079_v23 }
 0x337   :  { %v10459_v21 = vmax.f32 %v15236_v50, %v2609_v37  ;;  %v10462_v51 = vadd.f32 %v2609_v37, %v15238_v47  ;;  %v15243_v56 = vmax.f32 %v15241_v4, %v15242_v53  ;;  %v10472_v62 = vadd.f32 %v2606_v48, %v15245_v2  ;;  %v15249_v4 = vld [vmem:[#allocation89_spill] sm:$0xff]  ;;  %v7080_v53 = vld [vmem:[#allocation5 + $0x488] sm:$0xff]  }
 0x338   :  { %v3312_v37 = vsel %vm200_vm0, %v3262_v29, 0.0  ;;  %v3263_v47 = vmul.f32 %v6389_v9, %v15247_v44  ;;  %v3318_v2 = vsel %vm200_vm0, %v3264_v11, 0.0 }
 0x339   :  { %15237 = vst [vmem:[#allocation58_spill] sm:$0xff] %v10459_v21  ;;  %15239 = vst [vmem:[#allocation44_spill] sm:$0xff] %v10462_v51  ;;  %v10469_v17 = vmax.f32 %v15243_v56, %v2606_v48  ;;  %3307 = vadd.xlane.f32.xlu1 %v3306_v12  ;;  %3304 = vadd.xlane.f32.xlu0 %v3303_v45  ;;  %v15248_v51 = vld [vmem:[#allocation101_spill] sm:$0xff]  ;;  %v3309_v12 = vsel %vm200_vm0, %v3261_v63, 0.0  ;;  %v6393_v45 = vunpack.c.l.bf16 %v7079_v23  ;;  %v6398_v63 = vunpack.c.h.bf16 %v7080_v53 }
 0x33a   :  { %v10474_v50 = vpop.xlane.xlu1 %2775  ;;  %v10485_v48 = vpop.xlane.xlu0 %2772  ;;  %v3266_v21 = vmul.f32 %v6394_v5, %v15097_v32 }
 0x33b   :  { %15244 = vst [vmem:[#allocation59_spill] sm:$0xff] %v10469_v17  ;;  %v10483_v56 = vadd.f32 %v10474_v50, %v15249_v4  ;;  %15250 = vst [vmem:[#allocation91_spill] sm:$0xff] %v10485_v48  ;;  %v10492_v9 = vadd.f32 %v10485_v48, %v10172_v61  ;;  %v3315_v4 = vsel %vm200_vm0, %v3263_v47, 0.0  ;;  %v15256_v47 = vld [vmem:[#allocation103_spill] sm:$0xff] }
 0x33d   :  { %15251 = vst [vmem:[#allocation99_spill] sm:$0xff] %v10492_v9  ;;  %3313 = vadd.xlane.f32.xlu1 %v3312_v37  ;;  %3310 = vadd.xlane.f32.xlu0 %v3309_v12  ;;  %v3265_v37 = vmul.f32 %v6393_v45, %v15098_v38  ;;  %v6397_v12 = vunpack.c.l.bf16 %v7080_v53  ;;  %v7081_v9 = vld [vmem:[#allocation5 + $0x5c0] sm:$0xff]   ;;  %v15261_v38 = vld [vmem:[#allocation73_spill] sm:$0xff]  ;;  %v15269_v45 = vld [vmem:[#allocation28_spill] sm:$0xff] }
 0x33e   :  { %v10494_v36 = vpop.xlane.xlu1 %2781  ;;  %v10505_v61 = vpop.xlane.xlu0 %2778  ;;  %v6402_v35 = vunpack.c.h.bf16 %v7081_v9  ;;  %v6401_v32 = vunpack.c.l.bf16 %v7081_v9 }
 0x33f   :  { %15252 = vst [vmem:[#allocation47_spill] sm:$0xff] %v10494_v36  ;;  %v10503_v29 = vadd.f32 %v10494_v36, %v10183_v24  ;;  %15254 = vst [vmem:[#allocation63_spill] sm:$0xff] %v10505_v61  ;;  %v10512_v5 = vadd.f32 %v10505_v61, %v15256_v47  ;;  %v3324_v24 = vsel %vm200_vm0, %v3266_v21, 0.0  ;;  %v15264_v21 = vld [vmem:[#allocation79_spill] sm:$0xff] }
 0x341   :  { %15253 = vst [vmem:[#allocation100_spill] sm:$0xff] %v10503_v29  ;;  %15257 = vst [vmem:[#allocation53_spill] sm:$0xff] %v10512_v5  ;;  %3319 = vadd.xlane.f32.xlu1 %v3318_v2  ;;  %3316 = vadd.xlane.f32.xlu0 %v3315_v4  ;;  %v15259_v29 = vld [vmem:[#allocation25_spill] sm:$0xff]  ;;  %v3321_v2 = vsel %vm200_vm0, %v3265_v37, 0.0  ;;  %v15263_v4 = vld [vmem:[#allocation26_spill] sm:$0xff]  ;;  %v3269_v37 = vmul.f32 %v6401_v32, %v15269_v45 }
 0x342   :  { %v10514_v23 = vpop.xlane.xlu1 %2787  ;;  %v3268_v36 = vmul.f32 %v6398_v63, %v15259_v29  ;;  %v10524_v11 = vpop.xlane.xlu0 %2784  ;;  %v3267_v47 = vmul.f32 %v6397_v12, %v15263_v4  ;;  %v7082_v5 = vld [vmem:[#allocation5 + $0x5c8] sm:$0xff]   ;;  %v15265_v63 = vld [vmem:[#allocation64_spill] sm:$0xff]  ;;  %v15270_v12 = vld [vmem:[#allocation57_spill] sm:$0xff] }
 0x343   :  { %15258 = vst [vmem:[#allocation94_spill] sm:$0xff] %v10514_v23  ;;  %v10522_v48 = vadd.f32 %v10514_v23, %v15261_v38  ;;  %v10532_v9 = vadd.f32 %v10524_v11, %v15265_v63  ;;  %v6406_v29 = vunpack.c.h.bf16 %v7082_v5  ;;  %v3333_v4 = vsel %vm200_vm0, %v3269_v37, 0.0  ;;  %v15281_v37 = vld [vmem:[#allocation88_spill] sm:$0xff] }
 0x344   :  { %v3330_v38 = vsel %vm200_vm0, %v3268_v36, 0.0 }
 0x345   :  { %15262 = vst [vmem:[#allocation95_spill] sm:$0xff] %v10522_v48  ;;  %15266 = vst [vmem:[#allocation72_spill] sm:$0xff] %v10532_v9  ;;  %3325 = vadd.xlane.f32.xlu1 %v3324_v24  ;;  %3322 = vadd.xlane.f32.xlu0 %v3321_v2  ;;  %v15268_v48 = vld [vmem:[#allocation27_spill] sm:$0xff]  ;;  %v3327_v24 = vsel %vm200_vm0, %v3267_v47, 0.0  ;;  %v6405_v2 = vunpack.c.l.bf16 %v7082_v5  ;;  %v7083_v9 = vld [vmem:[#allocation5 + $0x700] sm:$0xff]   ;;  %v3272_v45 = vmul.f32 %v6406_v29, %v15131_v16 }
 0x346   :  { %v10534_v53 = vpop.xlane.xlu1 %2793  ;;  %v3270_v23 = vmul.f32 %v6402_v35, %v15268_v48  ;;  %v10545_v63 = vpop.xlane.xlu0 %2790  ;;  %v6410_v47 = vunpack.c.h.bf16 %v7083_v9 }
 0x347   :  { %15267 = vst [vmem:[#allocation67_spill] sm:$0xff] %v10534_v53  ;;  %v10543_v61 = vadd.f32 %v10534_v53, %v15271_v57  ;;  %15273 = vst [vmem:[#allocation66_spill] sm:$0xff] %v10545_v63  ;;  %v10552_v35 = vadd.f32 %v10545_v63, %v10232_v27  ;;  %v7084_v63 = vld [vmem:[#allocation5 + $0x708] sm:$0xff]   ;;  %v15295_v53 = vld [vmem:[#allocation84_spill] sm:$0xff] }
 0x348   :  { %v3336_v57 = vsel %vm200_vm0, %v3270_v23, 0.0  ;;  %v6414_v41 = vunpack.c.h.bf16 %v7084_v63  ;;  %v6413_v16 = vunpack.c.l.bf16 %v7084_v63 }
 0x349   :  { %15272 = vst [vmem:[#allocation74_spill] sm:$0xff] %v10543_v61  ;;  %15274 = vst [vmem:[#allocation75_spill] sm:$0xff] %v10552_v35  ;;  %3331 = vadd.xlane.f32.xlu1 %v3330_v38  ;;  %3328 = vadd.xlane.f32.xlu0 %v3327_v24  ;;  %v15276_v61 = vld [vmem:[#allocation70_spill] sm:$0xff]  ;;  %v6409_v35 = vunpack.c.l.bf16 %v7083_v9 }
 0x34a   :  { %v10554_v32 = vpop.xlane.xlu1 %2799  ;;  %v10565_v27 = vpop.xlane.xlu0 %2796  ;;  %v15279_v38 = vld [vmem:[#allocation30_spill] sm:$0xff] }
 0x34b   :  { %15275 = vst [vmem:[#allocation90_spill] sm:$0xff] %v10554_v32  ;;  %v10563_v36 = vadd.f32 %v10554_v32, %v15276_v61  ;;  %15278 = vst [vmem:[#allocation97_spill] sm:$0xff] %v10565_v27  ;;  %v3271_v24 = vmul.f32 %v6405_v2, %v15279_v38  ;;  %v10572_v29 = vadd.f32 %v10565_v27, %v15281_v37  ;;  %v3342_v61 = vsel %vm200_vm0, %v3272_v45, 0.0  ;;  %v15286_v38 = vld [vmem:[#allocation60_spill] sm:$0xff]  ;;  %v15289_v45 = vld [vmem:[#allocation82_spill] sm:$0xff] }
 0x34c   :  { %v15293_v9 = vld [vmem:[#allocation34_spill] sm:$0xff] }
 0x34d   :  { %15277 = vst [vmem:[#allocation46_spill] sm:$0xff] %v10563_v36  ;;  %15282 = vst [vmem:[#allocation49_spill] sm:$0xff] %v10572_v29  ;;  %3337 = vadd.xlane.f32.xlu1 %v3336_v57  ;;  %3334 = vadd.xlane.f32.xlu0 %v3333_v4  ;;  %v15284_v36 = vld [vmem:[#allocation31_spill] sm:$0xff]  ;;  %v3339_v57 = vsel %vm200_vm0, %v3271_v24, 0.0  ;;  %v15288_v4 = vld [vmem:[#allocation32_spill] sm:$0xff]  ;;  %v3275_v24 = vmul.f32 %v6413_v16, %v15293_v9 }
 0x34e   :  { %v10574_v5 = vpop.xlane.xlu1 %2805  ;;  %v3274_v32 = vmul.f32 %v6410_v47, %v15284_v36  ;;  %v10584_v23 = vpop.xlane.xlu0 %2802  ;;  %v3273_v37 = vmul.f32 %v6409_v35, %v15288_v4  ;;  %v7085_v29 = vld [vmem:[#allocation5 + $0x840] sm:$0xff]  }
 0x34f   :  { %15283 = vst [vmem:[#allocation106_spill] sm:$0xff] %v10574_v5  ;;  %v10582_v39 = vadd.f32 %v10574_v5, %v15286_v38  ;;  %v15290_v47 = vld [vmem:[#allocation62_spill] sm:$0xff]  ;;  %v6418_v36 = vunpack.c.h.bf16 %v7085_v29  ;;  %v3351_v4 = vsel %vm200_vm0, %v3275_v24, 0.0 }
 0x350   :  { %v10592_v63 = vadd.f32 %v10584_v23, %v15290_v47  ;;  %v3348_v38 = vsel %vm200_vm0, %v3274_v32, 0.0  ;;  %v15294_v35 = vld [vmem:[#allocation50_spill] sm:$0xff] }
 0x351   :  { %15287 = vst [vmem:[#allocation98_spill] sm:$0xff] %v10582_v39  ;;  %3343 = vadd.xlane.f32.xlu1 %v3342_v61  ;;  %3340 = vadd.xlane.f32.xlu0 %v3339_v57  ;;  %v15292_v39 = vld [vmem:[#allocation33_spill] sm:$0xff]  ;;  %v3345_v61 = vsel %vm200_vm0, %v3273_v37, 0.0  ;;  %v6417_v57 = vunpack.c.l.bf16 %v7085_v29  ;;  %v3278_v9 = vmul.f32 %v6418_v36, %v15167_v52 }
 0x352   :  { %15291 = vst [vmem:[#allocation45_spill] sm:$0xff] %v10592_v63  ;;  %v10594_v2 = vpop.xlane.xlu1 %2811  ;;  %v3276_v5 = vmul.f32 %v6414_v41, %v15292_v39  ;;  %v10605_v47 = vpop.xlane.xlu0 %2808  ;;  %v7086_v63 = vld [vmem:[#allocation5 + $0x848] sm:$0xff]  }
 0x353   :  { %v10603_v27 = vadd.f32 %v10594_v2, %v15295_v53  ;;  %v10612_v41 = vadd.f32 %v10605_v47, %v10292_v59  ;;  %v6422_v37 = vunpack.c.h.bf16 %v7086_v63 }
 0x354   :  { %v3354_v53 = vsel %vm200_vm0, %v3276_v5, 0.0 }
 0x355   :  { %15296 = vst [vmem:[#allocation77_spill] sm:$0xff] %v10612_v41  ;;  %3349 = vadd.xlane.f32.xlu1 %v3348_v38  ;;  %3346 = vadd.xlane.f32.xlu0 %v3345_v61  ;;  %v3277_v38 = vmul.f32 %v6417_v57, %v15168_v14  ;;  %v6421_v61 = vunpack.c.l.bf16 %v7086_v63  ;;  %v7087_v41 = vld [vmem:[#allocation5 + $0x980] sm:$0xff]   ;;  %v3280_v29 = vmul.f32 %v6422_v37, %v15047_v25  ;;  %v15304_v37 = vld [vmem:[#allocation107_spill] sm:$0xff] }
 0x356   :  { %v10614_v16 = vpop.xlane.xlu1 %2817  ;;  %v10625_v59 = vpop.xlane.xlu0 %2814 }
 0x357   :  { %15297 = vst [vmem:[#allocation71_spill] sm:$0xff] %v10614_v16  ;;  %v10623_v32 = vadd.f32 %v10614_v16, %v10303_v30  ;;  %15299 = vst [vmem:[#allocation43_spill] sm:$0xff] %v10625_v59  ;;  %v10632_v36 = vadd.f32 %v10625_v59, %v10312_v8  ;;  %v3360_v30 = vsel %vm200_vm0, %v3278_v9, 0.0  ;;  %v6425_v16 = vunpack.c.l.bf16 %v7087_v41  ;;  %v15309_v59 = vld [vmem:[#allocation48_spill] sm:$0xff] }
 0x358   :  { %v3357_v8 = vsel %vm200_vm0, %v3277_v38, 0.0 }
 0x359   :  { %15298 = vst [vmem:[#allocation105_spill] sm:$0xff] %v10623_v32  ;;  %15300 = vst [vmem:[#allocation83_spill] sm:$0xff] %v10632_v36  ;;  %3355 = vadd.xlane.f32.xlu1 %v3354_v53  ;;  %3352 = vadd.xlane.f32.xlu0 %v3351_v4  ;;  %v6426_v32 = vunpack.c.h.bf16 %v7087_v41  ;;  %v15303_v4 = vld [vmem:[#allocation38_spill] sm:$0xff]  ;;  %v7088_v36 = vld [vmem:[#allocation5 + $0x988] sm:$0xff]   ;;  %v3281_v38 = vmul.f32 %v6425_v16, %v15307_v15 }
 0x35a   :  { %v10634_v24 = vpop.xlane.xlu1 %2823  ;;  %v10644_v5 = vpop.xlane.xlu0 %2820  ;;  %v3279_v53 = vmul.f32 %v6421_v61, %v15303_v4  ;;  %v6430_v25 = vunpack.c.h.bf16 %v7088_v36  ;;  %v15308_v61 = vld [vmem:[#allocation85_spill] sm:$0xff] }
 0x35b   :  { %15301 = vst [vmem:[#allocation76_spill] sm:$0xff] %v10634_v24  ;;  %v10642_v57 = vadd.f32 %v10634_v24, %v10323_v42  ;;  %v10652_v41 = vadd.f32 %v10644_v5, %v15304_v37  ;;  %v3366_v42 = vsel %vm200_vm0, %v3280_v29, 0.0  ;;  %v3369_v4 = vsel %vm200_vm0, %v3281_v38, 0.0 }
 0x35c   :  { %v3284_v15 = vmul.f32 %v6430_v25, %v15189_v13 }
 0x35d   :  { %15302 = vst [vmem:[#allocation101_spill] sm:$0xff] %v10642_v57  ;;  %15305 = vst [vmem:[#allocation89_spill] sm:$0xff] %v10652_v41  ;;  %3361 = vadd.xlane.f32.xlu1 %v3360_v30  ;;  %3358 = vadd.xlane.f32.xlu0 %v3357_v8  ;;  %v15306_v57 = vld [vmem:[#allocation39_spill] sm:$0xff]  ;;  %v3363_v30 = vsel %vm200_vm0, %v3279_v53, 0.0  ;;  %v6429_v8 = vunpack.c.l.bf16 %v7088_v36  ;;  %v6432_v41 = vld [vmem:[#allocation5 + $0xd0] sm:$0xff]  }
 0x35e   :  { %v10654_v63 = vpop.xlane.xlu1 %2829  ;;  %v3282_v24 = vmul.f32 %v6426_v32, %v15306_v57  ;;  %v10665_v37 = vpop.xlane.xlu0 %2826  ;;  %v6434_v53 = vunpack.c.h.bf16 %v6432_v41 }
 0x35f   :  { %v10663_v9 = vadd.f32 %v10654_v63, %v15309_v59  ;;  %v10672_v32 = vadd.f32 %v10665_v37, %v10352_v49 }
 0x360   :  { %v3372_v59 = vsel %vm200_vm0, %v3282_v24, 0.0  ;;  %v3511_v36 = vmul.f32 %v6434_v53, %v15060_v34  ;;  %v15318_v53 = vld [vmem:[#allocation55_spill] sm:$0xff] }
 0x361   :  { %15310 = vst [vmem:[#allocation103_spill] sm:$0xff] %v10672_v32  ;;  %3367 = vadd.xlane.f32.xlu1 %v3366_v42  ;;  %3364 = vadd.xlane.f32.xlu0 %v3363_v30  ;;  %v3283_v42 = vmul.f32 %v6429_v8, %v15190_v46  ;;  %v6433_v30 = vunpack.c.l.bf16 %v6432_v41  ;;  %v7089_v32 = vld [vmem:[#allocation5 + $0xd8] sm:$0xff]  }
 0x362   :  { %v10674_v16 = vpop.xlane.xlu1 %2835  ;;  %v10685_v49 = vpop.xlane.xlu0 %2832 }
 0x363   :  { %15311 = vst [vmem:[#allocation73_spill] sm:$0xff] %v10674_v16  ;;  %v10683_v29 = vadd.f32 %v10674_v16, %v10363_v10  ;;  %15313 = vst [vmem:[#allocation64_spill] sm:$0xff] %v10685_v49  ;;  %v10692_v25 = vadd.f32 %v10685_v49, %v10372_v26  ;;  %v3378_v10 = vsel %vm200_vm0, %v3284_v15, 0.0  ;;  %v6437_v16 = vunpack.c.l.bf16 %v7089_v32  ;;  %v15323_v49 = vld [vmem:[#allocation86_spill] sm:$0xff] }
 0x364   :  { %v3375_v26 = vsel %vm200_vm0, %v3283_v42, 0.0 }
 0x365   :  { %15312 = vst [vmem:[#allocation79_spill] sm:$0xff] %v10683_v29  ;;  %15314 = vst [vmem:[#allocation57_spill] sm:$0xff] %v10692_v25  ;;  %3373 = vadd.xlane.f32.xlu1 %v3372_v59  ;;  %3370 = vadd.xlane.f32.xlu0 %v3369_v4  ;;  %v6438_v29 = vunpack.c.h.bf16 %v7089_v32  ;;  %v15317_v4 = vld [vmem:[#allocation12_spill] sm:$0xff]  ;;  %v3512_v42 = vmul.f32 %v6437_v16, %v15321_v22 }
 0x366   :  { %v10694_v38 = vpop.xlane.xlu1 %2841  ;;  %v10704_v24 = vpop.xlane.xlu0 %2838  ;;  %v3510_v59 = vmul.f32 %v6433_v30, %v15317_v4  ;;  %v7090_v25 = vld [vmem:[#allocation5 + $0x210] sm:$0xff]   ;;  %v15322_v30 = vld [vmem:[#allocation65_spill] sm:$0xff] }
 0x367   :  { %15315 = vst [vmem:[#allocation54_spill] sm:$0xff] %v10694_v38  ;;  %v10702_v8 = vadd.f32 %v10694_v38, %v10383_v54  ;;  %v10712_v32 = vadd.f32 %v10704_v24, %v15318_v53  ;;  %v3545_v54 = vsel %vm200_vm0, %v3511_v36, 0.0  ;;  %v6442_v34 = vunpack.c.h.bf16 %v7090_v25 }
 0x368   :  { %v3548_v4 = vsel %vm200_vm0, %v3512_v42, 0.0  ;;  %v15330_v42 = vld [vmem:[#allocation68_spill] sm:$0xff] }
 0x369   :  { %15316 = vst [vmem:[#allocation70_spill] sm:$0xff] %v10702_v8  ;;  %15319 = vst [vmem:[#allocation88_spill] sm:$0xff] %v10712_v32  ;;  %3379 = vadd.xlane.f32.xlu1 %v3378_v10  ;;  %3376 = vadd.xlane.f32.xlu0 %v3375_v26  ;;  %v15320_v8 = vld [vmem:[#allocation13_spill] sm:$0xff]  ;;  %v3542_v10 = vsel %vm200_vm0, %v3510_v59, 0.0  ;;  %v6441_v26 = vunpack.c.l.bf16 %v7090_v25  ;;  %v3515_v22 = vmul.f32 %v6442_v34, %v14814_v20 }
 0x36a   :  { %v10714_v41 = vpop.xlane.xlu1 %2847  ;;  %v3513_v38 = vmul.f32 %v6438_v29, %v15320_v8  ;;  %v10725_v53 = vpop.xlane.xlu0 %2844  ;;  %v7091_v32 = vld [vmem:[#allocation5 + $0x218] sm:$0xff]  }
 0x36b   :  { %v10723_v15 = vadd.f32 %v10714_v41, %v15323_v49  ;;  %15324 = vst [vmem:[#allocation60_spill] sm:$0xff] %v10725_v53  ;;  %v10732_v29 = vadd.f32 %v10725_v53, %v10412_v6  ;;  %v6446_v59 = vunpack.c.h.bf16 %v7091_v32 }
 0x36c   :  { %v3551_v49 = vsel %vm200_vm0, %v3513_v38, 0.0 }
 0x36d   :  { %15325 = vst [vmem:[#allocation82_spill] sm:$0xff] %v10732_v29  ;;  %3546 = vadd.xlane.f32.xlu1 %v3545_v54  ;;  %3543 = vadd.xlane.f32.xlu0 %v3542_v10  ;;  %v3514_v54 = vmul.f32 %v6441_v26, %v15212_v40  ;;  %v6445_v10 = vunpack.c.l.bf16 %v7091_v32  ;;  %v7092_v29 = vld [vmem:[#allocation5 + $0x350] sm:$0xff]   ;;  %v15335_v40 = vld [vmem:[#allocation69_spill] sm:$0xff] }
 0x36e   :  { %v10734_v16 = vpop.xlane.xlu1 %2853  ;;  %v10745_v6 = vpop.xlane.xlu0 %2850  ;;  %v6450_v33 = vunpack.c.h.bf16 %v7092_v29  ;;  %v6449_v20 = vunpack.c.l.bf16 %v7092_v29 }
 0x36f   :  { %15326 = vst [vmem:[#allocation62_spill] sm:$0xff] %v10734_v16  ;;  %v10743_v36 = vadd.f32 %v10734_v16, %v10423_v19  ;;  %15328 = vst [vmem:[#allocation84_spill] sm:$0xff] %v10745_v6  ;;  %v10752_v34 = vadd.f32 %v10745_v6, %v15330_v42  ;;  %v3557_v19 = vsel %vm200_vm0, %v3515_v22, 0.0  ;;  %v15338_v22 = vld [vmem:[#allocation109_spill] sm:$0xff] }
 0x371   :  { %15327 = vst [vmem:[#allocation50_spill] sm:$0xff] %v10743_v36  ;;  %15331 = vst [vmem:[#allocation107_spill] sm:$0xff] %v10752_v34  ;;  %3552 = vadd.xlane.f32.xlu1 %v3551_v49  ;;  %3549 = vadd.xlane.f32.xlu0 %v3548_v4  ;;  %v15333_v36 = vld [vmem:[#allocation17_spill] sm:$0xff]  ;;  %v3554_v49 = vsel %vm200_vm0, %v3514_v54, 0.0  ;;  %v15337_v4 = vld [vmem:[#allocation18_spill] sm:$0xff]  ;;  %v3518_v54 = vmul.f32 %v6449_v20, %v15240_v58 }
 0x372   :  { %v10754_v25 = vpop.xlane.xlu1 %2859  ;;  %v3517_v16 = vmul.f32 %v6446_v59, %v15333_v36  ;;  %v10764_v38 = vpop.xlane.xlu0 %2856  ;;  %v3516_v42 = vmul.f32 %v6445_v10, %v15337_v4  ;;  %v7093_v34 = vld [vmem:[#allocation5 + $0x358] sm:$0xff]   ;;  %v15339_v59 = vld [vmem:[#allocation56_spill] sm:$0xff]  ;;  %v15343_v10 = vld [vmem:[#allocation58_spill] sm:$0xff] }
 0x373   :  { %15332 = vst [vmem:[#allocation85_spill] sm:$0xff] %v10754_v25  ;;  %v10762_v53 = vadd.f32 %v10754_v25, %v15335_v40  ;;  %v10772_v29 = vadd.f32 %v10764_v38, %v15339_v59  ;;  %v6454_v32 = vunpack.c.h.bf16 %v7093_v34  ;;  %v15344_v36 = vld [vmem:[#allocation44_spill] sm:$0xff] }
 0x374   :  { %v3563_v40 = vsel %vm200_vm0, %v3517_v16, 0.0 }
 0x375   :  { %15336 = vst [vmem:[#allocation48_spill] sm:$0xff] %v10762_v53  ;;  %15340 = vst [vmem:[#allocation55_spill] sm:$0xff] %v10772_v29  ;;  %3558 = vadd.xlane.f32.xlu1 %v3557_v19  ;;  %3555 = vadd.xlane.f32.xlu0 %v3554_v49  ;;  %v15342_v53 = vld [vmem:[#allocation19_spill] sm:$0xff]  ;;  %v3560_v19 = vsel %vm200_vm0, %v3516_v42, 0.0  ;;  %v6453_v49 = vunpack.c.l.bf16 %v7093_v34  ;;  %v7094_v29 = vld [vmem:[#allocation5 + $0x490] sm:$0xff]   ;;  %v3521_v58 = vmul.f32 %v6454_v32, %v15246_v3 }
 0x376   :  { %v10774_v26 = vpop.xlane.xlu1 %2865  ;;  %v3519_v25 = vmul.f32 %v6450_v33, %v15342_v53  ;;  %v10785_v59 = vpop.xlane.xlu0 %2862  ;;  %v15348_v34 = vmax.f32 %v15248_v51, %v10474_v50  ;;  %v15355_v32 = vld [vmem:[#allocation99_spill] sm:$0xff] }
 0x377   :  { %15341 = vst [vmem:[#allocation65_spill] sm:$0xff] %v10774_v26  ;;  %v10783_v6 = vadd.f32 %v10774_v26, %v15344_v36  ;;  %15346 = vst [vmem:[#allocation68_spill] sm:$0xff] %v10785_v59  ;;  %v10792_v20 = vadd.f32 %v10785_v59, %v10472_v62  ;;  %v3566_v36 = vsel %vm200_vm0, %v3518_v54, 0.0  ;;  %v15351_v59 = vld [vmem:[#allocation92_spill] sm:$0xff]  ;;  %v3575_v50 = vsel %vm200_vm0, %v3521_v58, 0.0  ;;  %v15366_v58 = vld [vmem:[#allocation63_spill] sm:$0xff] }
 0x378   :  { %v3569_v4 = vsel %vm200_vm0, %v3519_v25, 0.0  ;;  %v15352_v25 = vld [vmem:[#allocation91_spill] sm:$0xff] }
 0x379   :  { %15345 = vst [vmem:[#allocation86_spill] sm:$0xff] %v10783_v6  ;;  %15347 = vst [vmem:[#allocation69_spill] sm:$0xff] %v10792_v20  ;;  %3564 = vadd.xlane.f32.xlu1 %v3563_v40  ;;  %3561 = vadd.xlane.f32.xlu0 %v3560_v19  ;;  %v6458_v6 = vunpack.c.h.bf16 %v7094_v29  ;;  %v3520_v40 = vmul.f32 %v6453_v49, %v15247_v44  ;;  %v6457_v19 = vunpack.c.l.bf16 %v7094_v29  ;;  %v7095_v20 = vld [vmem:[#allocation5 + $0x498] sm:$0xff]   ;;  %v15358_v49 = vld [vmem:[#allocation102_spill] sm:$0xff] }
 0x37a   :  { %v3033_v33 = vpop.xlane.xlu1 %3032  ;;  %v3030_v62 = vpop.xlane.xlu0 %3029  ;;  %v15353_v17 = vmax.f32 %v15351_v59, %v15352_v25  ;;  %v15359_v29 = vld [vmem:[#allocation47_spill] sm:$0xff]  ;;  %v15362_v59 = vld [vmem:[#allocation100_spill] sm:$0xff] }
 0x37b   :  { %v10800_v42 = vmax.f32 %v15348_v34, %v3033_v33  ;;  %v10803_v16 = vadd.f32 %v3033_v33, %v10483_v56  ;;  %v10812_v3 = vadd.f32 %v3030_v62, %v15355_v32  ;;  %v15357_v56 = vld [vmem:[#allocation23_spill] sm:$0xff]  ;;  %v6462_v34 = vunpack.c.h.bf16 %v7095_v20  ;;  %v7096_v32 = vld [vmem:[#allocation5 + $0x5d0] sm:$0xff]  }
 0x37c   :  { %v10809_v54 = vmax.f32 %v15353_v17, %v3030_v62  ;;  %v3523_v33 = vmul.f32 %v6458_v6, %v15357_v56  ;;  %v15360_v44 = vmax.f32 %v15358_v49, %v15359_v29  ;;  %v3572_v62 = vsel %vm200_vm0, %v3520_v40, 0.0  ;;  %v15370_v49 = vld [vmem:[#allocation25_spill] sm:$0xff] }
 0x37d   :  { %15349 = vst [vmem:[#allocation109_spill] sm:$0xff] %v10800_v42  ;;  %15350 = vst [vmem:[#allocation56_spill] sm:$0xff] %v10803_v16  ;;  %3570 = vadd.xlane.f32.xlu1 %v3569_v4  ;;  %3567 = vadd.xlane.f32.xlu0 %v3566_v36  ;;  %v6461_v16 = vunpack.c.l.bf16 %v7095_v20  ;;  %v15364_v4 = vld [vmem:[#allocation24_spill] sm:$0xff]  ;;  %v15369_v20 = vld [vmem:[#allocation53_spill] sm:$0xff]  ;;  %v3525_v29 = vmul.f32 %v6462_v34, %v15370_v49 }
 0x37e   :  { %15354 = vst [vmem:[#allocation58_spill] sm:$0xff] %v10809_v54  ;;  %15356 = vst [vmem:[#allocation44_spill] sm:$0xff] %v10812_v3  ;;  %v3039_v51 = vpop.xlane.xlu1 %3038  ;;  %v3036_v25 = vpop.xlane.xlu0 %3035  ;;  %v3522_v36 = vmul.f32 %v6457_v19, %v15364_v4  ;;  %v15365_v3 = vld [vmem:[#allocation108_spill] sm:$0xff] }
 0x37f   :  { %v10819_v42 = vmax.f32 %v15360_v44, %v3039_v51  ;;  %v10822_v17 = vadd.f32 %v3039_v51, %v15362_v59  ;;  %v15367_v54 = vmax.f32 %v15365_v3, %v15366_v58  ;;  %v10832_v56 = vadd.f32 %v3036_v25, %v15369_v20  ;;  %v15371_v59 = vld [vmem:[#allocation26_spill] sm:$0xff]  ;;  %v15372_v19 = vld [vmem:[#allocation104_spill] sm:$0xff]  ;;  %v15376_v3 = vld [vmem:[#allocation95_spill] sm:$0xff] }
 0x380   :  { %v3581_v51 = vsel %vm200_vm0, %v3523_v33, 0.0  ;;  %v3524_v40 = vmul.f32 %v6461_v16, %v15371_v59  ;;  %v7097_v58 = vld [vmem:[#allocation5 + $0x5d8] sm:$0xff]   ;;  %v15378_v33 = vmax.f32 %v15264_v21, %v10524_v11  ;;  %v15380_v16 = vld [vmem:[#allocation72_spill] sm:$0xff]  ;;  %v15385_v11 = vld [vmem:[#allocation74_spill] sm:$0xff] }
 0x381   :  { %15361 = vst [vmem:[#allocation92_spill] sm:$0xff] %v10819_v42  ;;  %15363 = vst [vmem:[#allocation91_spill] sm:$0xff] %v10822_v17  ;;  %v10829_v6 = vmax.f32 %v15367_v54, %v3036_v25  ;;  %3576 = vadd.xlane.f32.xlu1 %v3575_v50  ;;  %3573 = vadd.xlane.f32.xlu0 %v3572_v62  ;;  %v6466_v17 = vunpack.c.h.bf16 %v7096_v32  ;;  %v15373_v42 = vld [vmem:[#allocation94_spill] sm:$0xff]  ;;  %v3578_v50 = vsel %vm200_vm0, %v3522_v36, 0.0  ;;  %v6465_v62 = vunpack.c.l.bf16 %v7096_v32  ;;  %v15382_v32 = vld [vmem:[#allocation67_spill] sm:$0xff] }
 0x382   :  { %v3045_v44 = vpop.xlane.xlu1 %3044  ;;  %v15374_v4 = vmax.f32 %v15372_v19, %v15373_v42  ;;  %v3042_v25 = vpop.xlane.xlu0 %3041  ;;  %v6470_v36 = vunpack.c.h.bf16 %v7097_v58 }
 0x383   :  { %15368 = vst [vmem:[#allocation99_spill] sm:$0xff] %v10829_v6  ;;  %v10843_v54 = vadd.f32 %v3045_v44, %v15376_v3  ;;  %v10849_v34 = vmax.f32 %v15378_v33, %v3042_v25  ;;  %v10852_v20 = vadd.f32 %v3042_v25, %v15380_v16  ;;  %v3527_v19 = vmul.f32 %v6466_v17, %v15268_v48  ;;  %v15387_v33 = vld [vmem:[#allocation28_spill] sm:$0xff]  ;;  %v15392_v17 = vld [vmem:[#allocation75_spill] sm:$0xff] }
 0x384   :  { %v10840_v26 = vmax.f32 %v15374_v4, %v3045_v44  ;;  %v3587_v4 = vsel %vm200_vm0, %v3525_v29, 0.0  ;;  %v3584_v44 = vsel %vm200_vm0, %v3524_v40, 0.0  ;;  %v15383_v3 = vmax.f32 %v15270_v12, %v15382_v32  ;;  %v7098_v16 = vld [vmem:[#allocation5 + $0x710] sm:$0xff]   ;;  %v15389_v29 = vld [vmem:[#allocation66_spill] sm:$0xff] }
 0x385   :  { %15377 = vst [vmem:[#allocation47_spill] sm:$0xff] %v10843_v54  ;;  %15379 = vst [vmem:[#allocation100_spill] sm:$0xff] %v10849_v34  ;;  %3582 = vadd.xlane.f32.xlu1 %v3581_v51  ;;  %3579 = vadd.xlane.f32.xlu0 %v3578_v50  ;;  %v3526_v51 = vmul.f32 %v6465_v62, %v15387_v33  ;;  %v6469_v50 = vunpack.c.l.bf16 %v7097_v58  ;;  %v3593_v32 = vsel %vm200_vm0, %v3527_v19, 0.0  ;;  %v15395_v62 = vld [vmem:[#allocation87_spill] sm:$0xff]  ;;  %v15396_v58 = vld [vmem:[#allocation90_spill] sm:$0xff] }
 0x386   :  { %15375 = vst [vmem:[#allocation102_spill] sm:$0xff] %v10840_v26  ;;  %15381 = vst [vmem:[#allocation108_spill] sm:$0xff] %v10852_v20  ;;  %v3051_v42 = vpop.xlane.xlu1 %3050  ;;  %v3048_v25 = vpop.xlane.xlu0 %3047  ;;  %v15388_v20 = vld [vmem:[#allocation80_spill] sm:$0xff]  ;;  %v15397_v33 = vmax.f32 %v15395_v62, %v15396_v58  ;;  %v15403_v19 = vld [vmem:[#allocation97_spill] sm:$0xff] }
 0x387   :  { %v10860_v59 = vmax.f32 %v15383_v3, %v3051_v42  ;;  %v10863_v21 = vadd.f32 %v3051_v42, %v15385_v11  ;;  %v15390_v34 = vmax.f32 %v15388_v20, %v15389_v29  ;;  %v10872_v48 = vadd.f32 %v3048_v25, %v15392_v17  ;;  %v15394_v42 = vld [vmem:[#allocation29_spill] sm:$0xff]  ;;  %v15399_v20 = vld [vmem:[#allocation46_spill] sm:$0xff]  ;;  %v15406_v62 = vld [vmem:[#allocation31_spill] sm:$0xff] }
 0x388   :  { %v3529_v3 = vmul.f32 %v6470_v36, %v15394_v42  ;;  %v6474_v11 = vunpack.c.h.bf16 %v7098_v16  ;;  %v7099_v17 = vld [vmem:[#allocation5 + $0x718] sm:$0xff]  }
 0x389   :  { %15384 = vst [vmem:[#allocation63_spill] sm:$0xff] %v10860_v59  ;;  %15386 = vst [vmem:[#allocation53_spill] sm:$0xff] %v10863_v21  ;;  %v10869_v40 = vmax.f32 %v15390_v34, %v3048_v25  ;;  %3588 = vadd.xlane.f32.xlu1 %v3587_v4  ;;  %3585 = vadd.xlane.f32.xlu0 %v3584_v44  ;;  %v6473_v21 = vunpack.c.l.bf16 %v7098_v16  ;;  %v3590_v25 = vsel %vm200_vm0, %v3526_v51, 0.0  ;;  %v15401_v4 = vld [vmem:[#allocation30_spill] sm:$0xff]  ;;  %v15405_v16 = vld [vmem:[#allocation49_spill] sm:$0xff] }
 0x38a   :  { %15393 = vst [vmem:[#allocation94_spill] sm:$0xff] %v10872_v48  ;;  %v3057_v12 = vpop.xlane.xlu1 %3056  ;;  %v3054_v29 = vpop.xlane.xlu0 %3053  ;;  %v3528_v44 = vmul.f32 %v6469_v50, %v15401_v4  ;;  %v15402_v48 = vld [vmem:[#allocation81_spill] sm:$0xff]  ;;  %v3531_v58 = vmul.f32 %v6474_v11, %v15406_v62 }
 0x38b   :  { %15391 = vst [vmem:[#allocation104_spill] sm:$0xff] %v10869_v40  ;;  %v10879_v59 = vmax.f32 %v15397_v33, %v3057_v12  ;;  %v10882_v34 = vadd.f32 %v3057_v12, %v15399_v20  ;;  %v15404_v40 = vmax.f32 %v15402_v48, %v15403_v19  ;;  %v10892_v42 = vadd.f32 %v3054_v29, %v15405_v16  ;;  %v15407_v20 = vld [vmem:[#allocation32_spill] sm:$0xff]  ;;  %v15408_v50 = vld [vmem:[#allocation61_spill] sm:$0xff]  ;;  %v15411_v48 = vld [vmem:[#allocation98_spill] sm:$0xff] }
 0x38c   :  { %v3599_v12 = vsel %vm200_vm0, %v3529_v3, 0.0  ;;  %v3530_v51 = vmul.f32 %v6473_v21, %v15407_v20  ;;  %v7100_v19 = vld [vmem:[#allocation5 + $0x850] sm:$0xff]   ;;  %v15412_v3 = vmax.f32 %v15289_v45, %v10584_v23  ;;  %v15413_v21 = vld [vmem:[#allocation45_spill] sm:$0xff] }
 0x38d   :  { %15398 = vst [vmem:[#allocation95_spill] sm:$0xff] %v10879_v59  ;;  %15400 = vst [vmem:[#allocation72_spill] sm:$0xff] %v10882_v34  ;;  %v10889_v36 = vmax.f32 %v15404_v40, %v3054_v29  ;;  %3594 = vadd.xlane.f32.xlu1 %v3593_v32  ;;  %3591 = vadd.xlane.f32.xlu0 %v3590_v25  ;;  %v6478_v34 = vunpack.c.h.bf16 %v7099_v17  ;;  %v15409_v59 = vld [vmem:[#allocation106_spill] sm:$0xff]  ;;  %v3596_v32 = vsel %vm200_vm0, %v3528_v44, 0.0  ;;  %v6477_v25 = vunpack.c.l.bf16 %v7099_v17 }
 0x38e   :  { %v3063_v33 = vpop.xlane.xlu1 %3062  ;;  %v15410_v4 = vmax.f32 %v15408_v50, %v15409_v59  ;;  %v3060_v29 = vpop.xlane.xlu0 %3059  ;;  %v6482_v44 = vunpack.c.h.bf16 %v7100_v19  ;;  %v15414_v17 = vmax.f32 %v15294_v35, %v10594_v2 }
 0x38f   :  { %v10903_v40 = vadd.f32 %v3063_v33, %v15411_v48  ;;  %v10909_v11 = vmax.f32 %v15412_v3, %v3060_v29  ;;  %v10912_v16 = vadd.f32 %v3060_v29, %v15413_v21  ;;  %v3533_v50 = vmul.f32 %v6478_v34, %v15292_v39  ;;  %v15416_v29 = vld [vmem:[#allocation34_spill] sm:$0xff]  ;;  %v7101_v3 = vld [vmem:[#allocation5 + $0x858] sm:$0xff]  }
 0x390   :  { %v10900_v54 = vmax.f32 %v15410_v4, %v3063_v33  ;;  %v3605_v4 = vsel %vm200_vm0, %v3531_v58, 0.0  ;;  %v3602_v33 = vsel %vm200_vm0, %v3530_v51, 0.0  ;;  %v15417_v58 = vmax.f32 %v10289_v60, %v10605_v47  ;;  %v15418_v34 = vld [vmem:[#allocation77_spill] sm:$0xff] }
 0x391   :  { %3600 = vadd.xlane.f32.xlu1 %v3599_v12  ;;  %3597 = vadd.xlane.f32.xlu0 %v3596_v32  ;;  %v3532_v12 = vmul.f32 %v6477_v25, %v15416_v29  ;;  %v6481_v32 = vunpack.c.l.bf16 %v7100_v19  ;;  %v3611_v35 = vsel %vm200_vm0, %v3533_v50, 0.0  ;;  %v15420_v25 = vld [vmem:[#allocation71_spill] sm:$0xff]  ;;  %v15423_v60 = vld [vmem:[#allocation105_spill] sm:$0xff] }
 0x392   :  { %v3069_v59 = vpop.xlane.xlu1 %3068  ;;  %v3066_v45 = vpop.xlane.xlu0 %3065  ;;  %v15421_v19 = vmax.f32 %v10300_v7, %v15420_v25  ;;  %v15425_v50 = vld [vmem:[#allocation43_spill] sm:$0xff]  ;;  %v15428_v25 = vld [vmem:[#allocation37_spill] sm:$0xff] }
 0x393   :  { %v10920_v48 = vmax.f32 %v15414_v17, %v3069_v59  ;;  %v10923_v23 = vadd.f32 %v3069_v59, %v10603_v27  ;;  %v10929_v51 = vmax.f32 %v15417_v58, %v3066_v45  ;;  %v10932_v21 = vadd.f32 %v3066_v45, %v15418_v34 }
 0x394   :  { %v3535_v27 = vmul.f32 %v6482_v44, %v15167_v52  ;;  %v6486_v59 = vunpack.c.h.bf16 %v7101_v3  ;;  %v6485_v17 = vunpack.c.l.bf16 %v7101_v3  ;;  %v3608_v45 = vsel %vm200_vm0, %v3532_v12, 0.0  ;;  %v15427_v3 = vld [vmem:[#allocation83_spill] sm:$0xff] }
 0x395   :  { %15415 = vst [vmem:[#allocation67_spill] sm:$0xff] %v10920_v48  ;;  %15419 = vst [vmem:[#allocation74_spill] sm:$0xff] %v10932_v21  ;;  %3606 = vadd.xlane.f32.xlu1 %v3605_v4  ;;  %3603 = vadd.xlane.f32.xlu0 %v3602_v33  ;;  %v3534_v4 = vmul.f32 %v6481_v32, %v15168_v14  ;;  %v7102_v33 = vld [vmem:[#allocation5 + $0x990] sm:$0xff]   ;;  %v15426_v34 = vmax.f32 %v10309_v55, %v15425_v50  ;;  %v15433_v55 = vld [vmem:[#allocation101_spill] sm:$0xff] }
 0x396   :  { %v3075_v2 = vpop.xlane.xlu1 %3074  ;;  %v3072_v58 = vpop.xlane.xlu0 %3071  ;;  %v15430_v32 = vld [vmem:[#allocation96_spill] sm:$0xff] }
 0x397   :  { %v10939_v29 = vmax.f32 %v15421_v19, %v3075_v2  ;;  %v10942_v47 = vadd.f32 %v3075_v2, %v15423_v60  ;;  %v10949_v44 = vmax.f32 %v15426_v34, %v3072_v58  ;;  %v10952_v52 = vadd.f32 %v3072_v58, %v15427_v3  ;;  %v15429_v60 = vld [vmem:[#allocation38_spill] sm:$0xff]  ;;  %v7103_v34 = vld [vmem:[#allocation5 + $0x998] sm:$0xff]   ;;  %v15555_v48 = vld [vmem:[#allocation36_spill] sm:$0xff] }
 0x398   :  { %v3617_v2 = vsel %vm200_vm0, %v3535_v27, 0.0  ;;  %v3537_v19 = vmul.f32 %v6486_v59, %v15428_v25  ;;  %v3536_v12 = vmul.f32 %v6485_v17, %v15429_v60  ;;  %v15434_v27 = vmax.f32 %v10329_v28, %v10644_v5  ;;  %v15435_v17 = vld [vmem:[#allocation89_spill] sm:$0xff] }
 0x399   :  { %15422 = vst [vmem:[#allocation80_spill] sm:$0xff] %v10939_v29  ;;  %15424 = vst [vmem:[#allocation66_spill] sm:$0xff] %v10942_v47  ;;  %3612 = vadd.xlane.f32.xlu1 %v3611_v35  ;;  %3609 = vadd.xlane.f32.xlu0 %v3608_v45  ;;  %v6490_v47 = vunpack.c.h.bf16 %v7102_v33  ;;  %v15431_v29 = vld [vmem:[#allocation76_spill] sm:$0xff]  ;;  %v3614_v35 = vsel %vm200_vm0, %v3534_v4, 0.0  ;;  %v6489_v45 = vunpack.c.l.bf16 %v7102_v33  ;;  %v6494_v4 = vunpack.c.h.bf16 %v7103_v34 }
 0x39a   :  { %v3081_v7 = vpop.xlane.xlu1 %3080  ;;  %v15432_v14 = vmax.f32 %v15430_v32, %v15431_v29  ;;  %v3078_v58 = vpop.xlane.xlu0 %3077  ;;  %v3623_v29 = vsel %vm200_vm0, %v3537_v19, 0.0  ;;  %v15436_v33 = vmax.f32 %v15308_v61, %v10654_v63  ;;  %v15439_v19 = vmax.f32 %v10349_v1, %v10665_v37  ;;  %v15445_v1 = vld [vmem:[#allocation79_spill] sm:$0xff] }
 0x39b   :  { %v10963_v50 = vadd.f32 %v3081_v7, %v15433_v55  ;;  %v10969_v59 = vmax.f32 %v15434_v27, %v3078_v58  ;;  %v10972_v3 = vadd.f32 %v3078_v58, %v15435_v17  ;;  %v3539_v32 = vmul.f32 %v6490_v47, %v15306_v57  ;;  %v15438_v58 = vld [vmem:[#allocation40_spill] sm:$0xff]  ;;  %v6496_v27 = vld [vmem:[#allocation5 + $0xe0] sm:$0xff]   ;;  %v15440_v47 = vld [vmem:[#allocation103_spill] sm:$0xff] }
 0x39c   :  { %v10960_v21 = vmax.f32 %v15432_v14, %v3081_v7  ;;  %v3620_v7 = vsel %vm200_vm0, %v3536_v12, 0.0 }
 0x39d   :  { %3618 = vadd.xlane.f32.xlu1 %v3617_v2  ;;  %3615 = vadd.xlane.f32.xlu0 %v3614_v35  ;;  %v3538_v2 = vmul.f32 %v6489_v45, %v15438_v58  ;;  %v6493_v35 = vunpack.c.l.bf16 %v7103_v34  ;;  %v3629_v61 = vsel %vm200_vm0, %v3539_v32, 0.0  ;;  %v15442_v45 = vld [vmem:[#allocation73_spill] sm:$0xff]  ;;  %v15447_v32 = vld [vmem:[#allocation64_spill] sm:$0xff] }
 0x39e   :  { %v3087_v14 = vpop.xlane.xlu1 %3086  ;;  %v3084_v5 = vpop.xlane.xlu0 %3083  ;;  %v15443_v34 = vmax.f32 %v10360_v18, %v15442_v45  ;;  %v15450_v45 = vld [vmem:[#allocation14_spill] sm:$0xff] }
 0x39f   :  { %v10980_v55 = vmax.f32 %v15436_v33, %v3087_v14  ;;  %v10983_v28 = vadd.f32 %v3087_v14, %v10663_v9  ;;  %v10989_v12 = vmax.f32 %v15439_v19, %v3084_v5  ;;  %v10992_v17 = vadd.f32 %v3084_v5, %v15440_v47 }
 0x3a0   :  { %v3541_v9 = vmul.f32 %v6494_v4, %v15189_v13  ;;  %v6498_v14 = vunpack.c.h.bf16 %v6496_v27  ;;  %v6497_v33 = vunpack.c.l.bf16 %v6496_v27  ;;  %v3626_v5 = vsel %vm200_vm0, %v3538_v2, 0.0  ;;  %v15449_v27 = vld [vmem:[#allocation57_spill] sm:$0xff] }
 0x3a1   :  { %15437 = vst [vmem:[#allocation75_spill] sm:$0xff] %v10980_v55  ;;  %15441 = vst [vmem:[#allocation87_spill] sm:$0xff] %v10992_v17  ;;  %3624 = vadd.xlane.f32.xlu1 %v3623_v29  ;;  %3621 = vadd.xlane.f32.xlu0 %v3620_v7  ;;  %v3540_v29 = vmul.f32 %v6493_v35, %v15190_v46  ;;  %v7104_v7 = vld [vmem:[#allocation5 + $0xe8] sm:$0xff]   ;;  %v15448_v47 = vmax.f32 %v10369_v43, %v15447_v32  ;;  %v15452_v35 = vld [vmem:[#allocation93_spill] sm:$0xff] }
 0x3a2   :  { %v3093_v63 = vpop.xlane.xlu1 %3092  ;;  %v3090_v19 = vpop.xlane.xlu0 %3089  ;;  %v15456_v43 = vld [vmem:[#allocation70_spill] sm:$0xff] }
 0x3a3   :  { %v10999_v58 = vmax.f32 %v15443_v34, %v3093_v63  ;;  %v11002_v37 = vadd.f32 %v3093_v63, %v15445_v1  ;;  %v11009_v4 = vmax.f32 %v15448_v47, %v3090_v19  ;;  %v11012_v13 = vadd.f32 %v3090_v19, %v15449_v27  ;;  %v15451_v1 = vld [vmem:[#allocation12_spill] sm:$0xff]  ;;  %v7105_v47 = vld [vmem:[#allocation5 + $0x220] sm:$0xff]  }
 0x3a4   :  { %v3635_v63 = vsel %vm200_vm0, %v3541_v9, 0.0  ;;  %v3768_v34 = vmul.f32 %v6498_v14, %v15450_v45  ;;  %v3767_v2 = vmul.f32 %v6497_v33, %v15451_v1  ;;  %v15457_v9 = vmax.f32 %v10389_v31, %v10704_v24  ;;  %v15459_v33 = vld [vmem:[#allocation88_spill] sm:$0xff]  ;;  %v15569_v55 = vld [vmem:[#allocation42_spill] sm:$0xff] }
 0x3a5   :  { %15444 = vst [vmem:[#allocation90_spill] sm:$0xff] %v10999_v58  ;;  %15446 = vst [vmem:[#allocation46_spill] sm:$0xff] %v11002_v37  ;;  %3630 = vadd.xlane.f32.xlu1 %v3629_v61  ;;  %3627 = vadd.xlane.f32.xlu0 %v3626_v5  ;;  %v6502_v37 = vunpack.c.h.bf16 %v7104_v7  ;;  %v15453_v58 = vld [vmem:[#allocation54_spill] sm:$0xff]  ;;  %v3632_v61 = vsel %vm200_vm0, %v3540_v29, 0.0  ;;  %v6501_v5 = vunpack.c.l.bf16 %v7104_v7  ;;  %v6506_v29 = vunpack.c.h.bf16 %v7105_v47 }
 0x3a6   :  { %v3099_v18 = vpop.xlane.xlu1 %3098  ;;  %v15454_v46 = vmax.f32 %v15452_v35, %v15453_v58  ;;  %v3096_v19 = vpop.xlane.xlu0 %3095  ;;  %v3802_v58 = vsel %vm200_vm0, %v3768_v34, 0.0  ;;  %v15461_v7 = vmax.f32 %v15322_v30, %v10714_v41  ;;  %v15465_v34 = vld [vmem:[#allocation60_spill] sm:$0xff] }
 0x3a7   :  { %v11023_v32 = vadd.f32 %v3099_v18, %v15456_v43  ;;  %v11029_v14 = vmax.f32 %v15457_v9, %v3096_v19  ;;  %v11032_v27 = vadd.f32 %v3096_v19, %v15459_v33  ;;  %v3770_v35 = vmul.f32 %v6502_v37, %v15320_v8  ;;  %v15464_v19 = vld [vmem:[#allocation11_spill] sm:$0xff]  ;;  %v15468_v37 = vld [vmem:[#allocation82_spill] sm:$0xff] }
 0x3a8   :  { %v11020_v17 = vmax.f32 %v15454_v46, %v3099_v18  ;;  %v3799_v18 = vsel %vm200_vm0, %v3767_v2, 0.0  ;;  %v7106_v9 = vld [vmem:[#allocation5 + $0x228] sm:$0xff]   ;;  %v15466_v33 = vmax.f32 %v10409_v0, %v15465_v34  ;;  %v15475_v0 = vld [vmem:[#allocation50_spill] sm:$0xff] }
 0x3a9   :  { %15458 = vst [vmem:[#allocation97_spill] sm:$0xff] %v11029_v14  ;;  %15460 = vst [vmem:[#allocation49_spill] sm:$0xff] %v11032_v27  ;;  %3636 = vadd.xlane.f32.xlu1 %v3635_v63  ;;  %3633 = vadd.xlane.f32.xlu0 %v3632_v61  ;;  %v3769_v63 = vmul.f32 %v6501_v5, %v15464_v19  ;;  %v6505_v61 = vunpack.c.l.bf16 %v7105_v47  ;;  %v3808_v30 = vsel %vm200_vm0, %v3770_v35, 0.0  ;;  %v15471_v5 = vld [vmem:[#allocation51_spill] sm:$0xff]  ;;  %v15472_v47 = vld [vmem:[#allocation62_spill] sm:$0xff] }
 0x3aa   :  { %15455 = vst [vmem:[#allocation81_spill] sm:$0xff] %v11020_v17  ;;  %v3105_v46 = vpop.xlane.xlu1 %3104  ;;  %v3102_v24 = vpop.xlane.xlu0 %3101  ;;  %v15473_v19 = vmax.f32 %v15471_v5, %v15472_v47  ;;  %v15479_v35 = vld [vmem:[#allocation84_spill] sm:$0xff]  ;;  %v15483_v5 = vld [vmem:[#allocation17_spill] sm:$0xff] }
 0x3ab   :  { %v11040_v43 = vmax.f32 %v15461_v7, %v3105_v46  ;;  %v11043_v31 = vadd.f32 %v3105_v46, %v10723_v15  ;;  %v11049_v2 = vmax.f32 %v15466_v33, %v3102_v24  ;;  %v11052_v8 = vadd.f32 %v3102_v24, %v15468_v37  ;;  %v15470_v15 = vld [vmem:[#allocation15_spill] sm:$0xff]  ;;  %v7107_v37 = vld [vmem:[#allocation5 + $0x360] sm:$0xff]  }
 0x3ac   :  { %v3772_v46 = vmul.f32 %v6506_v29, %v15470_v15  ;;  %v6510_v7 = vunpack.c.h.bf16 %v7106_v9  ;;  %v3805_v24 = vsel %vm200_vm0, %v3769_v63, 0.0 }
 0x3ad   :  { %15462 = vst [vmem:[#allocation61_spill] sm:$0xff] %v11040_v43  ;;  %15463 = vst [vmem:[#allocation106_spill] sm:$0xff] %v11043_v31  ;;  %3803 = vadd.xlane.f32.xlu1 %v3802_v58  ;;  %3800 = vadd.xlane.f32.xlu0 %v3799_v18  ;;  %v6509_v31 = vunpack.c.l.bf16 %v7106_v9  ;;  %v15477_v58 = vld [vmem:[#allocation16_spill] sm:$0xff]  ;;  %v15482_v9 = vld [vmem:[#allocation107_spill] sm:$0xff] }
 0x3ae   :  { %15467 = vst [vmem:[#allocation98_spill] sm:$0xff] %v11049_v2  ;;  %15469 = vst [vmem:[#allocation45_spill] sm:$0xff] %v11052_v8  ;;  %v3111_v41 = vpop.xlane.xlu1 %3110  ;;  %v3108_v33 = vpop.xlane.xlu0 %3107  ;;  %v3771_v18 = vmul.f32 %v6505_v61, %v15477_v58  ;;  %v15478_v8 = vld [vmem:[#allocation78_spill] sm:$0xff]  ;;  %v3774_v47 = vmul.f32 %v6510_v7, %v15483_v5  ;;  %v15485_v61 = vld [vmem:[#allocation52_spill] sm:$0xff] }
 0x3af   :  { %v11059_v43 = vmax.f32 %v15473_v19, %v3111_v41  ;;  %v11062_v34 = vadd.f32 %v3111_v41, %v15475_v0  ;;  %v15480_v2 = vmax.f32 %v15478_v8, %v15479_v35  ;;  %v11072_v15 = vadd.f32 %v3108_v33, %v15482_v9  ;;  %v15484_v0 = vld [vmem:[#allocation18_spill] sm:$0xff]  ;;  %v15489_v8 = vld [vmem:[#allocation48_spill] sm:$0xff]  ;;  %v7108_v35 = vld [vmem:[#allocation5 + $0x368] sm:$0xff]  }
 0x3b0   :  { %v3814_v41 = vsel %vm200_vm0, %v3772_v46, 0.0  ;;  %v3773_v63 = vmul.f32 %v6509_v31, %v15484_v0  ;;  %v15490_v46 = vmax.f32 %v15338_v22, %v10764_v38  ;;  %v15492_v31 = vld [vmem:[#allocation55_spill] sm:$0xff]  ;;  %v15497_v38 = vld [vmem:[#allocation86_spill] sm:$0xff] }
 0x3b1   :  { %15474 = vst [vmem:[#allocation77_spill] sm:$0xff] %v11059_v43  ;;  %15476 = vst [vmem:[#allocation71_spill] sm:$0xff] %v11062_v34  ;;  %v11069_v29 = vmax.f32 %v15480_v2, %v3108_v33  ;;  %3809 = vadd.xlane.f32.xlu1 %v3808_v30  ;;  %3806 = vadd.xlane.f32.xlu0 %v3805_v24  ;;  %v6514_v34 = vunpack.c.h.bf16 %v7107_v37  ;;  %v15486_v43 = vld [vmem:[#allocation85_spill] sm:$0xff]  ;;  %v3811_v30 = vsel %vm200_vm0, %v3771_v18, 0.0  ;;  %v6513_v24 = vunpack.c.l.bf16 %v7107_v37 }
 0x3b2   :  { %v3117_v19 = vpop.xlane.xlu1 %3116  ;;  %v15487_v58 = vmax.f32 %v15485_v61, %v15486_v43  ;;  %v3114_v33 = vpop.xlane.xlu0 %3113  ;;  %v6518_v18 = vunpack.c.h.bf16 %v7108_v35  ;;  %v15494_v37 = vld [vmem:[#allocation65_spill] sm:$0xff] }
 0x3b3   :  { %15481 = vst [vmem:[#allocation105_spill] sm:$0xff] %v11069_v29  ;;  %v11083_v2 = vadd.f32 %v3117_v19, %v15489_v8  ;;  %v11089_v7 = vmax.f32 %v15490_v46, %v3114_v33  ;;  %v11092_v9 = vadd.f32 %v3114_v33, %v15492_v31  ;;  %v3776_v61 = vmul.f32 %v6514_v34, %v15342_v53  ;;  %v15499_v46 = vld [vmem:[#allocation20_spill] sm:$0xff]  ;;  %v7109_v31 = vld [vmem:[#allocation5 + $0x4a0] sm:$0xff]   ;;  %v15504_v34 = vld [vmem:[#allocation69_spill] sm:$0xff] }
 0x3b4   :  { %v11080_v27 = vmax.f32 %v15487_v58, %v3117_v19  ;;  %v3820_v58 = vsel %vm200_vm0, %v3774_v47, 0.0  ;;  %v3817_v19 = vsel %vm200_vm0, %v3773_v63, 0.0  ;;  %v15495_v8 = vmax.f32 %v15343_v10, %v15494_v37  ;;  %v15501_v47 = vld [vmem:[#allocation68_spill] sm:$0xff]  ;;  %v15507_v37 = vld [vmem:[#allocation21_spill] sm:$0xff] }
 0x3b5   :  { %15491 = vst [vmem:[#allocation83_spill] sm:$0xff] %v11089_v7  ;;  %15493 = vst [vmem:[#allocation96_spill] sm:$0xff] %v11092_v9  ;;  %3815 = vadd.xlane.f32.xlu1 %v3814_v41  ;;  %3812 = vadd.xlane.f32.xlu0 %v3811_v30  ;;  %v3775_v41 = vmul.f32 %v6513_v24, %v15499_v46  ;;  %v6517_v30 = vunpack.c.l.bf16 %v7108_v35  ;;  %v15500_v9 = vld [vmem:[#allocation59_spill] sm:$0xff]  ;;  %v6521_v24 = vunpack.c.l.bf16 %v7109_v31  ;;  %v15517_v35 = vld [vmem:[#allocation24_spill] sm:$0xff] }
 0x3b6   :  { %15488 = vst [vmem:[#allocation43_spill] sm:$0xff] %v11080_v27  ;;  %v3123_v43 = vpop.xlane.xlu1 %3122  ;;  %v3120_v33 = vpop.xlane.xlu0 %3119  ;;  %v15502_v7 = vmax.f32 %v15500_v9, %v15501_v47  ;;  %v7110_v47 = vld [vmem:[#allocation5 + $0x4a8] sm:$0xff]  }
 0x3b7   :  { %v11100_v0 = vmax.f32 %v15495_v8, %v3123_v43  ;;  %v11103_v22 = vadd.f32 %v3123_v43, %v15497_v38  ;;  %v11112_v53 = vadd.f32 %v3120_v33, %v15504_v34  ;;  %v3826_v43 = vsel %vm200_vm0, %v3776_v61, 0.0  ;;  %v15512_v61 = vld [vmem:[#allocation58_spill] sm:$0xff] }
 0x3b8   :  { %v11109_v63 = vmax.f32 %v15502_v7, %v3120_v33  ;;  %v3778_v8 = vmul.f32 %v6518_v18, %v15507_v37  ;;  %v6522_v38 = vunpack.c.h.bf16 %v7109_v31  ;;  %v15513_v18 = vld [vmem:[#allocation44_spill] sm:$0xff]  ;;  %v6526_v37 = vunpack.c.h.bf16 %v7110_v47 }
 0x3b9   :  { %15496 = vst [vmem:[#allocation76_spill] sm:$0xff] %v11100_v0  ;;  %15498 = vst [vmem:[#allocation101_spill] sm:$0xff] %v11103_v22  ;;  %3821 = vadd.xlane.f32.xlu1 %v3820_v58  ;;  %3818 = vadd.xlane.f32.xlu0 %v3817_v19  ;;  %v15509_v22 = vld [vmem:[#allocation56_spill] sm:$0xff]  ;;  %v3823_v58 = vsel %vm200_vm0, %v3775_v41, 0.0  ;;  %v15511_v19 = vld [vmem:[#allocation22_spill] sm:$0xff]  ;;  %v3779_v41 = vmul.f32 %v6521_v24, %v15517_v35 }
 0x3ba   :  { %15503 = vst [vmem:[#allocation89_spill] sm:$0xff] %v11109_v63  ;;  %15505 = vst [vmem:[#allocation103_spill] sm:$0xff] %v11112_v53  ;;  %v11114_v10 = vpop.xlane.xlu1 %3289  ;;  %v11124_v9 = vpop.xlane.xlu0 %3286  ;;  %v3777_v33 = vmul.f32 %v6517_v30, %v15511_v19  ;;  %v15518_v30 = vld [vmem:[#allocation92_spill] sm:$0xff]  ;;  %v15519_v53 = vld [vmem:[#allocation91_spill] sm:$0xff]  ;;  %v3782_v35 = vmul.f32 %v6526_v37, %v15370_v49 }
 0x3bb   :  { %15506 = vst [vmem:[#allocation73_spill] sm:$0xff] %v11114_v10  ;;  %v11122_v7 = vadd.f32 %v11114_v10, %v15509_v22  ;;  %v11132_v31 = vadd.f32 %v11124_v9, %v15513_v18  ;;  %v3832_v22 = vsel %vm200_vm0, %v3778_v8, 0.0  ;;  %v3835_v19 = vsel %vm200_vm0, %v3779_v41, 0.0  ;;  %v15529_v41 = vld [vmem:[#allocation108_spill] sm:$0xff]  ;;  %v15609_v0 = vld [vmem:[#allocation22_spill] sm:$0xff] }
 0x3bd   :  { %15510 = vst [vmem:[#allocation79_spill] sm:$0xff] %v11122_v7  ;;  %15514 = vst [vmem:[#allocation64_spill] sm:$0xff] %v11132_v31  ;;  %3827 = vadd.xlane.f32.xlu1 %v3826_v43  ;;  %3824 = vadd.xlane.f32.xlu0 %v3823_v58  ;;  %v15516_v7 = vld [vmem:[#allocation23_spill] sm:$0xff]  ;;  %v3829_v43 = vsel %vm200_vm0, %v3777_v33, 0.0  ;;  %v6525_v58 = vunpack.c.l.bf16 %v7110_v47  ;;  %v7111_v31 = vld [vmem:[#allocation5 + $0x5e0] sm:$0xff]  }
 0x3be   :  { %v11134_v46 = vpop.xlane.xlu1 %3295  ;;  %v3780_v10 = vmul.f32 %v6522_v38, %v15516_v7  ;;  %v11145_v18 = vpop.xlane.xlu0 %3292  ;;  %v6530_v33 = vunpack.c.h.bf16 %v7111_v31 }
 0x3bf   :  { %15515 = vst [vmem:[#allocation57_spill] sm:$0xff] %v11134_v46  ;;  %v11143_v34 = vadd.f32 %v11134_v46, %v15519_v53  ;;  %15521 = vst [vmem:[#allocation54_spill] sm:$0xff] %v11145_v18  ;;  %v11152_v38 = vadd.f32 %v11145_v18, %v10832_v56  ;;  %v7112_v18 = vld [vmem:[#allocation5 + $0x5e8] sm:$0xff]   ;;  %v15543_v46 = vld [vmem:[#allocation72_spill] sm:$0xff] }
 0x3c0   :  { %v3838_v53 = vsel %vm200_vm0, %v3780_v10, 0.0  ;;  %v6534_v26 = vunpack.c.h.bf16 %v7112_v18  ;;  %v6533_v49 = vunpack.c.l.bf16 %v7112_v18 }
 0x3c1   :  { %15520 = vst [vmem:[#allocation93_spill] sm:$0xff] %v11143_v34  ;;  %15522 = vst [vmem:[#allocation70_spill] sm:$0xff] %v11152_v38  ;;  %3833 = vadd.xlane.f32.xlu1 %v3832_v22  ;;  %3830 = vadd.xlane.f32.xlu0 %v3829_v43  ;;  %v15524_v34 = vld [vmem:[#allocation47_spill] sm:$0xff]  ;;  %v15527_v22 = vld [vmem:[#allocation26_spill] sm:$0xff]  ;;  %v6529_v38 = vunpack.c.l.bf16 %v7111_v31 }
 0x3c2   :  { %v11154_v24 = vpop.xlane.xlu1 %3301  ;;  %v11165_v56 = vpop.xlane.xlu0 %3298  ;;  %v3781_v43 = vmul.f32 %v6525_v58, %v15527_v22  ;;  %v15534_v22 = vld [vmem:[#allocation53_spill] sm:$0xff]  ;;  %v15541_v31 = vld [vmem:[#allocation30_spill] sm:$0xff] }
 0x3c3   :  { %15523 = vst [vmem:[#allocation88_spill] sm:$0xff] %v11154_v24  ;;  %v11163_v8 = vadd.f32 %v11154_v24, %v15524_v34  ;;  %15526 = vst [vmem:[#allocation82_spill] sm:$0xff] %v11165_v56  ;;  %v11172_v37 = vadd.f32 %v11165_v56, %v15529_v41  ;;  %v3844_v34 = vsel %vm200_vm0, %v3782_v35, 0.0  ;;  %v15537_v35 = vld [vmem:[#allocation104_spill] sm:$0xff] }
 0x3c5   :  { %15525 = vst [vmem:[#allocation60_spill] sm:$0xff] %v11163_v8  ;;  %15530 = vst [vmem:[#allocation51_spill] sm:$0xff] %v11172_v37  ;;  %3839 = vadd.xlane.f32.xlu1 %v3838_v53  ;;  %3836 = vadd.xlane.f32.xlu0 %v3835_v19  ;;  %v15532_v8 = vld [vmem:[#allocation27_spill] sm:$0xff]  ;;  %v3841_v53 = vsel %vm200_vm0, %v3781_v43, 0.0  ;;  %v15536_v19 = vld [vmem:[#allocation28_spill] sm:$0xff]  ;;  %v3785_v43 = vmul.f32 %v6533_v49, %v15541_v31 }
 0x3c6   :  { %v11174_v47 = vpop.xlane.xlu1 %3307  ;;  %v3784_v24 = vmul.f32 %v6530_v33, %v15532_v8  ;;  %v11184_v10 = vpop.xlane.xlu0 %3304  ;;  %v3783_v41 = vmul.f32 %v6529_v38, %v15536_v19  ;;  %v7113_v37 = vld [vmem:[#allocation5 + $0x720] sm:$0xff]   ;;  %v15542_v38 = vld [vmem:[#allocation95_spill] sm:$0xff] }
 0x3c7   :  { %15531 = vst [vmem:[#allocation62_spill] sm:$0xff] %v11174_v47  ;;  %v11182_v6 = vadd.f32 %v11174_v47, %v15534_v22  ;;  %v15538_v33 = vld [vmem:[#allocation94_spill] sm:$0xff]  ;;  %v6538_v8 = vunpack.c.h.bf16 %v7113_v37  ;;  %v3853_v19 = vsel %vm200_vm0, %v3785_v43, 0.0 }
 0x3c8   :  { %v11192_v18 = vadd.f32 %v11184_v10, %v15538_v33  ;;  %v3850_v22 = vsel %vm200_vm0, %v3784_v24, 0.0 }
 0x3c9   :  { %15535 = vst [vmem:[#allocation50_spill] sm:$0xff] %v11182_v6  ;;  %3845 = vadd.xlane.f32.xlu1 %v3844_v34  ;;  %3842 = vadd.xlane.f32.xlu0 %v3841_v53  ;;  %v15540_v6 = vld [vmem:[#allocation29_spill] sm:$0xff]  ;;  %v3847_v34 = vsel %vm200_vm0, %v3783_v41, 0.0  ;;  %v6537_v53 = vunpack.c.l.bf16 %v7113_v37  ;;  %v3788_v31 = vmul.f32 %v6538_v8, %v15406_v62 }
 0x3ca   :  { %15539 = vst [vmem:[#allocation78_spill] sm:$0xff] %v11192_v18  ;;  %v11194_v58 = vpop.xlane.xlu1 %3313  ;;  %v3786_v47 = vmul.f32 %v6534_v26, %v15540_v6  ;;  %v11205_v33 = vpop.xlane.xlu0 %3310  ;;  %v7114_v18 = vld [vmem:[#allocation5 + $0x728] sm:$0xff]  }
 0x3cb   :  { %v11203_v56 = vadd.f32 %v11194_v58, %v15543_v46  ;;  %v11212_v26 = vadd.f32 %v11205_v33, %v10892_v42  ;;  %v6542_v41 = vunpack.c.h.bf16 %v7114_v18 }
 0x3cc   :  { %v3856_v46 = vsel %vm200_vm0, %v3786_v47, 0.0 }
 0x3cd   :  { %15544 = vst [vmem:[#allocation84_spill] sm:$0xff] %v11212_v26  ;;  %3851 = vadd.xlane.f32.xlu1 %v3850_v22  ;;  %3848 = vadd.xlane.f32.xlu0 %v3847_v34  ;;  %v3787_v22 = vmul.f32 %v6537_v53, %v15407_v20  ;;  %v6541_v34 = vunpack.c.l.bf16 %v7114_v18  ;;  %v7115_v26 = vld [vmem:[#allocation5 + $0x860] sm:$0xff]   ;;  %v3790_v37 = vmul.f32 %v6542_v41, %v15292_v39 }
 0x3ce   :  { %v11214_v49 = vpop.xlane.xlu1 %3319  ;;  %v11225_v42 = vpop.xlane.xlu0 %3316  ;;  %v15552_v41 = vld [vmem:[#allocation74_spill] sm:$0xff] }
 0x3cf   :  { %15545 = vst [vmem:[#allocation107_spill] sm:$0xff] %v11214_v49  ;;  %v11223_v24 = vadd.f32 %v11214_v49, %v10903_v40  ;;  %15547 = vst [vmem:[#allocation85_spill] sm:$0xff] %v11225_v42  ;;  %v11232_v8 = vadd.f32 %v11225_v42, %v10912_v16  ;;  %v3862_v40 = vsel %vm200_vm0, %v3788_v31, 0.0  ;;  %v6545_v49 = vunpack.c.l.bf16 %v7115_v26  ;;  %v15557_v42 = vld [vmem:[#allocation66_spill] sm:$0xff] }
 0x3d0   :  { %v3859_v16 = vsel %vm200_vm0, %v3787_v22, 0.0 }
 0x3d1   :  { %15546 = vst [vmem:[#allocation52_spill] sm:$0xff] %v11223_v24  ;;  %15548 = vst [vmem:[#allocation48_spill] sm:$0xff] %v11232_v8  ;;  %3857 = vadd.xlane.f32.xlu1 %v3856_v46  ;;  %3854 = vadd.xlane.f32.xlu0 %v3853_v19  ;;  %v6546_v24 = vunpack.c.h.bf16 %v7115_v26  ;;  %v15551_v19 = vld [vmem:[#allocation34_spill] sm:$0xff]  ;;  %v7116_v8 = vld [vmem:[#allocation5 + $0x868] sm:$0xff]   ;;  %v3791_v22 = vmul.f32 %v6545_v49, %v15555_v48 }
 0x3d2   :  { %v11234_v43 = vpop.xlane.xlu1 %3325  ;;  %v11244_v47 = vpop.xlane.xlu0 %3322  ;;  %v3789_v46 = vmul.f32 %v6541_v34, %v15551_v19  ;;  %v6550_v39 = vunpack.c.h.bf16 %v7116_v8  ;;  %v15556_v34 = vld [vmem:[#allocation80_spill] sm:$0xff] }
 0x3d3   :  { %15549 = vst [vmem:[#allocation55_spill] sm:$0xff] %v11234_v43  ;;  %v11242_v53 = vadd.f32 %v11234_v43, %v10923_v23  ;;  %v11252_v26 = vadd.f32 %v11244_v47, %v15552_v41  ;;  %v3868_v23 = vsel %vm200_vm0, %v3790_v37, 0.0  ;;  %v3871_v19 = vsel %vm200_vm0, %v3791_v22, 0.0 }
 0x3d4   :  { %v3794_v48 = vmul.f32 %v6550_v39, %v15428_v25 }
 0x3d5   :  { %15550 = vst [vmem:[#allocation65_spill] sm:$0xff] %v11242_v53  ;;  %15553 = vst [vmem:[#allocation86_spill] sm:$0xff] %v11252_v26  ;;  %3863 = vadd.xlane.f32.xlu1 %v3862_v40  ;;  %3860 = vadd.xlane.f32.xlu0 %v3859_v16  ;;  %v15554_v53 = vld [vmem:[#allocation35_spill] sm:$0xff]  ;;  %v3865_v40 = vsel %vm200_vm0, %v3789_v46, 0.0  ;;  %v6549_v16 = vunpack.c.l.bf16 %v7116_v8  ;;  %v7117_v26 = vld [vmem:[#allocation5 + $0x9a0] sm:$0xff]  }
 0x3d6   :  { %v11254_v18 = vpop.xlane.xlu1 %3331  ;;  %v3792_v43 = vmul.f32 %v6546_v24, %v15554_v53  ;;  %v11265_v41 = vpop.xlane.xlu0 %3328  ;;  %v6554_v46 = vunpack.c.h.bf16 %v7117_v26 }
 0x3d7   :  { %v11263_v31 = vadd.f32 %v11254_v18, %v15557_v42  ;;  %v11272_v24 = vadd.f32 %v11265_v41, %v10952_v52 }
 0x3d8   :  { %v3874_v42 = vsel %vm200_vm0, %v3792_v43, 0.0  ;;  %v3796_v8 = vmul.f32 %v6554_v46, %v15306_v57  ;;  %v15566_v46 = vld [vmem:[#allocation87_spill] sm:$0xff] }
 0x3d9   :  { %15558 = vst [vmem:[#allocation59_spill] sm:$0xff] %v11272_v24  ;;  %3869 = vadd.xlane.f32.xlu1 %v3868_v23  ;;  %3866 = vadd.xlane.f32.xlu0 %v3865_v40  ;;  %v3793_v23 = vmul.f32 %v6549_v16, %v15429_v60  ;;  %v6553_v40 = vunpack.c.l.bf16 %v7117_v26  ;;  %v7118_v24 = vld [vmem:[#allocation5 + $0x9a8] sm:$0xff]  }
 0x3da   :  { %v11274_v49 = vpop.xlane.xlu1 %3337  ;;  %v11285_v52 = vpop.xlane.xlu0 %3334 }
 0x3db   :  { %15559 = vst [vmem:[#allocation68_spill] sm:$0xff] %v11274_v49  ;;  %v11283_v37 = vadd.f32 %v11274_v49, %v10963_v50  ;;  %15561 = vst [vmem:[#allocation56_spill] sm:$0xff] %v11285_v52  ;;  %v11292_v39 = vadd.f32 %v11285_v52, %v10972_v3  ;;  %v3880_v50 = vsel %vm200_vm0, %v3794_v48, 0.0  ;;  %v6557_v49 = vunpack.c.l.bf16 %v7118_v24  ;;  %v15571_v52 = vld [vmem:[#allocation46_spill] sm:$0xff] }
 0x3dc   :  { %v3877_v3 = vsel %vm200_vm0, %v3793_v23, 0.0 }
 0x3dd   :  { %15560 = vst [vmem:[#allocation69_spill] sm:$0xff] %v11283_v37  ;;  %15562 = vst [vmem:[#allocation58_spill] sm:$0xff] %v11292_v39  ;;  %3875 = vadd.xlane.f32.xlu1 %v3874_v42  ;;  %3872 = vadd.xlane.f32.xlu0 %v3871_v19  ;;  %v6558_v37 = vunpack.c.h.bf16 %v7118_v24  ;;  %v15565_v19 = vld [vmem:[#allocation40_spill] sm:$0xff]  ;;  %v3797_v23 = vmul.f32 %v6557_v49, %v15569_v55 }
 0x3de   :  { %v11294_v22 = vpop.xlane.xlu1 %3343  ;;  %v11304_v43 = vpop.xlane.xlu0 %3340  ;;  %v3795_v42 = vmul.f32 %v6553_v40, %v15565_v19  ;;  %v6560_v39 = vld [vmem:[#allocation5 + $0xf0] sm:$0xff]   ;;  %v15570_v40 = vld [vmem:[#allocation90_spill] sm:$0xff] }
 0x3df   :  { %15563 = vst [vmem:[#allocation44_spill] sm:$0xff] %v11294_v22  ;;  %v11302_v16 = vadd.f32 %v11294_v22, %v10983_v28  ;;  %v11312_v24 = vadd.f32 %v11304_v43, %v15566_v46  ;;  %v3886_v28 = vsel %vm200_vm0, %v3796_v8, 0.0  ;;  %v6562_v57 = vunpack.c.h.bf16 %v6560_v39 }
 0x3e0   :  { %v3889_v19 = vsel %vm200_vm0, %v3797_v23, 0.0  ;;  %v15577_v23 = vld [vmem:[#allocation49_spill] sm:$0xff] }
 0x3e1   :  { %15564 = vst [vmem:[#allocation92_spill] sm:$0xff] %v11302_v16  ;;  %15567 = vst [vmem:[#allocation91_spill] sm:$0xff] %v11312_v24  ;;  %3881 = vadd.xlane.f32.xlu1 %v3880_v50  ;;  %3878 = vadd.xlane.f32.xlu0 %v3877_v3  ;;  %v15568_v16 = vld [vmem:[#allocation41_spill] sm:$0xff]  ;;  %v3883_v50 = vsel %vm200_vm0, %v3795_v42, 0.0  ;;  %v6561_v3 = vunpack.c.l.bf16 %v6560_v39  ;;  %v4025_v55 = vmul.f32 %v6562_v57, %v15450_v45 }
 0x3e2   :  { %v11314_v26 = vpop.xlane.xlu1 %3349  ;;  %v3798_v22 = vmul.f32 %v6558_v37, %v15568_v16  ;;  %v11325_v46 = vpop.xlane.xlu0 %3346  ;;  %v7119_v24 = vld [vmem:[#allocation5 + $0xf8] sm:$0xff]  }
 0x3e3   :  { %v11323_v48 = vadd.f32 %v11314_v26, %v15571_v52  ;;  %15572 = vst [vmem:[#allocation47_spill] sm:$0xff] %v11325_v46  ;;  %v11332_v37 = vadd.f32 %v11325_v46, %v11012_v13  ;;  %v6566_v42 = vunpack.c.h.bf16 %v7119_v24  ;;  %v15591_v46 = vld [vmem:[#allocation71_spill] sm:$0xff] }
 0x3e4   :  { %v3892_v52 = vsel %vm200_vm0, %v3798_v22, 0.0 }
 0x3e5   :  { %15573 = vst [vmem:[#allocation108_spill] sm:$0xff] %v11332_v37  ;;  %3887 = vadd.xlane.f32.xlu1 %v3886_v28  ;;  %3884 = vadd.xlane.f32.xlu0 %v3883_v50  ;;  %v4024_v28 = vmul.f32 %v6561_v3, %v15451_v1  ;;  %v6565_v50 = vunpack.c.l.bf16 %v7119_v24  ;;  %v7120_v37 = vld [vmem:[#allocation5 + $0x230] sm:$0xff]   ;;  %v15582_v1 = vld [vmem:[#allocation106_spill] sm:$0xff] }
 0x3e6   :  { %v11334_v49 = vpop.xlane.xlu1 %3355  ;;  %v11345_v13 = vpop.xlane.xlu0 %3352  ;;  %v6570_v17 = vunpack.c.h.bf16 %v7120_v37  ;;  %v6569_v45 = vunpack.c.l.bf16 %v7120_v37  ;;  %v15589_v24 = vld [vmem:[#allocation16_spill] sm:$0xff] }
 0x3e7   :  { %15574 = vst [vmem:[#allocation53_spill] sm:$0xff] %v11334_v49  ;;  %v11343_v8 = vadd.f32 %v11334_v49, %v11023_v32  ;;  %15576 = vst [vmem:[#allocation94_spill] sm:$0xff] %v11345_v13  ;;  %v11352_v57 = vadd.f32 %v11345_v13, %v15577_v23  ;;  %v4059_v32 = vsel %vm200_vm0, %v4025_v55, 0.0  ;;  %v15585_v55 = vld [vmem:[#allocation98_spill] sm:$0xff] }
 0x3e9   :  { %15575 = vst [vmem:[#allocation104_spill] sm:$0xff] %v11343_v8  ;;  %15578 = vst [vmem:[#allocation95_spill] sm:$0xff] %v11352_v57  ;;  %3893 = vadd.xlane.f32.xlu1 %v3892_v52  ;;  %3890 = vadd.xlane.f32.xlu0 %v3889_v19  ;;  %v15580_v8 = vld [vmem:[#allocation13_spill] sm:$0xff]  ;;  %v4056_v52 = vsel %vm200_vm0, %v4024_v28, 0.0  ;;  %v15584_v19 = vld [vmem:[#allocation11_spill] sm:$0xff]  ;;  %v4028_v28 = vmul.f32 %v6569_v45, %v15589_v24 }
 0x3ea   :  { %v11354_v39 = vpop.xlane.xlu1 %3361  ;;  %v4027_v49 = vmul.f32 %v6566_v42, %v15580_v8  ;;  %v11364_v14 = vpop.xlane.xlu0 %3358  ;;  %v4026_v23 = vmul.f32 %v6565_v50, %v15584_v19  ;;  %v7121_v57 = vld [vmem:[#allocation5 + $0x238] sm:$0xff]  }
 0x3eb   :  { %15579 = vst [vmem:[#allocation72_spill] sm:$0xff] %v11354_v39  ;;  %v11362_v22 = vadd.f32 %v11354_v39, %v15582_v1  ;;  %v15586_v42 = vld [vmem:[#allocation45_spill] sm:$0xff]  ;;  %v6574_v8 = vunpack.c.h.bf16 %v7121_v57  ;;  %v4068_v19 = vsel %vm200_vm0, %v4028_v28, 0.0  ;;  %v15599_v28 = vld [vmem:[#allocation96_spill] sm:$0xff] }
 0x3ec   :  { %v11372_v37 = vadd.f32 %v11364_v14, %v15586_v42  ;;  %v4065_v1 = vsel %vm200_vm0, %v4027_v49, 0.0  ;;  %v15590_v50 = vld [vmem:[#allocation77_spill] sm:$0xff] }
 0x3ed   :  { %15583 = vst [vmem:[#allocation74_spill] sm:$0xff] %v11362_v22  ;;  %4060 = vadd.xlane.f32.xlu1 %v4059_v32  ;;  %4057 = vadd.xlane.f32.xlu0 %v4056_v52  ;;  %v15588_v22 = vld [vmem:[#allocation15_spill] sm:$0xff]  ;;  %v4062_v32 = vsel %vm200_vm0, %v4026_v23, 0.0  ;;  %v6573_v52 = vunpack.c.l.bf16 %v7121_v57  ;;  %v4031_v24 = vmul.f32 %v6574_v8, %v15483_v5 }
 0x3ee   :  { %15587 = vst [vmem:[#allocation80_spill] sm:$0xff] %v11372_v37  ;;  %v11374_v3 = vpop.xlane.xlu1 %3367  ;;  %v4029_v39 = vmul.f32 %v6570_v17, %v15588_v22  ;;  %v11385_v42 = vpop.xlane.xlu0 %3364  ;;  %v7122_v37 = vld [vmem:[#allocation5 + $0x370] sm:$0xff]  }
 0x3ef   :  { %v11383_v13 = vadd.f32 %v11374_v3, %v15591_v46  ;;  %15592 = vst [vmem:[#allocation66_spill] sm:$0xff] %v11385_v42  ;;  %v11392_v17 = vadd.f32 %v11385_v42, %v11072_v15  ;;  %v6578_v23 = vunpack.c.h.bf16 %v7122_v37  ;;  %v7123_v42 = vld [vmem:[#allocation5 + $0x378] sm:$0xff]  }
 0x3f0   :  { %v4071_v46 = vsel %vm200_vm0, %v4029_v39, 0.0  ;;  %v6582_v27 = vunpack.c.h.bf16 %v7123_v42  ;;  %v6581_v5 = vunpack.c.l.bf16 %v7123_v42 }
 0x3f1   :  { %15593 = vst [vmem:[#allocation87_spill] sm:$0xff] %v11392_v17  ;;  %4066 = vadd.xlane.f32.xlu1 %v4065_v1  ;;  %4063 = vadd.xlane.f32.xlu0 %v4062_v32  ;;  %v15597_v1 = vld [vmem:[#allocation18_spill] sm:$0xff]  ;;  %v6577_v17 = vunpack.c.l.bf16 %v7122_v37 }
 0x3f2   :  { %v11394_v45 = vpop.xlane.xlu1 %3373  ;;  %v11405_v15 = vpop.xlane.xlu0 %3370  ;;  %v4030_v32 = vmul.f32 %v6573_v52, %v15597_v1  ;;  %v15603_v52 = vld [vmem:[#allocation101_spill] sm:$0xff] }
 0x3f3   :  { %15594 = vst [vmem:[#allocation90_spill] sm:$0xff] %v11394_v45  ;;  %v11403_v49 = vadd.f32 %v11394_v45, %v11083_v2  ;;  %15596 = vst [vmem:[#allocation49_spill] sm:$0xff] %v11405_v15  ;;  %v11412_v8 = vadd.f32 %v11405_v15, %v15599_v28  ;;  %v4077_v2 = vsel %vm200_vm0, %v4031_v24, 0.0  ;;  %v15610_v15 = vld [vmem:[#allocation109_spill] sm:$0xff]  ;;  %v15614_v24 = vld [vmem:[#allocation79_spill] sm:$0xff] }
 0x3f5   :  { %15595 = vst [vmem:[#allocation46_spill] sm:$0xff] %v11403_v49  ;;  %15600 = vst [vmem:[#allocation106_spill] sm:$0xff] %v11412_v8  ;;  %4072 = vadd.xlane.f32.xlu1 %v4071_v46  ;;  %4069 = vadd.xlane.f32.xlu0 %v4068_v19  ;;  %v15602_v49 = vld [vmem:[#allocation19_spill] sm:$0xff]  ;;  %v4074_v46 = vsel %vm200_vm0, %v4030_v32, 0.0  ;;  %v15605_v19 = vld [vmem:[#allocation20_spill] sm:$0xff] }
 0x3f6   :  { %v11414_v57 = vpop.xlane.xlu1 %3379  ;;  %v4033_v45 = vmul.f32 %v6578_v23, %v15602_v49  ;;  %v11424_v39 = vpop.xlane.xlu0 %3376  ;;  %v4032_v28 = vmul.f32 %v6577_v17, %v15605_v19  ;;  %v7124_v8 = vld [vmem:[#allocation5 + $0x4b0] sm:$0xff]   ;;  %v15606_v23 = vld [vmem:[#allocation103_spill] sm:$0xff]  ;;  %v4034_v49 = vmul.f32 %v6581_v5, %v15609_v0  ;;  %v15611_v17 = vld [vmem:[#allocation73_spill] sm:$0xff] }
 0x3f7   :  { %15601 = vst [vmem:[#allocation98_spill] sm:$0xff] %v11414_v57  ;;  %v11422_v29 = vadd.f32 %v11414_v57, %v15603_v52  ;;  %v11432_v42 = vadd.f32 %v11424_v39, %v15606_v23  ;;  %v6586_v32 = vunpack.c.h.bf16 %v7124_v8  ;;  %v15612_v19 = vmax.f32 %v15610_v15, %v15611_v17  ;;  %v15618_v5 = vld [vmem:[#allocation64_spill] sm:$0xff] }
 0x3f8   :  { %v4083_v52 = vsel %vm200_vm0, %v4033_v45, 0.0  ;;  %v15616_v45 = vmax.f32 %v15512_v61, %v11124_v9  ;;  %v15623_v9 = vld [vmem:[#allocation93_spill] sm:$0xff] }
 0x3f9   :  { %15604 = vst [vmem:[#allocation45_spill] sm:$0xff] %v11422_v29  ;;  %15607 = vst [vmem:[#allocation77_spill] sm:$0xff] %v11432_v42  ;;  %4078 = vadd.xlane.f32.xlu1 %v4077_v2  ;;  %4075 = vadd.xlane.f32.xlu0 %v4074_v46  ;;  %v15608_v29 = vld [vmem:[#allocation21_spill] sm:$0xff]  ;;  %v4080_v2 = vsel %vm200_vm0, %v4032_v28, 0.0  ;;  %v6585_v46 = vunpack.c.l.bf16 %v7124_v8 }
 0x3fa   :  { %v3547_v37 = vpop.xlane.xlu1 %3546  ;;  %v4035_v57 = vmul.f32 %v6582_v27, %v15608_v29  ;;  %v3544_v23 = vpop.xlane.xlu0 %3543  ;;  %v7125_v42 = vld [vmem:[#allocation5 + $0x4b8] sm:$0xff]  }
 0x3fb   :  { %v11440_v1 = vmax.f32 %v15612_v19, %v3547_v37  ;;  %v11443_v63 = vadd.f32 %v3547_v37, %v15614_v24  ;;  %v11449_v27 = vmax.f32 %v15616_v45, %v3544_v23  ;;  %v11452_v0 = vadd.f32 %v3544_v23, %v15618_v5  ;;  %v15620_v8 = vld [vmem:[#allocation57_spill] sm:$0xff]  ;;  %v15625_v45 = vld [vmem:[#allocation24_spill] sm:$0xff] }
 0x3fc   :  { %v4089_v19 = vsel %vm200_vm0, %v4035_v57, 0.0  ;;  %v4086_v37 = vsel %vm200_vm0, %v4034_v49, 0.0  ;;  %v4037_v24 = vmul.f32 %v6586_v32, %v15516_v7  ;;  %v6590_v28 = vunpack.c.h.bf16 %v7125_v42  ;;  %v7126_v5 = vld [vmem:[#allocation5 + $0x5f0] sm:$0xff]   ;;  %v15627_v57 = vld [vmem:[#allocation54_spill] sm:$0xff] }
 0x3fd   :  { %15613 = vst [vmem:[#allocation71_spill] sm:$0xff] %v11440_v1  ;;  %15615 = vst [vmem:[#allocation96_spill] sm:$0xff] %v11443_v63  ;;  %4084 = vadd.xlane.f32.xlu1 %v4083_v52  ;;  %4081 = vadd.xlane.f32.xlu0 %v4080_v2  ;;  %v15621_v17 = vmax.f32 %v15518_v30, %v15620_v8  ;;  %v4036_v52 = vmul.f32 %v6585_v46, %v15625_v45  ;;  %v6589_v2 = vunpack.c.l.bf16 %v7125_v42  ;;  %v15630_v32 = vld [vmem:[#allocation70_spill] sm:$0xff]  ;;  %v15634_v42 = vld [vmem:[#allocation88_spill] sm:$0xff] }
 0x3fe   :  { %15617 = vst [vmem:[#allocation101_spill] sm:$0xff] %v11449_v27  ;;  %15619 = vst [vmem:[#allocation103_spill] sm:$0xff] %v11452_v0  ;;  %v3553_v15 = vpop.xlane.xlu1 %3552  ;;  %v3550_v23 = vpop.xlane.xlu0 %3549  ;;  %v15626_v0 = vld [vmem:[#allocation99_spill] sm:$0xff]  ;;  %v4095_v8 = vsel %vm200_vm0, %v4037_v24, 0.0  ;;  %v15633_v46 = vld [vmem:[#allocation102_spill] sm:$0xff] }
 0x3ff   :  { %v11460_v63 = vmax.f32 %v15621_v17, %v3553_v15  ;;  %v11463_v61 = vadd.f32 %v3553_v15, %v15623_v9  ;;  %v15628_v27 = vmax.f32 %v15626_v0, %v15627_v57  ;;  %v11472_v7 = vadd.f32 %v3550_v23, %v15630_v32  ;;  %v15632_v15 = vld [vmem:[#allocation25_spill] sm:$0xff]  ;;  %v15637_v0 = vld [vmem:[#allocation60_spill] sm:$0xff]  ;;  %v15641_v24 = vld [vmem:[#allocation82_spill] sm:$0xff] }
 0x400   :  { %v4039_v17 = vmul.f32 %v6590_v28, %v15632_v15  ;;  %v6594_v9 = vunpack.c.h.bf16 %v7126_v5  ;;  %v15635_v45 = vmax.f32 %v15633_v46, %v15634_v42  ;;  %v7127_v32 = vld [vmem:[#allocation5 + $0x5f8] sm:$0xff]   ;;  %v15644_v46 = vld [vmem:[#allocation27_spill] sm:$0xff] }
 0x401   :  { %15622 = vst [vmem:[#allocation109_spill] sm:$0xff] %v11460_v63  ;;  %15624 = vst [vmem:[#allocation73_spill] sm:$0xff] %v11463_v61  ;;  %v11469_v49 = vmax.f32 %v15628_v27, %v3550_v23  ;;  %4090 = vadd.xlane.f32.xlu1 %v4089_v19  ;;  %4087 = vadd.xlane.f32.xlu0 %v4086_v37  ;;  %v6593_v61 = vunpack.c.l.bf16 %v7126_v5  ;;  %v4092_v23 = vsel %vm200_vm0, %v4036_v52, 0.0  ;;  %v15639_v19 = vld [vmem:[#allocation26_spill] sm:$0xff]  ;;  %v15643_v5 = vld [vmem:[#allocation51_spill] sm:$0xff] }
 0x402   :  { %15631 = vst [vmem:[#allocation64_spill] sm:$0xff] %v11472_v7  ;;  %v3559_v30 = vpop.xlane.xlu1 %3558  ;;  %v3556_v57 = vpop.xlane.xlu0 %3555  ;;  %v4038_v37 = vmul.f32 %v6589_v2, %v15639_v19  ;;  %v15640_v7 = vld [vmem:[#allocation100_spill] sm:$0xff]  ;;  %v4041_v42 = vmul.f32 %v6594_v9, %v15644_v46  ;;  %v15646_v2 = vld [vmem:[#allocation63_spill] sm:$0xff] }
 0x403   :  { %15629 = vst [vmem:[#allocation79_spill] sm:$0xff] %v11469_v49  ;;  %v11479_v63 = vmax.f32 %v15635_v45, %v3559_v30  ;;  %v11482_v27 = vadd.f32 %v3559_v30, %v15637_v0  ;;  %v15642_v49 = vmax.f32 %v15640_v7, %v15641_v24  ;;  %v11492_v15 = vadd.f32 %v3556_v57, %v15643_v5  ;;  %v15645_v0 = vld [vmem:[#allocation28_spill] sm:$0xff]  ;;  %v15649_v7 = vld [vmem:[#allocation50_spill] sm:$0xff] }
 0x404   :  { %v4101_v30 = vsel %vm200_vm0, %v4039_v17, 0.0  ;;  %v4040_v52 = vmul.f32 %v6593_v61, %v15645_v0  ;;  %v7128_v24 = vld [vmem:[#allocation5 + $0x730] sm:$0xff]   ;;  %v15650_v17 = vmax.f32 %v15537_v35, %v11184_v10  ;;  %v15651_v61 = vld [vmem:[#allocation78_spill] sm:$0xff] }
 0x405   :  { %15636 = vst [vmem:[#allocation57_spill] sm:$0xff] %v11479_v63  ;;  %15638 = vst [vmem:[#allocation93_spill] sm:$0xff] %v11482_v27  ;;  %v11489_v28 = vmax.f32 %v15642_v49, %v3556_v57  ;;  %4096 = vadd.xlane.f32.xlu1 %v4095_v8  ;;  %4093 = vadd.xlane.f32.xlu0 %v4092_v23  ;;  %v6598_v27 = vunpack.c.h.bf16 %v7127_v32  ;;  %v15647_v63 = vld [vmem:[#allocation62_spill] sm:$0xff]  ;;  %v4098_v8 = vsel %vm200_vm0, %v4038_v37, 0.0  ;;  %v6597_v23 = vunpack.c.l.bf16 %v7127_v32 }
 0x406   :  { %v3565_v45 = vpop.xlane.xlu1 %3564  ;;  %v15648_v19 = vmax.f32 %v15646_v2, %v15647_v63  ;;  %v3562_v57 = vpop.xlane.xlu0 %3561  ;;  %v6602_v37 = vunpack.c.h.bf16 %v7128_v24  ;;  %v15652_v32 = vmax.f32 %v15542_v38, %v11194_v58 }
 0x407   :  { %v11503_v49 = vadd.f32 %v3565_v45, %v15649_v7  ;;  %v11509_v9 = vmax.f32 %v15650_v17, %v3562_v57  ;;  %v11512_v5 = vadd.f32 %v3562_v57, %v15651_v61  ;;  %v4043_v2 = vmul.f32 %v6598_v27, %v15540_v6  ;;  %v15654_v57 = vld [vmem:[#allocation30_spill] sm:$0xff]  ;;  %v7129_v17 = vld [vmem:[#allocation5 + $0x738] sm:$0xff]   ;;  %v15656_v27 = vld [vmem:[#allocation84_spill] sm:$0xff] }
 0x408   :  { %v11500_v1 = vmax.f32 %v15648_v19, %v3565_v45  ;;  %v4107_v19 = vsel %vm200_vm0, %v4041_v42, 0.0  ;;  %v4104_v45 = vsel %vm200_vm0, %v4040_v52, 0.0  ;;  %v15655_v42 = vmax.f32 %v10889_v36, %v11205_v33  ;;  %v15661_v36 = vld [vmem:[#allocation52_spill] sm:$0xff] }
 0x409   :  { %4102 = vadd.xlane.f32.xlu1 %v4101_v30  ;;  %4099 = vadd.xlane.f32.xlu0 %v4098_v8  ;;  %v4042_v30 = vmul.f32 %v6597_v23, %v15654_v57  ;;  %v6601_v8 = vunpack.c.l.bf16 %v7128_v24  ;;  %v4113_v38 = vsel %vm200_vm0, %v4043_v2, 0.0  ;;  %v15658_v23 = vld [vmem:[#allocation107_spill] sm:$0xff]  ;;  %v15663_v2 = vld [vmem:[#allocation85_spill] sm:$0xff] }
 0x40a   :  { %v3571_v63 = vpop.xlane.xlu1 %3570  ;;  %v3568_v35 = vpop.xlane.xlu0 %3567  ;;  %v15659_v24 = vmax.f32 %v10900_v54, %v15658_v23  ;;  %v15666_v23 = vld [vmem:[#allocation33_spill] sm:$0xff] }
 0x40b   :  { %v11520_v7 = vmax.f32 %v15652_v32, %v3571_v63  ;;  %v11523_v10 = vadd.f32 %v3571_v63, %v11203_v56  ;;  %v11529_v52 = vmax.f32 %v15655_v42, %v3568_v35  ;;  %v11532_v61 = vadd.f32 %v3568_v35, %v15656_v27 }
 0x40c   :  { %v4045_v56 = vmul.f32 %v6602_v37, %v15406_v62  ;;  %v6606_v63 = vunpack.c.h.bf16 %v7129_v17  ;;  %v6605_v32 = vunpack.c.l.bf16 %v7129_v17  ;;  %v4110_v35 = vsel %vm200_vm0, %v4042_v30, 0.0  ;;  %v15665_v17 = vld [vmem:[#allocation48_spill] sm:$0xff] }
 0x40d   :  { %15653 = vst [vmem:[#allocation99_spill] sm:$0xff] %v11520_v7  ;;  %15657 = vst [vmem:[#allocation54_spill] sm:$0xff] %v11532_v61  ;;  %4108 = vadd.xlane.f32.xlu1 %v4107_v19  ;;  %4105 = vadd.xlane.f32.xlu0 %v4104_v45  ;;  %v4044_v19 = vmul.f32 %v6601_v8, %v15407_v20  ;;  %v7130_v45 = vld [vmem:[#allocation5 + $0x870] sm:$0xff]   ;;  %v15664_v27 = vmax.f32 %v10909_v11, %v15663_v2  ;;  %v15668_v8 = vld [vmem:[#allocation67_spill] sm:$0xff] }
 0x40e   :  { %v3577_v58 = vpop.xlane.xlu1 %3576  ;;  %v3574_v42 = vpop.xlane.xlu0 %3573  ;;  %v15671_v11 = vld [vmem:[#allocation65_spill] sm:$0xff]  ;;  %v15800_v7 = vld [vmem:[#allocation32_spill] sm:$0xff] }
 0x40f   :  { %v11539_v57 = vmax.f32 %v15659_v24, %v3577_v58  ;;  %v11542_v33 = vadd.f32 %v3577_v58, %v15661_v36  ;;  %v11549_v37 = vmax.f32 %v15664_v27, %v3574_v42  ;;  %v11552_v62 = vadd.f32 %v3574_v42, %v15665_v17  ;;  %v15667_v36 = vld [vmem:[#allocation34_spill] sm:$0xff]  ;;  %v7131_v27 = vld [vmem:[#allocation5 + $0x878] sm:$0xff]  }
 0x410   :  { %v4119_v58 = vsel %vm200_vm0, %v4045_v56, 0.0  ;;  %v4047_v24 = vmul.f32 %v6606_v63, %v15666_v23  ;;  %v4046_v30 = vmul.f32 %v6605_v32, %v15667_v36  ;;  %v15672_v56 = vmax.f32 %v10929_v51, %v11244_v47  ;;  %v15673_v32 = vld [vmem:[#allocation86_spill] sm:$0xff] }
 0x411   :  { %15660 = vst [vmem:[#allocation70_spill] sm:$0xff] %v11539_v57  ;;  %15662 = vst [vmem:[#allocation102_spill] sm:$0xff] %v11542_v33  ;;  %4114 = vadd.xlane.f32.xlu1 %v4113_v38  ;;  %4111 = vadd.xlane.f32.xlu0 %v4110_v35  ;;  %v6610_v33 = vunpack.c.h.bf16 %v7130_v45  ;;  %v15669_v57 = vld [vmem:[#allocation55_spill] sm:$0xff]  ;;  %v4116_v38 = vsel %vm200_vm0, %v4044_v19, 0.0  ;;  %v6609_v35 = vunpack.c.l.bf16 %v7130_v45  ;;  %v6614_v19 = vunpack.c.h.bf16 %v7131_v27 }
 0x412   :  { %v3583_v54 = vpop.xlane.xlu1 %3582  ;;  %v15670_v20 = vmax.f32 %v15668_v8, %v15669_v57  ;;  %v3580_v42 = vpop.xlane.xlu0 %3579  ;;  %v4125_v57 = vsel %vm200_vm0, %v4047_v24, 0.0  ;;  %v15674_v45 = vmax.f32 %v15556_v34, %v11254_v18  ;;  %v15677_v24 = vmax.f32 %v10949_v44, %v11265_v41  ;;  %v15683_v44 = vld [vmem:[#allocation69_spill] sm:$0xff] }
 0x413   :  { %v11563_v2 = vadd.f32 %v3583_v54, %v15671_v11  ;;  %v11569_v63 = vmax.f32 %v15672_v56, %v3580_v42  ;;  %v11572_v17 = vadd.f32 %v3580_v42, %v15673_v32  ;;  %v4049_v8 = vmul.f32 %v6610_v33, %v15554_v53  ;;  %v15676_v42 = vld [vmem:[#allocation36_spill] sm:$0xff]  ;;  %v15678_v33 = vld [vmem:[#allocation59_spill] sm:$0xff] }
 0x414   :  { %v11560_v61 = vmax.f32 %v15670_v20, %v3583_v54  ;;  %v4122_v54 = vsel %vm200_vm0, %v4046_v30, 0.0  ;;  %v7132_v56 = vld [vmem:[#allocation5 + $0x9b0] sm:$0xff]  }
 0x415   :  { %4120 = vadd.xlane.f32.xlu1 %v4119_v58  ;;  %4117 = vadd.xlane.f32.xlu0 %v4116_v38  ;;  %v4048_v58 = vmul.f32 %v6609_v35, %v15676_v42  ;;  %v6613_v38 = vunpack.c.l.bf16 %v7131_v27  ;;  %v4131_v34 = vsel %vm200_vm0, %v4049_v8, 0.0  ;;  %v15680_v35 = vld [vmem:[#allocation68_spill] sm:$0xff] }
 0x416   :  { %v3589_v20 = vpop.xlane.xlu1 %3588  ;;  %v3586_v47 = vpop.xlane.xlu0 %3585  ;;  %v15681_v27 = vmax.f32 %v10960_v21, %v15680_v35  ;;  %v15685_v8 = vld [vmem:[#allocation56_spill] sm:$0xff]  ;;  %v15688_v35 = vld [vmem:[#allocation39_spill] sm:$0xff] }
 0x417   :  { %v11580_v11 = vmax.f32 %v15674_v45, %v3589_v20  ;;  %v11583_v51 = vadd.f32 %v3589_v20, %v11263_v31  ;;  %v11589_v30 = vmax.f32 %v15677_v24, %v3586_v47  ;;  %v11592_v32 = vadd.f32 %v3586_v47, %v15678_v33 }
 0x418   :  { %v4051_v31 = vmul.f32 %v6614_v19, %v15428_v25  ;;  %v6618_v20 = vunpack.c.h.bf16 %v7132_v56  ;;  %v6617_v45 = vunpack.c.l.bf16 %v7132_v56  ;;  %v4128_v47 = vsel %vm200_vm0, %v4048_v58, 0.0  ;;  %v15687_v56 = vld [vmem:[#allocation58_spill] sm:$0xff] }
 0x419   :  { %15675 = vst [vmem:[#allocation88_spill] sm:$0xff] %v11580_v11  ;;  %15679 = vst [vmem:[#allocation60_spill] sm:$0xff] %v11592_v32  ;;  %4126 = vadd.xlane.f32.xlu1 %v4125_v57  ;;  %4123 = vadd.xlane.f32.xlu0 %v4122_v54  ;;  %v4050_v57 = vmul.f32 %v6613_v38, %v15429_v60  ;;  %v7133_v54 = vld [vmem:[#allocation5 + $0x9b8] sm:$0xff]   ;;  %v15686_v33 = vmax.f32 %v10969_v59, %v15685_v8  ;;  %v15690_v38 = vld [vmem:[#allocation75_spill] sm:$0xff] }
 0x41a   :  { %v3595_v18 = vpop.xlane.xlu1 %3594  ;;  %v3592_v24 = vpop.xlane.xlu0 %3591  ;;  %v15694_v59 = vld [vmem:[#allocation92_spill] sm:$0xff]  ;;  %v15814_v11 = vld [vmem:[#allocation38_spill] sm:$0xff] }
 0x41b   :  { %v11599_v42 = vmax.f32 %v15681_v27, %v3595_v18  ;;  %v11602_v41 = vadd.f32 %v3595_v18, %v15683_v44  ;;  %v11609_v19 = vmax.f32 %v15686_v33, %v3592_v24  ;;  %v11612_v25 = vadd.f32 %v3592_v24, %v15687_v56  ;;  %v15689_v44 = vld [vmem:[#allocation40_spill] sm:$0xff]  ;;  %v6624_v33 = vld [vmem:[#allocation5 + $0x100] sm:$0xff]  }
 0x41c   :  { %v4137_v18 = vsel %vm200_vm0, %v4051_v31, 0.0  ;;  %v4053_v27 = vmul.f32 %v6618_v20, %v15688_v35  ;;  %v4052_v58 = vmul.f32 %v6617_v45, %v15689_v44  ;;  %v15695_v31 = vmax.f32 %v10989_v12, %v11304_v43  ;;  %v15697_v45 = vld [vmem:[#allocation91_spill] sm:$0xff] }
 0x41d   :  { %15682 = vst [vmem:[#allocation100_spill] sm:$0xff] %v11599_v42  ;;  %15684 = vst [vmem:[#allocation82_spill] sm:$0xff] %v11602_v41  ;;  %4132 = vadd.xlane.f32.xlu1 %v4131_v34  ;;  %4129 = vadd.xlane.f32.xlu0 %v4128_v47  ;;  %v6622_v41 = vunpack.c.h.bf16 %v7133_v54  ;;  %v15691_v42 = vld [vmem:[#allocation44_spill] sm:$0xff]  ;;  %v4134_v34 = vsel %vm200_vm0, %v4050_v57, 0.0  ;;  %v6621_v47 = vunpack.c.l.bf16 %v7133_v54  ;;  %v6626_v57 = vunpack.c.h.bf16 %v6624_v33 }
 0x41e   :  { %v3601_v21 = vpop.xlane.xlu1 %3600  ;;  %v15692_v60 = vmax.f32 %v15690_v38, %v15691_v42  ;;  %v3598_v24 = vpop.xlane.xlu0 %3597  ;;  %v4143_v42 = vsel %vm200_vm0, %v4053_v27, 0.0  ;;  %v15699_v54 = vmax.f32 %v15570_v40, %v11314_v26  ;;  %v15703_v27 = vld [vmem:[#allocation47_spill] sm:$0xff] }
 0x41f   :  { %v11623_v8 = vadd.f32 %v3601_v21, %v15694_v59  ;;  %v11629_v20 = vmax.f32 %v15695_v31, %v3598_v24  ;;  %v11632_v56 = vadd.f32 %v3598_v24, %v15697_v45  ;;  %v4055_v38 = vmul.f32 %v6622_v41, %v15568_v16  ;;  %v15702_v24 = vld [vmem:[#allocation42_spill] sm:$0xff]  ;;  %v7134_v31 = vld [vmem:[#allocation5 + $0x108] sm:$0xff]   ;;  %v15706_v41 = vld [vmem:[#allocation108_spill] sm:$0xff] }
 0x420   :  { %v11620_v32 = vmax.f32 %v15692_v60, %v3601_v21  ;;  %v4140_v21 = vsel %vm200_vm0, %v4052_v58, 0.0  ;;  %v15704_v45 = vmax.f32 %v11009_v4, %v15703_v27  ;;  %v15713_v4 = vld [vmem:[#allocation104_spill] sm:$0xff] }
 0x421   :  { %15696 = vst [vmem:[#allocation63_spill] sm:$0xff] %v11629_v20  ;;  %15698 = vst [vmem:[#allocation62_spill] sm:$0xff] %v11632_v56  ;;  %4138 = vadd.xlane.f32.xlu1 %v4137_v18  ;;  %4135 = vadd.xlane.f32.xlu0 %v4134_v34  ;;  %v4054_v18 = vmul.f32 %v6621_v47, %v15702_v24  ;;  %v6625_v34 = vunpack.c.l.bf16 %v6624_v33  ;;  %v4149_v40 = vsel %vm200_vm0, %v4055_v38, 0.0  ;;  %v15709_v47 = vld [vmem:[#allocation81_spill] sm:$0xff]  ;;  %v15717_v38 = vld [vmem:[#allocation94_spill] sm:$0xff] }
 0x422   :  { %15693 = vst [vmem:[#allocation51_spill] sm:$0xff] %v11620_v32  ;;  %v3607_v60 = vpop.xlane.xlu1 %3606  ;;  %v3604_v43 = vpop.xlane.xlu0 %3603  ;;  %v15710_v33 = vld [vmem:[#allocation53_spill] sm:$0xff] }
 0x423   :  { %v11640_v59 = vmax.f32 %v15699_v54, %v3607_v60  ;;  %v11643_v12 = vadd.f32 %v3607_v60, %v11323_v48  ;;  %v11649_v58 = vmax.f32 %v15704_v45, %v3604_v43  ;;  %v11652_v16 = vadd.f32 %v3604_v43, %v15706_v41  ;;  %v15708_v48 = vld [vmem:[#allocation14_spill] sm:$0xff] }
 0x424   :  { %v4282_v60 = vmul.f32 %v6626_v57, %v15708_v48  ;;  %v6630_v54 = vunpack.c.h.bf16 %v7134_v31  ;;  %v15711_v24 = vmax.f32 %v15709_v47, %v15710_v33  ;;  %v4146_v43 = vsel %vm200_vm0, %v4054_v18, 0.0  ;;  %v7135_v41 = vld [vmem:[#allocation5 + $0x240] sm:$0xff]   ;;  %v15721_v47 = vld [vmem:[#allocation13_spill] sm:$0xff] }
 0x425   :  { %15700 = vst [vmem:[#allocation50_spill] sm:$0xff] %v11640_v59  ;;  %15701 = vst [vmem:[#allocation78_spill] sm:$0xff] %v11643_v12  ;;  %4144 = vadd.xlane.f32.xlu1 %v4143_v42  ;;  %4141 = vadd.xlane.f32.xlu0 %v4140_v21  ;;  %v6629_v12 = vunpack.c.l.bf16 %v7134_v31  ;;  %v15715_v42 = vld [vmem:[#allocation12_spill] sm:$0xff]  ;;  %v15720_v31 = vld [vmem:[#allocation95_spill] sm:$0xff] }
 0x426   :  { %15705 = vst [vmem:[#allocation84_spill] sm:$0xff] %v11649_v58  ;;  %15707 = vst [vmem:[#allocation107_spill] sm:$0xff] %v11652_v16  ;;  %v3613_v26 = vpop.xlane.xlu1 %3612  ;;  %v3610_v45 = vpop.xlane.xlu0 %3609  ;;  %v4281_v21 = vmul.f32 %v6625_v34, %v15715_v42  ;;  %v15716_v16 = vld [vmem:[#allocation97_spill] sm:$0xff]  ;;  %v4284_v33 = vmul.f32 %v6630_v54, %v15721_v47 }
 0x427   :  { %v11659_v59 = vmax.f32 %v15711_v24, %v3613_v26  ;;  %v11662_v27 = vadd.f32 %v3613_v26, %v15713_v4  ;;  %v15718_v58 = vmax.f32 %v15716_v16, %v15717_v38  ;;  %v11672_v48 = vadd.f32 %v3610_v45, %v15720_v31  ;;  %v15722_v4 = vld [vmem:[#allocation11_spill] sm:$0xff]  ;;  %v15723_v34 = vld [vmem:[#allocation61_spill] sm:$0xff]  ;;  %v15727_v16 = vld [vmem:[#allocation74_spill] sm:$0xff] }
 0x428   :  { %v4316_v26 = vsel %vm200_vm0, %v4282_v60, 0.0  ;;  %v4283_v18 = vmul.f32 %v6629_v12, %v15722_v4  ;;  %v7136_v38 = vld [vmem:[#allocation5 + $0x248] sm:$0xff]   ;;  %v15728_v60 = vmax.f32 %v15585_v55, %v11364_v14  ;;  %v15730_v12 = vld [vmem:[#allocation80_spill] sm:$0xff] }
 0x429   :  { %15712 = vst [vmem:[#allocation52_spill] sm:$0xff] %v11659_v59  ;;  %15714 = vst [vmem:[#allocation85_spill] sm:$0xff] %v11662_v27  ;;  %v11669_v57 = vmax.f32 %v15718_v58, %v3610_v45  ;;  %4150 = vadd.xlane.f32.xlu1 %v4149_v40  ;;  %4147 = vadd.xlane.f32.xlu0 %v4146_v43  ;;  %v6634_v27 = vunpack.c.h.bf16 %v7135_v41  ;;  %v15724_v59 = vld [vmem:[#allocation72_spill] sm:$0xff]  ;;  %v4313_v40 = vsel %vm200_vm0, %v4281_v21, 0.0  ;;  %v6633_v43 = vunpack.c.l.bf16 %v7135_v41 }
 0x42a   :  { %v3619_v24 = vpop.xlane.xlu1 %3618  ;;  %v15725_v42 = vmax.f32 %v15723_v34, %v15724_v59  ;;  %v3616_v45 = vpop.xlane.xlu0 %3615  ;;  %v6638_v21 = vunpack.c.h.bf16 %v7136_v38  ;;  %v15732_v41 = vmax.f32 %v15590_v50, %v11374_v3 }
 0x42b   :  { %15719 = vst [vmem:[#allocation48_spill] sm:$0xff] %v11669_v57  ;;  %v11683_v58 = vadd.f32 %v3619_v24, %v15727_v16  ;;  %v11689_v54 = vmax.f32 %v15728_v60, %v3616_v45  ;;  %v11692_v31 = vadd.f32 %v3616_v45, %v15730_v12  ;;  %v4286_v34 = vmul.f32 %v6634_v27, %v15588_v22  ;;  %v15735_v45 = vld [vmem:[#allocation16_spill] sm:$0xff]  ;;  %v7137_v60 = vld [vmem:[#allocation5 + $0x380] sm:$0xff]   ;;  %v15736_v12 = vld [vmem:[#allocation105_spill] sm:$0xff] }
 0x42c   :  { %v11680_v56 = vmax.f32 %v15725_v42, %v3619_v24  ;;  %v4322_v42 = vsel %vm200_vm0, %v4284_v33, 0.0  ;;  %v4319_v24 = vsel %vm200_vm0, %v4283_v18, 0.0  ;;  %v15737_v33 = vld [vmem:[#allocation66_spill] sm:$0xff]  ;;  %v15740_v27 = vld [vmem:[#allocation87_spill] sm:$0xff] }
 0x42d   :  { %15729 = vst [vmem:[#allocation55_spill] sm:$0xff] %v11689_v54  ;;  %15731 = vst [vmem:[#allocation65_spill] sm:$0xff] %v11692_v31  ;;  %4317 = vadd.xlane.f32.xlu1 %v4316_v26  ;;  %4314 = vadd.xlane.f32.xlu0 %v4313_v40  ;;  %v4285_v26 = vmul.f32 %v6633_v43, %v15735_v45  ;;  %v6637_v40 = vunpack.c.l.bf16 %v7136_v38  ;;  %v15738_v31 = vmax.f32 %v15736_v12, %v15737_v33  ;;  %v15743_v43 = vld [vmem:[#allocation43_spill] sm:$0xff]  ;;  %v15744_v38 = vld [vmem:[#allocation90_spill] sm:$0xff] }
 0x42e   :  { %15726 = vst [vmem:[#allocation67_spill] sm:$0xff] %v11680_v56  ;;  %v3625_v59 = vpop.xlane.xlu1 %3624  ;;  %v3622_v55 = vpop.xlane.xlu0 %3621  ;;  %v4328_v50 = vsel %vm200_vm0, %v4286_v34, 0.0  ;;  %v15745_v45 = vmax.f32 %v15743_v43, %v15744_v38  ;;  %v15747_v12 = vld [vmem:[#allocation46_spill] sm:$0xff]  ;;  %v15751_v34 = vld [vmem:[#allocation49_spill] sm:$0xff]  ;;  %v15755_v43 = vld [vmem:[#allocation19_spill] sm:$0xff] }
 0x42f   :  { %v11700_v16 = vmax.f32 %v15732_v41, %v3625_v59  ;;  %v11703_v14 = vadd.f32 %v3625_v59, %v11383_v13  ;;  %v11709_v18 = vmax.f32 %v15738_v31, %v3622_v55  ;;  %v11712_v22 = vadd.f32 %v3622_v55, %v15740_v27  ;;  %v15742_v13 = vld [vmem:[#allocation17_spill] sm:$0xff]  ;;  %v7138_v27 = vld [vmem:[#allocation5 + $0x388] sm:$0xff]  }
 0x430   :  { %v4288_v59 = vmul.f32 %v6638_v21, %v15742_v13  ;;  %v6642_v41 = vunpack.c.h.bf16 %v7137_v60  ;;  %v4325_v55 = vsel %vm200_vm0, %v4285_v26, 0.0 }
 0x431   :  { %15733 = vst [vmem:[#allocation86_spill] sm:$0xff] %v11700_v16  ;;  %15734 = vst [vmem:[#allocation59_spill] sm:$0xff] %v11703_v14  ;;  %4323 = vadd.xlane.f32.xlu1 %v4322_v42  ;;  %4320 = vadd.xlane.f32.xlu0 %v4319_v24  ;;  %v6641_v14 = vunpack.c.l.bf16 %v7137_v60  ;;  %v15749_v42 = vld [vmem:[#allocation18_spill] sm:$0xff] }
 0x432   :  { %15739 = vst [vmem:[#allocation68_spill] sm:$0xff] %v11709_v18  ;;  %15741 = vst [vmem:[#allocation69_spill] sm:$0xff] %v11712_v22  ;;  %v3631_v3 = vpop.xlane.xlu1 %3630  ;;  %v3628_v33 = vpop.xlane.xlu0 %3627  ;;  %v4287_v24 = vmul.f32 %v6637_v40, %v15749_v42  ;;  %v15750_v22 = vld [vmem:[#allocation83_spill] sm:$0xff]  ;;  %v15754_v60 = vld [vmem:[#allocation106_spill] sm:$0xff]  ;;  %v4290_v38 = vmul.f32 %v6642_v41, %v15755_v43 }
 0x433   :  { %v11719_v16 = vmax.f32 %v15745_v45, %v3631_v3  ;;  %v11722_v31 = vadd.f32 %v3631_v3, %v15747_v12  ;;  %v15752_v18 = vmax.f32 %v15750_v22, %v15751_v34  ;;  %v11732_v13 = vadd.f32 %v3628_v33, %v15754_v60  ;;  %v15756_v12 = vld [vmem:[#allocation20_spill] sm:$0xff]  ;;  %v15761_v22 = vld [vmem:[#allocation45_spill] sm:$0xff]  ;;  %v7139_v34 = vld [vmem:[#allocation5 + $0x4c0] sm:$0xff]  }
 0x434   :  { %v4334_v3 = vsel %vm200_vm0, %v4288_v59, 0.0  ;;  %v4289_v26 = vmul.f32 %v6641_v14, %v15756_v12  ;;  %v15757_v40 = vld [vmem:[#allocation76_spill] sm:$0xff]  ;;  %v15762_v60 = vld [vmem:[#allocation89_spill] sm:$0xff] }
 0x435   :  { %15746 = vst [vmem:[#allocation56_spill] sm:$0xff] %v11719_v16  ;;  %15748 = vst [vmem:[#allocation58_spill] sm:$0xff] %v11722_v31  ;;  %v11729_v21 = vmax.f32 %v15752_v18, %v3628_v33  ;;  %4329 = vadd.xlane.f32.xlu1 %v4328_v50  ;;  %4326 = vadd.xlane.f32.xlu0 %v4325_v55  ;;  %v6646_v31 = vunpack.c.h.bf16 %v7138_v27  ;;  %v15758_v16 = vld [vmem:[#allocation98_spill] sm:$0xff]  ;;  %v4331_v50 = vsel %vm200_vm0, %v4287_v24, 0.0  ;;  %v6645_v55 = vunpack.c.l.bf16 %v7138_v27  ;;  %v15765_v14 = vld [vmem:[#allocation77_spill] sm:$0xff] }
 0x436   :  { %v3637_v45 = vpop.xlane.xlu1 %3636  ;;  %v15759_v42 = vmax.f32 %v15757_v40, %v15758_v16  ;;  %v3634_v33 = vpop.xlane.xlu0 %3633  ;;  %v15763_v59 = vmax.f32 %v15762_v60, %v11424_v39  ;;  %v6650_v27 = vunpack.c.h.bf16 %v7139_v34  ;;  %v15769_v39 = vld [vmem:[#allocation96_spill] sm:$0xff] }
 0x437   :  { %15753 = vst [vmem:[#allocation75_spill] sm:$0xff] %v11729_v21  ;;  %v11743_v18 = vadd.f32 %v3637_v45, %v15761_v22  ;;  %v11752_v12 = vadd.f32 %v3634_v33, %v15765_v14  ;;  %v4292_v24 = vmul.f32 %v6646_v31, %v15608_v29  ;;  %v7140_v14 = vld [vmem:[#allocation5 + $0x4c8] sm:$0xff]  }
 0x438   :  { %v11740_v54 = vmax.f32 %v15759_v42, %v3637_v45  ;;  %v11749_v41 = vmax.f32 %v15763_v59, %v3634_v33  ;;  %v4340_v42 = vsel %vm200_vm0, %v4290_v38, 0.0  ;;  %v4337_v45 = vsel %vm200_vm0, %v4289_v26, 0.0  ;;  %v15774_v26 = vld [vmem:[#allocation103_spill] sm:$0xff] }
 0x439   :  { %15766 = vst [vmem:[#allocation91_spill] sm:$0xff] %v11752_v12  ;;  %4335 = vadd.xlane.f32.xlu1 %v4334_v3  ;;  %4332 = vadd.xlane.f32.xlu0 %v4331_v50  ;;  %v15772_v3 = vld [vmem:[#allocation22_spill] sm:$0xff]  ;;  %v6649_v59 = vunpack.c.l.bf16 %v7139_v34  ;;  %v6654_v40 = vunpack.c.h.bf16 %v7140_v14  ;;  %v6653_v29 = vunpack.c.l.bf16 %v7140_v14 }
 0x43a   :  { %15760 = vst [vmem:[#allocation44_spill] sm:$0xff] %v11740_v54  ;;  %15764 = vst [vmem:[#allocation92_spill] sm:$0xff] %v11749_v41  ;;  %v11754_v16 = vpop.xlane.xlu1 %3803  ;;  %v11765_v33 = vpop.xlane.xlu0 %3800  ;;  %v4291_v50 = vmul.f32 %v6645_v55, %v15772_v3  ;;  %v15779_v3 = vld [vmem:[#allocation73_spill] sm:$0xff]  ;;  %v15786_v55 = vld [vmem:[#allocation26_spill] sm:$0xff] }
 0x43b   :  { %15767 = vst [vmem:[#allocation47_spill] sm:$0xff] %v11754_v16  ;;  %v11763_v60 = vadd.f32 %v11754_v16, %v15769_v39  ;;  %15771 = vst [vmem:[#allocation81_spill] sm:$0xff] %v11765_v33  ;;  %v11772_v31 = vadd.f32 %v11765_v33, %v15774_v26  ;;  %v4346_v39 = vsel %vm200_vm0, %v4292_v24, 0.0  ;;  %v15782_v24 = vld [vmem:[#allocation79_spill] sm:$0xff]  ;;  %v15788_v41 = vld [vmem:[#allocation93_spill] sm:$0xff] }
 0x43c   :  { %v15858_v57 = vld [vmem:[#allocation58_spill] sm:$0xff] }
 0x43d   :  { %15770 = vst [vmem:[#allocation108_spill] sm:$0xff] %v11763_v60  ;;  %15775 = vst [vmem:[#allocation53_spill] sm:$0xff] %v11772_v31  ;;  %4341 = vadd.xlane.f32.xlu1 %v4340_v42  ;;  %4338 = vadd.xlane.f32.xlu0 %v4337_v45  ;;  %v15777_v60 = vld [vmem:[#allocation23_spill] sm:$0xff]  ;;  %v4343_v42 = vsel %vm200_vm0, %v4291_v50, 0.0  ;;  %v15781_v45 = vld [vmem:[#allocation24_spill] sm:$0xff]  ;;  %v4295_v50 = vmul.f32 %v6653_v29, %v15786_v55 }
 0x43e   :  { %v11774_v22 = vpop.xlane.xlu1 %3809  ;;  %v4294_v16 = vmul.f32 %v6650_v27, %v15777_v60  ;;  %v11784_v38 = vpop.xlane.xlu0 %3806  ;;  %v4293_v26 = vmul.f32 %v6649_v59, %v15781_v45  ;;  %v7141_v31 = vld [vmem:[#allocation5 + $0x600] sm:$0xff]   ;;  %v15783_v27 = vld [vmem:[#allocation64_spill] sm:$0xff]  ;;  %v15787_v59 = vld [vmem:[#allocation57_spill] sm:$0xff] }
 0x43f   :  { %15776 = vst [vmem:[#allocation104_spill] sm:$0xff] %v11774_v22  ;;  %v11782_v12 = vadd.f32 %v11774_v22, %v15779_v3  ;;  %v11792_v14 = vadd.f32 %v11784_v38, %v15783_v27  ;;  %v6658_v60 = vunpack.c.h.bf16 %v7141_v31  ;;  %v4355_v45 = vsel %vm200_vm0, %v4295_v50, 0.0 }
 0x440   :  { %v4352_v3 = vsel %vm200_vm0, %v4294_v16, 0.0 }
 0x441   :  { %15780 = vst [vmem:[#allocation97_spill] sm:$0xff] %v11782_v12  ;;  %15784 = vst [vmem:[#allocation94_spill] sm:$0xff] %v11792_v14  ;;  %4347 = vadd.xlane.f32.xlu1 %v4346_v39  ;;  %4344 = vadd.xlane.f32.xlu0 %v4343_v42  ;;  %v15785_v12 = vld [vmem:[#allocation25_spill] sm:$0xff]  ;;  %v4349_v39 = vsel %vm200_vm0, %v4293_v26, 0.0  ;;  %v6657_v42 = vunpack.c.l.bf16 %v7141_v31  ;;  %v7142_v14 = vld [vmem:[#allocation5 + $0x608] sm:$0xff]   ;;  %v4298_v55 = vmul.f32 %v6658_v60, %v15644_v46 }
 0x442   :  { %v11794_v34 = vpop.xlane.xlu1 %3815  ;;  %v4296_v22 = vmul.f32 %v6654_v40, %v15785_v12  ;;  %v11805_v27 = vpop.xlane.xlu0 %3812  ;;  %v6662_v26 = vunpack.c.h.bf16 %v7142_v14 }
 0x443   :  { %v11803_v33 = vadd.f32 %v11794_v34, %v15788_v41  ;;  %v11812_v29 = vadd.f32 %v11805_v27, %v11492_v15 }
 0x444   :  { %v4358_v41 = vsel %vm200_vm0, %v4296_v22, 0.0  ;;  %v4300_v31 = vmul.f32 %v6662_v26, %v15540_v6  ;;  %v15797_v26 = vld [vmem:[#allocation54_spill] sm:$0xff] }
 0x445   :  { %15789 = vst [vmem:[#allocation95_spill] sm:$0xff] %v11812_v29  ;;  %4353 = vadd.xlane.f32.xlu1 %v4352_v3  ;;  %4350 = vadd.xlane.f32.xlu0 %v4349_v39  ;;  %v4297_v3 = vmul.f32 %v6657_v42, %v15645_v0  ;;  %v6661_v39 = vunpack.c.l.bf16 %v7142_v14  ;;  %v7143_v29 = vld [vmem:[#allocation5 + $0x740] sm:$0xff]  }
 0x446   :  { %v11814_v40 = vpop.xlane.xlu1 %3821  ;;  %v11825_v15 = vpop.xlane.xlu0 %3818 }
 0x447   :  { %15790 = vst [vmem:[#allocation61_spill] sm:$0xff] %v11814_v40  ;;  %v11823_v16 = vadd.f32 %v11814_v40, %v11503_v49  ;;  %15792 = vst [vmem:[#allocation74_spill] sm:$0xff] %v11825_v15  ;;  %v11832_v60 = vadd.f32 %v11825_v15, %v11512_v5  ;;  %v4364_v49 = vsel %vm200_vm0, %v4298_v55, 0.0  ;;  %v6665_v40 = vunpack.c.l.bf16 %v7143_v29  ;;  %v15802_v15 = vld [vmem:[#allocation102_spill] sm:$0xff] }
 0x448   :  { %v4361_v5 = vsel %vm200_vm0, %v4297_v3, 0.0 }
 0x449   :  { %15791 = vst [vmem:[#allocation72_spill] sm:$0xff] %v11823_v16  ;;  %15793 = vst [vmem:[#allocation80_spill] sm:$0xff] %v11832_v60  ;;  %4359 = vadd.xlane.f32.xlu1 %v4358_v41  ;;  %4356 = vadd.xlane.f32.xlu0 %v4355_v45  ;;  %v6666_v16 = vunpack.c.h.bf16 %v7143_v29  ;;  %v15796_v45 = vld [vmem:[#allocation30_spill] sm:$0xff]  ;;  %v7144_v60 = vld [vmem:[#allocation5 + $0x748] sm:$0xff]   ;;  %v4301_v3 = vmul.f32 %v6665_v40, %v15800_v7 }
 0x44a   :  { %v11834_v50 = vpop.xlane.xlu1 %3827  ;;  %v11844_v22 = vpop.xlane.xlu0 %3824  ;;  %v4299_v41 = vmul.f32 %v6661_v39, %v15796_v45  ;;  %v6670_v6 = vunpack.c.h.bf16 %v7144_v60  ;;  %v15801_v39 = vld [vmem:[#allocation70_spill] sm:$0xff] }
 0x44b   :  { %15794 = vst [vmem:[#allocation105_spill] sm:$0xff] %v11834_v50  ;;  %v11842_v42 = vadd.f32 %v11834_v50, %v11523_v10  ;;  %v11852_v29 = vadd.f32 %v11844_v22, %v15797_v26  ;;  %v4370_v10 = vsel %vm200_vm0, %v4300_v31, 0.0  ;;  %v4373_v45 = vsel %vm200_vm0, %v4301_v3, 0.0 }
 0x44c   :  { %v4304_v7 = vmul.f32 %v6670_v6, %v15666_v23 }
 0x44d   :  { %15795 = vst [vmem:[#allocation66_spill] sm:$0xff] %v11842_v42  ;;  %15798 = vst [vmem:[#allocation87_spill] sm:$0xff] %v11852_v29  ;;  %4365 = vadd.xlane.f32.xlu1 %v4364_v49  ;;  %4362 = vadd.xlane.f32.xlu0 %v4361_v5  ;;  %v15799_v42 = vld [vmem:[#allocation31_spill] sm:$0xff]  ;;  %v4367_v49 = vsel %vm200_vm0, %v4299_v41, 0.0  ;;  %v6669_v5 = vunpack.c.l.bf16 %v7144_v60  ;;  %v7145_v29 = vld [vmem:[#allocation5 + $0x880] sm:$0xff]  }
 0x44e   :  { %v11854_v14 = vpop.xlane.xlu1 %3833  ;;  %v4302_v50 = vmul.f32 %v6666_v16, %v15799_v42  ;;  %v11865_v26 = vpop.xlane.xlu0 %3830  ;;  %v6674_v41 = vunpack.c.h.bf16 %v7145_v29 }
 0x44f   :  { %v11863_v55 = vadd.f32 %v11854_v14, %v15802_v15  ;;  %v11872_v16 = vadd.f32 %v11865_v26, %v11552_v62 }
 0x450   :  { %v4376_v15 = vsel %vm200_vm0, %v4302_v50, 0.0  ;;  %v4306_v60 = vmul.f32 %v6674_v41, %v15554_v53  ;;  %v15811_v41 = vld [vmem:[#allocation60_spill] sm:$0xff] }
 0x451   :  { %15803 = vst [vmem:[#allocation43_spill] sm:$0xff] %v11872_v16  ;;  %4371 = vadd.xlane.f32.xlu1 %v4370_v10  ;;  %4368 = vadd.xlane.f32.xlu0 %v4367_v49  ;;  %v4303_v10 = vmul.f32 %v6669_v5, %v15667_v36  ;;  %v6673_v49 = vunpack.c.l.bf16 %v7145_v29  ;;  %v7146_v16 = vld [vmem:[#allocation5 + $0x888] sm:$0xff]  }
 0x452   :  { %v11874_v40 = vpop.xlane.xlu1 %3839  ;;  %v11885_v62 = vpop.xlane.xlu0 %3836 }
 0x453   :  { %15804 = vst [vmem:[#allocation90_spill] sm:$0xff] %v11874_v40  ;;  %v11883_v31 = vadd.f32 %v11874_v40, %v11563_v2  ;;  %15806 = vst [vmem:[#allocation83_spill] sm:$0xff] %v11885_v62  ;;  %v11892_v6 = vadd.f32 %v11885_v62, %v11572_v17  ;;  %v4382_v2 = vsel %vm200_vm0, %v4304_v7, 0.0  ;;  %v6677_v40 = vunpack.c.l.bf16 %v7146_v16  ;;  %v15816_v62 = vld [vmem:[#allocation82_spill] sm:$0xff] }
 0x454   :  { %v4379_v17 = vsel %vm200_vm0, %v4303_v10, 0.0 }
 0x455   :  { %15805 = vst [vmem:[#allocation46_spill] sm:$0xff] %v11883_v31  ;;  %15807 = vst [vmem:[#allocation49_spill] sm:$0xff] %v11892_v6  ;;  %4377 = vadd.xlane.f32.xlu1 %v4376_v15  ;;  %4374 = vadd.xlane.f32.xlu0 %v4373_v45  ;;  %v6678_v31 = vunpack.c.h.bf16 %v7146_v16  ;;  %v15810_v45 = vld [vmem:[#allocation36_spill] sm:$0xff]  ;;  %v7147_v6 = vld [vmem:[#allocation5 + $0x9c0] sm:$0xff]   ;;  %v4307_v10 = vmul.f32 %v6677_v40, %v15814_v11 }
 0x456   :  { %v11894_v3 = vpop.xlane.xlu1 %3845  ;;  %v11904_v50 = vpop.xlane.xlu0 %3842  ;;  %v4305_v15 = vmul.f32 %v6673_v49, %v15810_v45  ;;  %v6682_v53 = vunpack.c.h.bf16 %v7147_v6  ;;  %v15815_v49 = vld [vmem:[#allocation100_spill] sm:$0xff] }
 0x457   :  { %15808 = vst [vmem:[#allocation106_spill] sm:$0xff] %v11894_v3  ;;  %v11902_v5 = vadd.f32 %v11894_v3, %v11583_v51  ;;  %v11912_v16 = vadd.f32 %v11904_v50, %v15811_v41  ;;  %v4388_v51 = vsel %vm200_vm0, %v4306_v60, 0.0  ;;  %v4391_v45 = vsel %vm200_vm0, %v4307_v10, 0.0  ;;  %v15822_v10 = vld [vmem:[#allocation62_spill] sm:$0xff] }
 0x458   :  { %v4310_v11 = vmul.f32 %v6682_v53, %v15688_v35 }
 0x459   :  { %15809 = vst [vmem:[#allocation76_spill] sm:$0xff] %v11902_v5  ;;  %15812 = vst [vmem:[#allocation98_spill] sm:$0xff] %v11912_v16  ;;  %4383 = vadd.xlane.f32.xlu1 %v4382_v2  ;;  %4380 = vadd.xlane.f32.xlu0 %v4379_v17  ;;  %v15813_v5 = vld [vmem:[#allocation37_spill] sm:$0xff]  ;;  %v4385_v2 = vsel %vm200_vm0, %v4305_v15, 0.0  ;;  %v6681_v17 = vunpack.c.l.bf16 %v7147_v6  ;;  %v7148_v16 = vld [vmem:[#allocation5 + $0x9c8] sm:$0xff]  }
 0x45a   :  { %v11914_v29 = vpop.xlane.xlu1 %3851  ;;  %v4308_v3 = vmul.f32 %v6678_v31, %v15813_v5  ;;  %v11925_v41 = vpop.xlane.xlu0 %3848  ;;  %v6686_v15 = vunpack.c.h.bf16 %v7148_v16 }
 0x45b   :  { %v11923_v7 = vadd.f32 %v11914_v29, %v15816_v62  ;;  %15817 = vst [vmem:[#allocation45_spill] sm:$0xff] %v11925_v41  ;;  %v11932_v31 = vadd.f32 %v11925_v41, %v11612_v25  ;;  %v15836_v41 = vld [vmem:[#allocation85_spill] sm:$0xff] }
 0x45c   :  { %v4394_v62 = vsel %vm200_vm0, %v4308_v3, 0.0 }
 0x45d   :  { %15818 = vst [vmem:[#allocation89_spill] sm:$0xff] %v11932_v31  ;;  %4389 = vadd.xlane.f32.xlu1 %v4388_v51  ;;  %4386 = vadd.xlane.f32.xlu0 %v4385_v2  ;;  %v4309_v51 = vmul.f32 %v6681_v17, %v15689_v44  ;;  %v6685_v2 = vunpack.c.l.bf16 %v7148_v16  ;;  %v6688_v31 = vld [vmem:[#allocation5 + $0x110] sm:$0xff]   ;;  %v15827_v44 = vld [vmem:[#allocation78_spill] sm:$0xff] }
 0x45e   :  { %v11934_v40 = vpop.xlane.xlu1 %3857  ;;  %v11945_v25 = vpop.xlane.xlu0 %3854  ;;  %v6690_v32 = vunpack.c.h.bf16 %v6688_v31  ;;  %v6689_v35 = vunpack.c.l.bf16 %v6688_v31  ;;  %v15834_v16 = vld [vmem:[#allocation12_spill] sm:$0xff] }
 0x45f   :  { %15819 = vst [vmem:[#allocation77_spill] sm:$0xff] %v11934_v40  ;;  %v11943_v60 = vadd.f32 %v11934_v40, %v11623_v8  ;;  %15821 = vst [vmem:[#allocation103_spill] sm:$0xff] %v11945_v25  ;;  %v11952_v53 = vadd.f32 %v11945_v25, %v15822_v10  ;;  %v4400_v8 = vsel %vm200_vm0, %v4310_v11, 0.0  ;;  %v15830_v11 = vld [vmem:[#allocation84_spill] sm:$0xff] }
 0x461   :  { %15820 = vst [vmem:[#allocation96_spill] sm:$0xff] %v11943_v60  ;;  %15823 = vst [vmem:[#allocation73_spill] sm:$0xff] %v11952_v53  ;;  %4395 = vadd.xlane.f32.xlu1 %v4394_v62  ;;  %4392 = vadd.xlane.f32.xlu0 %v4391_v45  ;;  %v15825_v60 = vld [vmem:[#allocation41_spill] sm:$0xff]  ;;  %v4397_v62 = vsel %vm200_vm0, %v4309_v51, 0.0  ;;  %v15829_v45 = vld [vmem:[#allocation42_spill] sm:$0xff]  ;;  %v4538_v51 = vmul.f32 %v6689_v35, %v15834_v16 }
 0x462   :  { %v11954_v6 = vpop.xlane.xlu1 %3863  ;;  %v4312_v40 = vmul.f32 %v6686_v15, %v15825_v60  ;;  %v11964_v20 = vpop.xlane.xlu0 %3860  ;;  %v4311_v10 = vmul.f32 %v6685_v2, %v15829_v45  ;;  %v7149_v53 = vld [vmem:[#allocation5 + $0x118] sm:$0xff]   ;;  %v15831_v15 = vld [vmem:[#allocation107_spill] sm:$0xff]  ;;  %v15835_v2 = vld [vmem:[#allocation52_spill] sm:$0xff] }
 0x463   :  { %15824 = vst [vmem:[#allocation79_spill] sm:$0xff] %v11954_v6  ;;  %v11962_v3 = vadd.f32 %v11954_v6, %v15827_v44  ;;  %v11972_v31 = vadd.f32 %v11964_v20, %v15831_v15  ;;  %v6694_v60 = vunpack.c.h.bf16 %v7149_v53  ;;  %v4570_v45 = vsel %vm200_vm0, %v4538_v51, 0.0  ;;  %v15843_v51 = vld [vmem:[#allocation65_spill] sm:$0xff] }
 0x464   :  { %v4406_v44 = vsel %vm200_vm0, %v4312_v40, 0.0 }
 0x465   :  { %15828 = vst [vmem:[#allocation64_spill] sm:$0xff] %v11962_v3  ;;  %15832 = vst [vmem:[#allocation57_spill] sm:$0xff] %v11972_v31  ;;  %4401 = vadd.xlane.f32.xlu1 %v4400_v8  ;;  %4398 = vadd.xlane.f32.xlu0 %v4397_v62  ;;  %v15833_v3 = vld [vmem:[#allocation14_spill] sm:$0xff]  ;;  %v4403_v8 = vsel %vm200_vm0, %v4311_v10, 0.0  ;;  %v6693_v62 = vunpack.c.l.bf16 %v7149_v53  ;;  %v7150_v31 = vld [vmem:[#allocation5 + $0x250] sm:$0xff]   ;;  %v4541_v16 = vmul.f32 %v6694_v60, %v15721_v47 }
 0x466   :  { %v11974_v17 = vpop.xlane.xlu1 %3869  ;;  %v4539_v6 = vmul.f32 %v6690_v32, %v15833_v3  ;;  %v11985_v15 = vpop.xlane.xlu0 %3866  ;;  %v6698_v10 = vunpack.c.h.bf16 %v7150_v31 }
 0x467   :  { %v11983_v25 = vadd.f32 %v11974_v17, %v15836_v41  ;;  %15837 = vst [vmem:[#allocation93_spill] sm:$0xff] %v11985_v15  ;;  %v11992_v32 = vadd.f32 %v11985_v15, %v11672_v48 }
 0x468   :  { %v4573_v41 = vsel %vm200_vm0, %v4539_v6, 0.0 }
 0x469   :  { %15838 = vst [vmem:[#allocation54_spill] sm:$0xff] %v11992_v32  ;;  %4407 = vadd.xlane.f32.xlu1 %v4406_v44  ;;  %4404 = vadd.xlane.f32.xlu0 %v4403_v8  ;;  %v4540_v44 = vmul.f32 %v6693_v62, %v15722_v4  ;;  %v6697_v8 = vunpack.c.l.bf16 %v7150_v31  ;;  %v7151_v32 = vld [vmem:[#allocation5 + $0x258] sm:$0xff]   ;;  %v15848_v4 = vld [vmem:[#allocation59_spill] sm:$0xff]  ;;  %v15856_v31 = vld [vmem:[#allocation18_spill] sm:$0xff] }
 0x46a   :  { %v11994_v35 = vpop.xlane.xlu1 %3875  ;;  %v12005_v48 = vpop.xlane.xlu0 %3872  ;;  %v6702_v56 = vunpack.c.h.bf16 %v7151_v32  ;;  %v6701_v47 = vunpack.c.l.bf16 %v7151_v32 }
 0x46b   :  { %15839 = vst [vmem:[#allocation31_spill] sm:$0xff] %v11994_v35  ;;  %v12003_v40 = vadd.f32 %v11994_v35, %v11683_v58  ;;  %15841 = vst [vmem:[#allocation102_spill] sm:$0xff] %v12005_v48  ;;  %v12012_v60 = vadd.f32 %v12005_v48, %v15843_v51  ;;  %v4579_v58 = vsel %vm200_vm0, %v4541_v16, 0.0  ;;  %v15851_v16 = vld [vmem:[#allocation68_spill] sm:$0xff] }
 0x46d   :  { %15840 = vst [vmem:[#allocation70_spill] sm:$0xff] %v12003_v40  ;;  %15844 = vst [vmem:[#allocation60_spill] sm:$0xff] %v12012_v60  ;;  %4574 = vadd.xlane.f32.xlu1 %v4573_v41  ;;  %4571 = vadd.xlane.f32.xlu0 %v4570_v45  ;;  %v15846_v40 = vld [vmem:[#allocation15_spill] sm:$0xff]  ;;  %v4576_v41 = vsel %vm200_vm0, %v4540_v44, 0.0  ;;  %v15850_v45 = vld [vmem:[#allocation16_spill] sm:$0xff]  ;;  %v4544_v44 = vmul.f32 %v6701_v47, %v15856_v31 }
 0x46e   :  { %v12014_v53 = vpop.xlane.xlu1 %3881  ;;  %v4543_v35 = vmul.f32 %v6698_v10, %v15846_v40  ;;  %v12024_v6 = vpop.xlane.xlu0 %3878  ;;  %v4542_v51 = vmul.f32 %v6697_v8, %v15850_v45  ;;  %v7152_v60 = vld [vmem:[#allocation5 + $0x390] sm:$0xff]   ;;  %v15852_v10 = vld [vmem:[#allocation69_spill] sm:$0xff] }
 0x46f   :  { %15845 = vst [vmem:[#allocation100_spill] sm:$0xff] %v12014_v53  ;;  %v12022_v15 = vadd.f32 %v12014_v53, %v15848_v4  ;;  %v12032_v32 = vadd.f32 %v12024_v6, %v15852_v10  ;;  %v6706_v40 = vunpack.c.h.bf16 %v7152_v60  ;;  %v4588_v45 = vsel %vm200_vm0, %v4544_v44, 0.0  ;;  %v15867_v44 = vld [vmem:[#allocation91_spill] sm:$0xff] }
 0x470   :  { %v4585_v4 = vsel %vm200_vm0, %v4543_v35, 0.0 }
 0x471   :  { %15849 = vst [vmem:[#allocation82_spill] sm:$0xff] %v12022_v15  ;;  %15853 = vst [vmem:[#allocation62_spill] sm:$0xff] %v12032_v32  ;;  %4580 = vadd.xlane.f32.xlu1 %v4579_v58  ;;  %4577 = vadd.xlane.f32.xlu0 %v4576_v41  ;;  %v15855_v15 = vld [vmem:[#allocation17_spill] sm:$0xff]  ;;  %v4582_v58 = vsel %vm200_vm0, %v4542_v51, 0.0  ;;  %v6705_v41 = vunpack.c.l.bf16 %v7152_v60  ;;  %v4547_v31 = vmul.f32 %v6706_v40, %v15755_v43 }
 0x472   :  { %v12034_v62 = vpop.xlane.xlu1 %3887  ;;  %v4545_v53 = vmul.f32 %v6702_v56, %v15855_v15  ;;  %v12045_v10 = vpop.xlane.xlu0 %3884  ;;  %v7153_v32 = vld [vmem:[#allocation5 + $0x398] sm:$0xff]  }
 0x473   :  { %15854 = vst [vmem:[#allocation78_spill] sm:$0xff] %v12034_v62  ;;  %v12043_v48 = vadd.f32 %v12034_v62, %v15858_v57  ;;  %15860 = vst [vmem:[#allocation107_spill] sm:$0xff] %v12045_v10  ;;  %v12052_v56 = vadd.f32 %v12045_v10, %v11732_v13  ;;  %v6710_v51 = vunpack.c.h.bf16 %v7153_v32  ;;  %v7154_v10 = vld [vmem:[#allocation5 + $0x4d0] sm:$0xff]   ;;  %v4597_v54 = vsel %vm200_vm0, %v4547_v31, 0.0  ;;  %v15878_v31 = vld [vmem:[#allocation81_spill] sm:$0xff] }
 0x474   :  { %v4591_v57 = vsel %vm200_vm0, %v4545_v53, 0.0  ;;  %v6713_v43 = vunpack.c.l.bf16 %v7154_v10  ;;  %v15874_v62 = vld [vmem:[#allocation108_spill] sm:$0xff] }
 0x475   :  { %15859 = vst [vmem:[#allocation84_spill] sm:$0xff] %v12043_v48  ;;  %15861 = vst [vmem:[#allocation52_spill] sm:$0xff] %v12052_v56  ;;  %4586 = vadd.xlane.f32.xlu1 %v4585_v4  ;;  %4583 = vadd.xlane.f32.xlu0 %v4582_v58  ;;  %v15865_v4 = vld [vmem:[#allocation20_spill] sm:$0xff]  ;;  %v6709_v56 = vunpack.c.l.bf16 %v7153_v32  ;;  %v15870_v48 = vld [vmem:[#allocation71_spill] sm:$0xff] }
 0x476   :  { %v12054_v47 = vpop.xlane.xlu1 %3893  ;;  %v12065_v13 = vpop.xlane.xlu0 %3890  ;;  %v4546_v58 = vmul.f32 %v6705_v41, %v15865_v4  ;;  %v15871_v41 = vld [vmem:[#allocation47_spill] sm:$0xff] }
 0x477   :  { %15862 = vst [vmem:[#allocation85_spill] sm:$0xff] %v12054_v47  ;;  %v12063_v35 = vadd.f32 %v12054_v47, %v11743_v18  ;;  %15864 = vst [vmem:[#allocation59_spill] sm:$0xff] %v12065_v13  ;;  %v12072_v40 = vadd.f32 %v12065_v13, %v15867_v44  ;;  %v15869_v18 = vld [vmem:[#allocation21_spill] sm:$0xff]  ;;  %v6714_v47 = vunpack.c.h.bf16 %v7154_v10  ;;  %v15872_v32 = vmax.f32 %v15870_v48, %v15871_v41 }
 0x478   :  { %v4594_v44 = vsel %vm200_vm0, %v4546_v58, 0.0  ;;  %v15877_v13 = vld [vmem:[#allocation101_spill] sm:$0xff] }
 0x479   :  { %15863 = vst [vmem:[#allocation65_spill] sm:$0xff] %v12063_v35  ;;  %15868 = vst [vmem:[#allocation68_spill] sm:$0xff] %v12072_v40  ;;  %4592 = vadd.xlane.f32.xlu1 %v4591_v57  ;;  %4589 = vadd.xlane.f32.xlu0 %v4588_v45  ;;  %v4549_v35 = vmul.f32 %v6710_v51, %v15869_v18  ;;  %v15876_v57 = vld [vmem:[#allocation22_spill] sm:$0xff]  ;;  %v7155_v40 = vld [vmem:[#allocation5 + $0x4d8] sm:$0xff]   ;;  %v15879_v8 = vmax.f32 %v15877_v13, %v15878_v31 }
 0x47a   :  { %v4061_v60 = vpop.xlane.xlu1 %4060  ;;  %v4058_v53 = vpop.xlane.xlu0 %4057  ;;  %v4548_v45 = vmul.f32 %v6709_v56, %v15876_v57  ;;  %v15880_v10 = vld [vmem:[#allocation53_spill] sm:$0xff]  ;;  %v7156_v31 = vld [vmem:[#allocation5 + $0x610] sm:$0xff]  }
 0x47b   :  { %v12079_v4 = vmax.f32 %v15872_v32, %v4061_v60  ;;  %v12082_v21 = vadd.f32 %v4061_v60, %v15874_v62  ;;  %v12089_v51 = vmax.f32 %v15879_v8, %v4058_v53  ;;  %v12092_v18 = vadd.f32 %v4058_v53, %v15880_v10  ;;  %v15881_v60 = vld [vmem:[#allocation23_spill] sm:$0xff]  ;;  %v15882_v32 = vld [vmem:[#allocation24_spill] sm:$0xff]  ;;  %v15883_v56 = vld [vmem:[#allocation109_spill] sm:$0xff] }
 0x47c   :  { %v4603_v62 = vsel %vm200_vm0, %v4549_v35, 0.0  ;;  %v4551_v41 = vmul.f32 %v6714_v47, %v15881_v60  ;;  %v4550_v58 = vmul.f32 %v6713_v43, %v15882_v32  ;;  %v15886_v8 = vld [vmem:[#allocation97_spill] sm:$0xff]  ;;  %v15887_v35 = vmax.f32 %v15782_v24, %v11784_v38  ;;  %v15888_v43 = vld [vmem:[#allocation94_spill] sm:$0xff] }
 0x47d   :  { %15873 = vst [vmem:[#allocation69_spill] sm:$0xff] %v12079_v4  ;;  %15875 = vst [vmem:[#allocation58_spill] sm:$0xff] %v12082_v21  ;;  %4598 = vadd.xlane.f32.xlu1 %v4597_v54  ;;  %4595 = vadd.xlane.f32.xlu0 %v4594_v44  ;;  %v6718_v21 = vunpack.c.h.bf16 %v7155_v40  ;;  %v15884_v4 = vld [vmem:[#allocation104_spill] sm:$0xff]  ;;  %v4600_v54 = vsel %vm200_vm0, %v4548_v45, 0.0  ;;  %v6717_v44 = vunpack.c.l.bf16 %v7155_v40  ;;  %v6722_v45 = vunpack.c.h.bf16 %v7156_v31 }
 0x47e   :  { %v4067_v48 = vpop.xlane.xlu1 %4066  ;;  %v15885_v57 = vmax.f32 %v15883_v56, %v15884_v4  ;;  %v4064_v53 = vpop.xlane.xlu0 %4063  ;;  %v15889_v40 = vmax.f32 %v15787_v59, %v11794_v34 }
 0x47f   :  { %v12103_v13 = vadd.f32 %v4067_v48, %v15886_v8  ;;  %v12109_v47 = vmax.f32 %v15887_v35, %v4064_v53  ;;  %v12112_v10 = vadd.f32 %v4064_v53, %v15888_v43  ;;  %v4553_v56 = vmul.f32 %v6718_v21, %v15785_v12  ;;  %v15891_v53 = vld [vmem:[#allocation26_spill] sm:$0xff]  ;;  %v7157_v35 = vld [vmem:[#allocation5 + $0x618] sm:$0xff]   ;;  %v15893_v21 = vld [vmem:[#allocation95_spill] sm:$0xff] }
 0x480   :  { %v12100_v15 = vmax.f32 %v15885_v57, %v4067_v48  ;;  %v4609_v57 = vsel %vm200_vm0, %v4551_v41, 0.0  ;;  %v4606_v48 = vsel %vm200_vm0, %v4550_v58, 0.0  ;;  %v15892_v41 = vmax.f32 %v11489_v28, %v11805_v27  ;;  %v15898_v28 = vld [vmem:[#allocation72_spill] sm:$0xff] }
 0x481   :  { %4604 = vadd.xlane.f32.xlu1 %v4603_v62  ;;  %4601 = vadd.xlane.f32.xlu0 %v4600_v54  ;;  %v4552_v62 = vmul.f32 %v6717_v44, %v15891_v53  ;;  %v6721_v54 = vunpack.c.l.bf16 %v7156_v31  ;;  %v4615_v59 = vsel %vm200_vm0, %v4553_v56, 0.0  ;;  %v15895_v44 = vld [vmem:[#allocation61_spill] sm:$0xff]  ;;  %v15900_v56 = vld [vmem:[#allocation74_spill] sm:$0xff] }
 0x482   :  { %v4073_v4 = vpop.xlane.xlu1 %4072  ;;  %v4070_v24 = vpop.xlane.xlu0 %4069  ;;  %v15896_v31 = vmax.f32 %v11500_v1, %v15895_v44  ;;  %v15903_v44 = vld [vmem:[#allocation29_spill] sm:$0xff] }
 0x483   :  { %v12120_v8 = vmax.f32 %v15889_v40, %v4073_v4  ;;  %v12123_v38 = vadd.f32 %v4073_v4, %v11803_v33  ;;  %v12129_v58 = vmax.f32 %v15892_v41, %v4070_v24  ;;  %v12132_v43 = vadd.f32 %v4070_v24, %v15893_v21 }
 0x484   :  { %v4555_v33 = vmul.f32 %v6722_v45, %v15644_v46  ;;  %v6726_v4 = vunpack.c.h.bf16 %v7157_v35  ;;  %v6725_v40 = vunpack.c.l.bf16 %v7157_v35  ;;  %v4612_v24 = vsel %vm200_vm0, %v4552_v62, 0.0  ;;  %v15902_v35 = vld [vmem:[#allocation80_spill] sm:$0xff] }
 0x485   :  { %15890 = vst [vmem:[#allocation91_spill] sm:$0xff] %v12120_v8  ;;  %15894 = vst [vmem:[#allocation71_spill] sm:$0xff] %v12132_v43  ;;  %4610 = vadd.xlane.f32.xlu1 %v4609_v57  ;;  %4607 = vadd.xlane.f32.xlu0 %v4606_v48  ;;  %v4554_v57 = vmul.f32 %v6721_v54, %v15645_v0  ;;  %v7158_v48 = vld [vmem:[#allocation5 + $0x750] sm:$0xff]   ;;  %v15901_v21 = vmax.f32 %v11509_v9, %v15900_v56  ;;  %v15905_v54 = vld [vmem:[#allocation99_spill] sm:$0xff] }
 0x486   :  { %v4079_v34 = vpop.xlane.xlu1 %4078  ;;  %v4076_v41 = vpop.xlane.xlu0 %4075  ;;  %v15908_v9 = vld [vmem:[#allocation66_spill] sm:$0xff] }
 0x487   :  { %v12139_v53 = vmax.f32 %v15896_v31, %v4079_v34  ;;  %v12142_v27 = vadd.f32 %v4079_v34, %v15898_v28  ;;  %v12149_v45 = vmax.f32 %v15901_v21, %v4076_v41  ;;  %v12152_v46 = vadd.f32 %v4076_v41, %v15902_v35  ;;  %v15904_v28 = vld [vmem:[#allocation30_spill] sm:$0xff]  ;;  %v7159_v21 = vld [vmem:[#allocation5 + $0x758] sm:$0xff]  }
 0x488   :  { %v4621_v34 = vsel %vm200_vm0, %v4555_v33, 0.0  ;;  %v4557_v31 = vmul.f32 %v6726_v4, %v15903_v44  ;;  %v4556_v62 = vmul.f32 %v6725_v40, %v15904_v28  ;;  %v15909_v33 = vmax.f32 %v11529_v52, %v11844_v22  ;;  %v15910_v40 = vld [vmem:[#allocation87_spill] sm:$0xff] }
 0x489   :  { %15897 = vst [vmem:[#allocation47_spill] sm:$0xff] %v12139_v53  ;;  %15899 = vst [vmem:[#allocation108_spill] sm:$0xff] %v12142_v27  ;;  %4616 = vadd.xlane.f32.xlu1 %v4615_v59  ;;  %4613 = vadd.xlane.f32.xlu0 %v4612_v24  ;;  %v6730_v27 = vunpack.c.h.bf16 %v7158_v48  ;;  %v15906_v53 = vld [vmem:[#allocation105_spill] sm:$0xff]  ;;  %v4618_v59 = vsel %vm200_vm0, %v4554_v57, 0.0  ;;  %v6729_v24 = vunpack.c.l.bf16 %v7158_v48  ;;  %v6734_v57 = vunpack.c.h.bf16 %v7159_v21 }
 0x48a   :  { %v4085_v1 = vpop.xlane.xlu1 %4084  ;;  %v15907_v0 = vmax.f32 %v15905_v54, %v15906_v53  ;;  %v4082_v41 = vpop.xlane.xlu0 %4081  ;;  %v4627_v53 = vsel %vm200_vm0, %v4557_v31, 0.0  ;;  %v15911_v48 = vmax.f32 %v15801_v39, %v11854_v14  ;;  %v15914_v31 = vmax.f32 %v11549_v37, %v11865_v26  ;;  %v15921_v37 = vld [vmem:[#allocation46_spill] sm:$0xff] }
 0x48b   :  { %v12163_v56 = vadd.f32 %v4085_v1, %v15908_v9  ;;  %v12169_v4 = vmax.f32 %v15909_v33, %v4082_v41  ;;  %v12172_v35 = vadd.f32 %v4082_v41, %v15910_v40  ;;  %v4559_v54 = vmul.f32 %v6730_v27, %v15799_v42  ;;  %v15913_v41 = vld [vmem:[#allocation32_spill] sm:$0xff]  ;;  %v15916_v27 = vld [vmem:[#allocation43_spill] sm:$0xff] }
 0x48c   :  { %v12160_v43 = vmax.f32 %v15907_v0, %v4085_v1  ;;  %v4624_v1 = vsel %vm200_vm0, %v4556_v62, 0.0  ;;  %v7160_v33 = vld [vmem:[#allocation5 + $0x890] sm:$0xff]  }
 0x48d   :  { %4622 = vadd.xlane.f32.xlu1 %v4621_v34  ;;  %4619 = vadd.xlane.f32.xlu0 %v4618_v59  ;;  %v4558_v34 = vmul.f32 %v6729_v24, %v15913_v41  ;;  %v6733_v59 = vunpack.c.l.bf16 %v7159_v21  ;;  %v4633_v39 = vsel %vm200_vm0, %v4559_v54, 0.0  ;;  %v15918_v24 = vld [vmem:[#allocation90_spill] sm:$0xff]  ;;  %v15923_v54 = vld [vmem:[#allocation83_spill] sm:$0xff] }
 0x48e   :  { %v4091_v0 = vpop.xlane.xlu1 %4090  ;;  %v4088_v22 = vpop.xlane.xlu0 %4087  ;;  %v15919_v21 = vmax.f32 %v11560_v61, %v15918_v24  ;;  %v15927_v24 = vld [vmem:[#allocation35_spill] sm:$0xff] }
 0x48f   :  { %v12180_v9 = vmax.f32 %v15911_v48, %v4091_v0  ;;  %v12183_v52 = vadd.f32 %v4091_v0, %v11863_v55  ;;  %v12189_v62 = vmax.f32 %v15914_v31, %v4088_v22  ;;  %v12192_v40 = vadd.f32 %v4088_v22, %v15916_v27 }
 0x490   :  { %v4561_v55 = vmul.f32 %v6734_v57, %v15666_v23  ;;  %v6738_v0 = vunpack.c.h.bf16 %v7160_v33  ;;  %v6737_v48 = vunpack.c.l.bf16 %v7160_v33  ;;  %v4630_v22 = vsel %vm200_vm0, %v4558_v34, 0.0  ;;  %v15926_v33 = vld [vmem:[#allocation49_spill] sm:$0xff] }
 0x491   :  { %15912 = vst [vmem:[#allocation101_spill] sm:$0xff] %v12180_v9  ;;  %15915 = vst [vmem:[#allocation81_spill] sm:$0xff] %v12189_v62  ;;  %4628 = vadd.xlane.f32.xlu1 %v4627_v53  ;;  %4625 = vadd.xlane.f32.xlu0 %v4624_v1  ;;  %v4560_v53 = vmul.f32 %v6733_v59, %v15667_v36  ;;  %v7161_v1 = vld [vmem:[#allocation5 + $0x898] sm:$0xff]   ;;  %v15924_v27 = vmax.f32 %v11569_v63, %v15923_v54  ;;  %v15929_v59 = vld [vmem:[#allocation88_spill] sm:$0xff] }
 0x492   :  { %15917 = vst [vmem:[#allocation53_spill] sm:$0xff] %v12192_v40  ;;  %v4097_v14 = vpop.xlane.xlu1 %4096  ;;  %v4094_v31 = vpop.xlane.xlu0 %4093  ;;  %v15930_v36 = vld [vmem:[#allocation106_spill] sm:$0xff]  ;;  %v15933_v63 = vld [vmem:[#allocation76_spill] sm:$0xff] }
 0x493   :  { %v12199_v41 = vmax.f32 %v15919_v21, %v4097_v14  ;;  %v12202_v26 = vadd.f32 %v4097_v14, %v15921_v37  ;;  %v12209_v57 = vmax.f32 %v15924_v27, %v4094_v31  ;;  %v12212_v23 = vadd.f32 %v4094_v31, %v15926_v33  ;;  %v15928_v37 = vld [vmem:[#allocation36_spill] sm:$0xff] }
 0x494   :  { %v4639_v14 = vsel %vm200_vm0, %v4561_v55, 0.0  ;;  %v4563_v21 = vmul.f32 %v6738_v0, %v15927_v24  ;;  %v4562_v34 = vmul.f32 %v6737_v48, %v15928_v37  ;;  %v7162_v27 = vld [vmem:[#allocation5 + $0x9d0] sm:$0xff]   ;;  %v15934_v55 = vmax.f32 %v11589_v30, %v11904_v50  ;;  %v15936_v48 = vld [vmem:[#allocation98_spill] sm:$0xff] }
 0x495   :  { %15920 = vst [vmem:[#allocation23_spill] sm:$0xff] %v12199_v41  ;;  %15922 = vst [vmem:[#allocation24_spill] sm:$0xff] %v12202_v26  ;;  %4634 = vadd.xlane.f32.xlu1 %v4633_v39  ;;  %4631 = vadd.xlane.f32.xlu0 %v4630_v22  ;;  %v6742_v26 = vunpack.c.h.bf16 %v7161_v1  ;;  %v15931_v41 = vmax.f32 %v15929_v59, %v15930_v36  ;;  %v4636_v39 = vsel %vm200_vm0, %v4560_v53, 0.0  ;;  %v6741_v22 = vunpack.c.l.bf16 %v7161_v1 }
 0x496   :  { %15925 = vst [vmem:[#allocation109_spill] sm:$0xff] %v12209_v57  ;;  %v4103_v61 = vpop.xlane.xlu1 %4102  ;;  %v4100_v31 = vpop.xlane.xlu0 %4099  ;;  %v6746_v53 = vunpack.c.h.bf16 %v7162_v27  ;;  %v15938_v1 = vmax.f32 %v15815_v49, %v11914_v29 }
 0x497   :  { %v12220_v40 = vmax.f32 %v15931_v41, %v4103_v61  ;;  %v12223_v54 = vadd.f32 %v4103_v61, %v15933_v63  ;;  %v12229_v0 = vmax.f32 %v15934_v55, %v4100_v31  ;;  %v12232_v33 = vadd.f32 %v4100_v31, %v15936_v48  ;;  %v15941_v31 = vld [vmem:[#allocation38_spill] sm:$0xff]  ;;  %v7163_v55 = vld [vmem:[#allocation5 + $0x9d8] sm:$0xff]  }
 0x498   :  { %v4645_v41 = vsel %vm200_vm0, %v4563_v21, 0.0  ;;  %v4642_v61 = vsel %vm200_vm0, %v4562_v34, 0.0  ;;  %v4565_v59 = vmul.f32 %v6742_v26, %v15813_v5  ;;  %v15942_v21 = vld [vmem:[#allocation45_spill] sm:$0xff] }
 0x499   :  { %15932 = vst [vmem:[#allocation104_spill] sm:$0xff] %v12220_v40  ;;  %15935 = vst [vmem:[#allocation97_spill] sm:$0xff] %v12229_v0  ;;  %4640 = vadd.xlane.f32.xlu1 %v4639_v14  ;;  %4637 = vadd.xlane.f32.xlu0 %v4636_v39  ;;  %v4564_v14 = vmul.f32 %v6741_v22, %v15941_v31  ;;  %v6745_v39 = vunpack.c.l.bf16 %v7162_v27  ;;  %v15943_v48 = vmax.f32 %v11609_v19, %v15942_v21  ;;  %v15945_v26 = vld [vmem:[#allocation89_spill] sm:$0xff]  ;;  %v15948_v22 = vld [vmem:[#allocation51_spill] sm:$0xff] }
 0x49a   :  { %15937 = vst [vmem:[#allocation94_spill] sm:$0xff] %v12232_v33  ;;  %v4109_v36 = vpop.xlane.xlu1 %4108  ;;  %v4106_v50 = vpop.xlane.xlu0 %4105  ;;  %v4651_v49 = vsel %vm200_vm0, %v4565_v59, 0.0  ;;  %v15949_v27 = vld [vmem:[#allocation77_spill] sm:$0xff]  ;;  %v15952_v19 = vld [vmem:[#allocation96_spill] sm:$0xff]  ;;  %v15956_v59 = vld [vmem:[#allocation103_spill] sm:$0xff] }
 0x49b   :  { %v12240_v63 = vmax.f32 %v15938_v1, %v4109_v36  ;;  %v12243_v30 = vadd.f32 %v4109_v36, %v11923_v7  ;;  %v12249_v34 = vmax.f32 %v15943_v48, %v4106_v50  ;;  %v12252_v5 = vadd.f32 %v4106_v50, %v15945_v26  ;;  %v15947_v7 = vld [vmem:[#allocation39_spill] sm:$0xff]  ;;  %v6752_v26 = vld [vmem:[#allocation5 + $0x120] sm:$0xff]  }
 0x49c   :  { %v4567_v36 = vmul.f32 %v6746_v53, %v15947_v7  ;;  %v6750_v1 = vunpack.c.h.bf16 %v7163_v55  ;;  %v4648_v50 = vsel %vm200_vm0, %v4564_v14, 0.0 }
 0x49d   :  { %15939 = vst [vmem:[#allocation95_spill] sm:$0xff] %v12240_v63  ;;  %15940 = vst [vmem:[#allocation61_spill] sm:$0xff] %v12243_v30  ;;  %4646 = vadd.xlane.f32.xlu1 %v4645_v41  ;;  %4643 = vadd.xlane.f32.xlu0 %v4642_v61  ;;  %v6749_v30 = vunpack.c.l.bf16 %v7163_v55  ;;  %v15950_v63 = vmax.f32 %v15948_v22, %v15949_v27  ;;  %v15954_v41 = vld [vmem:[#allocation40_spill] sm:$0xff]  ;;  %v15959_v55 = vld [vmem:[#allocation73_spill] sm:$0xff] }
 0x49e   :  { %15944 = vst [vmem:[#allocation72_spill] sm:$0xff] %v12249_v34  ;;  %15946 = vst [vmem:[#allocation74_spill] sm:$0xff] %v12252_v5  ;;  %v4115_v29 = vpop.xlane.xlu1 %4114  ;;  %v4112_v48 = vpop.xlane.xlu0 %4111  ;;  %v4566_v61 = vmul.f32 %v6745_v39, %v15954_v41  ;;  %v15955_v5 = vld [vmem:[#allocation63_spill] sm:$0xff]  ;;  %v15960_v22 = vld [vmem:[#allocation41_spill] sm:$0xff] }
 0x49f   :  { %v12259_v31 = vmax.f32 %v15950_v63, %v4115_v29  ;;  %v12262_v21 = vadd.f32 %v4115_v29, %v15952_v19  ;;  %v15957_v34 = vmax.f32 %v15955_v5, %v15956_v59  ;;  %v12272_v33 = vadd.f32 %v4112_v48, %v15959_v55  ;;  %v15961_v19 = vld [vmem:[#allocation42_spill] sm:$0xff]  ;;  %v15966_v5 = vld [vmem:[#allocation64_spill] sm:$0xff]  ;;  %v7164_v59 = vld [vmem:[#allocation5 + $0x128] sm:$0xff]  }
 0x4a0   :  { %v4657_v29 = vsel %vm200_vm0, %v4567_v36, 0.0  ;;  %v4569_v27 = vmul.f32 %v6750_v1, %v15960_v22  ;;  %v4568_v14 = vmul.f32 %v6749_v30, %v15961_v19  ;;  %v15962_v39 = vld [vmem:[#allocation50_spill] sm:$0xff]  ;;  %v15967_v36 = vmax.f32 %v15830_v11, %v11964_v20  ;;  %v15969_v30 = vld [vmem:[#allocation57_spill] sm:$0xff] }
 0x4a1   :  { %15951 = vst [vmem:[#allocation80_spill] sm:$0xff] %v12259_v31  ;;  %15953 = vst [vmem:[#allocation99_spill] sm:$0xff] %v12262_v21  ;;  %v12269_v53 = vmax.f32 %v15957_v34, %v4112_v48  ;;  %4652 = vadd.xlane.f32.xlu1 %v4651_v49  ;;  %4649 = vadd.xlane.f32.xlu0 %v4648_v50  ;;  %v6754_v21 = vunpack.c.h.bf16 %v6752_v26  ;;  %v15963_v31 = vld [vmem:[#allocation79_spill] sm:$0xff]  ;;  %v4654_v49 = vsel %vm200_vm0, %v4566_v61, 0.0  ;;  %v6753_v50 = vunpack.c.l.bf16 %v6752_v26 }
 0x4a2   :  { %v4121_v63 = vpop.xlane.xlu1 %4120  ;;  %v15964_v0 = vmax.f32 %v15962_v39, %v15963_v31  ;;  %v4118_v48 = vpop.xlane.xlu0 %4117  ;;  %v4663_v31 = vsel %vm200_vm0, %v4569_v27, 0.0  ;;  %v6758_v61 = vunpack.c.h.bf16 %v7164_v59  ;;  %v15971_v26 = vmax.f32 %v15835_v2, %v11974_v17  ;;  %v15976_v27 = vld [vmem:[#allocation93_spill] sm:$0xff] }
 0x4a3   :  { %15958 = vst [vmem:[#allocation105_spill] sm:$0xff] %v12269_v53  ;;  %v12283_v34 = vadd.f32 %v4121_v63, %v15966_v5  ;;  %v12289_v1 = vmax.f32 %v15967_v36, %v4118_v48  ;;  %v12292_v55 = vadd.f32 %v4118_v48, %v15969_v30  ;;  %v4796_v39 = vmul.f32 %v6754_v21, %v15833_v3  ;;  %v15974_v48 = vld [vmem:[#allocation12_spill] sm:$0xff]  ;;  %v7165_v36 = vld [vmem:[#allocation5 + $0x260] sm:$0xff]  }
 0x4a4   :  { %v12280_v41 = vmax.f32 %v15964_v0, %v4121_v63  ;;  %v4660_v63 = vsel %vm200_vm0, %v4568_v14, 0.0  ;;  %v15975_v30 = vld [vmem:[#allocation48_spill] sm:$0xff]  ;;  %v15979_v21 = vld [vmem:[#allocation54_spill] sm:$0xff]  ;;  %v16074_v62 = vld [vmem:[#allocation61_spill] sm:$0xff] }
 0x4a5   :  { %15968 = vst [vmem:[#allocation87_spill] sm:$0xff] %v12289_v1  ;;  %15970 = vst [vmem:[#allocation43_spill] sm:$0xff] %v12292_v55  ;;  %4658 = vadd.xlane.f32.xlu1 %v4657_v29  ;;  %4655 = vadd.xlane.f32.xlu0 %v4654_v49  ;;  %v4795_v29 = vmul.f32 %v6753_v50, %v15974_v48  ;;  %v6757_v49 = vunpack.c.l.bf16 %v7164_v59  ;;  %v15977_v55 = vmax.f32 %v15975_v30, %v15976_v27  ;;  %v15982_v50 = vld [vmem:[#allocation67_spill] sm:$0xff]  ;;  %v15986_v30 = vld [vmem:[#allocation70_spill] sm:$0xff] }
 0x4a6   :  { %15965 = vst [vmem:[#allocation66_spill] sm:$0xff] %v12280_v41  ;;  %v4127_v0 = vpop.xlane.xlu1 %4126  ;;  %v4124_v11 = vpop.xlane.xlu0 %4123  ;;  %v4830_v2 = vsel %vm200_vm0, %v4796_v39, 0.0  ;;  %v15983_v59 = vld [vmem:[#allocation31_spill] sm:$0xff]  ;;  %v15990_v39 = vld [vmem:[#allocation102_spill] sm:$0xff] }
 0x4a7   :  { %v12300_v5 = vmax.f32 %v15971_v26, %v4127_v0  ;;  %v12303_v20 = vadd.f32 %v4127_v0, %v11983_v25  ;;  %v12309_v14 = vmax.f32 %v15977_v55, %v4124_v11  ;;  %v12312_v3 = vadd.f32 %v4124_v11, %v15979_v21  ;;  %v15981_v25 = vld [vmem:[#allocation13_spill] sm:$0xff]  ;;  %v7166_v21 = vld [vmem:[#allocation5 + $0x268] sm:$0xff]  }
 0x4a8   :  { %v4798_v0 = vmul.f32 %v6758_v61, %v15981_v25  ;;  %v6762_v26 = vunpack.c.h.bf16 %v7165_v36  ;;  %v15984_v48 = vmax.f32 %v15982_v50, %v15983_v59  ;;  %v4827_v11 = vsel %vm200_vm0, %v4795_v29, 0.0  ;;  %v15994_v50 = vld [vmem:[#allocation15_spill] sm:$0xff] }
 0x4a9   :  { %15972 = vst [vmem:[#allocation90_spill] sm:$0xff] %v12300_v5  ;;  %15973 = vst [vmem:[#allocation46_spill] sm:$0xff] %v12303_v20  ;;  %4664 = vadd.xlane.f32.xlu1 %v4663_v31  ;;  %4661 = vadd.xlane.f32.xlu0 %v4660_v63  ;;  %v6761_v20 = vunpack.c.l.bf16 %v7165_v36  ;;  %v15988_v31 = vld [vmem:[#allocation11_spill] sm:$0xff]  ;;  %v15992_v36 = vld [vmem:[#allocation60_spill] sm:$0xff] }
 0x4aa   :  { %15978 = vst [vmem:[#allocation83_spill] sm:$0xff] %v12309_v14  ;;  %15980 = vst [vmem:[#allocation49_spill] sm:$0xff] %v12312_v3  ;;  %v4133_v17 = vpop.xlane.xlu1 %4132  ;;  %v4130_v27 = vpop.xlane.xlu0 %4129  ;;  %v4797_v63 = vmul.f32 %v6757_v49, %v15988_v31  ;;  %v15989_v3 = vld [vmem:[#allocation55_spill] sm:$0xff]  ;;  %v4800_v59 = vmul.f32 %v6762_v26, %v15994_v50  ;;  %v15996_v49 = vld [vmem:[#allocation86_spill] sm:$0xff] }
 0x4ab   :  { %v12319_v5 = vmax.f32 %v15984_v48, %v4133_v17  ;;  %v12322_v55 = vadd.f32 %v4133_v17, %v15986_v30  ;;  %v15991_v14 = vmax.f32 %v15989_v3, %v15990_v39  ;;  %v12332_v25 = vadd.f32 %v4130_v27, %v15992_v36  ;;  %v15995_v30 = vld [vmem:[#allocation16_spill] sm:$0xff]  ;;  %v16000_v3 = vld [vmem:[#allocation82_spill] sm:$0xff] }
 0x4ac   :  { %v4836_v17 = vsel %vm200_vm0, %v4798_v0, 0.0  ;;  %v4799_v29 = vmul.f32 %v6761_v20, %v15995_v30  ;;  %v15997_v31 = vld [vmem:[#allocation100_spill] sm:$0xff]  ;;  %v7167_v39 = vld [vmem:[#allocation5 + $0x3a0] sm:$0xff]   ;;  %v16002_v0 = vmax.f32 %v15851_v16, %v12024_v6 }
 0x4ad   :  { %15985 = vst [vmem:[#allocation35_spill] sm:$0xff] %v12319_v5  ;;  %15987 = vst [vmem:[#allocation36_spill] sm:$0xff] %v12322_v55  ;;  %v12329_v61 = vmax.f32 %v15991_v14, %v4130_v27  ;;  %4831 = vadd.xlane.f32.xlu1 %v4830_v2  ;;  %4828 = vadd.xlane.f32.xlu0 %v4827_v11  ;;  %v6766_v55 = vunpack.c.h.bf16 %v7166_v21  ;;  %v15998_v5 = vmax.f32 %v15996_v49, %v15997_v31  ;;  %v16004_v20 = vld [vmem:[#allocation62_spill] sm:$0xff]  ;;  %v16006_v49 = vld [vmem:[#allocation17_spill] sm:$0xff] }
 0x4ae   :  { %15993 = vst [vmem:[#allocation88_spill] sm:$0xff] %v12332_v25  ;;  %v4139_v48 = vpop.xlane.xlu1 %4138  ;;  %v4136_v27 = vpop.xlane.xlu0 %4135  ;;  %v4833_v2 = vsel %vm200_vm0, %v4797_v63, 0.0  ;;  %v6765_v11 = vunpack.c.l.bf16 %v7166_v21  ;;  %v4842_v31 = vsel %vm200_vm0, %v4800_v59, 0.0  ;;  %v6770_v63 = vunpack.c.h.bf16 %v7167_v39  ;;  %v16007_v21 = vld [vmem:[#allocation56_spill] sm:$0xff]  ;;  %v16015_v59 = vld [vmem:[#allocation107_spill] sm:$0xff] }
 0x4af   :  { %v12340_v1 = vmax.f32 %v15998_v5, %v4139_v48  ;;  %v12343_v14 = vadd.f32 %v4139_v48, %v16000_v3  ;;  %v12349_v26 = vmax.f32 %v16002_v0, %v4136_v27  ;;  %v12352_v36 = vadd.f32 %v4136_v27, %v16004_v20  ;;  %v16011_v6 = vld [vmem:[#allocation84_spill] sm:$0xff]  ;;  %v16013_v0 = vld [vmem:[#allocation18_spill] sm:$0xff]  ;;  %v7168_v20 = vld [vmem:[#allocation5 + $0x3a8] sm:$0xff]  }
 0x4b0   :  { %v4839_v48 = vsel %vm200_vm0, %v4799_v29, 0.0  ;;  %v4802_v3 = vmul.f32 %v6766_v55, %v16006_v49  ;;  %v16018_v55 = vld [vmem:[#allocation52_spill] sm:$0xff] }
 0x4b1   :  { %15999 = vst [vmem:[#allocation106_spill] sm:$0xff] %v12340_v1  ;;  %16001 = vst [vmem:[#allocation76_spill] sm:$0xff] %v12343_v14  ;;  %4837 = vadd.xlane.f32.xlu1 %v4836_v17  ;;  %4834 = vadd.xlane.f32.xlu0 %v4833_v2  ;;  %v16008_v14 = vld [vmem:[#allocation78_spill] sm:$0xff]  ;;  %v4801_v17 = vmul.f32 %v6765_v11, %v16013_v0  ;;  %v6769_v2 = vunpack.c.l.bf16 %v7167_v39  ;;  %v16021_v11 = vld [vmem:[#allocation44_spill] sm:$0xff] }
 0x4b2   :  { %16003 = vst [vmem:[#allocation98_spill] sm:$0xff] %v12349_v26  ;;  %16005 = vst [vmem:[#allocation45_spill] sm:$0xff] %v12352_v36  ;;  %v4145_v5 = vpop.xlane.xlu1 %4144  ;;  %v16009_v1 = vmax.f32 %v16007_v21, %v16008_v14  ;;  %v4142_v27 = vpop.xlane.xlu0 %4141  ;;  %v16014_v36 = vld [vmem:[#allocation75_spill] sm:$0xff]  ;;  %v4848_v14 = vsel %vm200_vm0, %v4802_v3, 0.0  ;;  %v16022_v39 = vld [vmem:[#allocation85_spill] sm:$0xff] }
 0x4b3   :  { %v12363_v16 = vadd.f32 %v4145_v5, %v16011_v6  ;;  %v16016_v26 = vmax.f32 %v16014_v36, %v16015_v59  ;;  %v12372_v49 = vadd.f32 %v4142_v27, %v16018_v55  ;;  %v6774_v6 = vunpack.c.h.bf16 %v7168_v20  ;;  %v16025_v36 = vld [vmem:[#allocation65_spill] sm:$0xff]  ;;  %v7169_v55 = vld [vmem:[#allocation5 + $0x4e0] sm:$0xff]   ;;  %v16029_v3 = vld [vmem:[#allocation59_spill] sm:$0xff] }
 0x4b4   :  { %v12360_v25 = vmax.f32 %v16009_v1, %v4145_v5  ;;  %v16020_v5 = vld [vmem:[#allocation19_spill] sm:$0xff]  ;;  %v16023_v0 = vmax.f32 %v16021_v11, %v16022_v39  ;;  %v16032_v11 = vld [vmem:[#allocation21_spill] sm:$0xff] }
 0x4b5   :  { %16012 = vst [vmem:[#allocation39_spill] sm:$0xff] %v12363_v16  ;;  %v12369_v29 = vmax.f32 %v16016_v26, %v4142_v27  ;;  %16019 = vst [vmem:[#allocation77_spill] sm:$0xff] %v12372_v49  ;;  %4843 = vadd.xlane.f32.xlu1 %v4842_v31  ;;  %4840 = vadd.xlane.f32.xlu0 %v4839_v48  ;;  %v4804_v21 = vmul.f32 %v6770_v63, %v16020_v5  ;;  %v6773_v16 = vunpack.c.l.bf16 %v7168_v20  ;;  %v16027_v31 = vld [vmem:[#allocation20_spill] sm:$0xff] }
 0x4b6   :  { %16010 = vst [vmem:[#allocation89_spill] sm:$0xff] %v12360_v25  ;;  %v4151_v1 = vpop.xlane.xlu1 %4150  ;;  %v4148_v59 = vpop.xlane.xlu0 %4147  ;;  %v4845_v27 = vsel %vm200_vm0, %v4801_v17, 0.0  ;;  %v4803_v48 = vmul.f32 %v6769_v2, %v16027_v31  ;;  %v16028_v49 = vld [vmem:[#allocation92_spill] sm:$0xff]  ;;  %v4806_v39 = vmul.f32 %v6774_v6, %v16032_v11  ;;  %v16033_v17 = vld [vmem:[#allocation22_spill] sm:$0xff]  ;;  %v6778_v2 = vunpack.c.h.bf16 %v7169_v55 }
 0x4b7   :  { %16017 = vst [vmem:[#allocation51_spill] sm:$0xff] %v12369_v29  ;;  %v12379_v25 = vmax.f32 %v16023_v0, %v4151_v1  ;;  %v12382_v26 = vadd.f32 %v4151_v1, %v16025_v36  ;;  %v16030_v29 = vmax.f32 %v16028_v49, %v16029_v3  ;;  %v16031_v20 = vld [vmem:[#allocation68_spill] sm:$0xff]  ;;  %v4854_v1 = vsel %vm200_vm0, %v4804_v21, 0.0  ;;  %v16035_v49 = vld [vmem:[#allocation58_spill] sm:$0xff]  ;;  %v7170_v3 = vld [vmem:[#allocation5 + $0x4e8] sm:$0xff]  }
 0x4b8   :  { %v12392_v5 = vadd.f32 %v4148_v59, %v16031_v20  ;;  %v4805_v36 = vmul.f32 %v6773_v16, %v16033_v17  ;;  %v4860_v20 = vsel %vm200_vm0, %v4806_v39, 0.0  ;;  %v7171_v11 = vld [vmem:[#allocation5 + $0x620] sm:$0xff]  }
 0x4b9   :  { %16024 = vst [vmem:[#allocation96_spill] sm:$0xff] %v12379_v25  ;;  %16026 = vst [vmem:[#allocation63_spill] sm:$0xff] %v12382_v26  ;;  %v12389_v63 = vmax.f32 %v16030_v29, %v4148_v59  ;;  %4849 = vadd.xlane.f32.xlu1 %v4848_v14  ;;  %4846 = vadd.xlane.f32.xlu0 %v4845_v27  ;;  %v16034_v26 = vld [vmem:[#allocation69_spill] sm:$0xff]  ;;  %v4851_v14 = vsel %vm200_vm0, %v4803_v48, 0.0  ;;  %v6777_v27 = vunpack.c.l.bf16 %v7169_v55  ;;  %v6782_v48 = vunpack.c.h.bf16 %v7170_v3 }
 0x4ba   :  { %v12394_v0 = vpop.xlane.xlu1 %4317  ;;  %v12405_v59 = vpop.xlane.xlu0 %4314  ;;  %v4808_v25 = vmul.f32 %v6778_v2, %v15881_v60  ;;  %v6786_v17 = vunpack.c.h.bf16 %v7171_v11 }
 0x4bb   :  { %v12403_v29 = vadd.f32 %v12394_v0, %v16035_v49  ;;  %v12412_v16 = vadd.f32 %v12405_v59, %v12092_v18  ;;  %v4857_v49 = vsel %vm200_vm0, %v4805_v36, 0.0  ;;  %v4810_v55 = vmul.f32 %v6782_v48, %v15785_v12  ;;  %v16042_v48 = vld [vmem:[#allocation71_spill] sm:$0xff] }
 0x4bc   :  { %v16044_v12 = vld [vmem:[#allocation27_spill] sm:$0xff] }
 0x4bd   :  { %4855 = vadd.xlane.f32.xlu1 %v4854_v1  ;;  %4852 = vadd.xlane.f32.xlu0 %v4851_v14  ;;  %v4807_v1 = vmul.f32 %v6777_v27, %v15882_v32  ;;  %v6781_v14 = vunpack.c.l.bf16 %v7170_v3 }
 0x4be   :  { %v12414_v6 = vpop.xlane.xlu1 %4323  ;;  %v12425_v18 = vpop.xlane.xlu0 %4320 }
 0x4bf   :  { %v12423_v21 = vadd.f32 %v12414_v6, %v12103_v13  ;;  %16037 = vst [vmem:[#allocation73_spill] sm:$0xff] %v12425_v18  ;;  %v12432_v36 = vadd.f32 %v12425_v18, %v12112_v10  ;;  %v4866_v13 = vsel %vm200_vm0, %v4808_v25, 0.0  ;;  %v4863_v10 = vsel %vm200_vm0, %v4807_v1, 0.0  ;;  %v16047_v18 = vld [vmem:[#allocation108_spill] sm:$0xff] }
 0x4c1   :  { %16036 = vst [vmem:[#allocation103_spill] sm:$0xff] %v12423_v21  ;;  %16038 = vst [vmem:[#allocation42_spill] sm:$0xff] %v12432_v36  ;;  %4861 = vadd.xlane.f32.xlu1 %v4860_v20  ;;  %4858 = vadd.xlane.f32.xlu0 %v4857_v49  ;;  %v6785_v21 = vunpack.c.l.bf16 %v7171_v11  ;;  %v16041_v20 = vld [vmem:[#allocation26_spill] sm:$0xff]  ;;  %v7172_v36 = vld [vmem:[#allocation5 + $0x628] sm:$0xff]  }
 0x4c2   :  { %v12434_v2 = vpop.xlane.xlu1 %4329  ;;  %v12444_v39 = vpop.xlane.xlu0 %4326  ;;  %v4809_v49 = vmul.f32 %v6781_v14, %v16041_v20  ;;  %v6790_v8 = vunpack.c.h.bf16 %v7172_v36  ;;  %v16046_v14 = vld [vmem:[#allocation47_spill] sm:$0xff] }
 0x4c3   :  { %16039 = vst [vmem:[#allocation50_spill] sm:$0xff] %v12434_v2  ;;  %v12442_v3 = vadd.f32 %v12434_v2, %v12123_v38  ;;  %v12452_v11 = vadd.f32 %v12444_v39, %v16042_v48  ;;  %v4872_v38 = vsel %vm200_vm0, %v4810_v55, 0.0  ;;  %v16045_v2 = vld [vmem:[#allocation28_spill] sm:$0xff] }
 0x4c4   :  { %v4811_v1 = vmul.f32 %v6785_v21, %v16045_v2 }
 0x4c5   :  { %16040 = vst [vmem:[#allocation79_spill] sm:$0xff] %v12442_v3  ;;  %16043 = vst [vmem:[#allocation64_spill] sm:$0xff] %v12452_v11  ;;  %4867 = vadd.xlane.f32.xlu1 %v4866_v13  ;;  %4864 = vadd.xlane.f32.xlu0 %v4863_v10  ;;  %v4812_v3 = vmul.f32 %v6786_v17, %v16044_v12  ;;  %v4869_v13 = vsel %vm200_vm0, %v4809_v49, 0.0  ;;  %v6789_v10 = vunpack.c.l.bf16 %v7172_v36  ;;  %v7173_v11 = vld [vmem:[#allocation5 + $0x760] sm:$0xff]  }
 0x4c6   :  { %v12454_v27 = vpop.xlane.xlu1 %4335  ;;  %v12465_v48 = vpop.xlane.xlu0 %4332  ;;  %v4875_v20 = vsel %vm200_vm0, %v4811_v1, 0.0  ;;  %v6794_v49 = vunpack.c.h.bf16 %v7173_v11 }
 0x4c7   :  { %v12463_v25 = vadd.f32 %v12454_v27, %v16047_v18  ;;  %v12472_v17 = vadd.f32 %v12465_v48, %v12152_v46  ;;  %v4878_v18 = vsel %vm200_vm0, %v4812_v3, 0.0 }
 0x4c8   :  { %v4816_v36 = vmul.f32 %v6794_v49, %v15799_v42  ;;  %v16056_v49 = vld [vmem:[#allocation53_spill] sm:$0xff] }
 0x4c9   :  { %16048 = vst [vmem:[#allocation57_spill] sm:$0xff] %v12463_v25  ;;  %16049 = vst [vmem:[#allocation48_spill] sm:$0xff] %v12472_v17  ;;  %4873 = vadd.xlane.f32.xlu1 %v4872_v38  ;;  %4870 = vadd.xlane.f32.xlu0 %v4869_v13  ;;  %v4814_v25 = vmul.f32 %v6790_v8, %v15903_v44  ;;  %v4813_v38 = vmul.f32 %v6789_v10, %v15904_v28  ;;  %v6793_v13 = vunpack.c.l.bf16 %v7173_v11  ;;  %v7175_v17 = vld [vmem:[#allocation5 + $0x8a0] sm:$0xff]  }
 0x4ca   :  { %v12474_v21 = vpop.xlane.xlu1 %4341  ;;  %v12485_v46 = vpop.xlane.xlu0 %4338  ;;  %v6802_v44 = vunpack.c.h.bf16 %v7175_v17  ;;  %v7177_v28 = vld [vmem:[#allocation5 + $0x9e0] sm:$0xff]  }
 0x4cb   :  { %v12483_v55 = vadd.f32 %v12474_v21, %v12163_v56  ;;  %v12492_v8 = vadd.f32 %v12485_v46, %v12172_v35  ;;  %v4884_v56 = vsel %vm200_vm0, %v4814_v25, 0.0  ;;  %v4881_v35 = vsel %vm200_vm0, %v4813_v38, 0.0 }
 0x4cd   :  { %16050 = vst [vmem:[#allocation93_spill] sm:$0xff] %v12483_v55  ;;  %16051 = vst [vmem:[#allocation54_spill] sm:$0xff] %v12492_v8  ;;  %4879 = vadd.xlane.f32.xlu1 %v4878_v18  ;;  %4876 = vadd.xlane.f32.xlu0 %v4875_v20  ;;  %v6801_v55 = vunpack.c.l.bf16 %v7175_v17  ;;  %v16055_v20 = vld [vmem:[#allocation32_spill] sm:$0xff] }
 0x4ce   :  { %v12494_v1 = vpop.xlane.xlu1 %4347  ;;  %v12504_v3 = vpop.xlane.xlu0 %4344  ;;  %v4815_v18 = vmul.f32 %v6793_v13, %v16055_v20  ;;  %v16060_v8 = vld [vmem:[#allocation24_spill] sm:$0xff] }
 0x4cf   :  { %16052 = vst [vmem:[#allocation67_spill] sm:$0xff] %v12494_v1  ;;  %v12502_v10 = vadd.f32 %v12494_v1, %v12183_v52  ;;  %16054 = vst [vmem:[#allocation70_spill] sm:$0xff] %v12504_v3  ;;  %v12512_v17 = vadd.f32 %v12504_v3, %v16056_v49  ;;  %v4890_v52 = vsel %vm200_vm0, %v4816_v36, 0.0  ;;  %v4819_v38 = vmul.f32 %v6801_v55, %v15928_v37  ;;  %v7174_v55 = vld [vmem:[#allocation5 + $0x768] sm:$0xff]   ;;  %v16080_v3 = vld [vmem:[#allocation33_spill] sm:$0xff] }
 0x4d0   :  { %v6810_v1 = vunpack.c.h.bf16 %v7177_v28  ;;  %v6798_v40 = vunpack.c.h.bf16 %v7174_v55 }
 0x4d1   :  { %16053 = vst [vmem:[#allocation31_spill] sm:$0xff] %v12502_v10  ;;  %16057 = vst [vmem:[#allocation55_spill] sm:$0xff] %v12512_v17  ;;  %4885 = vadd.xlane.f32.xlu1 %v4884_v56  ;;  %4882 = vadd.xlane.f32.xlu0 %v4881_v35  ;;  %v4820_v10 = vmul.f32 %v6802_v44, %v15927_v24  ;;  %v4887_v56 = vsel %vm200_vm0, %v4815_v18, 0.0  ;;  %v6809_v35 = vunpack.c.l.bf16 %v7177_v28  ;;  %v7176_v17 = vld [vmem:[#allocation5 + $0x8a8] sm:$0xff]  }
 0x4d2   :  { %v12514_v11 = vpop.xlane.xlu1 %4353  ;;  %v12525_v49 = vpop.xlane.xlu0 %4350  ;;  %v4824_v18 = vmul.f32 %v6810_v1, %v15947_v7  ;;  %v6805_v28 = vunpack.c.l.bf16 %v7176_v17 }
 0x4d3   :  { %16058 = vst [vmem:[#allocation102_spill] sm:$0xff] %v12514_v11  ;;  %v12523_v25 = vadd.f32 %v12514_v11, %v16060_v8  ;;  %16062 = vst [vmem:[#allocation15_spill] sm:$0xff] %v12525_v49  ;;  %v12532_v44 = vadd.f32 %v12525_v49, %v12212_v23  ;;  %v4902_v8 = vsel %vm200_vm0, %v4820_v10, 0.0  ;;  %v7178_v49 = vld [vmem:[#allocation5 + $0x9e8] sm:$0xff]  }
 0x4d4   :  { %v6813_v13 = vunpack.c.l.bf16 %v7178_v49 }
 0x4d5   :  { %16061 = vst [vmem:[#allocation60_spill] sm:$0xff] %v12523_v25  ;;  %16063 = vst [vmem:[#allocation16_spill] sm:$0xff] %v12532_v44  ;;  %4891 = vadd.xlane.f32.xlu1 %v4890_v52  ;;  %4888 = vadd.xlane.f32.xlu0 %v4887_v56  ;;  %v4899_v25 = vsel %vm200_vm0, %v4819_v38, 0.0  ;;  %v16067_v52 = vld [vmem:[#allocation40_spill] sm:$0xff]  ;;  %v6797_v44 = vunpack.c.l.bf16 %v7174_v55  ;;  %v16069_v38 = vld [vmem:[#allocation94_spill] sm:$0xff] }
 0x4d6   :  { %v12534_v9 = vpop.xlane.xlu1 %4359  ;;  %v12545_v23 = vpop.xlane.xlu0 %4356  ;;  %v4823_v56 = vmul.f32 %v6809_v35, %v16067_v52 }
 0x4d7   :  { %16064 = vst [vmem:[#allocation86_spill] sm:$0xff] %v12534_v9  ;;  %v12543_v36 = vadd.f32 %v12534_v9, %v12223_v54  ;;  %16066 = vst [vmem:[#allocation82_spill] sm:$0xff] %v12545_v23  ;;  %v12552_v1 = vadd.f32 %v12545_v23, %v16069_v38  ;;  %v4914_v54 = vsel %vm200_vm0, %v4824_v18, 0.0  ;;  %v16078_v23 = vld [vmem:[#allocation74_spill] sm:$0xff] }
 0x4d9   :  { %16065 = vst [vmem:[#allocation100_spill] sm:$0xff] %v12543_v36  ;;  %16070 = vst [vmem:[#allocation62_spill] sm:$0xff] %v12552_v1  ;;  %4903 = vadd.xlane.f32.xlu1 %v4902_v8  ;;  %4900 = vadd.xlane.f32.xlu0 %v4899_v25  ;;  %v16072_v36 = vld [vmem:[#allocation38_spill] sm:$0xff]  ;;  %v4911_v8 = vsel %vm200_vm0, %v4823_v56, 0.0  ;;  %v16077_v1 = vld [vmem:[#allocation72_spill] sm:$0xff]  ;;  %v6814_v56 = vunpack.c.h.bf16 %v7178_v49 }
 0x4da   :  { %v12554_v11 = vpop.xlane.xlu1 %4365  ;;  %v4821_v9 = vmul.f32 %v6805_v28, %v16072_v36  ;;  %v12564_v10 = vpop.xlane.xlu0 %4362  ;;  %v16076_v25 = vld [vmem:[#allocation34_spill] sm:$0xff]  ;;  %v16082_v36 = vld [vmem:[#allocation99_spill] sm:$0xff] }
 0x4db   :  { %16071 = vst [vmem:[#allocation56_spill] sm:$0xff] %v12554_v11  ;;  %v12562_v57 = vadd.f32 %v12554_v11, %v16074_v62  ;;  %v4817_v38 = vmul.f32 %v6797_v44, %v16076_v25  ;;  %v12572_v55 = vadd.f32 %v12564_v10, %v16078_v23  ;;  %v4825_v11 = vmul.f32 %v6813_v13, %v15961_v19  ;;  %v16081_v44 = vld [vmem:[#allocation80_spill] sm:$0xff] }
 0x4dc   :  { %v4905_v62 = vsel %vm200_vm0, %v4821_v9, 0.0  ;;  %v4826_v35 = vmul.f32 %v6814_v56, %v15960_v22 }
 0x4dd   :  { %16075 = vst [vmem:[#allocation78_spill] sm:$0xff] %v12562_v57  ;;  %16079 = vst [vmem:[#allocation84_spill] sm:$0xff] %v12572_v55  ;;  %4915 = vadd.xlane.f32.xlu1 %v4914_v54  ;;  %4912 = vadd.xlane.f32.xlu0 %v4911_v8  ;;  %v4818_v57 = vmul.f32 %v6798_v40, %v16080_v3  ;;  %v4893_v54 = vsel %vm200_vm0, %v4817_v38, 0.0  ;;  %v6806_v8 = vunpack.c.h.bf16 %v7176_v17  ;;  %v6816_v55 = vld [vmem:[#allocation5 + $0x130] sm:$0xff]  }
 0x4de   :  { %v12574_v28 = vpop.xlane.xlu1 %4371  ;;  %v12585_v23 = vpop.xlane.xlu0 %4368  ;;  %v6818_v38 = vunpack.c.h.bf16 %v6816_v55 }
 0x4df   :  { %v12583_v18 = vadd.f32 %v12574_v28, %v16082_v36  ;;  %16083 = vst [vmem:[#allocation75_spill] sm:$0xff] %v12585_v23  ;;  %v12592_v40 = vadd.f32 %v12585_v23, %v12272_v33  ;;  %v4896_v49 = vsel %vm200_vm0, %v4818_v57, 0.0  ;;  %v4917_v36 = vsel %vm200_vm0, %v4825_v11, 0.0  ;;  %v7180_v23 = vld [vmem:[#allocation5 + $0x270] sm:$0xff]   ;;  %v16090_v11 = vld [vmem:[#allocation43_spill] sm:$0xff] }
 0x4e0   :  { %v6826_v41 = vunpack.c.h.bf16 %v7180_v23  ;;  %v6825_v22 = vunpack.c.l.bf16 %v7180_v23 }
 0x4e1   :  { %16084 = vst [vmem:[#allocation107_spill] sm:$0xff] %v12592_v40  ;;  %4906 = vadd.xlane.f32.xlu1 %v4905_v62  ;;  %4894 = vadd.xlane.f32.xlu0 %v4893_v54  ;;  %v16088_v62 = vld [vmem:[#allocation37_spill] sm:$0xff]  ;;  %v6817_v40 = vunpack.c.l.bf16 %v6816_v55  ;;  %v16094_v55 = vld [vmem:[#allocation90_spill] sm:$0xff] }
 0x4e2   :  { %v12594_v13 = vpop.xlane.xlu1 %4377  ;;  %v12605_v33 = vpop.xlane.xlu0 %4374  ;;  %v4822_v54 = vmul.f32 %v6806_v8, %v16088_v62  ;;  %v16095_v62 = vld [vmem:[#allocation46_spill] sm:$0xff]  ;;  %v5057_v8 = vmul.f32 %v6826_v41, %v15994_v50  ;;  %v16106_v41 = vld [vmem:[#allocation88_spill] sm:$0xff] }
 0x4e3   :  { %16085 = vst [vmem:[#allocation52_spill] sm:$0xff] %v12594_v13  ;;  %v12603_v9 = vadd.f32 %v12594_v13, %v12283_v34  ;;  %16087 = vst [vmem:[#allocation85_spill] sm:$0xff] %v12605_v33  ;;  %v12612_v56 = vadd.f32 %v12605_v33, %v16090_v11  ;;  %v4920_v34 = vsel %vm200_vm0, %v4826_v35, 0.0  ;;  %v16098_v35 = vld [vmem:[#allocation83_spill] sm:$0xff] }
 0x4e5   :  { %16086 = vst [vmem:[#allocation44_spill] sm:$0xff] %v12603_v9  ;;  %16091 = vst [vmem:[#allocation65_spill] sm:$0xff] %v12612_v56  ;;  %4897 = vadd.xlane.f32.xlu1 %v4896_v49  ;;  %4918 = vadd.xlane.f32.xlu0 %v4917_v36  ;;  %v16093_v9 = vld [vmem:[#allocation14_spill] sm:$0xff]  ;;  %v4908_v49 = vsel %vm200_vm0, %v4822_v54, 0.0  ;;  %v16097_v36 = vld [vmem:[#allocation12_spill] sm:$0xff]  ;;  %v5056_v54 = vmul.f32 %v6825_v22, %v15995_v30  ;;  %v5099_v30 = vsel %vm200_vm0, %v5057_v8, 0.0 }
 0x4e6   :  { %v12614_v17 = vpop.xlane.xlu1 %4383  ;;  %v5053_v13 = vmul.f32 %v6818_v38, %v16093_v9  ;;  %v12624_v57 = vpop.xlane.xlu0 %4380  ;;  %v5052_v11 = vmul.f32 %v6817_v40, %v16097_v36  ;;  %v7182_v56 = vld [vmem:[#allocation5 + $0x3b0] sm:$0xff]   ;;  %v16099_v9 = vld [vmem:[#allocation49_spill] sm:$0xff]  ;;  %v16109_v36 = vld [vmem:[#allocation19_spill] sm:$0xff] }
 0x4e7   :  { %16092 = vst [vmem:[#allocation20_spill] sm:$0xff] %v12614_v17  ;;  %v12622_v53 = vadd.f32 %v12614_v17, %v16095_v62  ;;  %v12632_v23 = vadd.f32 %v12624_v57, %v16099_v9  ;;  %v16103_v17 = vld [vmem:[#allocation36_spill] sm:$0xff] }
 0x4e8   :  { %v5087_v62 = vsel %vm200_vm0, %v5053_v13, 0.0  ;;  %v16111_v40 = vld [vmem:[#allocation76_spill] sm:$0xff] }
 0x4e9   :  { %16096 = vst [vmem:[#allocation92_spill] sm:$0xff] %v12622_v53  ;;  %16100 = vst [vmem:[#allocation59_spill] sm:$0xff] %v12632_v23  ;;  %4921 = vadd.xlane.f32.xlu1 %v4920_v34  ;;  %4909 = vadd.xlane.f32.xlu0 %v4908_v49  ;;  %v6834_v53 = vunpack.c.h.bf16 %v7182_v56  ;;  %v5084_v34 = vsel %vm200_vm0, %v5052_v11, 0.0  ;;  %v6833_v49 = vunpack.c.l.bf16 %v7182_v56  ;;  %v7184_v23 = vld [vmem:[#allocation5 + $0x4f0] sm:$0xff]   ;;  %v16110_v56 = vld [vmem:[#allocation106_spill] sm:$0xff] }
 0x4ea   :  { %v12634_v38 = vpop.xlane.xlu1 %4389  ;;  %v12645_v9 = vpop.xlane.xlu0 %4386  ;;  %v6842_v11 = vunpack.c.h.bf16 %v7184_v23 }
 0x4eb   :  { %16101 = vst [vmem:[#allocation68_spill] sm:$0xff] %v12634_v38  ;;  %v12643_v33 = vadd.f32 %v12634_v38, %v16103_v17  ;;  %16105 = vst [vmem:[#allocation58_spill] sm:$0xff] %v12645_v9  ;;  %v12652_v22 = vadd.f32 %v12645_v9, %v16106_v41  ;;  %v5096_v17 = vsel %vm200_vm0, %v5056_v54, 0.0  ;;  %v16114_v54 = vld [vmem:[#allocation45_spill] sm:$0xff] }
 0x4ec   :  { %v5065_v38 = vmul.f32 %v6842_v11, %v15881_v60  ;;  %v16121_v60 = vld [vmem:[#allocation77_spill] sm:$0xff] }
 0x4ed   :  { %16104 = vst [vmem:[#allocation69_spill] sm:$0xff] %v12643_v33  ;;  %16107 = vst [vmem:[#allocation71_spill] sm:$0xff] %v12652_v22  ;;  %5088 = vadd.xlane.f32.xlu1 %v5087_v62  ;;  %5085 = vadd.xlane.f32.xlu0 %v5084_v34  ;;  %v5061_v33 = vmul.f32 %v6834_v53, %v16109_v36  ;;  %v5060_v62 = vmul.f32 %v6833_v49, %v16027_v31  ;;  %v6841_v34 = vunpack.c.l.bf16 %v7184_v23  ;;  %v7186_v22 = vld [vmem:[#allocation5 + $0x630] sm:$0xff]   ;;  %v16117_v31 = vld [vmem:[#allocation89_spill] sm:$0xff] }
 0x4ee   :  { %v12654_v50 = vpop.xlane.xlu1 %4395  ;;  %v12665_v41 = vpop.xlane.xlu0 %4392  ;;  %v16118_v49 = vld [vmem:[#allocation39_spill] sm:$0xff] }
 0x4ef   :  { %16108 = vst [vmem:[#allocation27_spill] sm:$0xff] %v12654_v50  ;;  %v12663_v13 = vadd.f32 %v12654_v50, %v16111_v40  ;;  %v12672_v53 = vadd.f32 %v12665_v41, %v16114_v54  ;;  %v5111_v40 = vsel %vm200_vm0, %v5061_v33, 0.0  ;;  %v6849_v50 = vunpack.c.l.bf16 %v7186_v22  ;;  %v7188_v54 = vld [vmem:[#allocation5 + $0x770] sm:$0xff]   ;;  %v16120_v33 = vld [vmem:[#allocation51_spill] sm:$0xff] }
 0x4f1   :  { %16112 = vst [vmem:[#allocation28_spill] sm:$0xff] %v12663_v13  ;;  %16115 = vst [vmem:[#allocation47_spill] sm:$0xff] %v12672_v53  ;;  %5100 = vadd.xlane.f32.xlu1 %v5099_v30  ;;  %5097 = vadd.xlane.f32.xlu0 %v5096_v17  ;;  %v6850_v13 = vunpack.c.h.bf16 %v7186_v22  ;;  %v5108_v30 = vsel %vm200_vm0, %v5060_v62, 0.0  ;;  %v5064_v17 = vmul.f32 %v6841_v34, %v15882_v32  ;;  %v16123_v32 = vld [vmem:[#allocation96_spill] sm:$0xff] }
 0x4f2   :  { %v12674_v36 = vpop.xlane.xlu1 %4401  ;;  %v12684_v8 = vpop.xlane.xlu0 %4398  ;;  %v5068_v62 = vmul.f32 %v6849_v50, %v16045_v2 }
 0x4f3   :  { %16116 = vst [vmem:[#allocation108_spill] sm:$0xff] %v12674_v36  ;;  %v12682_v9 = vadd.f32 %v12674_v36, %v16118_v49  ;;  %v12692_v22 = vadd.f32 %v12684_v8, %v16121_v60  ;;  %v5123_v49 = vsel %vm200_vm0, %v5065_v38, 0.0  ;;  %v5069_v23 = vmul.f32 %v6850_v13, %v16044_v12  ;;  %v16124_v36 = vld [vmem:[#allocation63_spill] sm:$0xff] }
 0x4f4   :  { %v5132_v50 = vsel %vm200_vm0, %v5068_v62, 0.0 }
 0x4f5   :  { %16119 = vst [vmem:[#allocation32_spill] sm:$0xff] %v12682_v9  ;;  %16122 = vst [vmem:[#allocation53_spill] sm:$0xff] %v12692_v22  ;;  %5112 = vadd.xlane.f32.xlu1 %v5111_v40  ;;  %5109 = vadd.xlane.f32.xlu0 %v5108_v30  ;;  %v6858_v9 = vunpack.c.h.bf16 %v7188_v54  ;;  %v5120_v40 = vsel %vm200_vm0, %v5064_v17, 0.0  ;;  %v6857_v30 = vunpack.c.l.bf16 %v7188_v54  ;;  %v7190_v22 = vld [vmem:[#allocation5 + $0x8b0] sm:$0xff]   ;;  %v5135_v13 = vsel %vm200_vm0, %v5069_v23, 0.0 }
 0x4f6   :  { %v12694_v11 = vpop.xlane.xlu1 %4407  ;;  %v12705_v60 = vpop.xlane.xlu0 %4404  ;;  %v6866_v34 = vunpack.c.h.bf16 %v7190_v22  ;;  %v16126_v17 = vmax.f32 %v16034_v26, %v12394_v0  ;;  %v16127_v23 = vmax.f32 %v12089_v51, %v12405_v59  ;;  %v16130_v51 = vld [vmem:[#allocation103_spill] sm:$0xff] }
 0x4f7   :  { %v12703_v53 = vadd.f32 %v12694_v11, %v16124_v36  ;;  %v12712_v12 = vadd.f32 %v12705_v60, %v12392_v5  ;;  %v5073_v36 = vmul.f32 %v6858_v9, %v15799_v42 }
 0x4f9   :  { %16125 = vst [vmem:[#allocation24_spill] sm:$0xff] %v12712_v12  ;;  %5124 = vadd.xlane.f32.xlu1 %v5123_v49  ;;  %5121 = vadd.xlane.f32.xlu0 %v5120_v40  ;;  %v5072_v49 = vmul.f32 %v6857_v30, %v16055_v20  ;;  %v6865_v40 = vunpack.c.l.bf16 %v7190_v22  ;;  %v7192_v12 = vld [vmem:[#allocation5 + $0x9f0] sm:$0xff]   ;;  %v5147_v0 = vsel %vm200_vm0, %v5073_v36, 0.0  ;;  %v16128_v20 = vmax.f32 %v12100_v15, %v12414_v6  ;;  %v16131_v36 = vld [vmem:[#allocation73_spill] sm:$0xff] }
 0x4fa   :  { %v4575_v2 = vpop.xlane.xlu1 %4574  ;;  %v4572_v5 = vpop.xlane.xlu0 %4571  ;;  %v6874_v9 = vunpack.c.h.bf16 %v7192_v12  ;;  %v12756_v15 = vld [vmem:[#allocation5 + $0x138] sm:$0xff]  }
 0x4fb   :  { %v12720_v54 = vmax.f32 %v16126_v17, %v4575_v2  ;;  %v12723_v38 = vadd.f32 %v4575_v2, %v12403_v29  ;;  %v12729_v62 = vmax.f32 %v16127_v23, %v4572_v5  ;;  %v12732_v42 = vadd.f32 %v4572_v5, %v12412_v16  ;;  %v16135_v23 = vld [vmem:[#allocation91_spill] sm:$0xff] }
 0x4fc   :  { %v5077_v29 = vmul.f32 %v6866_v34, %v15927_v24  ;;  %v6873_v2 = vunpack.c.l.bf16 %v7192_v12  ;;  %v5144_v16 = vsel %vm200_vm0, %v5072_v49, 0.0  ;;  %v16132_v24 = vmax.f32 %v12109_v47, %v16131_v36  ;;  %v16134_v12 = vld [vmem:[#allocation42_spill] sm:$0xff] }
 0x4fd   :  { %5136 = vadd.xlane.f32.xlu1 %v5135_v13  ;;  %5133 = vadd.xlane.f32.xlu0 %v5132_v50  ;;  %v5076_v13 = vmul.f32 %v6865_v40, %v15928_v37  ;;  %v12746_v50 = vld [vmem:[#allocation5 + $0x278] sm:$0xff]   ;;  %v5081_v49 = vmul.f32 %v6874_v9, %v15947_v7  ;;  %v16136_v47 = vld [vmem:[#allocation50_spill] sm:$0xff]  ;;  %v16139_v7 = vmax.f32 %v12129_v58, %v12444_v39  ;;  %v16140_v9 = vld [vmem:[#allocation64_spill] sm:$0xff] }
 0x4fe   :  { %v4581_v26 = vpop.xlane.xlu1 %4580  ;;  %v4578_v30 = vpop.xlane.xlu0 %4577  ;;  %v5159_v5 = vsel %vm200_vm0, %v5077_v29, 0.0  ;;  %v5080_v37 = vmul.f32 %v6873_v2, %v16067_v52  ;;  %v6829_v40 = vunpack.c.l.bf16 %v12746_v50  ;;  %v12772_v29 = vld [vmem:[#allocation5 + $0x4f8] sm:$0xff]   ;;  %v16142_v58 = vmax.f32 %v16046_v14, %v12454_v27  ;;  %v16149_v27 = vld [vmem:[#allocation48_spill] sm:$0xff] }
 0x4ff   :  { %v12739_v22 = vmax.f32 %v16128_v20, %v4581_v26  ;;  %v12742_v59 = vadd.f32 %v4581_v26, %v16130_v51  ;;  %v12751_v34 = vmax.f32 %v16132_v24, %v4578_v30  ;;  %v12754_v17 = vadd.f32 %v4578_v30, %v16134_v12  ;;  %v16138_v51 = vld [vmem:[#allocation79_spill] sm:$0xff]  ;;  %v12782_v24 = vld [vmem:[#allocation5 + $0x3b8] sm:$0xff]  }
 0x500   :  { %v16137_v26 = vmax.f32 %v16135_v23, %v16136_v47  ;;  %v16141_v23 = vld [vmem:[#allocation18_spill] sm:$0xff] }
 0x501   :  { %16129 = vst [vmem:[#allocation40_spill] sm:$0xff] %v12739_v22  ;;  %16133 = vst [vmem:[#allocation94_spill] sm:$0xff] %v12751_v34  ;;  %5148 = vadd.xlane.f32.xlu1 %v5147_v0  ;;  %5145 = vadd.xlane.f32.xlu0 %v5144_v16  ;;  %v5156_v0 = vsel %vm200_vm0, %v5076_v13, 0.0  ;;  %v6821_v16 = vunpack.c.l.bf16 %v12756_v15  ;;  %v5168_v13 = vsel %vm200_vm0, %v5080_v37, 0.0  ;;  %v5058_v47 = vmul.f32 %v6829_v40, %v16141_v23  ;;  %v12800_v37 = vld [vmem:[#allocation5 + $0x638] sm:$0xff]  }
 0x502   :  { %v4587_v6 = vpop.xlane.xlu1 %4586  ;;  %v4584_v36 = vpop.xlane.xlu0 %4583  ;;  %v16147_v40 = vmax.f32 %v12149_v45, %v12465_v48  ;;  %v16153_v48 = vld [vmem:[#allocation93_spill] sm:$0xff] }
 0x503   :  { %v12765_v20 = vmax.f32 %v16137_v26, %v4587_v6  ;;  %v12768_v30 = vadd.f32 %v4587_v6, %v16138_v51  ;;  %v12777_v52 = vmax.f32 %v16139_v7, %v4584_v36  ;;  %v12780_v2 = vadd.f32 %v4584_v36, %v16140_v9  ;;  %v16144_v51 = vld [vmem:[#allocation57_spill] sm:$0xff] }
 0x504   :  { %v5171_v6 = vsel %vm200_vm0, %v5081_v49, 0.0  ;;  %v6845_v26 = vunpack.c.l.bf16 %v12772_v29  ;;  %v6837_v9 = vunpack.c.l.bf16 %v12782_v24  ;;  %v12798_v49 = vld [vmem:[#allocation5 + $0x778] sm:$0xff]  }
 0x505   :  { %5160 = vadd.xlane.f32.xlu1 %v5159_v5  ;;  %5157 = vadd.xlane.f32.xlu0 %v5156_v0  ;;  %v16146_v5 = vld [vmem:[#allocation11_spill] sm:$0xff] }
 0x506   :  { %v4593_v12 = vpop.xlane.xlu1 %4592  ;;  %v4590_v7 = vpop.xlane.xlu0 %4589  ;;  %v5054_v0 = vmul.f32 %v6821_v16, %v16146_v5  ;;  %v16151_v16 = vld [vmem:[#allocation26_spill] sm:$0xff]  ;;  %v6861_v5 = vunpack.c.l.bf16 %v12798_v49 }
 0x507   :  { %v12791_v39 = vmax.f32 %v16142_v58, %v4593_v12  ;;  %v12794_v36 = vadd.f32 %v4593_v12, %v16144_v51  ;;  %v12805_v23 = vmax.f32 %v16147_v40, %v4590_v7  ;;  %v12808_v14 = vadd.f32 %v4590_v7, %v16149_v27 }
 0x508   :  { %v5102_v58 = vsel %vm200_vm0, %v5058_v47, 0.0  ;;  %v5066_v51 = vmul.f32 %v6845_v26, %v16151_v16  ;;  %v12824_v47 = vld [vmem:[#allocation5 + $0x9f8] sm:$0xff]   ;;  %v16155_v26 = vmax.f32 %v12169_v4, %v12485_v46  ;;  %v16161_v4 = vld [vmem:[#allocation67_spill] sm:$0xff] }
 0x509   :  { %16143 = vst [vmem:[#allocation61_spill] sm:$0xff] %v12791_v39  ;;  %16145 = vst [vmem:[#allocation34_spill] sm:$0xff] %v12794_v36  ;;  %5172 = vadd.xlane.f32.xlu1 %v5171_v6  ;;  %5169 = vadd.xlane.f32.xlu0 %v5168_v13  ;;  %v6853_v36 = vunpack.c.l.bf16 %v12800_v37  ;;  %v16152_v39 = vmax.f32 %v12160_v43, %v12474_v21  ;;  %v5090_v6 = vsel %vm200_vm0, %v5054_v0, 0.0  ;;  %v16154_v13 = vld [vmem:[#allocation22_spill] sm:$0xff]  ;;  %v12834_v43 = vld [vmem:[#allocation5 + $0x8b8] sm:$0xff]  }
 0x50a   :  { %16148 = vst [vmem:[#allocation72_spill] sm:$0xff] %v12805_v23  ;;  %16150 = vst [vmem:[#allocation74_spill] sm:$0xff] %v12808_v14  ;;  %v4599_v12 = vpop.xlane.xlu1 %4598  ;;  %v4596_v7 = vpop.xlane.xlu0 %4595  ;;  %v5062_v27 = vmul.f32 %v6837_v9, %v16154_v13  ;;  %v16157_v14 = vld [vmem:[#allocation54_spill] sm:$0xff]  ;;  %v5074_v0 = vmul.f32 %v6861_v5, %v16076_v25  ;;  %v16160_v13 = vld [vmem:[#allocation101_spill] sm:$0xff] }
 0x50b   :  { %v12817_v45 = vmax.f32 %v16152_v39, %v4599_v12  ;;  %v12820_v40 = vadd.f32 %v4599_v12, %v16153_v48  ;;  %v12829_v16 = vmax.f32 %v16155_v26, %v4596_v7  ;;  %v12832_v23 = vadd.f32 %v4596_v7, %v16157_v14  ;;  %v16159_v9 = vld [vmem:[#allocation30_spill] sm:$0xff]  ;;  %v16164_v14 = vld [vmem:[#allocation31_spill] sm:$0xff] }
 0x50c   :  { %v5126_v39 = vsel %vm200_vm0, %v5066_v51, 0.0  ;;  %v5070_v12 = vmul.f32 %v6853_v36, %v16159_v9  ;;  %v6877_v48 = vunpack.c.l.bf16 %v12824_v47  ;;  %v16162_v46 = vmax.f32 %v16160_v13, %v16161_v4  ;;  %v16166_v51 = vld [vmem:[#allocation81_spill] sm:$0xff]  ;;  %v16170_v36 = vld [vmem:[#allocation55_spill] sm:$0xff] }
 0x50d   :  { %16156 = vst [vmem:[#allocation33_spill] sm:$0xff] %v12829_v16  ;;  %16158 = vst [vmem:[#allocation80_spill] sm:$0xff] %v12832_v23  ;;  %5103 = vadd.xlane.f32.xlu1 %v5102_v58  ;;  %5091 = vadd.xlane.f32.xlu0 %v5090_v6  ;;  %v5114_v58 = vsel %vm200_vm0, %v5062_v27, 0.0  ;;  %v6869_v6 = vunpack.c.l.bf16 %v12834_v43  ;;  %v16167_v16 = vld [vmem:[#allocation70_spill] sm:$0xff]  ;;  %v5150_v4 = vsel %vm200_vm0, %v5074_v0, 0.0  ;;  %v6830_v27 = vunpack.c.h.bf16 %v12746_v50  ;;  %v16177_v0 = vld [vmem:[#allocation109_spill] sm:$0xff] }
 0x50e   :  { %v4605_v21 = vpop.xlane.xlu1 %4604  ;;  %v4602_v23 = vpop.xlane.xlu0 %4601  ;;  %v16168_v25 = vmax.f32 %v16166_v51, %v16167_v16  ;;  %v16175_v51 = vld [vmem:[#allocation60_spill] sm:$0xff] }
 0x50f   :  { %v12843_v26 = vmax.f32 %v16162_v46, %v4605_v21  ;;  %v12846_v7 = vadd.f32 %v4605_v21, %v16164_v14  ;;  %v12856_v9 = vadd.f32 %v4602_v23, %v16170_v36  ;;  %v5138_v21 = vsel %vm200_vm0, %v5070_v12, 0.0  ;;  %v16172_v14 = vld [vmem:[#allocation23_spill] sm:$0xff] }
 0x510   :  { %v12853_v5 = vmax.f32 %v16168_v25, %v4602_v23  ;;  %v5082_v46 = vmul.f32 %v6877_v48, %v15961_v19  ;;  %v6822_v36 = vunpack.c.h.bf16 %v12756_v15  ;;  %v16180_v19 = vld [vmem:[#allocation16_spill] sm:$0xff] }
 0x511   :  { %16163 = vst [vmem:[#allocation99_spill] sm:$0xff] %v12843_v26  ;;  %16165 = vst [vmem:[#allocation43_spill] sm:$0xff] %v12846_v7  ;;  %5127 = vadd.xlane.f32.xlu1 %v5126_v39  ;;  %5115 = vadd.xlane.f32.xlu0 %v5114_v58  ;;  %v16173_v7 = vld [vmem:[#allocation102_spill] sm:$0xff]  ;;  %v16183_v15 = vld [vmem:[#allocation104_spill] sm:$0xff] }
 0x512   :  { %16169 = vst [vmem:[#allocation14_spill] sm:$0xff] %v12853_v5  ;;  %16171 = vst [vmem:[#allocation90_spill] sm:$0xff] %v12856_v9  ;;  %v4611_v13 = vpop.xlane.xlu1 %4610  ;;  %v16174_v26 = vmax.f32 %v16172_v14, %v16173_v7  ;;  %v4608_v23 = vpop.xlane.xlu0 %4607  ;;  %v16176_v39 = vld [vmem:[#allocation38_spill] sm:$0xff]  ;;  %v16178_v9 = vld [vmem:[#allocation15_spill] sm:$0xff]  ;;  %v6846_v14 = vunpack.c.h.bf16 %v12772_v29 }
 0x513   :  { %v12868_v25 = vadd.f32 %v4611_v13, %v16175_v51  ;;  %v5078_v58 = vmul.f32 %v6869_v6, %v16176_v39  ;;  %v16179_v12 = vmax.f32 %v16177_v0, %v16178_v9  ;;  %v12878_v50 = vadd.f32 %v4608_v23, %v16180_v19  ;;  %v16182_v7 = vld [vmem:[#allocation17_spill] sm:$0xff]  ;;  %v16184_v51 = vld [vmem:[#allocation86_spill] sm:$0xff]  ;;  %v16187_v0 = vld [vmem:[#allocation100_spill] sm:$0xff] }
 0x514   :  { %v12865_v16 = vmax.f32 %v16174_v26, %v4611_v13  ;;  %v5174_v26 = vsel %vm200_vm0, %v5082_v46, 0.0  ;;  %v5059_v13 = vmul.f32 %v6830_v27, %v16182_v7  ;;  %v6838_v6 = vunpack.c.h.bf16 %v12782_v24  ;;  %v16190_v46 = vld [vmem:[#allocation97_spill] sm:$0xff]  ;;  %v16194_v29 = vld [vmem:[#allocation62_spill] sm:$0xff] }
 0x515   :  { %v12875_v5 = vmax.f32 %v16179_v12, %v4608_v23  ;;  %16181 = vst [vmem:[#allocation46_spill] sm:$0xff] %v12878_v50  ;;  %5151 = vadd.xlane.f32.xlu1 %v5150_v4  ;;  %5139 = vadd.xlane.f32.xlu0 %v5138_v21  ;;  %v16185_v39 = vmax.f32 %v16183_v15, %v16184_v51  ;;  %v5162_v4 = vsel %vm200_vm0, %v5078_v58, 0.0  ;;  %v16189_v21 = vld [vmem:[#allocation13_spill] sm:$0xff]  ;;  %v16191_v50 = vld [vmem:[#allocation82_spill] sm:$0xff]  ;;  %v6862_v58 = vunpack.c.h.bf16 %v12798_v49 }
 0x516   :  { %v4617_v48 = vpop.xlane.xlu1 %4616  ;;  %v4614_v23 = vpop.xlane.xlu0 %4613  ;;  %v5055_v19 = vmul.f32 %v6822_v36, %v16189_v21  ;;  %v16192_v27 = vmax.f32 %v16190_v46, %v16191_v50  ;;  %v5105_v51 = vsel %vm200_vm0, %v5059_v13, 0.0  ;;  %v16197_v36 = vld [vmem:[#allocation95_spill] sm:$0xff]  ;;  %v16198_v21 = vld [vmem:[#allocation56_spill] sm:$0xff]  ;;  %v16200_v46 = vld [vmem:[#allocation78_spill] sm:$0xff]  ;;  %v16201_v13 = vmax.f32 %v16077_v1, %v12564_v10 }
 0x517   :  { %v12887_v9 = vmax.f32 %v16185_v39, %v4617_v48  ;;  %v12890_v12 = vadd.f32 %v4617_v48, %v16187_v0  ;;  %v12900_v24 = vadd.f32 %v4614_v23, %v16194_v29  ;;  %v16195_v48 = vld [vmem:[#allocation25_spill] sm:$0xff] }
 0x518   :  { %v12897_v7 = vmax.f32 %v16192_v27, %v4614_v23  ;;  %v5067_v39 = vmul.f32 %v6846_v14, %v16195_v48  ;;  %v16196_v0 = vld [vmem:[#allocation21_spill] sm:$0xff]  ;;  %v5075_v48 = vmul.f32 %v6862_v58, %v16080_v3  ;;  %v16210_v3 = vld [vmem:[#allocation107_spill] sm:$0xff] }
 0x519   :  { %16186 = vst [vmem:[#allocation12_spill] sm:$0xff] %v12887_v9  ;;  %16188 = vst [vmem:[#allocation83_spill] sm:$0xff] %v12890_v12  ;;  %5175 = vadd.xlane.f32.xlu1 %v5174_v26  ;;  %5163 = vadd.xlane.f32.xlu0 %v5162_v4  ;;  %v5063_v12 = vmul.f32 %v6838_v6, %v16196_v0  ;;  %v16199_v9 = vmax.f32 %v16197_v36, %v16198_v21  ;;  %v5093_v26 = vsel %vm200_vm0, %v5055_v19, 0.0  ;;  %v16202_v6 = vld [vmem:[#allocation84_spill] sm:$0xff]  ;;  %v16272_v34 = vld [vmem:[#allocation43_spill] sm:$0xff] }
 0x51a   :  { %16193 = vst [vmem:[#allocation49_spill] sm:$0xff] %v12897_v7  ;;  %v4623_v15 = vpop.xlane.xlu1 %4622  ;;  %v4620_v23 = vpop.xlane.xlu0 %4619  ;;  %v6854_v4 = vunpack.c.h.bf16 %v12800_v37  ;;  %v5129_v29 = vsel %vm200_vm0, %v5067_v39, 0.0  ;;  %v6878_v19 = vunpack.c.h.bf16 %v12824_v47  ;;  %v16203_v37 = vmax.f32 %v16081_v44, %v12574_v28  ;;  %v16206_v39 = vld [vmem:[#allocation105_spill] sm:$0xff] }
 0x51b   :  { %v12909_v50 = vmax.f32 %v16199_v9, %v4623_v15  ;;  %v12912_v27 = vadd.f32 %v4623_v15, %v16200_v46  ;;  %v12919_v14 = vmax.f32 %v16201_v13, %v4620_v23  ;;  %v12922_v49 = vadd.f32 %v4620_v23, %v16202_v6  ;;  %v16207_v46 = vld [vmem:[#allocation75_spill] sm:$0xff]  ;;  %v16213_v13 = vld [vmem:[#allocation52_spill] sm:$0xff] }
 0x51c   :  { %v5117_v15 = vsel %vm200_vm0, %v5063_v12, 0.0  ;;  %v6870_v21 = vunpack.c.h.bf16 %v12834_v43  ;;  %v16208_v12 = vmax.f32 %v16206_v39, %v16207_v46  ;;  %v5153_v44 = vsel %vm200_vm0, %v5075_v48, 0.0  ;;  %v16215_v43 = vld [vmem:[#allocation44_spill] sm:$0xff]  ;;  %v16220_v48 = vld [vmem:[#allocation65_spill] sm:$0xff] }
 0x51d   :  { %5106 = vadd.xlane.f32.xlu1 %v5105_v51  ;;  %5094 = vadd.xlane.f32.xlu0 %v5093_v26  ;;  %v16205_v51 = vld [vmem:[#allocation29_spill] sm:$0xff]  ;;  %v16212_v26 = vld [vmem:[#allocation66_spill] sm:$0xff] }
 0x51e   :  { %v4629_v9 = vpop.xlane.xlu1 %4628  ;;  %v4626_v0 = vpop.xlane.xlu0 %4625  ;;  %v5071_v36 = vmul.f32 %v6854_v4, %v16205_v51  ;;  %v16214_v4 = vmax.f32 %v16212_v26, %v16213_v13 }
 0x51f   :  { %v12931_v10 = vmax.f32 %v16203_v37, %v4629_v9  ;;  %v12934_v1 = vadd.f32 %v4629_v9, %v12583_v18  ;;  %v12941_v23 = vmax.f32 %v16208_v12, %v4626_v0  ;;  %v12944_v47 = vadd.f32 %v4626_v0, %v16210_v3  ;;  %v16211_v18 = vld [vmem:[#allocation41_spill] sm:$0xff] }
 0x520   :  { %v5083_v58 = vmul.f32 %v6878_v19, %v16211_v18  ;;  %v5141_v51 = vsel %vm200_vm0, %v5071_v36, 0.0  ;;  %v16216_v0 = vld [vmem:[#allocation37_spill] sm:$0xff]  ;;  %v16224_v36 = vld [vmem:[#allocation92_spill] sm:$0xff] }
 0x521   :  { %16204 = vst [vmem:[#allocation36_spill] sm:$0xff] %v12931_v10  ;;  %16209 = vst [vmem:[#allocation88_spill] sm:$0xff] %v12941_v23  ;;  %5130 = vadd.xlane.f32.xlu1 %v5129_v29  ;;  %5118 = vadd.xlane.f32.xlu0 %v5117_v15  ;;  %v5079_v39 = vmul.f32 %v6870_v21, %v16216_v0  ;;  %v16217_v29 = vld [vmem:[#allocation87_spill] sm:$0xff]  ;;  %v16218_v15 = vld [vmem:[#allocation85_spill] sm:$0xff] }
 0x522   :  { %v4635_v28 = vpop.xlane.xlu1 %4634  ;;  %v4632_v37 = vpop.xlane.xlu0 %4631  ;;  %v16219_v46 = vmax.f32 %v16217_v29, %v16218_v15  ;;  %v5177_v18 = vsel %vm200_vm0, %v5083_v58, 0.0  ;;  %v16230_v29 = vld [vmem:[#allocation68_spill] sm:$0xff] }
 0x523   :  { %v12951_v6 = vmax.f32 %v16214_v4, %v4635_v28  ;;  %v12954_v9 = vadd.f32 %v4635_v28, %v16215_v43  ;;  %v12964_v19 = vadd.f32 %v4632_v37, %v16220_v48  ;;  %v16221_v28 = vld [vmem:[#allocation20_spill] sm:$0xff]  ;;  %v5165_v43 = vsel %vm200_vm0, %v5079_v39, 0.0  ;;  %v16232_v48 = vld [vmem:[#allocation69_spill] sm:$0xff] }
 0x524   :  { %v12961_v12 = vmax.f32 %v16219_v46, %v4632_v37  ;;  %v16222_v26 = vmax.f32 %v16094_v55, %v16221_v28  ;;  %v16226_v37 = vmax.f32 %v16098_v35, %v12624_v57  ;;  %v16229_v55 = vld [vmem:[#allocation35_spill] sm:$0xff]  ;;  %v16233_v28 = vld [vmem:[#allocation58_spill] sm:$0xff] }
 0x525   :  { %5154 = vadd.xlane.f32.xlu1 %v5153_v44  ;;  %5142 = vadd.xlane.f32.xlu0 %v5141_v51  ;;  %v16228_v44 = vld [vmem:[#allocation59_spill] sm:$0xff]  ;;  %v16231_v15 = vmax.f32 %v16229_v55, %v16230_v29  ;;  %v16234_v57 = vmax.f32 %v12329_v61, %v16233_v28  ;;  %v16241_v29 = vld [vmem:[#allocation98_spill] sm:$0xff] }
 0x526   :  { %v4641_v3 = vpop.xlane.xlu1 %4640  ;;  %v4638_v4 = vpop.xlane.xlu0 %4637  ;;  %v16244_v61 = vld [vmem:[#allocation47_spill] sm:$0xff] }
 0x527   :  { %v12970_v13 = vmax.f32 %v16222_v26, %v4641_v3  ;;  %v12973_v21 = vadd.f32 %v4641_v3, %v16224_v36  ;;  %v12979_v0 = vmax.f32 %v16226_v37, %v4638_v4  ;;  %v12982_v51 = vadd.f32 %v4638_v4, %v16228_v44  ;;  %v16235_v26 = vld [vmem:[#allocation71_spill] sm:$0xff]  ;;  %v16239_v44 = vld [vmem:[#allocation28_spill] sm:$0xff] }
 0x528   :  { %v16236_v4 = vld [vmem:[#allocation27_spill] sm:$0xff] }
 0x529   :  { %16223 = vst [vmem:[#allocation19_spill] sm:$0xff] %v12970_v13  ;;  %16225 = vst [vmem:[#allocation106_spill] sm:$0xff] %v12973_v21  ;;  %5178 = vadd.xlane.f32.xlu1 %v5177_v18  ;;  %5166 = vadd.xlane.f32.xlu0 %v5165_v43  ;;  %v16237_v43 = vmax.f32 %v16110_v56, %v16236_v4  ;;  %v16247_v56 = vld [vmem:[#allocation32_spill] sm:$0xff] }
 0x52a   :  { %16227 = vst [vmem:[#allocation76_spill] sm:$0xff] %v12979_v0  ;;  %v4647_v58 = vpop.xlane.xlu1 %4646  ;;  %v4644_v39 = vpop.xlane.xlu0 %4643 }
 0x52b   :  { %v12987_v46 = vmax.f32 %v16231_v15, %v4647_v58  ;;  %v12990_v3 = vadd.f32 %v4647_v58, %v16232_v48  ;;  %v12995_v35 = vmax.f32 %v16234_v57, %v4644_v39  ;;  %v12998_v36 = vadd.f32 %v4644_v39, %v16235_v26  ;;  %v16245_v57 = vld [vmem:[#allocation108_spill] sm:$0xff] }
 0x52c   :  { %v16242_v15 = vmax.f32 %v16241_v29, %v12665_v41  ;;  %v16246_v26 = vmax.f32 %v16117_v31, %v16245_v57  ;;  %v16249_v41 = vld [vmem:[#allocation53_spill] sm:$0xff]  ;;  %v16253_v57 = vmax.f32 %v12389_v63, %v12705_v60 }
 0x52e   :  { %v4653_v18 = vpop.xlane.xlu1 %4652  ;;  %v4650_v58 = vpop.xlane.xlu0 %4649 }
 0x52f   :  { %v13003_v37 = vmax.f32 %v16237_v43, %v4653_v18  ;;  %v13006_v55 = vadd.f32 %v4653_v18, %v16239_v44  ;;  %v13011_v48 = vmax.f32 %v16242_v15, %v4650_v58  ;;  %v13014_v28 = vadd.f32 %v4650_v58, %v16244_v61 }
 0x530   :  { %v16248_v43 = vmax.f32 %v16120_v33, %v12684_v8  ;;  %v16250_v15 = vmax.f32 %v16123_v32, %v12694_v11  ;;  %v16255_v8 = vld [vmem:[#allocation24_spill] sm:$0xff] }
 0x531   :  { %16238 = vst [vmem:[#allocation45_spill] sm:$0xff] %v13003_v37  ;;  %16240 = vst [vmem:[#allocation89_spill] sm:$0xff] %v13006_v55 }
 0x532   :  { %16243 = vst [vmem:[#allocation39_spill] sm:$0xff] %v13011_v48  ;;  %v4659_v39 = vpop.xlane.xlu1 %4658  ;;  %v4656_v18 = vpop.xlane.xlu0 %4655 }
 0x533   :  { %v13019_v21 = vmax.f32 %v16246_v26, %v4659_v39  ;;  %v13022_v4 = vadd.f32 %v4659_v39, %v16247_v56  ;;  %v13027_v44 = vmax.f32 %v16248_v43, %v4656_v18  ;;  %v13030_v29 = vadd.f32 %v4656_v18, %v16249_v41  ;;  %v16262_v18 = vld [vmem:[#allocation34_spill] sm:$0xff] }
 0x536   :  { %v4665_v58 = vpop.xlane.xlu1 %4664  ;;  %v4662_v39 = vpop.xlane.xlu0 %4661 }
 0x537   :  { %v13035_v61 = vmax.f32 %v16250_v15, %v4665_v58  ;;  %v13038_v31 = vadd.f32 %v4665_v58, %v12703_v53  ;;  %v13043_v26 = vmax.f32 %v16253_v57, %v4662_v39  ;;  %v13046_v33 = vadd.f32 %v4662_v39, %v16255_v8 }
 0x539   :  { %16251 = vst [vmem:[#allocation51_spill] sm:$0xff] %v13035_v61  ;;  %16252 = vst [vmem:[#allocation77_spill] sm:$0xff] %v13038_v31 }
 0x53a   :  { %16254 = vst [vmem:[#allocation96_spill] sm:$0xff] %v13043_v26  ;;  %v13048_v56 = vpop.xlane.xlu1 %4831  ;;  %v13056_v53 = vpop.xlane.xlu0 %4828 }
 0x53b   :  { %v13054_v11 = vadd.f32 %v13048_v56, %v12723_v38  ;;  %v13062_v63 = vadd.f32 %v13056_v53, %v12732_v42 }
 0x53e   :  { %v13064_v60 = vpop.xlane.xlu1 %4837  ;;  %v13072_v38 = vpop.xlane.xlu0 %4834 }
 0x53f   :  { %16256 = vst [vmem:[#allocation63_spill] sm:$0xff] %v13064_v60  ;;  %v13070_v41 = vadd.f32 %v13064_v60, %v12742_v59  ;;  %16258 = vst [vmem:[#allocation73_spill] sm:$0xff] %v13072_v38  ;;  %v13078_v15 = vadd.f32 %v13072_v38, %v12754_v17  ;;  %v16266_v60 = vld [vmem:[#allocation74_spill] sm:$0xff] }
 0x541   :  { %16257 = vst [vmem:[#allocation103_spill] sm:$0xff] %v13070_v41  ;;  %16259 = vst [vmem:[#allocation42_spill] sm:$0xff] %v13078_v15  ;;  %v16269_v41 = vld [vmem:[#allocation80_spill] sm:$0xff]  ;;  %v16276_v15 = vld [vmem:[#allocation90_spill] sm:$0xff] }
 0x542   :  { %v13080_v42 = vpop.xlane.xlu1 %4843  ;;  %v13088_v59 = vpop.xlane.xlu0 %4840 }
 0x543   :  { %v13086_v57 = vadd.f32 %v13080_v42, %v12768_v30  ;;  %v13094_v43 = vadd.f32 %v13088_v59, %v12780_v2 }
 0x546   :  { %v13096_v17 = vpop.xlane.xlu1 %4849  ;;  %v13104_v30 = vpop.xlane.xlu0 %4846 }
 0x547   :  { %16260 = vst [vmem:[#allocation91_spill] sm:$0xff] %v13096_v17  ;;  %v13102_v39 = vadd.f32 %v13096_v17, %v16262_v18  ;;  %16264 = vst [vmem:[#allocation79_spill] sm:$0xff] %v13104_v30  ;;  %v13110_v8 = vadd.f32 %v13104_v30, %v16266_v60  ;;  %v16268_v17 = vld [vmem:[#allocation33_spill] sm:$0xff]  ;;  %v16282_v30 = vld [vmem:[#allocation83_spill] sm:$0xff] }
 0x549   :  { %16263 = vst [vmem:[#allocation50_spill] sm:$0xff] %v13102_v39  ;;  %16267 = vst [vmem:[#allocation64_spill] sm:$0xff] %v13110_v8  ;;  %v16279_v39 = vld [vmem:[#allocation46_spill] sm:$0xff] }
 0x54a   :  { %v13112_v2 = vpop.xlane.xlu1 %4855  ;;  %v13120_v18 = vpop.xlane.xlu0 %4852 }
 0x54b   :  { %v13118_v32 = vadd.f32 %v13112_v2, %v12820_v40  ;;  %v13126_v31 = vadd.f32 %v13120_v18, %v16269_v41 }
 0x54e   :  { %v13128_v60 = vpop.xlane.xlu1 %4861  ;;  %v13136_v40 = vpop.xlane.xlu0 %4858 }
 0x54f   :  { %16270 = vst [vmem:[#allocation18_spill] sm:$0xff] %v13128_v60  ;;  %v13134_v22 = vadd.f32 %v13128_v60, %v16272_v34  ;;  %16274 = vst [vmem:[#allocation11_spill] sm:$0xff] %v13136_v40  ;;  %v13142_v58 = vadd.f32 %v13136_v40, %v16276_v15 }
 0x551   :  { %16273 = vst [vmem:[#allocation57_spill] sm:$0xff] %v13134_v22  ;;  %16277 = vst [vmem:[#allocation48_spill] sm:$0xff] %v13142_v58 }
 0x552   :  { %v13144_v41 = vpop.xlane.xlu1 %4867  ;;  %v13152_v34 = vpop.xlane.xlu0 %4864 }
 0x553   :  { %v13150_v38 = vadd.f32 %v13144_v41, %v12868_v25  ;;  %16278 = vst [vmem:[#allocation26_spill] sm:$0xff] %v13152_v34  ;;  %v13158_v55 = vadd.f32 %v13152_v34, %v16279_v39 }
 0x556   :  { %v13160_v15 = vpop.xlane.xlu1 %4873  ;;  %v13168_v25 = vpop.xlane.xlu0 %4870 }
 0x557   :  { %16280 = vst [vmem:[#allocation93_spill] sm:$0xff] %v13160_v15  ;;  %v13166_v8 = vadd.f32 %v13160_v15, %v16282_v30  ;;  %16284 = vst [vmem:[#allocation54_spill] sm:$0xff] %v13168_v25  ;;  %v13174_v60 = vadd.f32 %v13168_v25, %v12900_v24 }
 0x559   :  { %16283 = vst [vmem:[#allocation22_spill] sm:$0xff] %v13166_v8  ;;  %16285 = vst [vmem:[#allocation30_spill] sm:$0xff] %v13174_v60 }
 0x55a   :  { %v13176_v39 = vpop.xlane.xlu1 %4879  ;;  %v13184_v30 = vpop.xlane.xlu0 %4876 }
 0x55b   :  { %v13182_v40 = vadd.f32 %v13176_v39, %v12912_v27  ;;  %v13190_v58 = vadd.f32 %v13184_v30, %v12922_v49 }
 0x55e   :  { %v13192_v24 = vpop.xlane.xlu1 %4885  ;;  %v13200_v27 = vpop.xlane.xlu0 %4882 }
 0x55f   :  { %16286 = vst [vmem:[#allocation101_spill] sm:$0xff] %v13192_v24  ;;  %v13198_v34 = vadd.f32 %v13192_v24, %v12934_v1  ;;  %16288 = vst [vmem:[#allocation31_spill] sm:$0xff] %v13200_v27  ;;  %v13206_v15 = vadd.f32 %v13200_v27, %v12944_v47 }
 0x561   :  { %16287 = vst [vmem:[#allocation67_spill] sm:$0xff] %v13198_v34  ;;  %16289 = vst [vmem:[#allocation81_spill] sm:$0xff] %v13206_v15 }
 0x562   :  { %v13208_v49 = vpop.xlane.xlu1 %4891  ;;  %v13216_v1 = vpop.xlane.xlu0 %4888 }
 0x563   :  { %v13214_v22 = vadd.f32 %v13208_v49, %v12954_v9  ;;  %v13222_v8 = vadd.f32 %v13216_v1, %v12964_v19 }
 0x566   :  { %v13224_v47 = vpop.xlane.xlu1 %4903  ;;  %v13232_v9 = vpop.xlane.xlu0 %4900 }
 0x567   :  { %v13230_v25 = vadd.f32 %v13224_v47, %v12990_v3  ;;  %v13238_v24 = vadd.f32 %v13232_v9, %v12998_v36 }
 0x56a   :  { %v13240_v19 = vpop.xlane.xlu1 %4915  ;;  %v13248_v3 = vpop.xlane.xlu0 %4912 }
 0x56b   :  { %v13246_v10 = vadd.f32 %v13240_v19, %v13022_v4  ;;  %16290 = vst [vmem:[#allocation70_spill] sm:$0xff] %v13248_v3  ;;  %v13254_v34 = vadd.f32 %v13248_v3, %v13030_v29  ;;  %v5340_v29 = vlaneseq  ;;  %v16301_v3 = vmax.f32 %v12729_v62, %v13056_v53 }
 0x56d   :  { %v13284_v7 = vand.u32 127, %v5340_v29  ;;  %v13294_v13 = vshrl.u32 %v5340_v29, 7 }
 0x56e   :  { %v13256_v36 = vpop.xlane.xlu1 %4906  ;;  %v13264_v4 = vpop.xlane.xlu0 %4894 }
 0x56f   :  { %16291 = vst [vmem:[#allocation55_spill] sm:$0xff] %v13256_v36  ;;  %v13262_v27 = vadd.f32 %v13256_v36, %v13014_v28  ;;  %16293 = vst [vmem:[#allocation102_spill] sm:$0xff] %v13264_v4  ;;  %v13270_v23 = vadd.f32 %v13264_v4, %v12982_v51  ;;  %v5346_v28 = vadd.s32 4294967288, %v13284_v7  ;;  %v16300_v51 = vmax.f32 %v12720_v54, %v13048_v56 }
 0x570   :  { %v13307_v29 = vsub.s32 %v13284_v7, %v13294_v13  ;;  %v16302_v56 = vmax.f32 %v12765_v20, %v13080_v42 }
 0x571   :  { %16292 = vst [vmem:[#allocation23_spill] sm:$0xff] %v13262_v27  ;;  %16294 = vst [vmem:[#allocation60_spill] sm:$0xff] %v13270_v23 }
 0x572   :  { %v13272_v60 = vpop.xlane.xlu1 %4897  ;;  %v13276_v15 = vpop.xlane.xlu0 %4918 }
 0x573   :  { %16295 = vst [vmem:[#allocation38_spill] sm:$0xff] %v13272_v60  ;;  %16296 = vst [vmem:[#allocation109_spill] sm:$0xff] %v13276_v15  ;;  %v13282_v36 = vadd.f32 %v13276_v15, %v13046_v33 }
 0x575   :  { %16297 = vst [vmem:[#allocation15_spill] sm:$0xff] %v13282_v36  ;;  %v13300_v36 = vsub.s32 %v5346_v28, %v13294_v13 }
 0x576   :  { %v13286_v48 = vpop.xlane.xlu1 %4921  ;;  %v13290_v27 = vpop.xlane.xlu0 %4909 }
 0x577   :  { %16298 = vst [vmem:[#allocation16_spill] sm:$0xff] %v13286_v48  ;;  %16299 = vst [vmem:[#allocation17_spill] sm:$0xff] %v13290_v27 }
 0x57a   :  { %v5089_v60 = vpop.xlane.xlu1 %5088  ;;  %v5086_v15 = vpop.xlane.xlu0 %5085 }
 0x57b   :  { %v5213_v33 = vadd.f32 %v5089_v60, %v13054_v11  ;;  %v5212_v26 = vadd.f32 %v5086_v15, %v13062_v63  ;;  %v5181_v61 = vmax.f32 %v16300_v51, %v5089_v60  ;;  %v5180_v37 = vmax.f32 %v16301_v3, %v5086_v15 }
 0x57d   :  { %v5245_v48 = vmul.f32 0.03125, %v5213_v33  ;;  %v5244_v11 = vmul.f32 0.03125, %v5212_v26  ;;  %v16303_v26 = vmax.f32 %v12777_v52, %v13088_v59  ;;  %v16305_v59 = vmax.f32 %v16268_v17, %v13120_v18 }
 0x57e   :  { %v5101_v27 = vpop.xlane.xlu1 %5100  ;;  %v5098_v28 = vpop.xlane.xlu0 %5097 }
 0x57f   :  { %v5277_v4 = vsub.f32 %v5181_v61, %v5245_v48  ;;  %v5217_v63 = vadd.f32 %v5101_v27, %v13086_v57  ;;  %v5276_v0 = vsub.f32 %v5180_v37, %v5244_v11  ;;  %v5216_v23 = vadd.f32 %v5098_v28, %v13094_v43 }
 0x580   :  { %v5185_v60 = vmax.f32 %v16302_v56, %v5101_v27  ;;  %v5184_v48 = vmax.f32 %v16303_v26, %v5098_v28  ;;  %v16306_v56 = vmax.f32 %v12865_v16, %v13144_v41 }
 0x581   :  { %v5350_v54 = vrot.slane %v5277_v4, %v13300_v36  ;;  %v5249_v51 = vmul.f32 0.03125, %v5217_v63  ;;  %v5345_v62 = vrot.slane %v5276_v0, %v13307_v29  ;;  %v5248_v61 = vmul.f32 0.03125, %v5216_v23 }
 0x582   :  { %v5113_v53 = vpop.xlane.xlu1 %5112  ;;  %v5110_v43 = vpop.xlane.xlu0 %5109  ;;  %v16304_v0 = vmax.f32 %v12817_v45, %v13112_v2 }
 0x583   :  { %v5281_v57 = vsub.f32 %v5185_v60, %v5249_v51  ;;  %v5221_v37 = vadd.f32 %v5113_v53, %v13118_v32  ;;  %v13324_v15 = vsel %vm5351_vm1, %v5350_v54, %v5345_v62  ;;  %v5280_v3 = vsub.f32 %v5184_v48, %v5248_v61  ;;  %v16307_v51 = vld [vmem:[#allocation26_spill] sm:$0xff] }
 0x584   :  { %v5220_v20 = vadd.f32 %v5110_v43, %v13126_v31  ;;  %v5189_v27 = vmax.f32 %v16304_v0, %v5113_v53  ;;  %v5188_v32 = vmax.f32 %v16305_v59, %v5110_v43  ;;  %v16308_v62 = vmax.f32 %v12875_v5, %v16307_v51 }
 0x585   :  { %v5374_v42 = vrot.slane %v5281_v57, %v13300_v36  ;;  %v5253_v52 = vmul.f32 0.03125, %v5221_v37  ;;  %v5370_v23 = vrot.slane %v5280_v3, %v13307_v29  ;;  %v16309_v43 = vmax.f32 %v12909_v50, %v13176_v39 }
 0x586   :  { %v5252_v4 = vmul.f32 0.03125, %v5220_v20  ;;  %v5125_v33 = vpop.xlane.xlu1 %5124  ;;  %v5122_v28 = vpop.xlane.xlu0 %5121 }
 0x587   :  { %v5285_v11 = vsub.f32 %v5189_v27, %v5253_v52  ;;  %v5225_v63 = vadd.f32 %v5125_v33, %v13150_v38  ;;  %v13337_v31 = vsel %vm5351_vm1, %v5374_v42, %v5370_v23  ;;  %v5224_v45 = vadd.f32 %v5122_v28, %v13158_v55 }
 0x588   :  { %v5284_v54 = vsub.f32 %v5188_v32, %v5252_v4  ;;  %v5193_v60 = vmax.f32 %v16306_v56, %v5125_v33  ;;  %v5192_v38 = vmax.f32 %v16308_v62, %v5122_v28  ;;  %v16310_v42 = vmax.f32 %v12919_v14, %v13184_v30 }
 0x589   :  { %v5393_v2 = vrot.slane %v5285_v11, %v13300_v36  ;;  %v5257_v17 = vmul.f32 0.03125, %v5225_v63  ;;  %v5256_v26 = vmul.f32 0.03125, %v5224_v45  ;;  %v16311_v4 = vmax.f32 %v12951_v6, %v13208_v49 }
 0x58a   :  { %v5389_v18 = vrot.slane %v5284_v54, %v13307_v29  ;;  %v5137_v48 = vpop.xlane.xlu1 %5136  ;;  %v5134_v57 = vpop.xlane.xlu0 %5133  ;;  %v16312_v11 = vmax.f32 %v12961_v12, %v13216_v1 }
 0x58b   :  { %v5289_v61 = vsub.f32 %v5193_v60, %v5257_v17  ;;  %v5229_v53 = vadd.f32 %v5137_v48, %v13182_v40  ;;  %v5288_v37 = vsub.f32 %v5192_v38, %v5256_v26  ;;  %v5228_v16 = vadd.f32 %v5134_v57, %v13190_v58 }
 0x58c   :  { %v13350_v55 = vsel %vm5351_vm1, %v5393_v2, %v5389_v18  ;;  %v5197_v3 = vmax.f32 %v16309_v43, %v5137_v48  ;;  %v5196_v40 = vmax.f32 %v16310_v42, %v5134_v57  ;;  %v16313_v60 = vmax.f32 %v12987_v46, %v13224_v47 }
 0x58d   :  { %v5412_v41 = vrot.slane %v5289_v61, %v13300_v36  ;;  %v5261_v5 = vmul.f32 0.03125, %v5229_v53  ;;  %v5408_v20 = vrot.slane %v5288_v37, %v13307_v29  ;;  %v5260_v0 = vmul.f32 0.03125, %v5228_v16 }
 0x58e   :  { %v5149_v27 = vpop.xlane.xlu1 %5148  ;;  %v5146_v59 = vpop.xlane.xlu0 %5145  ;;  %v16314_v18 = vmax.f32 %v12995_v35, %v13232_v9  ;;  %v16315_v53 = vmax.f32 %v13019_v21, %v13240_v19  ;;  %v5353_v9 = vadd.s32 4294967280, %v13284_v7  ;;  %v16319_v19 = vld [vmem:[#allocation42_spill] sm:$0xff] }
 0x58f   :  { %v5293_v52 = vsub.f32 %v5197_v3, %v5261_v5  ;;  %v5233_v23 = vadd.f32 %v5149_v27, %v13214_v22  ;;  %v13363_v58 = vsel %vm5351_vm1, %v5412_v41, %v5408_v20  ;;  %v5292_v32 = vsub.f32 %v5196_v40, %v5260_v0  ;;  %v16318_v20 = vld [vmem:[#allocation64_spill] sm:$0xff] }
 0x590   :  { %v5232_v50 = vadd.f32 %v5146_v59, %v13222_v8  ;;  %v5201_v33 = vmax.f32 %v16311_v4, %v5149_v27  ;;  %v5200_v22 = vmax.f32 %v16312_v11, %v5146_v59  ;;  %v16321_v59 = vld [vmem:[#allocation79_spill] sm:$0xff]  ;;  %v16323_v4 = vld [vmem:[#allocation94_spill] sm:$0xff] }
 0x591   :  { %v5431_v39 = vrot.slane %v5293_v52, %v13300_v36  ;;  %v5265_v14 = vmul.f32 0.03125, %v5233_v23  ;;  %v5427_v30 = vrot.slane %v5292_v32, %v13307_v29  ;;  %v5356_v52 = vsub.s32 %v5353_v9, %v13294_v13  ;;  %v16320_v23 = vld [vmem:[#allocation72_spill] sm:$0xff] }
 0x592   :  { %v5264_v63 = vmul.f32 0.03125, %v5232_v50  ;;  %v5161_v28 = vpop.xlane.xlu1 %5160  ;;  %v5158_v2 = vpop.xlane.xlu0 %5157 }
 0x593   :  { %v5297_v54 = vsub.f32 %v5201_v33, %v5265_v14  ;;  %v5237_v45 = vadd.f32 %v5161_v28, %v13230_v25  ;;  %v13376_v8 = vsel %vm5351_vm1, %v5431_v39, %v5427_v30  ;;  %v5236_v6 = vadd.f32 %v5158_v2, %v13238_v24  ;;  %v16324_v33 = vld [vmem:[#allocation73_spill] sm:$0xff] }
 0x594   :  { %v5296_v56 = vsub.f32 %v5200_v22, %v5264_v63  ;;  %v5205_v17 = vmax.f32 %v16313_v60, %v5161_v28  ;;  %v5204_v25 = vmax.f32 %v16314_v18, %v5158_v2  ;;  %v16325_v14 = vmax.f32 %v16323_v4, %v16324_v33  ;;  %v16326_v28 = vld [vmem:[#allocation30_spill] sm:$0xff]  ;;  %v16328_v60 = vld [vmem:[#allocation49_spill] sm:$0xff]  ;;  %v16343_v4 = vld [vmem:[#allocation23_spill] sm:$0xff] }
 0x595   :  { %v5450_v49 = vrot.slane %v5297_v54, %v13300_v36  ;;  %v5269_v12 = vmul.f32 0.03125, %v5237_v45  ;;  %v5268_v51 = vmul.f32 0.03125, %v5236_v6 }
 0x596   :  { %v5446_v1 = vrot.slane %v5296_v56, %v13307_v29  ;;  %v5173_v62 = vpop.xlane.xlu1 %5172  ;;  %v5170_v48 = vpop.xlane.xlu0 %5169  ;;  %v16327_v56 = vld [vmem:[#allocation48_spill] sm:$0xff] }
 0x597   :  { %v5301_v38 = vsub.f32 %v5205_v17, %v5269_v12  ;;  %v5241_v26 = vadd.f32 %v5173_v62, %v13246_v10  ;;  %v5300_v61 = vsub.f32 %v5204_v25, %v5268_v51  ;;  %v5240_v46 = vadd.f32 %v5170_v48, %v13254_v34  ;;  %v16316_v10 = vld [vmem:[#allocation70_spill] sm:$0xff]  ;;  %v16332_v51 = vld [vmem:[#allocation11_spill] sm:$0xff] }
 0x598   :  { %v13389_v24 = vsel %vm5351_vm1, %v5450_v49, %v5446_v1  ;;  %v5209_v57 = vmax.f32 %v16315_v53, %v5173_v62  ;;  %v16317_v16 = vmax.f32 %v13027_v44, %v16316_v10  ;;  %v16322_v44 = vmax.f32 %v16320_v23, %v16321_v59  ;;  %v16329_v17 = vld [vmem:[#allocation54_spill] sm:$0xff]  ;;  %v16342_v59 = vld [vmem:[#allocation15_spill] sm:$0xff] }
 0x599   :  { %v5469_v47 = vrot.slane %v5301_v38, %v13300_v36  ;;  %v5273_v35 = vmul.f32 0.03125, %v5241_v26  ;;  %v5465_v37 = vrot.slane %v5300_v61, %v13307_v29  ;;  %v5272_v43 = vmul.f32 0.03125, %v5240_v46  ;;  %v16331_v25 = vld [vmem:[#allocation14_spill] sm:$0xff] }
 0x59a   :  { %v5208_v41 = vmax.f32 %v16317_v16, %v5170_v48  ;;  %v5104_v3 = vpop.xlane.xlu1 %5103  ;;  %v5092_v42 = vpop.xlane.xlu0 %5091  ;;  %v16333_v62 = vmax.f32 %v16331_v25, %v16332_v51  ;;  %v16351_v25 = vld [vmem:[#allocation103_spill] sm:$0xff] }
 0x59b   :  { %v5305_v5 = vsub.f32 %v5209_v57, %v5273_v35  ;;  %v5218_v34 = vadd.f32 %v5104_v3, %v16318_v20  ;;  %v13403_v40 = vsel %vm5351_vm1, %v5469_v47, %v5465_v37  ;;  %v5214_v0 = vadd.f32 %v5092_v42, %v16319_v19  ;;  %v16334_v47 = vld [vmem:[#allocation60_spill] sm:$0xff]  ;;  %v16335_v37 = vld [vmem:[#allocation81_spill] sm:$0xff] }
 0x59c   :  { %v5304_v21 = vsub.f32 %v5208_v41, %v5272_v43  ;;  %v5186_v32 = vmax.f32 %v16322_v44, %v5104_v3  ;;  %v5182_v30 = vmax.f32 %v16325_v14, %v5092_v42  ;;  %v16336_v41 = vld [vmem:[#allocation76_spill] sm:$0xff]  ;;  %v16337_v43 = vld [vmem:[#allocation102_spill] sm:$0xff] }
 0x59d   :  { %v5488_v27 = vrot.slane %v5305_v5, %v13300_v36  ;;  %v5250_v50 = vmul.f32 0.03125, %v5218_v34  ;;  %v5246_v11 = vmul.f32 0.03125, %v5214_v0  ;;  %v16338_v3 = vmax.f32 %v16336_v41, %v16337_v43  ;;  %v16339_v42 = vld [vmem:[#allocation88_spill] sm:$0xff] }
 0x59e   :  { %v5484_v39 = vrot.slane %v5304_v21, %v13307_v29  ;;  %v5128_v22 = vpop.xlane.xlu1 %5127  ;;  %v5116_v45 = vpop.xlane.xlu0 %5115  ;;  %v16330_v29 = vmax.f32 %v16328_v60, %v16329_v17 }
 0x59f   :  { %v5282_v63 = vsub.f32 %v5186_v32, %v5250_v50  ;;  %v5226_v54 = vadd.f32 %v5128_v22, %v16326_v28  ;;  %v5278_v2 = vsub.f32 %v5182_v30, %v5246_v11  ;;  %v5222_v6 = vadd.f32 %v5116_v45, %v16327_v56  ;;  %v16344_v30 = vld [vmem:[#allocation96_spill] sm:$0xff]  ;;  %v16345_v11 = vld [vmem:[#allocation109_spill] sm:$0xff] }
 0x5a0   :  { %v5489_v36 = vsel %vm5351_vm1, %v5488_v27, %v5484_v39  ;;  %v5194_v12 = vmax.f32 %v16330_v29, %v5128_v22  ;;  %v5190_v38 = vmax.f32 %v16333_v62, %v5116_v45  ;;  %v16346_v22 = vmax.f32 %v16344_v30, %v16345_v11  ;;  %v16347_v45 = vld [vmem:[#allocation39_spill] sm:$0xff]  ;;  %v16350_v29 = vld [vmem:[#allocation50_spill] sm:$0xff] }
 0x5a1   :  { %v5379_v49 = vrot.slane %v5282_v63, %v5356_v52  ;;  %v5258_v1 = vmul.f32 0.03125, %v5226_v54  ;;  %v5357_v18 = vrot.slane %v5278_v2, %v5356_v52  ;;  %v5254_v26 = vmul.f32 0.03125, %v5222_v6  ;;  %v16348_v2 = vld [vmem:[#allocation55_spill] sm:$0xff] }
 0x5a2   :  { %v5152_v48 = vpop.xlane.xlu1 %5151  ;;  %v5140_v57 = vpop.xlane.xlu0 %5139  ;;  %v16349_v56 = vmax.f32 %v16347_v45, %v16348_v2  ;;  %v16368_v45 = vld [vmem:[#allocation67_spill] sm:$0xff] }
 0x5a3   :  { %v5380_v61 = vsel %vm5358_vm2, %v5379_v49, %v13337_v31  ;;  %v5290_v46 = vsub.f32 %v5194_v12, %v5258_v1  ;;  %v5234_v53 = vadd.f32 %v5152_v48, %v16334_v47  ;;  %v13429_v35 = vsel %vm5358_vm2, %v5357_v18, %v13324_v15  ;;  %v16340_v31 = vld [vmem:[#allocation31_spill] sm:$0xff] }
 0x5a4   :  { %v5286_v9 = vsub.f32 %v5190_v38, %v5254_v26  ;;  %v5230_v10 = vadd.f32 %v5140_v57, %v16335_v37  ;;  %v5202_v5 = vmax.f32 %v16338_v3, %v5152_v48  ;;  %v16341_v21 = vmax.f32 %v16339_v42, %v16340_v31  ;;  %v16352_v26 = vld [vmem:[#allocation61_spill] sm:$0xff]  ;;  %v16353_v48 = vld [vmem:[#allocation91_spill] sm:$0xff]  ;;  %v16358_v3 = vld [vmem:[#allocation22_spill] sm:$0xff] }
 0x5a5   :  { %v5417_v16 = vrot.slane %v5290_v46, %v5356_v52  ;;  %v5266_v20 = vmul.f32 0.03125, %v5234_v53  ;;  %v16354_v46 = vmax.f32 %v16352_v26, %v16353_v48  ;;  %v16359_v42 = vld [vmem:[#allocation57_spill] sm:$0xff]  ;;  %v16360_v31 = vld [vmem:[#allocation106_spill] sm:$0xff] }
 0x5a6   :  { %v5398_v34 = vrot.slane %v5286_v9, %v5356_v52  ;;  %v5198_v19 = vmax.f32 %v16341_v21, %v5140_v57  ;;  %v5262_v0 = vmul.f32 0.03125, %v5230_v10  ;;  %v5176_v27 = vpop.xlane.xlu1 %5175  ;;  %v5164_v32 = vpop.xlane.xlu0 %5163  ;;  %v16355_v57 = vld [vmem:[#allocation40_spill] sm:$0xff]  ;;  %v16356_v9 = vld [vmem:[#allocation63_spill] sm:$0xff]  ;;  %v16361_v21 = vld [vmem:[#allocation38_spill] sm:$0xff] }
 0x5a7   :  { %v13440_v15 = vsel %vm5358_vm2, %v5417_v16, %v13363_v58  ;;  %v5298_v23 = vsub.f32 %v5202_v5, %v5266_v20  ;;  %v5242_v44 = vadd.f32 %v5176_v27, %v16342_v59  ;;  %v5238_v33 = vadd.f32 %v5164_v32, %v16343_v4  ;;  %v16366_v4 = vld [vmem:[#allocation18_spill] sm:$0xff] }
 0x5a8   :  { %v13445_v50 = vsel %vm5358_vm2, %v5398_v34, %v13350_v55  ;;  %v5294_v39 = vsub.f32 %v5198_v19, %v5262_v0  ;;  %v5210_v63 = vmax.f32 %v16346_v22, %v5176_v27  ;;  %v5360_v58 = vadd.s32 4294967272, %v13284_v7  ;;  %v16362_v27 = vld [vmem:[#allocation12_spill] sm:$0xff] }
 0x5a9   :  { %v5455_v14 = vrot.slane %v5298_v23, %v5356_v52  ;;  %v5274_v28 = vmul.f32 0.03125, %v5242_v44  ;;  %v5206_v6 = vmax.f32 %v16349_v56, %v5164_v32  ;;  %v5270_v49 = vmul.f32 0.03125, %v5238_v33  ;;  %v16363_v23 = vld [vmem:[#allocation93_spill] sm:$0xff] }
 0x5aa   :  { %v5436_v54 = vrot.slane %v5294_v39, %v5356_v52  ;;  %v5107_v60 = vpop.xlane.xlu1 %5106  ;;  %v5095_v1 = vpop.xlane.xlu0 %5094  ;;  %v13466_v38 = vsub.s32 %v5360_v58, %v13294_v13  ;;  %v16357_v37 = vmax.f32 %v16355_v57, %v16356_v9  ;;  %v4978_v19 = vadd.f32 %v16361_v21, %v16360_v31  ;;  %v16365_v39 = vld [vmem:[#allocation99_spill] sm:$0xff]  ;;  %v16369_v56 = vld [vmem:[#allocation77_spill] sm:$0xff] }
 0x5ab   :  { %v13457_v55 = vsel %vm5358_vm2, %v5455_v14, %v13389_v24  ;;  %v5306_v17 = vsub.f32 %v5210_v63, %v5274_v28  ;;  %v5219_v12 = vadd.f32 %v5107_v60, %v16350_v29  ;;  %v5302_v7 = vsub.f32 %v5206_v6, %v5270_v49  ;;  %v16370_v6 = vld [vmem:[#allocation16_spill] sm:$0xff] }
 0x5ac   :  { %v13462_v18 = vsel %vm5358_vm2, %v5436_v54, %v13376_v8  ;;  %v5215_v51 = vadd.f32 %v5095_v1, %v16351_v25  ;;  %v5187_v24 = vmax.f32 %v16354_v46, %v5107_v60  ;;  %v5183_v10 = vmax.f32 %v16357_v37, %v5095_v1  ;;  %v16373_v1 = vld [vmem:[#allocation89_spill] sm:$0xff] }
 0x5ad   :  { %v5493_v62 = vrot.slane %v5306_v17, %v5356_v52  ;;  %v5251_v47 = vmul.f32 0.03125, %v5219_v12  ;;  %v5474_v53 = vrot.slane %v5302_v7, %v5356_v52  ;;  %v16367_v33 = vmax.f32 %v16365_v39, %v16366_v4  ;;  %v16371_v17 = vld [vmem:[#allocation19_spill] sm:$0xff]  ;;  %v16374_v7 = vld [vmem:[#allocation17_spill] sm:$0xff] }
 0x5ae   :  { %v5247_v16 = vmul.f32 0.03125, %v5215_v51  ;;  %v5131_v8 = vpop.xlane.xlu1 %5130  ;;  %v5119_v13 = vpop.xlane.xlu0 %5118  ;;  %v4986_v49 = vadd.f32 %v16370_v6, %v16369_v56  ;;  %v4982_v25 = vadd.f32 %v16374_v7, %v16373_v1  ;;  %v16375_v51 = vld [vmem:[#allocation36_spill] sm:$0xff] }
 0x5af   :  { %v5494_v41 = vsel %vm5358_vm2, %v5493_v62, %v5489_v36  ;;  %v5283_v43 = vsub.f32 %v5187_v24, %v5251_v47  ;;  %v5227_v5 = vadd.f32 %v5131_v8, %v16358_v3  ;;  %v5475_v20 = vsel %vm5358_vm2, %v5474_v53, %v13403_v40  ;;  %v16376_v62 = vld [vmem:[#allocation101_spill] sm:$0xff] }
 0x5b0   :  { %v5279_v34 = vsub.f32 %v5183_v10, %v5247_v16  ;;  %v5223_v52 = vadd.f32 %v5119_v13, %v16359_v42  ;;  %v16364_v36 = vmax.f32 %v16362_v27, %v16363_v23  ;;  %v5191_v40 = vmax.f32 %v16367_v33, %v5119_v13 }
 0x5b1   :  { %v5384_v0 = vrot.slane %v5283_v43, %v13466_v38  ;;  %v5259_v44 = vmul.f32 0.03125, %v5227_v5  ;;  %v16377_v26 = vmax.f32 %v16375_v51, %v16376_v62  ;;  %v16378_v43 = vld [vmem:[#allocation51_spill] sm:$0xff] }
 0x5b2   :  { %v5195_v59 = vmax.f32 %v16364_v36, %v5131_v8  ;;  %v5364_v32 = vrot.slane %v5279_v34, %v13466_v38  ;;  %v5255_v14 = vmul.f32 0.03125, %v5223_v52  ;;  %v5155_v30 = vpop.xlane.xlu1 %5154  ;;  %v5143_v28 = vpop.xlane.xlu0 %5142  ;;  %v16379_v3 = vmax.f32 %v16378_v43, %v16370_v6  ;;  %v16380_v34 = vld [vmem:[#allocation45_spill] sm:$0xff] }
 0x5b3   :  { %v5385_v11 = vsel %vm5365_vm3, %v5384_v0, %v5380_v61  ;;  %v5235_v63 = vadd.f32 %v5155_v30, %v4978_v19  ;;  %v5231_v2 = vadd.f32 %v5143_v28, %v16368_v45  ;;  %v16372_v61 = vmax.f32 %v16371_v17, %v16361_v21 }
 0x5b4   :  { %v5291_v22 = vsub.f32 %v5195_v59, %v5259_v44  ;;  %5510 = vst.msk [vmem:[#allocation7 + $0x1] sm:$0x1] %vm5508_vm4, %v5385_v11  ;;  %v5366_v58 = vsel %vm5365_vm3, %v5364_v32, %v13429_v35  ;;  %v5287_v54 = vsub.f32 %v5191_v40, %v5255_v14  ;;  %v5199_v48 = vmax.f32 %v16377_v26, %v5143_v28 }
 0x5b5   :  { %5509 = vst.msk [vmem:[#allocation7] sm:$0x1] %vm5508_vm4, %v5366_v58  ;;  %v5203_v29 = vmax.f32 %v16372_v61, %v5155_v30  ;;  %v5267_v12 = vmul.f32 0.03125, %v5235_v63  ;;  %v5263_v46 = vmul.f32 0.03125, %v5231_v2  ;;  %v16381_v42 = vmax.f32 %v16380_v34, %v16374_v7 }
 0x5b6   :  { %v5422_v60 = vrot.slane %v5291_v22, %v13466_v38  ;;  %v5403_v35 = vrot.slane %v5287_v54, %v13466_v38  ;;  %v5179_v24 = vpop.xlane.xlu1 %5178  ;;  %v5167_v9 = vpop.xlane.xlu0 %5166 }
 0x5b7   :  { %v5299_v53 = vsub.f32 %v5203_v29, %v5267_v12  ;;  %v5243_v57 = vadd.f32 %v5179_v24, %v4986_v49  ;;  %v5295_v10 = vsub.f32 %v5199_v48, %v5263_v46  ;;  %v5239_v16 = vadd.f32 %v5167_v9, %v4982_v25 }
 0x5b8   :  { %v5423_v47 = vsel %vm5365_vm3, %v5422_v60, %v13440_v15  ;;  %v5404_v37 = vsel %vm5365_vm3, %v5403_v35, %v13445_v50  ;;  %v5211_v5 = vmax.f32 %v16379_v3, %v5179_v24  ;;  %v5207_v52 = vmax.f32 %v16381_v42, %v5167_v9 }
 0x5b9   :  { %5512 = vst.msk [vmem:[#allocation7 + $0x3] sm:$0x1] %vm5508_vm4, %v5423_v47  ;;  %5511 = vst.msk [vmem:[#allocation7 + $0x2] sm:$0x1] %vm5508_vm4, %v5404_v37  ;;  %v5460_v8 = vrot.slane %v5299_v53, %v13466_v38  ;;  %v5275_v13 = vmul.f32 0.03125, %v5243_v57  ;;  %v5441_v15 = vrot.slane %v5295_v10, %v13466_v38  ;;  %v5271_v31 = vmul.f32 0.03125, %v5239_v16 }
 0x5bb   :  { %v5461_v50 = vsel %vm5365_vm3, %v5460_v8, %v13457_v55  ;;  %v5307_v21 = vsub.f32 %v5211_v5, %v5275_v13  ;;  %v5442_v19 = vsel %vm5365_vm3, %v5441_v15, %v13462_v18  ;;  %v5303_v0 = vsub.f32 %v5207_v52, %v5271_v31 }
 0x5bc   :  { %5514 = vst.msk [vmem:[#allocation7 + $0x5] sm:$0x1] %vm5508_vm4, %v5461_v50  ;;  %5513 = vst.msk [vmem:[#allocation7 + $0x4] sm:$0x1] %vm5508_vm4, %v5442_v19 }
 0x5bd   :  { %v5498_v27 = vrot.slane %v5307_v21, %v13466_v38  ;;  %v5479_v23 = vrot.slane %v5303_v0, %v13466_v38 }
 0x5bf   :  { %v5499_v36 = vsel %vm5365_vm3, %v5498_v27, %v5494_v41  ;;  %v5480_v55 = vsel %vm5365_vm3, %v5479_v23, %v5475_v20 }
 0x5c0   :  { %5516 = vst.msk [vmem:[#allocation7 + $0x7] sm:$0x1] %vm5508_vm4, %v5499_v36  ;;  %5515 = vst.msk [vmem:[#allocation7 + $0x6] sm:$0x1] %vm5508_vm4, %v5480_v55 }
 0x5c1   :  { %7256 = shalt.err (!%p7253_p6)
}
 0x5c2   :  { %s7257_s10 = scalar_lea.hbm %s13547_s2, 128 }
 0x5c3   :  { %p7258_p7 = scmp.ne.s32.totalorder %s13547_s2, %s7257_s10  ;;  %p7261_p8 = scmp.lt.u32.totalorder %s7257_s10, %s13547_s2 }
 0x5c5   :  { %p7263_p9 = pnand %p7261_p8, %p7258_p7 }
 0x5c7   :  { %7266 = shalt.err (!%p7263_p9)
}
 0x5c8   :  { %s7278_s15 = smov 16   ;;  %s7279_s16 = smov 1  }
 0x5c9   :  { %5528 = dma.vmem_to_hbm [thread:$0]  %s5523_s6, 128, %s13547_s2, [#allocation4], %s7278_s15, %s7278_s15, %s7279_s16  }
 0x5ca   :  { %7271 = dma.done.wait [#allocation4], 128  }
 0x5cb   :  { %7272 = vsyncadd [#allocation4], 4294967168 }
 0x5cc   :  { %5532 = vsyncpa [#allocation3], 1 }
 0x5cd   :  { %5533 = vsyncpa [#allocation6], 1 }
 0x5ce   :  { %5534 = vsyncpa [#allocation4], 1 }

</bundles_post_ra>
